<compile_context>
chip_gen: v7x
topology: tpu7x:2x2x1
jax: 0.10.0
libtpu: 0.0.40
codegen_flags: <defaults>
</compile_context>

<pallas_src>
import math

import jax
import jax.numpy as jnp
from jax.experimental import pallas as pl
from jax.experimental.pallas import tpu as pltpu

# ---------------- small config consistent with the module -------------------
BATCH        = 2
N_CLS        = 4          # number of classnames
N_CTX        = 2          # MaPLe context tokens
CTX_DIM      = 32         # text transformer width (ln_final width)
VIS_DIM      = 48         # vision transformer width (stands in for 768)
EMBED_DIM    = 32         # joint CLIP embedding dim
SEQ_LEN      = 8          # 1 prefix + N_CTX ctx + 5 suffix tokens
IMG_SIZE     = 16
PATCH        = 8
N_PATCH      = (IMG_SIZE // PATCH) ** 2        # 4
VIS_SEQ      = 1 + N_PATCH + N_CTX             # cls + patches + visual prompts
TXT_HEADS    = 2
VIS_HEADS    = 2
TXT_LAYERS   = 2
VIS_LAYERS   = 2
PROMPT_DEPTH = 2                               # -> 1 compound prompt / proj
DTYPE        = jnp.float32

BLOCK_ORDER = ("ln1_g", "ln1_b", "wq", "wk", "wv", "bq", "bk", "bv",
               "wo", "bo", "ln2_g", "ln2_b", "w1", "b1", "w2", "b2")


def _vmem():
    return pl.BlockSpec(memory_space=pltpu.MemorySpace.VMEM)


# --------------------------- in-kernel helpers -------------------------------
def _mm(a, b):
    return jnp.dot(a, b, preferred_element_type=jnp.float32)


def _mm_nt(a, b):
    # a (M, K) x b (N, K) -> (M, N); contraction on last dims (no explicit .T)
    return jax.lax.dot_general(a, b, (((1,), (1,)), ((), ())),
                               preferred_element_type=jnp.float32)


def _layernorm(x, g, b, eps=1e-5):
    mu = jnp.mean(x, axis=-1, keepdims=True)
    var = jnp.mean(jnp.square(x - mu), axis=-1, keepdims=True)
    return (x - mu) * jax.lax.rsqrt(var + eps) * g + b


def _residual_block(x, blk, layer, heads, mask):
    """CLIP ResidualAttentionBlock on a class/image-batched 2-D (rows, dim) slab.

    `mask` is a block-diagonal (optionally causal) additive mask that keeps
    attention within each class / image block, so all matmuls run with the
    full batched row count on the MXU.
    """
    (ln1_g, ln1_b, wq, wk, wv, bq, bk, bv, wo, bo,
     ln2_g, ln2_b, w1, b1, w2, b2) = blk
    dim = x.shape[-1]
    hd = dim // heads
    scale = 1.0 / math.sqrt(hd)

    # --- multi-head self-attention (per-head weight slabs, no lane slicing) ---
    h = _layernorm(x, ln1_g[layer], ln1_b[layer])
    attn = None
    for hh in range(heads):
        q = _mm(h, wq[layer, hh]) + bq[layer, hh]           # (rows, hd)
        k = _mm(h, wk[layer, hh]) + bk[layer, hh]
        v = _mm(h, wv[layer, hh]) + bv[layer, hh]
        s = _mm_nt(q, k) * scale + mask                     # (rows, rows)
        m = jnp.max(s, axis=-1, keepdims=True)
        p = jnp.exp(s - m)
        # approx reciprocal on the EUP path; ~1e-3 rel. err vs exact softmax.
        p = p * pl.reciprocal(jnp.sum(p, axis=-1, keepdims=True), approx=True)
        o = _mm(p, v)                                       # (rows, hd)
        contrib = _mm(o, wo[layer, hh])                     # (rows, dim)
        attn = contrib if attn is None else attn + contrib
    x = x + attn + bo[layer]

    # --- MLP with QuickGELU ---
    h = _layernorm(x, ln2_g[layer], ln2_b[layer])
    m1 = _mm(h, w1[layer]) + b1[layer]
    m1 = m1 * jax.nn.sigmoid(1.702 * m1)
    x = x + _mm(m1, w2[layer]) + b2[layer]
    return x


# ------------------------------ fused kernel ---------------------------------
def _custom_clip_kernel(*refs):
    """Prompt learner + text encoder + image encoder + logit head, one launch."""
    (txt_x0, txt_mask, deep_text, place_txt, txt_cmask, onehot_eot,
     lnf_g, lnf_b, tproj) = refs[0:9]
    txt_blk = refs[9:25]
    (patches, conv_w, conv_b, vis_base, place_patch, place_vis, vis_cmask,
     vis_mask, ln_pre_g, ln_pre_b, ctx, proj_w, proj_b, comp_w, comp_b,
     sel_cls, ln_post_g, ln_post_b, vproj) = refs[25:44]
    vis_blk = refs[44:60]
    scale_ref = refs[60]
    out_ref = refs[61]

    # ---------------- text encoder: all classes batched ----------------
    x = txt_x0[...]                                         # (N_CLS*SEQ, CTX_DIM)
    t_mask = txt_mask[...]
    t_place = place_txt[...]
    t_cmask = txt_cmask[...]
    for layer in range(TXT_LAYERS):
        if 0 < layer < PROMPT_DEPTH:                        # MaPLe deep text prompts
            inj = _mm(t_place, deep_text[layer - 1])        # zero outside ctx rows
            x = x * (1.0 - t_cmask) + inj                   # in-register splice
        x = _residual_block(x, txt_blk, layer, TXT_HEADS, t_mask)
    y = _layernorm(x, lnf_g[...], lnf_b[...])
    txt_feat = _mm(_mm(onehot_eot[...], y), tproj[...])     # EOT gather + projection
    txt_n = txt_feat * jax.lax.rsqrt(
        jnp.sum(txt_feat * txt_feat, axis=-1, keepdims=True) + 1e-12)
    txt_scaled = scale_ref[0, 0] * txt_n                    # logit_scale applied once

    # ---------------- image encoder: whole batch batched ----------------
    v_place = place_vis[...]
    v_cmask = vis_cmask[...]
    v_mask = vis_mask[...]

    shared_ctx = _mm(ctx[...], proj_w[...]) + proj_b[...]   # (N_CTX, VIS_DIM)
    pe = _mm(patches[...], conv_w[...]) + conv_b[...]       # patchify (Normalize folded)
    xv = vis_base[...] + _mm(place_patch[...], pe) + _mm(v_place, shared_ctx)
    xv = _layernorm(xv, ln_pre_g[...], ln_pre_b[...])       # ln_pre over ALL tokens
    for layer in range(VIS_LAYERS):
        if 0 < layer < PROMPT_DEPTH:                        # MaPLe deep visual prompts
            deep_vis = (_mm(deep_text[layer - 1], comp_w[layer - 1])
                        + comp_b[layer - 1])
            xv = xv * (1.0 - v_cmask) + _mm(v_place, deep_vis)
        xv = _residual_block(xv, vis_blk, layer, VIS_HEADS, v_mask)

    cls_tok = _mm(sel_cls[...], xv)                         # (B, VIS_DIM) CLS gather
    cls_tok = _layernorm(cls_tok, ln_post_g[...], ln_post_b[...])
    img = _mm(cls_tok, vproj[...])                          # (B, EMBED_DIM)
    img_n = img * jax.lax.rsqrt(
        jnp.sum(img * img, axis=-1, keepdims=True) + 1e-12)
    out_ref[...] = _mm_nt(img_n, txt_scaled).astype(out_ref.dtype)  # single store


# ------------------------ wrapper-level param prep ----------------------------
def _stack_blocks(blocks, heads):
    """Stack per-layer transformer weights; split attention weights per head."""
    d = blocks[0]["w_qkv"].shape[0]
    hd = d // heads

    def per_layer(p):
        wqkv, bqkv = p["w_qkv"], p["b_qkv"]

        def split_w(w):      # (d, d) -> (heads, d, hd): columns of head h
            return w.reshape(d, heads, hd).transpose(1, 0, 2)

        def split_b(v):      # (d,) -> (heads, 1, hd)
            return v.reshape(heads, 1, hd)

        return {
            "ln1_g": p["ln1_g"].reshape(1, d), "ln1_b": p["ln1_b"].reshape(1, d),
            "wq": split_w(wqkv[:, :d]),
            "wk": split_w(wqkv[:, d:2 * d]),
            "wv": split_w(wqkv[:, 2 * d:]),
            "bq": split_b(bqkv[:d]),
            "bk": split_b(bqkv[d:2 * d]),
            "bv": split_b(bqkv[2 * d:]),
            "wo": p["w_out"].reshape(heads, hd, d),          # rows of head h
            "bo": p["b_out"].reshape(1, d),
            "ln2_g": p["ln2_g"].reshape(1, d), "ln2_b": p["ln2_b"].reshape(1, d),
            "w1": p["w1"], "b1": p["b1"].reshape(1, -1),
            "w2": p["w2"], "b2": p["b2"].reshape(1, d),
        }

    per = [per_layer(p) for p in blocks]
    return tuple(jnp.stack([lyr[k] for lyr in per], axis=0) for k in BLOCK_ORDER)


def custom_clip_forward(params, image):
    """CustomCLIP.forward(image) — eval path, returns logits (B, n_cls)."""
    pp = params["prompt_learner"]
    tp = params["text_encoder"]
    vp = params["image_encoder"]

    txt_blk = _stack_blocks(tp["blocks"], TXT_HEADS)
    vis_blk = _stack_blocks(vp["blocks"], VIS_HEADS)

    # --- construct_prompts + positional embedding: pure layout glue ---
    ctx_exp = jnp.broadcast_to(pp["ctx"][None], (N_CLS, N_CTX, CTX_DIM))
    prompts = jnp.concatenate([pp["token_prefix"], ctx_exp, pp["token_suffix"]],
                              axis=1)                                  # (n_cls, seq, d)
    txt_x0 = (prompts + tp["pos_embed"][None]).reshape(N_CLS * SEQ_LEN, CTX_DIM)

    deep_text = jnp.stack(pp["compound_prompts_text"], axis=0)         # (depth-1, n_ctx, d)
    comp_w = jnp.stack([w for w, _ in pp["compound_proj"]], axis=0)
    comp_b = jnp.stack([b.reshape(1, -1) for _, b in pp["compound_proj"]], axis=0)

    # --- block-diag causal mask / EOT one-hot / ctx placement (text) ---
    r_t = N_CLS * SEQ_LEN
    tidx = jnp.arange(r_t)
    cls_id, pos_in = tidx // SEQ_LEN, tidx % SEQ_LEN
    txt_mask = jnp.where((cls_id[:, None] == cls_id[None, :]) &
                         (pos_in[None, :] <= pos_in[:, None]),
                         0.0, -1e9).astype(DTYPE)
    place_txt = (pos_in[:, None] == (jnp.arange(N_CTX)[None, :] + 1)).astype(DTYPE)
    txt_cmask = ((pos_in >= 1) & (pos_in < 1 + N_CTX)).astype(DTYPE)[:, None]
    eot = jnp.argmax(params["tokenized_prompts"], axis=-1)
    onehot_eot = (tidx[None, :] ==
                  (jnp.arange(N_CLS) * SEQ_LEN + eot)[:, None]).astype(DTYPE)

    # --- block-diag mask / placement one-hots (vision) ---
    r_v = BATCH * VIS_SEQ
    vidx = jnp.arange(r_v)
    img_id, tok_pos = vidx // VIS_SEQ, vidx % VIS_SEQ
    vis_mask = jnp.where(img_id[:, None] == img_id[None, :], 0.0, -1e9).astype(DTYPE)
    is_patch = (tok_pos >= 1) & (tok_pos < 1 + N_PATCH)
    patch_col = img_id * N_PATCH + (tok_pos - 1)
    place_patch = (is_patch[:, None] &
                   (patch_col[:, None] ==
                    jnp.arange(BATCH * N_PATCH)[None, :])).astype(DTYPE)
    place_vis = ((tok_pos[:, None] - 1 - N_PATCH) ==
                 jnp.arange(N_CTX)[None, :]).astype(DTYPE)
    vis_cmask = (tok_pos >= 1 + N_PATCH).astype(DTYPE)[:, None]
    sel_cls = (vidx[None, :] == (jnp.arange(BATCH) * VIS_SEQ)[:, None]).astype(DTYPE)
    base_block = jnp.concatenate(
        [vp["class_embed"].reshape(1, VIS_DIM) + vp["pos_embed"][0:1],
         vp["pos_embed"][1:],
         jnp.zeros((N_CTX, VIS_DIM), DTYPE)], axis=0)                   # (VIS_SEQ, d)
    vis_base = jnp.tile(base_block, (BATCH, 1))

    # --- fold transforms.Normalize into the patchify matmul ---
    inv_std = 1.0 / params["norm_std"]
    conv_w = vp["conv_w"]                                               # (3*p*p, vis_dim)
    conv_w_f = conv_w * jnp.repeat(inv_std, PATCH * PATCH)[:, None]
    chan_sum = conv_w.reshape(3, PATCH * PATCH, VIS_DIM).sum(axis=1)
    conv_b_f = (-jnp.dot(params["norm_mean"] * inv_std, chan_sum)).reshape(1, VIS_DIM)

    # --- patch extraction: pure layout glue on the raw image ---
    b, c, hgt, wdt = image.shape
    p = PATCH
    patches = image.reshape(b, c, hgt // p, p, wdt // p, p)
    patches = patches.transpose(0, 2, 4, 1, 3, 5).reshape(b * N_PATCH, c * p * p)

    scale = jnp.exp(params["logit_scale"]).astype(jnp.float32).reshape(1, 1)

    args = (
        # text side
        txt_x0, txt_mask, deep_text, place_txt, txt_cmask, onehot_eot,
        tp["lnf_g"].reshape(1, CTX_DIM), tp["lnf_b"].reshape(1, CTX_DIM),
        tp["text_projection"],
        *txt_blk,
        # vision side
        patches, conv_w_f, conv_b_f, vis_base, place_patch, place_vis,
        vis_cmask, vis_mask,
        vp["ln_pre_g"].reshape(1, VIS_DIM), vp["ln_pre_b"].reshape(1, VIS_DIM),
        pp["ctx"], pp["proj_w"], pp["proj_b"].reshape(1, VIS_DIM),
        comp_w, comp_b, sel_cls,
        vp["ln_post_g"].reshape(1, VIS_DIM), vp["ln_post_b"].reshape(1, VIS_DIM),
        vp["visual_proj"],
        *vis_blk,
        scale,
    )

    logits = pl.pallas_call(
        _custom_clip_kernel,
        out_shape=jax.ShapeDtypeStruct((b, N_CLS), DTYPE),
        in_specs=[_vmem()] * (len(args) - 1)
                 + [pl.BlockSpec(memory_space=pltpu.MemorySpace.SMEM)],
        out_specs=_vmem(),
    )(*args)
    return logits


# ------------------------------ parameter init --------------------------------
def _normal(key, shape, std=0.02):
    return (std * jax.random.normal(key, shape, dtype=DTYPE)).astype(DTYPE)


def _init_block(key, d):
    ks = jax.random.split(key, 4)
    return {
        "ln1_g": jnp.ones((d,), DTYPE), "ln1_b": jnp.zeros((d,), DTYPE),
        "w_qkv": _normal(ks[0], (d, 3 * d)), "b_qkv": jnp.zeros((3 * d,), DTYPE),
        "w_out": _normal(ks[1], (d, d)),     "b_out": jnp.zeros((d,), DTYPE),
        "ln2_g": jnp.ones((d,), DTYPE), "ln2_b": jnp.zeros((d,), DTYPE),
        "w1": _normal(ks[2], (d, 4 * d)),    "b1": jnp.zeros((4 * d,), DTYPE),
        "w2": _normal(ks[3], (4 * d, d)),    "b2": jnp.zeros((d,), DTYPE),
    }


def init_params(key):
    keys = jax.random.split(key, 24)
    ki = iter(keys)

    prompt_learner = {
        "ctx": _normal(next(ki), (N_CTX, CTX_DIM)),
        "proj_w": _normal(next(ki), (CTX_DIM, VIS_DIM)),
        "proj_b": jnp.zeros((VIS_DIM,), DTYPE),
        "compound_prompts_text": [_normal(next(ki), (N_CTX, CTX_DIM))
                                  for _ in range(PROMPT_DEPTH - 1)],
        "compound_proj": [(_normal(next(ki), (CTX_DIM, VIS_DIM)),
                           jnp.zeros((VIS_DIM,), DTYPE))
                          for _ in range(PROMPT_DEPTH - 1)],
        "token_prefix": _normal(next(ki), (N_CLS, 1, CTX_DIM)),
        "token_suffix": _normal(next(ki), (N_CLS, SEQ_LEN - 1 - N_CTX, CTX_DIM)),
    }

    text_enc = {
        "pos_embed": _normal(next(ki), (SEQ_LEN, CTX_DIM)),
        "blocks": [_init_block(next(ki), CTX_DIM) for _ in range(TXT_LAYERS)],
        "lnf_g": jnp.ones((CTX_DIM,), DTYPE), "lnf_b": jnp.zeros((CTX_DIM,), DTYPE),
        "text_projection": _normal(next(ki), (CTX_DIM, EMBED_DIM)),
    }

    image_enc = {
        "conv_w": _normal(next(ki), (3 * PATCH * PATCH, VIS_DIM)),
        "class_embed": _normal(next(ki), (VIS_DIM,)),
        "pos_embed": _normal(next(ki), (1 + N_PATCH, VIS_DIM)),
        "ln_pre_g": jnp.ones((VIS_DIM,), DTYPE), "ln_pre_b": jnp.zeros((VIS_DIM,), DTYPE),
        "blocks": [_init_block(next(ki), VIS_DIM) for _ in range(VIS_LAYERS)],
        "ln_post_g": jnp.ones((VIS_DIM,), DTYPE), "ln_post_b": jnp.zeros((VIS_DIM,), DTYPE),
        "visual_proj": _normal(next(ki), (VIS_DIM, EMBED_DIM)),
    }

    # tokenized prompts: argmax along seq picks the EOT position
    tok = jax.random.randint(next(ki), (N_CLS, SEQ_LEN), 1, 50)
    eot_positions = jnp.array([5, 6, 7, 6], dtype=jnp.int32)
    tok = tok.at[jnp.arange(N_CLS), eot_positions].set(999)

    return {
        "prompt_learner": prompt_learner,
        "text_encoder": text_enc,
        "image_encoder": image_enc,
        "tokenized_prompts": tok,
        "logit_scale": jnp.asarray(math.log(1.0 / 0.07), DTYPE),
        "norm_mean": jnp.asarray([0.48145466, 0.4578275, 0.40821073], DTYPE),
        "norm_std": jnp.asarray([0.26862954, 0.26130258, 0.27577711], DTYPE),
    }


# ----------------------------------- main -------------------------------------
if __name__ == "__main__":
    key = jax.random.PRNGKey(0)
    pkey, ikey = jax.random.split(key)
    params = init_params(pkey)
    image = jax.random.uniform(ikey, (BATCH, 3, IMG_SIZE, IMG_SIZE), DTYPE)

    forward = jax.jit(custom_clip_forward)
    logits = jax.block_until_ready(forward(params, image))

    assert logits.shape == (BATCH, N_CLS), logits.shape
    assert bool(jnp.all(jnp.isfinite(logits)))
    print("KERNEL_OK")
</pallas_src>

<mosaic_0001>
module attributes {stable_mosaic.version = 11 : i64} {
  func.func @_custom_clip_kernel(%arg0: memref<32x32xf32, #tpu.memory_space<vmem>>, %arg1: memref<32x32xf32, #tpu.memory_space<vmem>>, %arg2: memref<1x2x32xf32, #tpu.memory_space<vmem>>, %arg3: memref<32x2xf32, #tpu.memory_space<vmem>>, %arg4: memref<32x1xf32, #tpu.memory_space<vmem>>, %arg5: memref<4x32xf32, #tpu.memory_space<vmem>>, %arg6: memref<1x32xf32, #tpu.memory_space<vmem>>, %arg7: memref<1x32xf32, #tpu.memory_space<vmem>>, %arg8: memref<32x32xf32, #tpu.memory_space<vmem>>, %arg9: memref<2x1x32xf32, #tpu.memory_space<vmem>>, %arg10: memref<2x1x32xf32, #tpu.memory_space<vmem>>, %arg11: memref<2x2x32x16xf32, #tpu.memory_space<vmem>>, %arg12: memref<2x2x32x16xf32, #tpu.memory_space<vmem>>, %arg13: memref<2x2x32x16xf32, #tpu.memory_space<vmem>>, %arg14: memref<2x2x1x16xf32, #tpu.memory_space<vmem>>, %arg15: memref<2x2x1x16xf32, #tpu.memory_space<vmem>>, %arg16: memref<2x2x1x16xf32, #tpu.memory_space<vmem>>, %arg17: memref<2x2x16x32xf32, #tpu.memory_space<vmem>>, %arg18: memref<2x1x32xf32, #tpu.memory_space<vmem>>, %arg19: memref<2x1x32xf32, #tpu.memory_space<vmem>>, %arg20: memref<2x1x32xf32, #tpu.memory_space<vmem>>, %arg21: memref<2x32x128xf32, #tpu.memory_space<vmem>>, %arg22: memref<2x1x128xf32, #tpu.memory_space<vmem>>, %arg23: memref<2x128x32xf32, #tpu.memory_space<vmem>>, %arg24: memref<2x1x32xf32, #tpu.memory_space<vmem>>, %arg25: memref<8x192xf32, #tpu.memory_space<vmem>>, %arg26: memref<192x48xf32, #tpu.memory_space<vmem>>, %arg27: memref<1x48xf32, #tpu.memory_space<vmem>>, %arg28: memref<14x48xf32, #tpu.memory_space<vmem>>, %arg29: memref<14x8xf32, #tpu.memory_space<vmem>>, %arg30: memref<14x2xf32, #tpu.memory_space<vmem>>, %arg31: memref<14x1xf32, #tpu.memory_space<vmem>>, %arg32: memref<14x14xf32, #tpu.memory_space<vmem>>, %arg33: memref<1x48xf32, #tpu.memory_space<vmem>>, %arg34: memref<1x48xf32, #tpu.memory_space<vmem>>, %arg35: memref<2x32xf32, #tpu.memory_space<vmem>>, %arg36: memref<32x48xf32, #tpu.memory_space<vmem>>, %arg37: memref<1x48xf32, #tpu.memory_space<vmem>>, %arg38: memref<1x32x48xf32, #tpu.memory_space<vmem>>, %arg39: memref<1x1x48xf32, #tpu.memory_space<vmem>>, %arg40: memref<2x14xf32, #tpu.memory_space<vmem>>, %arg41: memref<1x48xf32, #tpu.memory_space<vmem>>, %arg42: memref<1x48xf32, #tpu.memory_space<vmem>>, %arg43: memref<48x32xf32, #tpu.memory_space<vmem>>, %arg44: memref<2x1x48xf32, #tpu.memory_space<vmem>>, %arg45: memref<2x1x48xf32, #tpu.memory_space<vmem>>, %arg46: memref<2x2x48x24xf32, #tpu.memory_space<vmem>>, %arg47: memref<2x2x48x24xf32, #tpu.memory_space<vmem>>, %arg48: memref<2x2x48x24xf32, #tpu.memory_space<vmem>>, %arg49: memref<2x2x1x24xf32, #tpu.memory_space<vmem>>, %arg50: memref<2x2x1x24xf32, #tpu.memory_space<vmem>>, %arg51: memref<2x2x1x24xf32, #tpu.memory_space<vmem>>, %arg52: memref<2x2x24x48xf32, #tpu.memory_space<vmem>>, %arg53: memref<2x1x48xf32, #tpu.memory_space<vmem>>, %arg54: memref<2x1x48xf32, #tpu.memory_space<vmem>>, %arg55: memref<2x1x48xf32, #tpu.memory_space<vmem>>, %arg56: memref<2x48x192xf32, #tpu.memory_space<vmem>>, %arg57: memref<2x1x192xf32, #tpu.memory_space<vmem>>, %arg58: memref<2x192x48xf32, #tpu.memory_space<vmem>>, %arg59: memref<2x1x48xf32, #tpu.memory_space<vmem>>, %arg60: memref<1x1xf32, #tpu.memory_space<smem>>, %arg61: memref<2x4xf32, #tpu.memory_space<vmem>>) attributes {dimension_semantics = [], scalar_prefetch = 0 : i64, scratch_operands = 0 : i64, tpu.core_type = #tpu.core_type<tc>} {
    %c0 = arith.constant 0 : index
    %c0_0 = arith.constant 0 : index
    %0 = vector.load %arg0[%c0, %c0_0] : memref<32x32xf32, #tpu.memory_space<vmem>>, vector<32x32xf32>
    %c0_1 = arith.constant 0 : index
    %c0_2 = arith.constant 0 : index
    %1 = vector.load %arg1[%c0_1, %c0_2] : memref<32x32xf32, #tpu.memory_space<vmem>>, vector<32x32xf32>
    %c0_3 = arith.constant 0 : index
    %c0_4 = arith.constant 0 : index
    %2 = vector.load %arg3[%c0_3, %c0_4] : memref<32x2xf32, #tpu.memory_space<vmem>>, vector<32x2xf32>
    %c0_5 = arith.constant 0 : index
    %c0_6 = arith.constant 0 : index
    %3 = vector.load %arg4[%c0_5, %c0_6] : memref<32x1xf32, #tpu.memory_space<vmem>>, vector<32x1xf32>
    %c0_7 = arith.constant 0 : index
    %c0_8 = arith.constant 0 : index
    %c0_9 = arith.constant 0 : index
    %4 = vector.load %arg9[%c0_7, %c0_8, %c0_9] : memref<2x1x32xf32, #tpu.memory_space<vmem>>, vector<1x1x32xf32>
    %5 = vector.shape_cast %4 : vector<1x1x32xf32> to vector<1x32xf32>
    %c0_10 = arith.constant 0 : index
    %c0_11 = arith.constant 0 : index
    %c0_12 = arith.constant 0 : index
    %6 = vector.load %arg10[%c0_10, %c0_11, %c0_12] : memref<2x1x32xf32, #tpu.memory_space<vmem>>, vector<1x1x32xf32>
    %7 = vector.shape_cast %6 : vector<1x1x32xf32> to vector<1x32xf32>
    %cst = arith.constant dense<0.000000e+00> : vector<32xf32>
    %8 = vector.multi_reduction <add>, %0, %cst [1] : vector<32x32xf32> to vector<32xf32>
    %9 = vector.shape_cast %8 : vector<32xf32> to vector<32x1xf32>
    %cst_13 = arith.constant 3.200000e+01 : f32
    %10 = vector.broadcast %cst_13 : f32 to vector<32x1xf32>
    %11 = arith.divf %9, %10 : vector<32x1xf32>
    %12 = vector.broadcast %11 : vector<32x1xf32> to vector<32x32xf32>
    %13 = arith.subf %0, %12 : vector<32x32xf32>
    %14 = arith.mulf %13, %13 : vector<32x32xf32>
    %cst_14 = arith.constant dense<0.000000e+00> : vector<32xf32>
    %15 = vector.multi_reduction <add>, %14, %cst_14 [1] : vector<32x32xf32> to vector<32xf32>
    %16 = vector.shape_cast %15 : vector<32xf32> to vector<32x1xf32>
    %cst_15 = arith.constant 3.200000e+01 : f32
    %17 = vector.broadcast %cst_15 : f32 to vector<32x1xf32>
    %18 = arith.divf %16, %17 : vector<32x1xf32>
    %19 = vector.broadcast %11 : vector<32x1xf32> to vector<32x32xf32>
    %20 = arith.subf %0, %19 : vector<32x32xf32>
    %cst_16 = arith.constant 9.99999974E-6 : f32
    %21 = vector.broadcast %cst_16 : f32 to vector<32x1xf32>
    %22 = arith.addf %18, %21 : vector<32x1xf32>
    %23 = math.rsqrt %22 : vector<32x1xf32>
    %24 = vector.broadcast %23 : vector<32x1xf32> to vector<32x32xf32>
    %25 = arith.mulf %20, %24 : vector<32x32xf32>
    %26 = vector.broadcast %5 : vector<1x32xf32> to vector<32x32xf32>
    %27 = arith.mulf %25, %26 : vector<32x32xf32>
    %28 = vector.broadcast %7 : vector<1x32xf32> to vector<32x32xf32>
    %29 = arith.addf %27, %28 : vector<32x32xf32>
    %c0_17 = arith.constant 0 : index
    %c0_18 = arith.constant 0 : index
    %c0_19 = arith.constant 0 : index
    %c0_20 = arith.constant 0 : index
    %30 = vector.load %arg11[%c0_17, %c0_18, %c0_19, %c0_20] : memref<2x2x32x16xf32, #tpu.memory_space<vmem>>, vector<1x1x32x16xf32>
    %31 = vector.shape_cast %30 : vector<1x1x32x16xf32> to vector<32x16xf32>
    %cst_21 = arith.constant dense<0.000000e+00> : vector<32x16xf32>
    %32 = tpu.matmul %29, %31, %cst_21 {dimension_numbers = #tpu.dot_dimension_numbers<[1], [0], [0], [1], [0, 0, 1, 1], [], []>} : vector<32x32xf32>, vector<32x16xf32>, vector<32x16xf32> -> vector<32x16xf32>
    %c0_22 = arith.constant 0 : index
    %c0_23 = arith.constant 0 : index
    %c0_24 = arith.constant 0 : index
    %c0_25 = arith.constant 0 : index
    %33 = vector.load %arg14[%c0_22, %c0_23, %c0_24, %c0_25] : memref<2x2x1x16xf32, #tpu.memory_space<vmem>>, vector<1x1x1x16xf32>
    %34 = vector.shape_cast %33 : vector<1x1x1x16xf32> to vector<1x16xf32>
    %35 = vector.broadcast %34 : vector<1x16xf32> to vector<32x16xf32>
    %36 = arith.addf %32, %35 : vector<32x16xf32>
    %c0_26 = arith.constant 0 : index
    %c0_27 = arith.constant 0 : index
    %c0_28 = arith.constant 0 : index
    %c0_29 = arith.constant 0 : index
    %37 = vector.load %arg12[%c0_26, %c0_27, %c0_28, %c0_29] : memref<2x2x32x16xf32, #tpu.memory_space<vmem>>, vector<1x1x32x16xf32>
    %38 = vector.shape_cast %37 : vector<1x1x32x16xf32> to vector<32x16xf32>
    %cst_30 = arith.constant dense<0.000000e+00> : vector<32x16xf32>
    %39 = tpu.matmul %29, %38, %cst_30 {dimension_numbers = #tpu.dot_dimension_numbers<[1], [0], [0], [1], [0, 0, 1, 1], [], []>} : vector<32x32xf32>, vector<32x16xf32>, vector<32x16xf32> -> vector<32x16xf32>
    %c0_31 = arith.constant 0 : index
    %c0_32 = arith.constant 0 : index
    %c0_33 = arith.constant 0 : index
    %c0_34 = arith.constant 0 : index
    %40 = vector.load %arg15[%c0_31, %c0_32, %c0_33, %c0_34] : memref<2x2x1x16xf32, #tpu.memory_space<vmem>>, vector<1x1x1x16xf32>
    %41 = vector.shape_cast %40 : vector<1x1x1x16xf32> to vector<1x16xf32>
    %42 = vector.broadcast %41 : vector<1x16xf32> to vector<32x16xf32>
    %43 = arith.addf %39, %42 : vector<32x16xf32>
    %c0_35 = arith.constant 0 : index
    %c0_36 = arith.constant 0 : index
    %c0_37 = arith.constant 0 : index
    %c0_38 = arith.constant 0 : index
    %44 = vector.load %arg13[%c0_35, %c0_36, %c0_37, %c0_38] : memref<2x2x32x16xf32, #tpu.memory_space<vmem>>, vector<1x1x32x16xf32>
    %45 = vector.shape_cast %44 : vector<1x1x32x16xf32> to vector<32x16xf32>
    %cst_39 = arith.constant dense<0.000000e+00> : vector<32x16xf32>
    %46 = tpu.matmul %29, %45, %cst_39 {dimension_numbers = #tpu.dot_dimension_numbers<[1], [0], [0], [1], [0, 0, 1, 1], [], []>} : vector<32x32xf32>, vector<32x16xf32>, vector<32x16xf32> -> vector<32x16xf32>
    %c0_40 = arith.constant 0 : index
    %c0_41 = arith.constant 0 : index
    %c0_42 = arith.constant 0 : index
    %c0_43 = arith.constant 0 : index
    %47 = vector.load %arg16[%c0_40, %c0_41, %c0_42, %c0_43] : memref<2x2x1x16xf32, #tpu.memory_space<vmem>>, vector<1x1x1x16xf32>
    %48 = vector.shape_cast %47 : vector<1x1x1x16xf32> to vector<1x16xf32>
    %49 = vector.broadcast %48 : vector<1x16xf32> to vector<32x16xf32>
    %50 = arith.addf %46, %49 : vector<32x16xf32>
    %cst_44 = arith.constant dense<0.000000e+00> : vector<32x32xf32>
    %51 = tpu.matmul %36, %43, %cst_44 {dimension_numbers = #tpu.dot_dimension_numbers<[1], [1], [0], [0], [0, 0, 1, 0], [], []>} : vector<32x16xf32>, vector<32x16xf32>, vector<32x32xf32> -> vector<32x32xf32>
    %cst_45 = arith.constant 2.500000e-01 : f32
    %52 = vector.broadcast %cst_45 : f32 to vector<32x32xf32>
    %53 = arith.mulf %51, %52 : vector<32x32xf32>
    %54 = arith.addf %53, %1 : vector<32x32xf32>
    %cst_46 = arith.constant dense<0xFF800000> : vector<32xf32>
    %55 = vector.multi_reduction <maximumf>, %54, %cst_46 [1] : vector<32x32xf32> to vector<32xf32>
    %56 = vector.shape_cast %55 : vector<32xf32> to vector<32x1xf32>
    %57 = vector.broadcast %56 : vector<32x1xf32> to vector<32x32xf32>
    %58 = arith.subf %54, %57 : vector<32x32xf32>
    %59 = math.exp %58 : vector<32x32xf32>
    %cst_47 = arith.constant dense<0.000000e+00> : vector<32xf32>
    %60 = vector.multi_reduction <add>, %59, %cst_47 [1] : vector<32x32xf32> to vector<32xf32>
    %61 = vector.shape_cast %60 : vector<32xf32> to vector<32x1xf32>
    %62 = tpu.reciprocal %61 {approx = true} : vector<32x1xf32> -> vector<32x1xf32>
    %63 = vector.broadcast %62 : vector<32x1xf32> to vector<32x32xf32>
    %64 = arith.mulf %59, %63 : vector<32x32xf32>
    %cst_48 = arith.constant dense<0.000000e+00> : vector<32x16xf32>
    %65 = tpu.matmul %64, %50, %cst_48 {dimension_numbers = #tpu.dot_dimension_numbers<[1], [0], [0], [1], [0, 0, 1, 1], [], []>} : vector<32x32xf32>, vector<32x16xf32>, vector<32x16xf32> -> vector<32x16xf32>
    %c0_49 = arith.constant 0 : index
    %c0_50 = arith.constant 0 : index
    %c0_51 = arith.constant 0 : index
    %c0_52 = arith.constant 0 : index
    %66 = vector.load %arg17[%c0_49, %c0_50, %c0_51, %c0_52] : memref<2x2x16x32xf32, #tpu.memory_space<vmem>>, vector<1x1x16x32xf32>
    %67 = vector.shape_cast %66 : vector<1x1x16x32xf32> to vector<16x32xf32>
    %cst_53 = arith.constant dense<0.000000e+00> : vector<32x32xf32>
    %68 = tpu.matmul %65, %67, %cst_53 {dimension_numbers = #tpu.dot_dimension_numbers<[1], [0], [0], [1], [0, 0, 1, 1], [], []>} : vector<32x16xf32>, vector<16x32xf32>, vector<32x32xf32> -> vector<32x32xf32>
    %c0_54 = arith.constant 0 : index
    %c1 = arith.constant 1 : index
    %c0_55 = arith.constant 0 : index
    %c0_56 = arith.constant 0 : index
    %69 = vector.load %arg11[%c0_54, %c1, %c0_55, %c0_56] : memref<2x2x32x16xf32, #tpu.memory_space<vmem>>, vector<1x1x32x16xf32>
    %70 = vector.shape_cast %69 : vector<1x1x32x16xf32> to vector<32x16xf32>
    %cst_57 = arith.constant dense<0.000000e+00> : vector<32x16xf32>
    %71 = tpu.matmul %29, %70, %cst_57 {dimension_numbers = #tpu.dot_dimension_numbers<[1], [0], [0], [1], [0, 0, 1, 1], [], []>} : vector<32x32xf32>, vector<32x16xf32>, vector<32x16xf32> -> vector<32x16xf32>
    %c0_58 = arith.constant 0 : index
    %c1_59 = arith.constant 1 : index
    %c0_60 = arith.constant 0 : index
    %c0_61 = arith.constant 0 : index
    %72 = vector.load %arg14[%c0_58, %c1_59, %c0_60, %c0_61] : memref<2x2x1x16xf32, #tpu.memory_space<vmem>>, vector<1x1x1x16xf32>
    %73 = vector.shape_cast %72 : vector<1x1x1x16xf32> to vector<1x16xf32>
    %74 = vector.broadcast %73 : vector<1x16xf32> to vector<32x16xf32>
    %75 = arith.addf %71, %74 : vector<32x16xf32>
    %c0_62 = arith.constant 0 : index
    %c1_63 = arith.constant 1 : index
    %c0_64 = arith.constant 0 : index
    %c0_65 = arith.constant 0 : index
    %76 = vector.load %arg12[%c0_62, %c1_63, %c0_64, %c0_65] : memref<2x2x32x16xf32, #tpu.memory_space<vmem>>, vector<1x1x32x16xf32>
    %77 = vector.shape_cast %76 : vector<1x1x32x16xf32> to vector<32x16xf32>
    %cst_66 = arith.constant dense<0.000000e+00> : vector<32x16xf32>
    %78 = tpu.matmul %29, %77, %cst_66 {dimension_numbers = #tpu.dot_dimension_numbers<[1], [0], [0], [1], [0, 0, 1, 1], [], []>} : vector<32x32xf32>, vector<32x16xf32>, vector<32x16xf32> -> vector<32x16xf32>
    %c0_67 = arith.constant 0 : index
    %c1_68 = arith.constant 1 : index
    %c0_69 = arith.constant 0 : index
    %c0_70 = arith.constant 0 : index
    %79 = vector.load %arg15[%c0_67, %c1_68, %c0_69, %c0_70] : memref<2x2x1x16xf32, #tpu.memory_space<vmem>>, vector<1x1x1x16xf32>
    %80 = vector.shape_cast %79 : vector<1x1x1x16xf32> to vector<1x16xf32>
    %81 = vector.broadcast %80 : vector<1x16xf32> to vector<32x16xf32>
    %82 = arith.addf %78, %81 : vector<32x16xf32>
    %c0_71 = arith.constant 0 : index
    %c1_72 = arith.constant 1 : index
    %c0_73 = arith.constant 0 : index
    %c0_74 = arith.constant 0 : index
    %83 = vector.load %arg13[%c0_71, %c1_72, %c0_73, %c0_74] : memref<2x2x32x16xf32, #tpu.memory_space<vmem>>, vector<1x1x32x16xf32>
    %84 = vector.shape_cast %83 : vector<1x1x32x16xf32> to vector<32x16xf32>
    %cst_75 = arith.constant dense<0.000000e+00> : vector<32x16xf32>
    %85 = tpu.matmul %29, %84, %cst_75 {dimension_numbers = #tpu.dot_dimension_numbers<[1], [0], [0], [1], [0, 0, 1, 1], [], []>} : vector<32x32xf32>, vector<32x16xf32>, vector<32x16xf32> -> vector<32x16xf32>
    %c0_76 = arith.constant 0 : index
    %c1_77 = arith.constant 1 : index
    %c0_78 = arith.constant 0 : index
    %c0_79 = arith.constant 0 : index
    %86 = vector.load %arg16[%c0_76, %c1_77, %c0_78, %c0_79] : memref<2x2x1x16xf32, #tpu.memory_space<vmem>>, vector<1x1x1x16xf32>
    %87 = vector.shape_cast %86 : vector<1x1x1x16xf32> to vector<1x16xf32>
    %88 = vector.broadcast %87 : vector<1x16xf32> to vector<32x16xf32>
    %89 = arith.addf %85, %88 : vector<32x16xf32>
    %cst_80 = arith.constant dense<0.000000e+00> : vector<32x32xf32>
    %90 = tpu.matmul %75, %82, %cst_80 {dimension_numbers = #tpu.dot_dimension_numbers<[1], [1], [0], [0], [0, 0, 1, 0], [], []>} : vector<32x16xf32>, vector<32x16xf32>, vector<32x32xf32> -> vector<32x32xf32>
    %cst_81 = arith.constant 2.500000e-01 : f32
    %91 = vector.broadcast %cst_81 : f32 to vector<32x32xf32>
    %92 = arith.mulf %90, %91 : vector<32x32xf32>
    %93 = arith.addf %92, %1 : vector<32x32xf32>
    %cst_82 = arith.constant dense<0xFF800000> : vector<32xf32>
    %94 = vector.multi_reduction <maximumf>, %93, %cst_82 [1] : vector<32x32xf32> to vector<32xf32>
    %95 = vector.shape_cast %94 : vector<32xf32> to vector<32x1xf32>
    %96 = vector.broadcast %95 : vector<32x1xf32> to vector<32x32xf32>
    %97 = arith.subf %93, %96 : vector<32x32xf32>
    %98 = math.exp %97 : vector<32x32xf32>
    %cst_83 = arith.constant dense<0.000000e+00> : vector<32xf32>
    %99 = vector.multi_reduction <add>, %98, %cst_83 [1] : vector<32x32xf32> to vector<32xf32>
    %100 = vector.shape_cast %99 : vector<32xf32> to vector<32x1xf32>
    %101 = tpu.reciprocal %100 {approx = true} : vector<32x1xf32> -> vector<32x1xf32>
    %102 = vector.broadcast %101 : vector<32x1xf32> to vector<32x32xf32>
    %103 = arith.mulf %98, %102 : vector<32x32xf32>
    %cst_84 = arith.constant dense<0.000000e+00> : vector<32x16xf32>
    %104 = tpu.matmul %103, %89, %cst_84 {dimension_numbers = #tpu.dot_dimension_numbers<[1], [0], [0], [1], [0, 0, 1, 1], [], []>} : vector<32x32xf32>, vector<32x16xf32>, vector<32x16xf32> -> vector<32x16xf32>
    %c0_85 = arith.constant 0 : index
    %c1_86 = arith.constant 1 : index
    %c0_87 = arith.constant 0 : index
    %c0_88 = arith.constant 0 : index
    %105 = vector.load %arg17[%c0_85, %c1_86, %c0_87, %c0_88] : memref<2x2x16x32xf32, #tpu.memory_space<vmem>>, vector<1x1x16x32xf32>
    %106 = vector.shape_cast %105 : vector<1x1x16x32xf32> to vector<16x32xf32>
    %cst_89 = arith.constant dense<0.000000e+00> : vector<32x32xf32>
    %107 = tpu.matmul %104, %106, %cst_89 {dimension_numbers = #tpu.dot_dimension_numbers<[1], [0], [0], [1], [0, 0, 1, 1], [], []>} : vector<32x16xf32>, vector<16x32xf32>, vector<32x32xf32> -> vector<32x32xf32>
    %108 = arith.addf %68, %107 : vector<32x32xf32>
    %109 = arith.addf %0, %108 : vector<32x32xf32>
    %c0_90 = arith.constant 0 : index
    %c0_91 = arith.constant 0 : index
    %c0_92 = arith.constant 0 : index
    %110 = vector.load %arg18[%c0_90, %c0_91, %c0_92] : memref<2x1x32xf32, #tpu.memory_space<vmem>>, vector<1x1x32xf32>
    %111 = vector.shape_cast %110 : vector<1x1x32xf32> to vector<1x32xf32>
    %112 = vector.broadcast %111 : vector<1x32xf32> to vector<32x32xf32>
    %113 = arith.addf %109, %112 : vector<32x32xf32>
    %c0_93 = arith.constant 0 : index
    %c0_94 = arith.constant 0 : index
    %c0_95 = arith.constant 0 : index
    %114 = vector.load %arg19[%c0_93, %c0_94, %c0_95] : memref<2x1x32xf32, #tpu.memory_space<vmem>>, vector<1x1x32xf32>
    %115 = vector.shape_cast %114 : vector<1x1x32xf32> to vector<1x32xf32>
    %c0_96 = arith.constant 0 : index
    %c0_97 = arith.constant 0 : index
    %c0_98 = arith.constant 0 : index
    %116 = vector.load %arg20[%c0_96, %c0_97, %c0_98] : memref<2x1x32xf32, #tpu.memory_space<vmem>>, vector<1x1x32xf32>
    %117 = vector.shape_cast %116 : vector<1x1x32xf32> to vector<1x32xf32>
    %cst_99 = arith.constant dense<0.000000e+00> : vector<32xf32>
    %118 = vector.multi_reduction <add>, %113, %cst_99 [1] : vector<32x32xf32> to vector<32xf32>
    %119 = vector.shape_cast %118 : vector<32xf32> to vector<32x1xf32>
    %cst_100 = arith.constant 3.200000e+01 : f32
    %120 = vector.broadcast %cst_100 : f32 to vector<32x1xf32>
    %121 = arith.divf %119, %120 : vector<32x1xf32>
    %122 = vector.broadcast %121 : vector<32x1xf32> to vector<32x32xf32>
    %123 = arith.subf %113, %122 : vector<32x32xf32>
    %124 = arith.mulf %123, %123 : vector<32x32xf32>
    %cst_101 = arith.constant dense<0.000000e+00> : vector<32xf32>
    %125 = vector.multi_reduction <add>, %124, %cst_101 [1] : vector<32x32xf32> to vector<32xf32>
    %126 = vector.shape_cast %125 : vector<32xf32> to vector<32x1xf32>
    %cst_102 = arith.constant 3.200000e+01 : f32
    %127 = vector.broadcast %cst_102 : f32 to vector<32x1xf32>
    %128 = arith.divf %126, %127 : vector<32x1xf32>
    %129 = vector.broadcast %121 : vector<32x1xf32> to vector<32x32xf32>
    %130 = arith.subf %113, %129 : vector<32x32xf32>
    %cst_103 = arith.constant 9.99999974E-6 : f32
    %131 = vector.broadcast %cst_103 : f32 to vector<32x1xf32>
    %132 = arith.addf %128, %131 : vector<32x1xf32>
    %133 = math.rsqrt %132 : vector<32x1xf32>
    %134 = vector.broadcast %133 : vector<32x1xf32> to vector<32x32xf32>
    %135 = arith.mulf %130, %134 : vector<32x32xf32>
    %136 = vector.broadcast %115 : vector<1x32xf32> to vector<32x32xf32>
    %137 = arith.mulf %135, %136 : vector<32x32xf32>
    %138 = vector.broadcast %117 : vector<1x32xf32> to vector<32x32xf32>
    %139 = arith.addf %137, %138 : vector<32x32xf32>
    %c0_104 = arith.constant 0 : index
    %c0_105 = arith.constant 0 : index
    %c0_106 = arith.constant 0 : index
    %140 = vector.load %arg21[%c0_104, %c0_105, %c0_106] : memref<2x32x128xf32, #tpu.memory_space<vmem>>, vector<1x32x128xf32>
    %141 = vector.shape_cast %140 : vector<1x32x128xf32> to vector<32x128xf32>
    %cst_107 = arith.constant dense<0.000000e+00> : vector<32x128xf32>
    %142 = tpu.matmul %139, %141, %cst_107 {dimension_numbers = #tpu.dot_dimension_numbers<[1], [0], [0], [1], [0, 0, 1, 1], [], []>} : vector<32x32xf32>, vector<32x128xf32>, vector<32x128xf32> -> vector<32x128xf32>
    %c0_108 = arith.constant 0 : index
    %c0_109 = arith.constant 0 : index
    %c0_110 = arith.constant 0 : index
    %143 = vector.load %arg22[%c0_108, %c0_109, %c0_110] : memref<2x1x128xf32, #tpu.memory_space<vmem>>, vector<1x1x128xf32>
    %144 = vector.shape_cast %143 : vector<1x1x128xf32> to vector<1x128xf32>
    %145 = vector.broadcast %144 : vector<1x128xf32> to vector<32x128xf32>
    %146 = arith.addf %142, %145 : vector<32x128xf32>
    %cst_111 = arith.constant 1.702000e+00 : f32
    %147 = vector.broadcast %cst_111 : f32 to vector<32x128xf32>
    %148 = arith.mulf %147, %146 : vector<32x128xf32>
    %149 = arith.negf %148 : vector<32x128xf32>
    %150 = math.exp %149 : vector<32x128xf32>
    %cst_112 = arith.constant 1.000000e+00 : f32
    %151 = vector.broadcast %cst_112 : f32 to vector<32x128xf32>
    %152 = arith.addf %151, %150 : vector<32x128xf32>
    %153 = arith.divf %151, %152 : vector<32x128xf32>
    %154 = arith.mulf %146, %153 : vector<32x128xf32>
    %c0_113 = arith.constant 0 : index
    %c0_114 = arith.constant 0 : index
    %c0_115 = arith.constant 0 : index
    %155 = vector.load %arg23[%c0_113, %c0_114, %c0_115] : memref<2x128x32xf32, #tpu.memory_space<vmem>>, vector<1x128x32xf32>
    %156 = vector.shape_cast %155 : vector<1x128x32xf32> to vector<128x32xf32>
    %cst_116 = arith.constant dense<0.000000e+00> : vector<32x32xf32>
    %157 = tpu.matmul %154, %156, %cst_116 {dimension_numbers = #tpu.dot_dimension_numbers<[1], [0], [0], [1], [0, 0, 1, 1], [], []>} : vector<32x128xf32>, vector<128x32xf32>, vector<32x32xf32> -> vector<32x32xf32>
    %158 = arith.addf %113, %157 : vector<32x32xf32>
    %c0_117 = arith.constant 0 : index
    %c0_118 = arith.constant 0 : index
    %c0_119 = arith.constant 0 : index
    %159 = vector.load %arg24[%c0_117, %c0_118, %c0_119] : memref<2x1x32xf32, #tpu.memory_space<vmem>>, vector<1x1x32xf32>
    %160 = vector.shape_cast %159 : vector<1x1x32xf32> to vector<1x32xf32>
    %161 = vector.broadcast %160 : vector<1x32xf32> to vector<32x32xf32>
    %162 = arith.addf %158, %161 : vector<32x32xf32>
    %c0_120 = arith.constant 0 : index
    %c0_121 = arith.constant 0 : index
    %c0_122 = arith.constant 0 : index
    %163 = vector.load %arg2[%c0_120, %c0_121, %c0_122] : memref<1x2x32xf32, #tpu.memory_space<vmem>>, vector<1x2x32xf32>
    %164 = vector.shape_cast %163 : vector<1x2x32xf32> to vector<2x32xf32>
    %cst_123 = arith.constant dense<0.000000e+00> : vector<32x32xf32>
    %165 = tpu.matmul %2, %164, %cst_123 {dimension_numbers = #tpu.dot_dimension_numbers<[1], [0], [0], [1], [0, 0, 1, 1], [], []>} : vector<32x2xf32>, vector<2x32xf32>, vector<32x32xf32> -> vector<32x32xf32>
    %cst_124 = arith.constant 1.000000e+00 : f32
    %166 = vector.broadcast %cst_124 : f32 to vector<32x1xf32>
    %167 = arith.subf %166, %3 : vector<32x1xf32>
    %168 = vector.broadcast %167 : vector<32x1xf32> to vector<32x32xf32>
    %169 = arith.mulf %162, %168 : vector<32x32xf32>
    %170 = arith.addf %169, %165 : vector<32x32xf32>
    %c1_125 = arith.constant 1 : index
    %c0_126 = arith.constant 0 : index
    %c0_127 = arith.constant 0 : index
    %171 = vector.load %arg9[%c1_125, %c0_126, %c0_127] : memref<2x1x32xf32, #tpu.memory_space<vmem>>, vector<1x1x32xf32>
    %172 = vector.shape_cast %171 : vector<1x1x32xf32> to vector<1x32xf32>
    %c1_128 = arith.constant 1 : index
    %c0_129 = arith.constant 0 : index
    %c0_130 = arith.constant 0 : index
    %173 = vector.load %arg10[%c1_128, %c0_129, %c0_130] : memref<2x1x32xf32, #tpu.memory_space<vmem>>, vector<1x1x32xf32>
    %174 = vector.shape_cast %173 : vector<1x1x32xf32> to vector<1x32xf32>
    %cst_131 = arith.constant dense<0.000000e+00> : vector<32xf32>
    %175 = vector.multi_reduction <add>, %170, %cst_131 [1] : vector<32x32xf32> to vector<32xf32>
    %176 = vector.shape_cast %175 : vector<32xf32> to vector<32x1xf32>
    %cst_132 = arith.constant 3.200000e+01 : f32
    %177 = vector.broadcast %cst_132 : f32 to vector<32x1xf32>
    %178 = arith.divf %176, %177 : vector<32x1xf32>
    %179 = vector.broadcast %178 : vector<32x1xf32> to vector<32x32xf32>
    %180 = arith.subf %170, %179 : vector<32x32xf32>
    %181 = arith.mulf %180, %180 : vector<32x32xf32>
    %cst_133 = arith.constant dense<0.000000e+00> : vector<32xf32>
    %182 = vector.multi_reduction <add>, %181, %cst_133 [1] : vector<32x32xf32> to vector<32xf32>
    %183 = vector.shape_cast %182 : vector<32xf32> to vector<32x1xf32>
    %cst_134 = arith.constant 3.200000e+01 : f32
    %184 = vector.broadcast %cst_134 : f32 to vector<32x1xf32>
    %185 = arith.divf %183, %184 : vector<32x1xf32>
    %186 = vector.broadcast %178 : vector<32x1xf32> to vector<32x32xf32>
    %187 = arith.subf %170, %186 : vector<32x32xf32>
    %cst_135 = arith.constant 9.99999974E-6 : f32
    %188 = vector.broadcast %cst_135 : f32 to vector<32x1xf32>
    %189 = arith.addf %185, %188 : vector<32x1xf32>
    %190 = math.rsqrt %189 : vector<32x1xf32>
    %191 = vector.broadcast %190 : vector<32x1xf32> to vector<32x32xf32>
    %192 = arith.mulf %187, %191 : vector<32x32xf32>
    %193 = vector.broadcast %172 : vector<1x32xf32> to vector<32x32xf32>
    %194 = arith.mulf %192, %193 : vector<32x32xf32>
    %195 = vector.broadcast %174 : vector<1x32xf32> to vector<32x32xf32>
    %196 = arith.addf %194, %195 : vector<32x32xf32>
    %c1_136 = arith.constant 1 : index
    %c0_137 = arith.constant 0 : index
    %c0_138 = arith.constant 0 : index
    %c0_139 = arith.constant 0 : index
    %197 = vector.load %arg11[%c1_136, %c0_137, %c0_138, %c0_139] : memref<2x2x32x16xf32, #tpu.memory_space<vmem>>, vector<1x1x32x16xf32>
    %198 = vector.shape_cast %197 : vector<1x1x32x16xf32> to vector<32x16xf32>
    %cst_140 = arith.constant dense<0.000000e+00> : vector<32x16xf32>
    %199 = tpu.matmul %196, %198, %cst_140 {dimension_numbers = #tpu.dot_dimension_numbers<[1], [0], [0], [1], [0, 0, 1, 1], [], []>} : vector<32x32xf32>, vector<32x16xf32>, vector<32x16xf32> -> vector<32x16xf32>
    %c1_141 = arith.constant 1 : index
    %c0_142 = arith.constant 0 : index
    %c0_143 = arith.constant 0 : index
    %c0_144 = arith.constant 0 : index
    %200 = vector.load %arg14[%c1_141, %c0_142, %c0_143, %c0_144] : memref<2x2x1x16xf32, #tpu.memory_space<vmem>>, vector<1x1x1x16xf32>
    %201 = vector.shape_cast %200 : vector<1x1x1x16xf32> to vector<1x16xf32>
    %202 = vector.broadcast %201 : vector<1x16xf32> to vector<32x16xf32>
    %203 = arith.addf %199, %202 : vector<32x16xf32>
    %c1_145 = arith.constant 1 : index
    %c0_146 = arith.constant 0 : index
    %c0_147 = arith.constant 0 : index
    %c0_148 = arith.constant 0 : index
    %204 = vector.load %arg12[%c1_145, %c0_146, %c0_147, %c0_148] : memref<2x2x32x16xf32, #tpu.memory_space<vmem>>, vector<1x1x32x16xf32>
    %205 = vector.shape_cast %204 : vector<1x1x32x16xf32> to vector<32x16xf32>
    %cst_149 = arith.constant dense<0.000000e+00> : vector<32x16xf32>
    %206 = tpu.matmul %196, %205, %cst_149 {dimension_numbers = #tpu.dot_dimension_numbers<[1], [0], [0], [1], [0, 0, 1, 1], [], []>} : vector<32x32xf32>, vector<32x16xf32>, vector<32x16xf32> -> vector<32x16xf32>
    %c1_150 = arith.constant 1 : index
    %c0_151 = arith.constant 0 : index
    %c0_152 = arith.constant 0 : index
    %c0_153 = arith.constant 0 : index
    %207 = vector.load %arg15[%c1_150, %c0_151, %c0_152, %c0_153] : memref<2x2x1x16xf32, #tpu.memory_space<vmem>>, vector<1x1x1x16xf32>
    %208 = vector.shape_cast %207 : vector<1x1x1x16xf32> to vector<1x16xf32>
    %209 = vector.broadcast %208 : vector<1x16xf32> to vector<32x16xf32>
    %210 = arith.addf %206, %209 : vector<32x16xf32>
    %c1_154 = arith.constant 1 : index
    %c0_155 = arith.constant 0 : index
    %c0_156 = arith.constant 0 : index
    %c0_157 = arith.constant 0 : index
    %211 = vector.load %arg13[%c1_154, %c0_155, %c0_156, %c0_157] : memref<2x2x32x16xf32, #tpu.memory_space<vmem>>, vector<1x1x32x16xf32>
    %212 = vector.shape_cast %211 : vector<1x1x32x16xf32> to vector<32x16xf32>
    %cst_158 = arith.constant dense<0.000000e+00> : vector<32x16xf32>
    %213 = tpu.matmul %196, %212, %cst_158 {dimension_numbers = #tpu.dot_dimension_numbers<[1], [0], [0], [1], [0, 0, 1, 1], [], []>} : vector<32x32xf32>, vector<32x16xf32>, vector<32x16xf32> -> vector<32x16xf32>
    %c1_159 = arith.constant 1 : index
    %c0_160 = arith.constant 0 : index
    %c0_161 = arith.constant 0 : index
    %c0_162 = arith.constant 0 : index
    %214 = vector.load %arg16[%c1_159, %c0_160, %c0_161, %c0_162] : memref<2x2x1x16xf32, #tpu.memory_space<vmem>>, vector<1x1x1x16xf32>
    %215 = vector.shape_cast %214 : vector<1x1x1x16xf32> to vector<1x16xf32>
    %216 = vector.broadcast %215 : vector<1x16xf32> to vector<32x16xf32>
    %217 = arith.addf %213, %216 : vector<32x16xf32>
    %cst_163 = arith.constant dense<0.000000e+00> : vector<32x32xf32>
    %218 = tpu.matmul %203, %210, %cst_163 {dimension_numbers = #tpu.dot_dimension_numbers<[1], [1], [0], [0], [0, 0, 1, 0], [], []>} : vector<32x16xf32>, vector<32x16xf32>, vector<32x32xf32> -> vector<32x32xf32>
    %cst_164 = arith.constant 2.500000e-01 : f32
    %219 = vector.broadcast %cst_164 : f32 to vector<32x32xf32>
    %220 = arith.mulf %218, %219 : vector<32x32xf32>
    %221 = arith.addf %220, %1 : vector<32x32xf32>
    %cst_165 = arith.constant dense<0xFF800000> : vector<32xf32>
    %222 = vector.multi_reduction <maximumf>, %221, %cst_165 [1] : vector<32x32xf32> to vector<32xf32>
    %223 = vector.shape_cast %222 : vector<32xf32> to vector<32x1xf32>
    %224 = vector.broadcast %223 : vector<32x1xf32> to vector<32x32xf32>
    %225 = arith.subf %221, %224 : vector<32x32xf32>
    %226 = math.exp %225 : vector<32x32xf32>
    %cst_166 = arith.constant dense<0.000000e+00> : vector<32xf32>
    %227 = vector.multi_reduction <add>, %226, %cst_166 [1] : vector<32x32xf32> to vector<32xf32>
    %228 = vector.shape_cast %227 : vector<32xf32> to vector<32x1xf32>
    %229 = tpu.reciprocal %228 {approx = true} : vector<32x1xf32> -> vector<32x1xf32>
    %230 = vector.broadcast %229 : vector<32x1xf32> to vector<32x32xf32>
    %231 = arith.mulf %226, %230 : vector<32x32xf32>
    %cst_167 = arith.constant dense<0.000000e+00> : vector<32x16xf32>
    %232 = tpu.matmul %231, %217, %cst_167 {dimension_numbers = #tpu.dot_dimension_numbers<[1], [0], [0], [1], [0, 0, 1, 1], [], []>} : vector<32x32xf32>, vector<32x16xf32>, vector<32x16xf32> -> vector<32x16xf32>
    %c1_168 = arith.constant 1 : index
    %c0_169 = arith.constant 0 : index
    %c0_170 = arith.constant 0 : index
    %c0_171 = arith.constant 0 : index
    %233 = vector.load %arg17[%c1_168, %c0_169, %c0_170, %c0_171] : memref<2x2x16x32xf32, #tpu.memory_space<vmem>>, vector<1x1x16x32xf32>
    %234 = vector.shape_cast %233 : vector<1x1x16x32xf32> to vector<16x32xf32>
    %cst_172 = arith.constant dense<0.000000e+00> : vector<32x32xf32>
    %235 = tpu.matmul %232, %234, %cst_172 {dimension_numbers = #tpu.dot_dimension_numbers<[1], [0], [0], [1], [0, 0, 1, 1], [], []>} : vector<32x16xf32>, vector<16x32xf32>, vector<32x32xf32> -> vector<32x32xf32>
    %c1_173 = arith.constant 1 : index
    %c1_174 = arith.constant 1 : index
    %c0_175 = arith.constant 0 : index
    %c0_176 = arith.constant 0 : index
    %236 = vector.load %arg11[%c1_173, %c1_174, %c0_175, %c0_176] : memref<2x2x32x16xf32, #tpu.memory_space<vmem>>, vector<1x1x32x16xf32>
    %237 = vector.shape_cast %236 : vector<1x1x32x16xf32> to vector<32x16xf32>
    %cst_177 = arith.constant dense<0.000000e+00> : vector<32x16xf32>
    %238 = tpu.matmul %196, %237, %cst_177 {dimension_numbers = #tpu.dot_dimension_numbers<[1], [0], [0], [1], [0, 0, 1, 1], [], []>} : vector<32x32xf32>, vector<32x16xf32>, vector<32x16xf32> -> vector<32x16xf32>
    %c1_178 = arith.constant 1 : index
    %c1_179 = arith.constant 1 : index
    %c0_180 = arith.constant 0 : index
    %c0_181 = arith.constant 0 : index
    %239 = vector.load %arg14[%c1_178, %c1_179, %c0_180, %c0_181] : memref<2x2x1x16xf32, #tpu.memory_space<vmem>>, vector<1x1x1x16xf32>
    %240 = vector.shape_cast %239 : vector<1x1x1x16xf32> to vector<1x16xf32>
    %241 = vector.broadcast %240 : vector<1x16xf32> to vector<32x16xf32>
    %242 = arith.addf %238, %241 : vector<32x16xf32>
    %c1_182 = arith.constant 1 : index
    %c1_183 = arith.constant 1 : index
    %c0_184 = arith.constant 0 : index
    %c0_185 = arith.constant 0 : index
    %243 = vector.load %arg12[%c1_182, %c1_183, %c0_184, %c0_185] : memref<2x2x32x16xf32, #tpu.memory_space<vmem>>, vector<1x1x32x16xf32>
    %244 = vector.shape_cast %243 : vector<1x1x32x16xf32> to vector<32x16xf32>
    %cst_186 = arith.constant dense<0.000000e+00> : vector<32x16xf32>
    %245 = tpu.matmul %196, %244, %cst_186 {dimension_numbers = #tpu.dot_dimension_numbers<[1], [0], [0], [1], [0, 0, 1, 1], [], []>} : vector<32x32xf32>, vector<32x16xf32>, vector<32x16xf32> -> vector<32x16xf32>
    %c1_187 = arith.constant 1 : index
    %c1_188 = arith.constant 1 : index
    %c0_189 = arith.constant 0 : index
    %c0_190 = arith.constant 0 : index
    %246 = vector.load %arg15[%c1_187, %c1_188, %c0_189, %c0_190] : memref<2x2x1x16xf32, #tpu.memory_space<vmem>>, vector<1x1x1x16xf32>
    %247 = vector.shape_cast %246 : vector<1x1x1x16xf32> to vector<1x16xf32>
    %248 = vector.broadcast %247 : vector<1x16xf32> to vector<32x16xf32>
    %249 = arith.addf %245, %248 : vector<32x16xf32>
    %c1_191 = arith.constant 1 : index
    %c1_192 = arith.constant 1 : index
    %c0_193 = arith.constant 0 : index
    %c0_194 = arith.constant 0 : index
    %250 = vector.load %arg13[%c1_191, %c1_192, %c0_193, %c0_194] : memref<2x2x32x16xf32, #tpu.memory_space<vmem>>, vector<1x1x32x16xf32>
    %251 = vector.shape_cast %250 : vector<1x1x32x16xf32> to vector<32x16xf32>
    %cst_195 = arith.constant dense<0.000000e+00> : vector<32x16xf32>
    %252 = tpu.matmul %196, %251, %cst_195 {dimension_numbers = #tpu.dot_dimension_numbers<[1], [0], [0], [1], [0, 0, 1, 1], [], []>} : vector<32x32xf32>, vector<32x16xf32>, vector<32x16xf32> -> vector<32x16xf32>
    %c1_196 = arith.constant 1 : index
    %c1_197 = arith.constant 1 : index
    %c0_198 = arith.constant 0 : index
    %c0_199 = arith.constant 0 : index
    %253 = vector.load %arg16[%c1_196, %c1_197, %c0_198, %c0_199] : memref<2x2x1x16xf32, #tpu.memory_space<vmem>>, vector<1x1x1x16xf32>
    %254 = vector.shape_cast %253 : vector<1x1x1x16xf32> to vector<1x16xf32>
    %255 = vector.broadcast %254 : vector<1x16xf32> to vector<32x16xf32>
    %256 = arith.addf %252, %255 : vector<32x16xf32>
    %cst_200 = arith.constant dense<0.000000e+00> : vector<32x32xf32>
    %257 = tpu.matmul %242, %249, %cst_200 {dimension_numbers = #tpu.dot_dimension_numbers<[1], [1], [0], [0], [0, 0, 1, 0], [], []>} : vector<32x16xf32>, vector<32x16xf32>, vector<32x32xf32> -> vector<32x32xf32>
    %cst_201 = arith.constant 2.500000e-01 : f32
    %258 = vector.broadcast %cst_201 : f32 to vector<32x32xf32>
    %259 = arith.mulf %257, %258 : vector<32x32xf32>
    %260 = arith.addf %259, %1 : vector<32x32xf32>
    %cst_202 = arith.constant dense<0xFF800000> : vector<32xf32>
    %261 = vector.multi_reduction <maximumf>, %260, %cst_202 [1] : vector<32x32xf32> to vector<32xf32>
    %262 = vector.shape_cast %261 : vector<32xf32> to vector<32x1xf32>
    %263 = vector.broadcast %262 : vector<32x1xf32> to vector<32x32xf32>
    %264 = arith.subf %260, %263 : vector<32x32xf32>
    %265 = math.exp %264 : vector<32x32xf32>
    %cst_203 = arith.constant dense<0.000000e+00> : vector<32xf32>
    %266 = vector.multi_reduction <add>, %265, %cst_203 [1] : vector<32x32xf32> to vector<32xf32>
    %267 = vector.shape_cast %266 : vector<32xf32> to vector<32x1xf32>
    %268 = tpu.reciprocal %267 {approx = true} : vector<32x1xf32> -> vector<32x1xf32>
    %269 = vector.broadcast %268 : vector<32x1xf32> to vector<32x32xf32>
    %270 = arith.mulf %265, %269 : vector<32x32xf32>
    %cst_204 = arith.constant dense<0.000000e+00> : vector<32x16xf32>
    %271 = tpu.matmul %270, %256, %cst_204 {dimension_numbers = #tpu.dot_dimension_numbers<[1], [0], [0], [1], [0, 0, 1, 1], [], []>} : vector<32x32xf32>, vector<32x16xf32>, vector<32x16xf32> -> vector<32x16xf32>
    %c1_205 = arith.constant 1 : index
    %c1_206 = arith.constant 1 : index
    %c0_207 = arith.constant 0 : index
    %c0_208 = arith.constant 0 : index
    %272 = vector.load %arg17[%c1_205, %c1_206, %c0_207, %c0_208] : memref<2x2x16x32xf32, #tpu.memory_space<vmem>>, vector<1x1x16x32xf32>
    %273 = vector.shape_cast %272 : vector<1x1x16x32xf32> to vector<16x32xf32>
    %cst_209 = arith.constant dense<0.000000e+00> : vector<32x32xf32>
    %274 = tpu.matmul %271, %273, %cst_209 {dimension_numbers = #tpu.dot_dimension_numbers<[1], [0], [0], [1], [0, 0, 1, 1], [], []>} : vector<32x16xf32>, vector<16x32xf32>, vector<32x32xf32> -> vector<32x32xf32>
    %275 = arith.addf %235, %274 : vector<32x32xf32>
    %276 = arith.addf %170, %275 : vector<32x32xf32>
    %c1_210 = arith.constant 1 : index
    %c0_211 = arith.constant 0 : index
    %c0_212 = arith.constant 0 : index
    %277 = vector.load %arg18[%c1_210, %c0_211, %c0_212] : memref<2x1x32xf32, #tpu.memory_space<vmem>>, vector<1x1x32xf32>
    %278 = vector.shape_cast %277 : vector<1x1x32xf32> to vector<1x32xf32>
    %279 = vector.broadcast %278 : vector<1x32xf32> to vector<32x32xf32>
    %280 = arith.addf %276, %279 : vector<32x32xf32>
    %c1_213 = arith.constant 1 : index
    %c0_214 = arith.constant 0 : index
    %c0_215 = arith.constant 0 : index
    %281 = vector.load %arg19[%c1_213, %c0_214, %c0_215] : memref<2x1x32xf32, #tpu.memory_space<vmem>>, vector<1x1x32xf32>
    %282 = vector.shape_cast %281 : vector<1x1x32xf32> to vector<1x32xf32>
    %c1_216 = arith.constant 1 : index
    %c0_217 = arith.constant 0 : index
    %c0_218 = arith.constant 0 : index
    %283 = vector.load %arg20[%c1_216, %c0_217, %c0_218] : memref<2x1x32xf32, #tpu.memory_space<vmem>>, vector<1x1x32xf32>
    %284 = vector.shape_cast %283 : vector<1x1x32xf32> to vector<1x32xf32>
    %cst_219 = arith.constant dense<0.000000e+00> : vector<32xf32>
    %285 = vector.multi_reduction <add>, %280, %cst_219 [1] : vector<32x32xf32> to vector<32xf32>
    %286 = vector.shape_cast %285 : vector<32xf32> to vector<32x1xf32>
    %cst_220 = arith.constant 3.200000e+01 : f32
    %287 = vector.broadcast %cst_220 : f32 to vector<32x1xf32>
    %288 = arith.divf %286, %287 : vector<32x1xf32>
    %289 = vector.broadcast %288 : vector<32x1xf32> to vector<32x32xf32>
    %290 = arith.subf %280, %289 : vector<32x32xf32>
    %291 = arith.mulf %290, %290 : vector<32x32xf32>
    %cst_221 = arith.constant dense<0.000000e+00> : vector<32xf32>
    %292 = vector.multi_reduction <add>, %291, %cst_221 [1] : vector<32x32xf32> to vector<32xf32>
    %293 = vector.shape_cast %292 : vector<32xf32> to vector<32x1xf32>
    %cst_222 = arith.constant 3.200000e+01 : f32
    %294 = vector.broadcast %cst_222 : f32 to vector<32x1xf32>
    %295 = arith.divf %293, %294 : vector<32x1xf32>
    %296 = vector.broadcast %288 : vector<32x1xf32> to vector<32x32xf32>
    %297 = arith.subf %280, %296 : vector<32x32xf32>
    %cst_223 = arith.constant 9.99999974E-6 : f32
    %298 = vector.broadcast %cst_223 : f32 to vector<32x1xf32>
    %299 = arith.addf %295, %298 : vector<32x1xf32>
    %300 = math.rsqrt %299 : vector<32x1xf32>
    %301 = vector.broadcast %300 : vector<32x1xf32> to vector<32x32xf32>
    %302 = arith.mulf %297, %301 : vector<32x32xf32>
    %303 = vector.broadcast %282 : vector<1x32xf32> to vector<32x32xf32>
    %304 = arith.mulf %302, %303 : vector<32x32xf32>
    %305 = vector.broadcast %284 : vector<1x32xf32> to vector<32x32xf32>
    %306 = arith.addf %304, %305 : vector<32x32xf32>
    %c1_224 = arith.constant 1 : index
    %c0_225 = arith.constant 0 : index
    %c0_226 = arith.constant 0 : index
    %307 = vector.load %arg21[%c1_224, %c0_225, %c0_226] : memref<2x32x128xf32, #tpu.memory_space<vmem>>, vector<1x32x128xf32>
    %308 = vector.shape_cast %307 : vector<1x32x128xf32> to vector<32x128xf32>
    %cst_227 = arith.constant dense<0.000000e+00> : vector<32x128xf32>
    %309 = tpu.matmul %306, %308, %cst_227 {dimension_numbers = #tpu.dot_dimension_numbers<[1], [0], [0], [1], [0, 0, 1, 1], [], []>} : vector<32x32xf32>, vector<32x128xf32>, vector<32x128xf32> -> vector<32x128xf32>
    %c1_228 = arith.constant 1 : index
    %c0_229 = arith.constant 0 : index
    %c0_230 = arith.constant 0 : index
    %310 = vector.load %arg22[%c1_228, %c0_229, %c0_230] : memref<2x1x128xf32, #tpu.memory_space<vmem>>, vector<1x1x128xf32>
    %311 = vector.shape_cast %310 : vector<1x1x128xf32> to vector<1x128xf32>
    %312 = vector.broadcast %311 : vector<1x128xf32> to vector<32x128xf32>
    %313 = arith.addf %309, %312 : vector<32x128xf32>
    %cst_231 = arith.constant 1.702000e+00 : f32
    %314 = vector.broadcast %cst_231 : f32 to vector<32x128xf32>
    %315 = arith.mulf %314, %313 : vector<32x128xf32>
    %316 = arith.negf %315 : vector<32x128xf32>
    %317 = math.exp %316 : vector<32x128xf32>
    %cst_232 = arith.constant 1.000000e+00 : f32
    %318 = vector.broadcast %cst_232 : f32 to vector<32x128xf32>
    %319 = arith.addf %318, %317 : vector<32x128xf32>
    %320 = arith.divf %318, %319 : vector<32x128xf32>
    %321 = arith.mulf %313, %320 : vector<32x128xf32>
    %c1_233 = arith.constant 1 : index
    %c0_234 = arith.constant 0 : index
    %c0_235 = arith.constant 0 : index
    %322 = vector.load %arg23[%c1_233, %c0_234, %c0_235] : memref<2x128x32xf32, #tpu.memory_space<vmem>>, vector<1x128x32xf32>
    %323 = vector.shape_cast %322 : vector<1x128x32xf32> to vector<128x32xf32>
    %cst_236 = arith.constant dense<0.000000e+00> : vector<32x32xf32>
    %324 = tpu.matmul %321, %323, %cst_236 {dimension_numbers = #tpu.dot_dimension_numbers<[1], [0], [0], [1], [0, 0, 1, 1], [], []>} : vector<32x128xf32>, vector<128x32xf32>, vector<32x32xf32> -> vector<32x32xf32>
    %325 = arith.addf %280, %324 : vector<32x32xf32>
    %c1_237 = arith.constant 1 : index
    %c0_238 = arith.constant 0 : index
    %c0_239 = arith.constant 0 : index
    %326 = vector.load %arg24[%c1_237, %c0_238, %c0_239] : memref<2x1x32xf32, #tpu.memory_space<vmem>>, vector<1x1x32xf32>
    %327 = vector.shape_cast %326 : vector<1x1x32xf32> to vector<1x32xf32>
    %328 = vector.broadcast %327 : vector<1x32xf32> to vector<32x32xf32>
    %329 = arith.addf %325, %328 : vector<32x32xf32>
    %c0_240 = arith.constant 0 : index
    %c0_241 = arith.constant 0 : index
    %330 = vector.load %arg6[%c0_240, %c0_241] : memref<1x32xf32, #tpu.memory_space<vmem>>, vector<1x32xf32>
    %c0_242 = arith.constant 0 : index
    %c0_243 = arith.constant 0 : index
    %331 = vector.load %arg7[%c0_242, %c0_243] : memref<1x32xf32, #tpu.memory_space<vmem>>, vector<1x32xf32>
    %cst_244 = arith.constant dense<0.000000e+00> : vector<32xf32>
    %332 = vector.multi_reduction <add>, %329, %cst_244 [1] : vector<32x32xf32> to vector<32xf32>
    %333 = vector.shape_cast %332 : vector<32xf32> to vector<32x1xf32>
    %cst_245 = arith.constant 3.200000e+01 : f32
    %334 = vector.broadcast %cst_245 : f32 to vector<32x1xf32>
    %335 = arith.divf %333, %334 : vector<32x1xf32>
    %336 = vector.broadcast %335 : vector<32x1xf32> to vector<32x32xf32>
    %337 = arith.subf %329, %336 : vector<32x32xf32>
    %338 = arith.mulf %337, %337 : vector<32x32xf32>
    %cst_246 = arith.constant dense<0.000000e+00> : vector<32xf32>
    %339 = vector.multi_reduction <add>, %338, %cst_246 [1] : vector<32x32xf32> to vector<32xf32>
    %340 = vector.shape_cast %339 : vector<32xf32> to vector<32x1xf32>
    %cst_247 = arith.constant 3.200000e+01 : f32
    %341 = vector.broadcast %cst_247 : f32 to vector<32x1xf32>
    %342 = arith.divf %340, %341 : vector<32x1xf32>
    %343 = vector.broadcast %335 : vector<32x1xf32> to vector<32x32xf32>
    %344 = arith.subf %329, %343 : vector<32x32xf32>
    %cst_248 = arith.constant 9.99999974E-6 : f32
    %345 = vector.broadcast %cst_248 : f32 to vector<32x1xf32>
    %346 = arith.addf %342, %345 : vector<32x1xf32>
    %347 = math.rsqrt %346 : vector<32x1xf32>
    %348 = vector.broadcast %347 : vector<32x1xf32> to vector<32x32xf32>
    %349 = arith.mulf %344, %348 : vector<32x32xf32>
    %350 = vector.broadcast %330 : vector<1x32xf32> to vector<32x32xf32>
    %351 = arith.mulf %349, %350 : vector<32x32xf32>
    %352 = vector.broadcast %331 : vector<1x32xf32> to vector<32x32xf32>
    %353 = arith.addf %351, %352 : vector<32x32xf32>
    %c0_249 = arith.constant 0 : index
    %c0_250 = arith.constant 0 : index
    %354 = vector.load %arg5[%c0_249, %c0_250] : memref<4x32xf32, #tpu.memory_space<vmem>>, vector<4x32xf32>
    %cst_251 = arith.constant dense<0.000000e+00> : vector<4x32xf32>
    %355 = tpu.matmul %354, %353, %cst_251 {dimension_numbers = #tpu.dot_dimension_numbers<[1], [0], [0], [1], [0, 0, 1, 1], [], []>} : vector<4x32xf32>, vector<32x32xf32>, vector<4x32xf32> -> vector<4x32xf32>
    %c0_252 = arith.constant 0 : index
    %c0_253 = arith.constant 0 : index
    %356 = vector.load %arg8[%c0_252, %c0_253] : memref<32x32xf32, #tpu.memory_space<vmem>>, vector<32x32xf32>
    %cst_254 = arith.constant dense<0.000000e+00> : vector<4x32xf32>
    %357 = tpu.matmul %355, %356, %cst_254 {dimension_numbers = #tpu.dot_dimension_numbers<[1], [0], [0], [1], [0, 0, 1, 1], [], []>} : vector<4x32xf32>, vector<32x32xf32>, vector<4x32xf32> -> vector<4x32xf32>
    %358 = arith.mulf %357, %357 : vector<4x32xf32>
    %cst_255 = arith.constant dense<0.000000e+00> : vector<4xf32>
    %359 = vector.multi_reduction <add>, %358, %cst_255 [1] : vector<4x32xf32> to vector<4xf32>
    %360 = vector.shape_cast %359 : vector<4xf32> to vector<4x1xf32>
    %cst_256 = arith.constant 9.99999996E-13 : f32
    %361 = vector.broadcast %cst_256 : f32 to vector<4x1xf32>
    %362 = arith.addf %360, %361 : vector<4x1xf32>
    %363 = math.rsqrt %362 : vector<4x1xf32>
    %364 = vector.broadcast %363 : vector<4x1xf32> to vector<4x32xf32>
    %365 = arith.mulf %357, %364 : vector<4x32xf32>
    %c0_257 = arith.constant 0 : index
    %c0_258 = arith.constant 0 : index
    %366 = memref.load %arg60[%c0_257, %c0_258] : memref<1x1xf32, #tpu.memory_space<smem>>
    %367 = vector.broadcast %366 : f32 to vector<4x32xf32>
    %368 = arith.mulf %367, %365 : vector<4x32xf32>
    %c0_259 = arith.constant 0 : index
    %c0_260 = arith.constant 0 : index
    %369 = vector.load %arg30[%c0_259, %c0_260] : memref<14x2xf32, #tpu.memory_space<vmem>>, vector<14x2xf32>
    %c0_261 = arith.constant 0 : index
    %c0_262 = arith.constant 0 : index
    %370 = vector.load %arg31[%c0_261, %c0_262] : memref<14x1xf32, #tpu.memory_space<vmem>>, vector<14x1xf32>
    %c0_263 = arith.constant 0 : index
    %c0_264 = arith.constant 0 : index
    %371 = vector.load %arg32[%c0_263, %c0_264] : memref<14x14xf32, #tpu.memory_space<vmem>>, vector<14x14xf32>
    %c0_265 = arith.constant 0 : index
    %c0_266 = arith.constant 0 : index
    %372 = vector.load %arg35[%c0_265, %c0_266] : memref<2x32xf32, #tpu.memory_space<vmem>>, vector<2x32xf32>
    %c0_267 = arith.constant 0 : index
    %c0_268 = arith.constant 0 : index
    %373 = vector.load %arg36[%c0_267, %c0_268] : memref<32x48xf32, #tpu.memory_space<vmem>>, vector<32x48xf32>
    %cst_269 = arith.constant dense<0.000000e+00> : vector<2x48xf32>
    %374 = tpu.matmul %372, %373, %cst_269 {dimension_numbers = #tpu.dot_dimension_numbers<[1], [0], [0], [1], [0, 0, 1, 1], [], []>} : vector<2x32xf32>, vector<32x48xf32>, vector<2x48xf32> -> vector<2x48xf32>
    %c0_270 = arith.constant 0 : index
    %c0_271 = arith.constant 0 : index
    %375 = vector.load %arg37[%c0_270, %c0_271] : memref<1x48xf32, #tpu.memory_space<vmem>>, vector<1x48xf32>
    %376 = vector.broadcast %375 : vector<1x48xf32> to vector<2x48xf32>
    %377 = arith.addf %374, %376 : vector<2x48xf32>
    %c0_272 = arith.constant 0 : index
    %c0_273 = arith.constant 0 : index
    %378 = vector.load %arg25[%c0_272, %c0_273] : memref<8x192xf32, #tpu.memory_space<vmem>>, vector<8x192xf32>
    %c0_274 = arith.constant 0 : index
    %c0_275 = arith.constant 0 : index
    %379 = vector.load %arg26[%c0_274, %c0_275] : memref<192x48xf32, #tpu.memory_space<vmem>>, vector<192x48xf32>
    %cst_276 = arith.constant dense<0.000000e+00> : vector<8x48xf32>
    %380 = tpu.matmul %378, %379, %cst_276 {dimension_numbers = #tpu.dot_dimension_numbers<[1], [0], [0], [1], [0, 0, 1, 1], [], []>} : vector<8x192xf32>, vector<192x48xf32>, vector<8x48xf32> -> vector<8x48xf32>
    %c0_277 = arith.constant 0 : index
    %c0_278 = arith.constant 0 : index
    %381 = vector.load %arg27[%c0_277, %c0_278] : memref<1x48xf32, #tpu.memory_space<vmem>>, vector<1x48xf32>
    %382 = vector.broadcast %381 : vector<1x48xf32> to vector<8x48xf32>
    %383 = arith.addf %380, %382 : vector<8x48xf32>
    %c0_279 = arith.constant 0 : index
    %c0_280 = arith.constant 0 : index
    %384 = vector.load %arg28[%c0_279, %c0_280] : memref<14x48xf32, #tpu.memory_space<vmem>>, vector<14x48xf32>
    %c0_281 = arith.constant 0 : index
    %c0_282 = arith.constant 0 : index
    %385 = vector.load %arg29[%c0_281, %c0_282] : memref<14x8xf32, #tpu.memory_space<vmem>>, vector<14x8xf32>
    %cst_283 = arith.constant dense<0.000000e+00> : vector<14x48xf32>
    %386 = tpu.matmul %385, %383, %cst_283 {dimension_numbers = #tpu.dot_dimension_numbers<[1], [0], [0], [1], [0, 0, 1, 1], [], []>} : vector<14x8xf32>, vector<8x48xf32>, vector<14x48xf32> -> vector<14x48xf32>
    %387 = arith.addf %384, %386 : vector<14x48xf32>
    %cst_284 = arith.constant dense<0.000000e+00> : vector<14x48xf32>
    %388 = tpu.matmul %369, %377, %cst_284 {dimension_numbers = #tpu.dot_dimension_numbers<[1], [0], [0], [1], [0, 0, 1, 1], [], []>} : vector<14x2xf32>, vector<2x48xf32>, vector<14x48xf32> -> vector<14x48xf32>
    %389 = arith.addf %387, %388 : vector<14x48xf32>
    %c0_285 = arith.constant 0 : index
    %c0_286 = arith.constant 0 : index
    %390 = vector.load %arg33[%c0_285, %c0_286] : memref<1x48xf32, #tpu.memory_space<vmem>>, vector<1x48xf32>
    %c0_287 = arith.constant 0 : index
    %c0_288 = arith.constant 0 : index
    %391 = vector.load %arg34[%c0_287, %c0_288] : memref<1x48xf32, #tpu.memory_space<vmem>>, vector<1x48xf32>
    %cst_289 = arith.constant dense<0.000000e+00> : vector<14xf32>
    %392 = vector.multi_reduction <add>, %389, %cst_289 [1] : vector<14x48xf32> to vector<14xf32>
    %393 = vector.shape_cast %392 : vector<14xf32> to vector<14x1xf32>
    %cst_290 = arith.constant 4.800000e+01 : f32
    %394 = vector.broadcast %cst_290 : f32 to vector<14x1xf32>
    %395 = arith.divf %393, %394 : vector<14x1xf32>
    %396 = vector.broadcast %395 : vector<14x1xf32> to vector<14x48xf32>
    %397 = arith.subf %389, %396 : vector<14x48xf32>
    %398 = arith.mulf %397, %397 : vector<14x48xf32>
    %cst_291 = arith.constant dense<0.000000e+00> : vector<14xf32>
    %399 = vector.multi_reduction <add>, %398, %cst_291 [1] : vector<14x48xf32> to vector<14xf32>
    %400 = vector.shape_cast %399 : vector<14xf32> to vector<14x1xf32>
    %cst_292 = arith.constant 4.800000e+01 : f32
    %401 = vector.broadcast %cst_292 : f32 to vector<14x1xf32>
    %402 = arith.divf %400, %401 : vector<14x1xf32>
    %403 = vector.broadcast %395 : vector<14x1xf32> to vector<14x48xf32>
    %404 = arith.subf %389, %403 : vector<14x48xf32>
    %cst_293 = arith.constant 9.99999974E-6 : f32
    %405 = vector.broadcast %cst_293 : f32 to vector<14x1xf32>
    %406 = arith.addf %402, %405 : vector<14x1xf32>
    %407 = math.rsqrt %406 : vector<14x1xf32>
    %408 = vector.broadcast %407 : vector<14x1xf32> to vector<14x48xf32>
    %409 = arith.mulf %404, %408 : vector<14x48xf32>
    %410 = vector.broadcast %390 : vector<1x48xf32> to vector<14x48xf32>
    %411 = arith.mulf %409, %410 : vector<14x48xf32>
    %412 = vector.broadcast %391 : vector<1x48xf32> to vector<14x48xf32>
    %413 = arith.addf %411, %412 : vector<14x48xf32>
    %c0_294 = arith.constant 0 : index
    %c0_295 = arith.constant 0 : index
    %c0_296 = arith.constant 0 : index
    %414 = vector.load %arg44[%c0_294, %c0_295, %c0_296] : memref<2x1x48xf32, #tpu.memory_space<vmem>>, vector<1x1x48xf32>
    %415 = vector.shape_cast %414 : vector<1x1x48xf32> to vector<1x48xf32>
    %c0_297 = arith.constant 0 : index
    %c0_298 = arith.constant 0 : index
    %c0_299 = arith.constant 0 : index
    %416 = vector.load %arg45[%c0_297, %c0_298, %c0_299] : memref<2x1x48xf32, #tpu.memory_space<vmem>>, vector<1x1x48xf32>
    %417 = vector.shape_cast %416 : vector<1x1x48xf32> to vector<1x48xf32>
    %cst_300 = arith.constant dense<0.000000e+00> : vector<14xf32>
    %418 = vector.multi_reduction <add>, %413, %cst_300 [1] : vector<14x48xf32> to vector<14xf32>
    %419 = vector.shape_cast %418 : vector<14xf32> to vector<14x1xf32>
    %cst_301 = arith.constant 4.800000e+01 : f32
    %420 = vector.broadcast %cst_301 : f32 to vector<14x1xf32>
    %421 = arith.divf %419, %420 : vector<14x1xf32>
    %422 = vector.broadcast %421 : vector<14x1xf32> to vector<14x48xf32>
    %423 = arith.subf %413, %422 : vector<14x48xf32>
    %424 = arith.mulf %423, %423 : vector<14x48xf32>
    %cst_302 = arith.constant dense<0.000000e+00> : vector<14xf32>
    %425 = vector.multi_reduction <add>, %424, %cst_302 [1] : vector<14x48xf32> to vector<14xf32>
    %426 = vector.shape_cast %425 : vector<14xf32> to vector<14x1xf32>
    %cst_303 = arith.constant 4.800000e+01 : f32
    %427 = vector.broadcast %cst_303 : f32 to vector<14x1xf32>
    %428 = arith.divf %426, %427 : vector<14x1xf32>
    %429 = vector.broadcast %421 : vector<14x1xf32> to vector<14x48xf32>
    %430 = arith.subf %413, %429 : vector<14x48xf32>
    %cst_304 = arith.constant 9.99999974E-6 : f32
    %431 = vector.broadcast %cst_304 : f32 to vector<14x1xf32>
    %432 = arith.addf %428, %431 : vector<14x1xf32>
    %433 = math.rsqrt %432 : vector<14x1xf32>
    %434 = vector.broadcast %433 : vector<14x1xf32> to vector<14x48xf32>
    %435 = arith.mulf %430, %434 : vector<14x48xf32>
    %436 = vector.broadcast %415 : vector<1x48xf32> to vector<14x48xf32>
    %437 = arith.mulf %435, %436 : vector<14x48xf32>
    %438 = vector.broadcast %417 : vector<1x48xf32> to vector<14x48xf32>
    %439 = arith.addf %437, %438 : vector<14x48xf32>
    %c0_305 = arith.constant 0 : index
    %c0_306 = arith.constant 0 : index
    %c0_307 = arith.constant 0 : index
    %c0_308 = arith.constant 0 : index
    %440 = vector.load %arg46[%c0_305, %c0_306, %c0_307, %c0_308] : memref<2x2x48x24xf32, #tpu.memory_space<vmem>>, vector<1x1x48x24xf32>
    %441 = vector.shape_cast %440 : vector<1x1x48x24xf32> to vector<48x24xf32>
    %cst_309 = arith.constant dense<0.000000e+00> : vector<14x24xf32>
    %442 = tpu.matmul %439, %441, %cst_309 {dimension_numbers = #tpu.dot_dimension_numbers<[1], [0], [0], [1], [0, 0, 1, 1], [], []>} : vector<14x48xf32>, vector<48x24xf32>, vector<14x24xf32> -> vector<14x24xf32>
    %c0_310 = arith.constant 0 : index
    %c0_311 = arith.constant 0 : index
    %c0_312 = arith.constant 0 : index
    %c0_313 = arith.constant 0 : index
    %443 = vector.load %arg49[%c0_310, %c0_311, %c0_312, %c0_313] : memref<2x2x1x24xf32, #tpu.memory_space<vmem>>, vector<1x1x1x24xf32>
    %444 = vector.shape_cast %443 : vector<1x1x1x24xf32> to vector<1x24xf32>
    %445 = vector.broadcast %444 : vector<1x24xf32> to vector<14x24xf32>
    %446 = arith.addf %442, %445 : vector<14x24xf32>
    %c0_314 = arith.constant 0 : index
    %c0_315 = arith.constant 0 : index
    %c0_316 = arith.constant 0 : index
    %c0_317 = arith.constant 0 : index
    %447 = vector.load %arg47[%c0_314, %c0_315, %c0_316, %c0_317] : memref<2x2x48x24xf32, #tpu.memory_space<vmem>>, vector<1x1x48x24xf32>
    %448 = vector.shape_cast %447 : vector<1x1x48x24xf32> to vector<48x24xf32>
    %cst_318 = arith.constant dense<0.000000e+00> : vector<14x24xf32>
    %449 = tpu.matmul %439, %448, %cst_318 {dimension_numbers = #tpu.dot_dimension_numbers<[1], [0], [0], [1], [0, 0, 1, 1], [], []>} : vector<14x48xf32>, vector<48x24xf32>, vector<14x24xf32> -> vector<14x24xf32>
    %c0_319 = arith.constant 0 : index
    %c0_320 = arith.constant 0 : index
    %c0_321 = arith.constant 0 : index
    %c0_322 = arith.constant 0 : index
    %450 = vector.load %arg50[%c0_319, %c0_320, %c0_321, %c0_322] : memref<2x2x1x24xf32, #tpu.memory_space<vmem>>, vector<1x1x1x24xf32>
    %451 = vector.shape_cast %450 : vector<1x1x1x24xf32> to vector<1x24xf32>
    %452 = vector.broadcast %451 : vector<1x24xf32> to vector<14x24xf32>
    %453 = arith.addf %449, %452 : vector<14x24xf32>
    %c0_323 = arith.constant 0 : index
    %c0_324 = arith.constant 0 : index
    %c0_325 = arith.constant 0 : index
    %c0_326 = arith.constant 0 : index
    %454 = vector.load %arg48[%c0_323, %c0_324, %c0_325, %c0_326] : memref<2x2x48x24xf32, #tpu.memory_space<vmem>>, vector<1x1x48x24xf32>
    %455 = vector.shape_cast %454 : vector<1x1x48x24xf32> to vector<48x24xf32>
    %cst_327 = arith.constant dense<0.000000e+00> : vector<14x24xf32>
    %456 = tpu.matmul %439, %455, %cst_327 {dimension_numbers = #tpu.dot_dimension_numbers<[1], [0], [0], [1], [0, 0, 1, 1], [], []>} : vector<14x48xf32>, vector<48x24xf32>, vector<14x24xf32> -> vector<14x24xf32>
    %c0_328 = arith.constant 0 : index
    %c0_329 = arith.constant 0 : index
    %c0_330 = arith.constant 0 : index
    %c0_331 = arith.constant 0 : index
    %457 = vector.load %arg51[%c0_328, %c0_329, %c0_330, %c0_331] : memref<2x2x1x24xf32, #tpu.memory_space<vmem>>, vector<1x1x1x24xf32>
    %458 = vector.shape_cast %457 : vector<1x1x1x24xf32> to vector<1x24xf32>
    %459 = vector.broadcast %458 : vector<1x24xf32> to vector<14x24xf32>
    %460 = arith.addf %456, %459 : vector<14x24xf32>
    %cst_332 = arith.constant dense<0.000000e+00> : vector<14x14xf32>
    %461 = tpu.matmul %446, %453, %cst_332 {dimension_numbers = #tpu.dot_dimension_numbers<[1], [1], [0], [0], [0, 0, 1, 0], [], []>} : vector<14x24xf32>, vector<14x24xf32>, vector<14x14xf32> -> vector<14x14xf32>
    %cst_333 = arith.constant 0.204124153 : f32
    %462 = vector.broadcast %cst_333 : f32 to vector<14x14xf32>
    %463 = arith.mulf %461, %462 : vector<14x14xf32>
    %464 = arith.addf %463, %371 : vector<14x14xf32>
    %cst_334 = arith.constant dense<0xFF800000> : vector<14xf32>
    %465 = vector.multi_reduction <maximumf>, %464, %cst_334 [1] : vector<14x14xf32> to vector<14xf32>
    %466 = vector.shape_cast %465 : vector<14xf32> to vector<14x1xf32>
    %467 = vector.broadcast %466 : vector<14x1xf32> to vector<14x14xf32>
    %468 = arith.subf %464, %467 : vector<14x14xf32>
    %469 = math.exp %468 : vector<14x14xf32>
    %cst_335 = arith.constant dense<0.000000e+00> : vector<14xf32>
    %470 = vector.multi_reduction <add>, %469, %cst_335 [1] : vector<14x14xf32> to vector<14xf32>
    %471 = vector.shape_cast %470 : vector<14xf32> to vector<14x1xf32>
    %472 = tpu.reciprocal %471 {approx = true} : vector<14x1xf32> -> vector<14x1xf32>
    %473 = vector.broadcast %472 : vector<14x1xf32> to vector<14x14xf32>
    %474 = arith.mulf %469, %473 : vector<14x14xf32>
    %cst_336 = arith.constant dense<0.000000e+00> : vector<14x24xf32>
    %475 = tpu.matmul %474, %460, %cst_336 {dimension_numbers = #tpu.dot_dimension_numbers<[1], [0], [0], [1], [0, 0, 1, 1], [], []>} : vector<14x14xf32>, vector<14x24xf32>, vector<14x24xf32> -> vector<14x24xf32>
    %c0_337 = arith.constant 0 : index
    %c0_338 = arith.constant 0 : index
    %c0_339 = arith.constant 0 : index
    %c0_340 = arith.constant 0 : index
    %476 = vector.load %arg52[%c0_337, %c0_338, %c0_339, %c0_340] : memref<2x2x24x48xf32, #tpu.memory_space<vmem>>, vector<1x1x24x48xf32>
    %477 = vector.shape_cast %476 : vector<1x1x24x48xf32> to vector<24x48xf32>
    %cst_341 = arith.constant dense<0.000000e+00> : vector<14x48xf32>
    %478 = tpu.matmul %475, %477, %cst_341 {dimension_numbers = #tpu.dot_dimension_numbers<[1], [0], [0], [1], [0, 0, 1, 1], [], []>} : vector<14x24xf32>, vector<24x48xf32>, vector<14x48xf32> -> vector<14x48xf32>
    %c0_342 = arith.constant 0 : index
    %c1_343 = arith.constant 1 : index
    %c0_344 = arith.constant 0 : index
    %c0_345 = arith.constant 0 : index
    %479 = vector.load %arg46[%c0_342, %c1_343, %c0_344, %c0_345] : memref<2x2x48x24xf32, #tpu.memory_space<vmem>>, vector<1x1x48x24xf32>
    %480 = vector.shape_cast %479 : vector<1x1x48x24xf32> to vector<48x24xf32>
    %cst_346 = arith.constant dense<0.000000e+00> : vector<14x24xf32>
    %481 = tpu.matmul %439, %480, %cst_346 {dimension_numbers = #tpu.dot_dimension_numbers<[1], [0], [0], [1], [0, 0, 1, 1], [], []>} : vector<14x48xf32>, vector<48x24xf32>, vector<14x24xf32> -> vector<14x24xf32>
    %c0_347 = arith.constant 0 : index
    %c1_348 = arith.constant 1 : index
    %c0_349 = arith.constant 0 : index
    %c0_350 = arith.constant 0 : index
    %482 = vector.load %arg49[%c0_347, %c1_348, %c0_349, %c0_350] : memref<2x2x1x24xf32, #tpu.memory_space<vmem>>, vector<1x1x1x24xf32>
    %483 = vector.shape_cast %482 : vector<1x1x1x24xf32> to vector<1x24xf32>
    %484 = vector.broadcast %483 : vector<1x24xf32> to vector<14x24xf32>
    %485 = arith.addf %481, %484 : vector<14x24xf32>
    %c0_351 = arith.constant 0 : index
    %c1_352 = arith.constant 1 : index
    %c0_353 = arith.constant 0 : index
    %c0_354 = arith.constant 0 : index
    %486 = vector.load %arg47[%c0_351, %c1_352, %c0_353, %c0_354] : memref<2x2x48x24xf32, #tpu.memory_space<vmem>>, vector<1x1x48x24xf32>
    %487 = vector.shape_cast %486 : vector<1x1x48x24xf32> to vector<48x24xf32>
    %cst_355 = arith.constant dense<0.000000e+00> : vector<14x24xf32>
    %488 = tpu.matmul %439, %487, %cst_355 {dimension_numbers = #tpu.dot_dimension_numbers<[1], [0], [0], [1], [0, 0, 1, 1], [], []>} : vector<14x48xf32>, vector<48x24xf32>, vector<14x24xf32> -> vector<14x24xf32>
    %c0_356 = arith.constant 0 : index
    %c1_357 = arith.constant 1 : index
    %c0_358 = arith.constant 0 : index
    %c0_359 = arith.constant 0 : index
    %489 = vector.load %arg50[%c0_356, %c1_357, %c0_358, %c0_359] : memref<2x2x1x24xf32, #tpu.memory_space<vmem>>, vector<1x1x1x24xf32>
    %490 = vector.shape_cast %489 : vector<1x1x1x24xf32> to vector<1x24xf32>
    %491 = vector.broadcast %490 : vector<1x24xf32> to vector<14x24xf32>
    %492 = arith.addf %488, %491 : vector<14x24xf32>
    %c0_360 = arith.constant 0 : index
    %c1_361 = arith.constant 1 : index
    %c0_362 = arith.constant 0 : index
    %c0_363 = arith.constant 0 : index
    %493 = vector.load %arg48[%c0_360, %c1_361, %c0_362, %c0_363] : memref<2x2x48x24xf32, #tpu.memory_space<vmem>>, vector<1x1x48x24xf32>
    %494 = vector.shape_cast %493 : vector<1x1x48x24xf32> to vector<48x24xf32>
    %cst_364 = arith.constant dense<0.000000e+00> : vector<14x24xf32>
    %495 = tpu.matmul %439, %494, %cst_364 {dimension_numbers = #tpu.dot_dimension_numbers<[1], [0], [0], [1], [0, 0, 1, 1], [], []>} : vector<14x48xf32>, vector<48x24xf32>, vector<14x24xf32> -> vector<14x24xf32>
    %c0_365 = arith.constant 0 : index
    %c1_366 = arith.constant 1 : index
    %c0_367 = arith.constant 0 : index
    %c0_368 = arith.constant 0 : index
    %496 = vector.load %arg51[%c0_365, %c1_366, %c0_367, %c0_368] : memref<2x2x1x24xf32, #tpu.memory_space<vmem>>, vector<1x1x1x24xf32>
    %497 = vector.shape_cast %496 : vector<1x1x1x24xf32> to vector<1x24xf32>
    %498 = vector.broadcast %497 : vector<1x24xf32> to vector<14x24xf32>
    %499 = arith.addf %495, %498 : vector<14x24xf32>
    %cst_369 = arith.constant dense<0.000000e+00> : vector<14x14xf32>
    %500 = tpu.matmul %485, %492, %cst_369 {dimension_numbers = #tpu.dot_dimension_numbers<[1], [1], [0], [0], [0, 0, 1, 0], [], []>} : vector<14x24xf32>, vector<14x24xf32>, vector<14x14xf32> -> vector<14x14xf32>
    %cst_370 = arith.constant 0.204124153 : f32
    %501 = vector.broadcast %cst_370 : f32 to vector<14x14xf32>
    %502 = arith.mulf %500, %501 : vector<14x14xf32>
    %503 = arith.addf %502, %371 : vector<14x14xf32>
    %cst_371 = arith.constant dense<0xFF800000> : vector<14xf32>
    %504 = vector.multi_reduction <maximumf>, %503, %cst_371 [1] : vector<14x14xf32> to vector<14xf32>
    %505 = vector.shape_cast %504 : vector<14xf32> to vector<14x1xf32>
    %506 = vector.broadcast %505 : vector<14x1xf32> to vector<14x14xf32>
    %507 = arith.subf %503, %506 : vector<14x14xf32>
    %508 = math.exp %507 : vector<14x14xf32>
    %cst_372 = arith.constant dense<0.000000e+00> : vector<14xf32>
    %509 = vector.multi_reduction <add>, %508, %cst_372 [1] : vector<14x14xf32> to vector<14xf32>
    %510 = vector.shape_cast %509 : vector<14xf32> to vector<14x1xf32>
    %511 = tpu.reciprocal %510 {approx = true} : vector<14x1xf32> -> vector<14x1xf32>
    %512 = vector.broadcast %511 : vector<14x1xf32> to vector<14x14xf32>
    %513 = arith.mulf %508, %512 : vector<14x14xf32>
    %cst_373 = arith.constant dense<0.000000e+00> : vector<14x24xf32>
    %514 = tpu.matmul %513, %499, %cst_373 {dimension_numbers = #tpu.dot_dimension_numbers<[1], [0], [0], [1], [0, 0, 1, 1], [], []>} : vector<14x14xf32>, vector<14x24xf32>, vector<14x24xf32> -> vector<14x24xf32>
    %c0_374 = arith.constant 0 : index
    %c1_375 = arith.constant 1 : index
    %c0_376 = arith.constant 0 : index
    %c0_377 = arith.constant 0 : index
    %515 = vector.load %arg52[%c0_374, %c1_375, %c0_376, %c0_377] : memref<2x2x24x48xf32, #tpu.memory_space<vmem>>, vector<1x1x24x48xf32>
    %516 = vector.shape_cast %515 : vector<1x1x24x48xf32> to vector<24x48xf32>
    %cst_378 = arith.constant dense<0.000000e+00> : vector<14x48xf32>
    %517 = tpu.matmul %514, %516, %cst_378 {dimension_numbers = #tpu.dot_dimension_numbers<[1], [0], [0], [1], [0, 0, 1, 1], [], []>} : vector<14x24xf32>, vector<24x48xf32>, vector<14x48xf32> -> vector<14x48xf32>
    %518 = arith.addf %478, %517 : vector<14x48xf32>
    %519 = arith.addf %413, %518 : vector<14x48xf32>
    %c0_379 = arith.constant 0 : index
    %c0_380 = arith.constant 0 : index
    %c0_381 = arith.constant 0 : index
    %520 = vector.load %arg53[%c0_379, %c0_380, %c0_381] : memref<2x1x48xf32, #tpu.memory_space<vmem>>, vector<1x1x48xf32>
    %521 = vector.shape_cast %520 : vector<1x1x48xf32> to vector<1x48xf32>
    %522 = vector.broadcast %521 : vector<1x48xf32> to vector<14x48xf32>
    %523 = arith.addf %519, %522 : vector<14x48xf32>
    %c0_382 = arith.constant 0 : index
    %c0_383 = arith.constant 0 : index
    %c0_384 = arith.constant 0 : index
    %524 = vector.load %arg54[%c0_382, %c0_383, %c0_384] : memref<2x1x48xf32, #tpu.memory_space<vmem>>, vector<1x1x48xf32>
    %525 = vector.shape_cast %524 : vector<1x1x48xf32> to vector<1x48xf32>
    %c0_385 = arith.constant 0 : index
    %c0_386 = arith.constant 0 : index
    %c0_387 = arith.constant 0 : index
    %526 = vector.load %arg55[%c0_385, %c0_386, %c0_387] : memref<2x1x48xf32, #tpu.memory_space<vmem>>, vector<1x1x48xf32>
    %527 = vector.shape_cast %526 : vector<1x1x48xf32> to vector<1x48xf32>
    %cst_388 = arith.constant dense<0.000000e+00> : vector<14xf32>
    %528 = vector.multi_reduction <add>, %523, %cst_388 [1] : vector<14x48xf32> to vector<14xf32>
    %529 = vector.shape_cast %528 : vector<14xf32> to vector<14x1xf32>
    %cst_389 = arith.constant 4.800000e+01 : f32
    %530 = vector.broadcast %cst_389 : f32 to vector<14x1xf32>
    %531 = arith.divf %529, %530 : vector<14x1xf32>
    %532 = vector.broadcast %531 : vector<14x1xf32> to vector<14x48xf32>
    %533 = arith.subf %523, %532 : vector<14x48xf32>
    %534 = arith.mulf %533, %533 : vector<14x48xf32>
    %cst_390 = arith.constant dense<0.000000e+00> : vector<14xf32>
    %535 = vector.multi_reduction <add>, %534, %cst_390 [1] : vector<14x48xf32> to vector<14xf32>
    %536 = vector.shape_cast %535 : vector<14xf32> to vector<14x1xf32>
    %cst_391 = arith.constant 4.800000e+01 : f32
    %537 = vector.broadcast %cst_391 : f32 to vector<14x1xf32>
    %538 = arith.divf %536, %537 : vector<14x1xf32>
    %539 = vector.broadcast %531 : vector<14x1xf32> to vector<14x48xf32>
    %540 = arith.subf %523, %539 : vector<14x48xf32>
    %cst_392 = arith.constant 9.99999974E-6 : f32
    %541 = vector.broadcast %cst_392 : f32 to vector<14x1xf32>
    %542 = arith.addf %538, %541 : vector<14x1xf32>
    %543 = math.rsqrt %542 : vector<14x1xf32>
    %544 = vector.broadcast %543 : vector<14x1xf32> to vector<14x48xf32>
    %545 = arith.mulf %540, %544 : vector<14x48xf32>
    %546 = vector.broadcast %525 : vector<1x48xf32> to vector<14x48xf32>
    %547 = arith.mulf %545, %546 : vector<14x48xf32>
    %548 = vector.broadcast %527 : vector<1x48xf32> to vector<14x48xf32>
    %549 = arith.addf %547, %548 : vector<14x48xf32>
    %c0_393 = arith.constant 0 : index
    %c0_394 = arith.constant 0 : index
    %c0_395 = arith.constant 0 : index
    %550 = vector.load %arg56[%c0_393, %c0_394, %c0_395] : memref<2x48x192xf32, #tpu.memory_space<vmem>>, vector<1x48x192xf32>
    %551 = vector.shape_cast %550 : vector<1x48x192xf32> to vector<48x192xf32>
    %cst_396 = arith.constant dense<0.000000e+00> : vector<14x192xf32>
    %552 = tpu.matmul %549, %551, %cst_396 {dimension_numbers = #tpu.dot_dimension_numbers<[1], [0], [0], [1], [0, 0, 1, 1], [], []>} : vector<14x48xf32>, vector<48x192xf32>, vector<14x192xf32> -> vector<14x192xf32>
    %c0_397 = arith.constant 0 : index
    %c0_398 = arith.constant 0 : index
    %c0_399 = arith.constant 0 : index
    %553 = vector.load %arg57[%c0_397, %c0_398, %c0_399] : memref<2x1x192xf32, #tpu.memory_space<vmem>>, vector<1x1x192xf32>
    %554 = vector.shape_cast %553 : vector<1x1x192xf32> to vector<1x192xf32>
    %555 = vector.broadcast %554 : vector<1x192xf32> to vector<14x192xf32>
    %556 = arith.addf %552, %555 : vector<14x192xf32>
    %cst_400 = arith.constant 1.702000e+00 : f32
    %557 = vector.broadcast %cst_400 : f32 to vector<14x192xf32>
    %558 = arith.mulf %557, %556 : vector<14x192xf32>
    %559 = arith.negf %558 : vector<14x192xf32>
    %560 = math.exp %559 : vector<14x192xf32>
    %cst_401 = arith.constant 1.000000e+00 : f32
    %561 = vector.broadcast %cst_401 : f32 to vector<14x192xf32>
    %562 = arith.addf %561, %560 : vector<14x192xf32>
    %563 = arith.divf %561, %562 : vector<14x192xf32>
    %564 = arith.mulf %556, %563 : vector<14x192xf32>
    %c0_402 = arith.constant 0 : index
    %c0_403 = arith.constant 0 : index
    %c0_404 = arith.constant 0 : index
    %565 = vector.load %arg58[%c0_402, %c0_403, %c0_404] : memref<2x192x48xf32, #tpu.memory_space<vmem>>, vector<1x192x48xf32>
    %566 = vector.shape_cast %565 : vector<1x192x48xf32> to vector<192x48xf32>
    %cst_405 = arith.constant dense<0.000000e+00> : vector<14x48xf32>
    %567 = tpu.matmul %564, %566, %cst_405 {dimension_numbers = #tpu.dot_dimension_numbers<[1], [0], [0], [1], [0, 0, 1, 1], [], []>} : vector<14x192xf32>, vector<192x48xf32>, vector<14x48xf32> -> vector<14x48xf32>
    %568 = arith.addf %523, %567 : vector<14x48xf32>
    %c0_406 = arith.constant 0 : index
    %c0_407 = arith.constant 0 : index
    %c0_408 = arith.constant 0 : index
    %569 = vector.load %arg59[%c0_406, %c0_407, %c0_408] : memref<2x1x48xf32, #tpu.memory_space<vmem>>, vector<1x1x48xf32>
    %570 = vector.shape_cast %569 : vector<1x1x48xf32> to vector<1x48xf32>
    %571 = vector.broadcast %570 : vector<1x48xf32> to vector<14x48xf32>
    %572 = arith.addf %568, %571 : vector<14x48xf32>
    %c0_409 = arith.constant 0 : index
    %c0_410 = arith.constant 0 : index
    %c0_411 = arith.constant 0 : index
    %573 = vector.load %arg2[%c0_409, %c0_410, %c0_411] : memref<1x2x32xf32, #tpu.memory_space<vmem>>, vector<1x2x32xf32>
    %574 = vector.shape_cast %573 : vector<1x2x32xf32> to vector<2x32xf32>
    %c0_412 = arith.constant 0 : index
    %c0_413 = arith.constant 0 : index
    %c0_414 = arith.constant 0 : index
    %575 = vector.load %arg38[%c0_412, %c0_413, %c0_414] : memref<1x32x48xf32, #tpu.memory_space<vmem>>, vector<1x32x48xf32>
    %576 = vector.shape_cast %575 : vector<1x32x48xf32> to vector<32x48xf32>
    %cst_415 = arith.constant dense<0.000000e+00> : vector<2x48xf32>
    %577 = tpu.matmul %574, %576, %cst_415 {dimension_numbers = #tpu.dot_dimension_numbers<[1], [0], [0], [1], [0, 0, 1, 1], [], []>} : vector<2x32xf32>, vector<32x48xf32>, vector<2x48xf32> -> vector<2x48xf32>
    %c0_416 = arith.constant 0 : index
    %c0_417 = arith.constant 0 : index
    %c0_418 = arith.constant 0 : index
    %578 = vector.load %arg39[%c0_416, %c0_417, %c0_418] : memref<1x1x48xf32, #tpu.memory_space<vmem>>, vector<1x1x48xf32>
    %579 = vector.shape_cast %578 : vector<1x1x48xf32> to vector<1x48xf32>
    %580 = vector.broadcast %579 : vector<1x48xf32> to vector<2x48xf32>
    %581 = arith.addf %577, %580 : vector<2x48xf32>
    %cst_419 = arith.constant 1.000000e+00 : f32
    %582 = vector.broadcast %cst_419 : f32 to vector<14x1xf32>
    %583 = arith.subf %582, %370 : vector<14x1xf32>
    %584 = vector.broadcast %583 : vector<14x1xf32> to vector<14x48xf32>
    %585 = arith.mulf %572, %584 : vector<14x48xf32>
    %cst_420 = arith.constant dense<0.000000e+00> : vector<14x48xf32>
    %586 = tpu.matmul %369, %581, %cst_420 {dimension_numbers = #tpu.dot_dimension_numbers<[1], [0], [0], [1], [0, 0, 1, 1], [], []>} : vector<14x2xf32>, vector<2x48xf32>, vector<14x48xf32> -> vector<14x48xf32>
    %587 = arith.addf %585, %586 : vector<14x48xf32>
    %c1_421 = arith.constant 1 : index
    %c0_422 = arith.constant 0 : index
    %c0_423 = arith.constant 0 : index
    %588 = vector.load %arg44[%c1_421, %c0_422, %c0_423] : memref<2x1x48xf32, #tpu.memory_space<vmem>>, vector<1x1x48xf32>
    %589 = vector.shape_cast %588 : vector<1x1x48xf32> to vector<1x48xf32>
    %c1_424 = arith.constant 1 : index
    %c0_425 = arith.constant 0 : index
    %c0_426 = arith.constant 0 : index
    %590 = vector.load %arg45[%c1_424, %c0_425, %c0_426] : memref<2x1x48xf32, #tpu.memory_space<vmem>>, vector<1x1x48xf32>
    %591 = vector.shape_cast %590 : vector<1x1x48xf32> to vector<1x48xf32>
    %cst_427 = arith.constant dense<0.000000e+00> : vector<14xf32>
    %592 = vector.multi_reduction <add>, %587, %cst_427 [1] : vector<14x48xf32> to vector<14xf32>
    %593 = vector.shape_cast %592 : vector<14xf32> to vector<14x1xf32>
    %cst_428 = arith.constant 4.800000e+01 : f32
    %594 = vector.broadcast %cst_428 : f32 to vector<14x1xf32>
    %595 = arith.divf %593, %594 : vector<14x1xf32>
    %596 = vector.broadcast %595 : vector<14x1xf32> to vector<14x48xf32>
    %597 = arith.subf %587, %596 : vector<14x48xf32>
    %598 = arith.mulf %597, %597 : vector<14x48xf32>
    %cst_429 = arith.constant dense<0.000000e+00> : vector<14xf32>
    %599 = vector.multi_reduction <add>, %598, %cst_429 [1] : vector<14x48xf32> to vector<14xf32>
    %600 = vector.shape_cast %599 : vector<14xf32> to vector<14x1xf32>
    %cst_430 = arith.constant 4.800000e+01 : f32
    %601 = vector.broadcast %cst_430 : f32 to vector<14x1xf32>
    %602 = arith.divf %600, %601 : vector<14x1xf32>
    %603 = vector.broadcast %595 : vector<14x1xf32> to vector<14x48xf32>
    %604 = arith.subf %587, %603 : vector<14x48xf32>
    %cst_431 = arith.constant 9.99999974E-6 : f32
    %605 = vector.broadcast %cst_431 : f32 to vector<14x1xf32>
    %606 = arith.addf %602, %605 : vector<14x1xf32>
    %607 = math.rsqrt %606 : vector<14x1xf32>
    %608 = vector.broadcast %607 : vector<14x1xf32> to vector<14x48xf32>
    %609 = arith.mulf %604, %608 : vector<14x48xf32>
    %610 = vector.broadcast %589 : vector<1x48xf32> to vector<14x48xf32>
    %611 = arith.mulf %609, %610 : vector<14x48xf32>
    %612 = vector.broadcast %591 : vector<1x48xf32> to vector<14x48xf32>
    %613 = arith.addf %611, %612 : vector<14x48xf32>
    %c1_432 = arith.constant 1 : index
    %c0_433 = arith.constant 0 : index
    %c0_434 = arith.constant 0 : index
    %c0_435 = arith.constant 0 : index
    %614 = vector.load %arg46[%c1_432, %c0_433, %c0_434, %c0_435] : memref<2x2x48x24xf32, #tpu.memory_space<vmem>>, vector<1x1x48x24xf32>
    %615 = vector.shape_cast %614 : vector<1x1x48x24xf32> to vector<48x24xf32>
    %cst_436 = arith.constant dense<0.000000e+00> : vector<14x24xf32>
    %616 = tpu.matmul %613, %615, %cst_436 {dimension_numbers = #tpu.dot_dimension_numbers<[1], [0], [0], [1], [0, 0, 1, 1], [], []>} : vector<14x48xf32>, vector<48x24xf32>, vector<14x24xf32> -> vector<14x24xf32>
    %c1_437 = arith.constant 1 : index
    %c0_438 = arith.constant 0 : index
    %c0_439 = arith.constant 0 : index
    %c0_440 = arith.constant 0 : index
    %617 = vector.load %arg49[%c1_437, %c0_438, %c0_439, %c0_440] : memref<2x2x1x24xf32, #tpu.memory_space<vmem>>, vector<1x1x1x24xf32>
    %618 = vector.shape_cast %617 : vector<1x1x1x24xf32> to vector<1x24xf32>
    %619 = vector.broadcast %618 : vector<1x24xf32> to vector<14x24xf32>
    %620 = arith.addf %616, %619 : vector<14x24xf32>
    %c1_441 = arith.constant 1 : index
    %c0_442 = arith.constant 0 : index
    %c0_443 = arith.constant 0 : index
    %c0_444 = arith.constant 0 : index
    %621 = vector.load %arg47[%c1_441, %c0_442, %c0_443, %c0_444] : memref<2x2x48x24xf32, #tpu.memory_space<vmem>>, vector<1x1x48x24xf32>
    %622 = vector.shape_cast %621 : vector<1x1x48x24xf32> to vector<48x24xf32>
    %cst_445 = arith.constant dense<0.000000e+00> : vector<14x24xf32>
    %623 = tpu.matmul %613, %622, %cst_445 {dimension_numbers = #tpu.dot_dimension_numbers<[1], [0], [0], [1], [0, 0, 1, 1], [], []>} : vector<14x48xf32>, vector<48x24xf32>, vector<14x24xf32> -> vector<14x24xf32>
    %c1_446 = arith.constant 1 : index
    %c0_447 = arith.constant 0 : index
    %c0_448 = arith.constant 0 : index
    %c0_449 = arith.constant 0 : index
    %624 = vector.load %arg50[%c1_446, %c0_447, %c0_448, %c0_449] : memref<2x2x1x24xf32, #tpu.memory_space<vmem>>, vector<1x1x1x24xf32>
    %625 = vector.shape_cast %624 : vector<1x1x1x24xf32> to vector<1x24xf32>
    %626 = vector.broadcast %625 : vector<1x24xf32> to vector<14x24xf32>
    %627 = arith.addf %623, %626 : vector<14x24xf32>
    %c1_450 = arith.constant 1 : index
    %c0_451 = arith.constant 0 : index
    %c0_452 = arith.constant 0 : index
    %c0_453 = arith.constant 0 : index
    %628 = vector.load %arg48[%c1_450, %c0_451, %c0_452, %c0_453] : memref<2x2x48x24xf32, #tpu.memory_space<vmem>>, vector<1x1x48x24xf32>
    %629 = vector.shape_cast %628 : vector<1x1x48x24xf32> to vector<48x24xf32>
    %cst_454 = arith.constant dense<0.000000e+00> : vector<14x24xf32>
    %630 = tpu.matmul %613, %629, %cst_454 {dimension_numbers = #tpu.dot_dimension_numbers<[1], [0], [0], [1], [0, 0, 1, 1], [], []>} : vector<14x48xf32>, vector<48x24xf32>, vector<14x24xf32> -> vector<14x24xf32>
    %c1_455 = arith.constant 1 : index
    %c0_456 = arith.constant 0 : index
    %c0_457 = arith.constant 0 : index
    %c0_458 = arith.constant 0 : index
    %631 = vector.load %arg51[%c1_455, %c0_456, %c0_457, %c0_458] : memref<2x2x1x24xf32, #tpu.memory_space<vmem>>, vector<1x1x1x24xf32>
    %632 = vector.shape_cast %631 : vector<1x1x1x24xf32> to vector<1x24xf32>
    %633 = vector.broadcast %632 : vector<1x24xf32> to vector<14x24xf32>
    %634 = arith.addf %630, %633 : vector<14x24xf32>
    %cst_459 = arith.constant dense<0.000000e+00> : vector<14x14xf32>
    %635 = tpu.matmul %620, %627, %cst_459 {dimension_numbers = #tpu.dot_dimension_numbers<[1], [1], [0], [0], [0, 0, 1, 0], [], []>} : vector<14x24xf32>, vector<14x24xf32>, vector<14x14xf32> -> vector<14x14xf32>
    %cst_460 = arith.constant 0.204124153 : f32
    %636 = vector.broadcast %cst_460 : f32 to vector<14x14xf32>
    %637 = arith.mulf %635, %636 : vector<14x14xf32>
    %638 = arith.addf %637, %371 : vector<14x14xf32>
    %cst_461 = arith.constant dense<0xFF800000> : vector<14xf32>
    %639 = vector.multi_reduction <maximumf>, %638, %cst_461 [1] : vector<14x14xf32> to vector<14xf32>
    %640 = vector.shape_cast %639 : vector<14xf32> to vector<14x1xf32>
    %641 = vector.broadcast %640 : vector<14x1xf32> to vector<14x14xf32>
    %642 = arith.subf %638, %641 : vector<14x14xf32>
    %643 = math.exp %642 : vector<14x14xf32>
    %cst_462 = arith.constant dense<0.000000e+00> : vector<14xf32>
    %644 = vector.multi_reduction <add>, %643, %cst_462 [1] : vector<14x14xf32> to vector<14xf32>
    %645 = vector.shape_cast %644 : vector<14xf32> to vector<14x1xf32>
    %646 = tpu.reciprocal %645 {approx = true} : vector<14x1xf32> -> vector<14x1xf32>
    %647 = vector.broadcast %646 : vector<14x1xf32> to vector<14x14xf32>
    %648 = arith.mulf %643, %647 : vector<14x14xf32>
    %cst_463 = arith.constant dense<0.000000e+00> : vector<14x24xf32>
    %649 = tpu.matmul %648, %634, %cst_463 {dimension_numbers = #tpu.dot_dimension_numbers<[1], [0], [0], [1], [0, 0, 1, 1], [], []>} : vector<14x14xf32>, vector<14x24xf32>, vector<14x24xf32> -> vector<14x24xf32>
    %c1_464 = arith.constant 1 : index
    %c0_465 = arith.constant 0 : index
    %c0_466 = arith.constant 0 : index
    %c0_467 = arith.constant 0 : index
    %650 = vector.load %arg52[%c1_464, %c0_465, %c0_466, %c0_467] : memref<2x2x24x48xf32, #tpu.memory_space<vmem>>, vector<1x1x24x48xf32>
    %651 = vector.shape_cast %650 : vector<1x1x24x48xf32> to vector<24x48xf32>
    %cst_468 = arith.constant dense<0.000000e+00> : vector<14x48xf32>
    %652 = tpu.matmul %649, %651, %cst_468 {dimension_numbers = #tpu.dot_dimension_numbers<[1], [0], [0], [1], [0, 0, 1, 1], [], []>} : vector<14x24xf32>, vector<24x48xf32>, vector<14x48xf32> -> vector<14x48xf32>
    %c1_469 = arith.constant 1 : index
    %c1_470 = arith.constant 1 : index
    %c0_471 = arith.constant 0 : index
    %c0_472 = arith.constant 0 : index
    %653 = vector.load %arg46[%c1_469, %c1_470, %c0_471, %c0_472] : memref<2x2x48x24xf32, #tpu.memory_space<vmem>>, vector<1x1x48x24xf32>
    %654 = vector.shape_cast %653 : vector<1x1x48x24xf32> to vector<48x24xf32>
    %cst_473 = arith.constant dense<0.000000e+00> : vector<14x24xf32>
    %655 = tpu.matmul %613, %654, %cst_473 {dimension_numbers = #tpu.dot_dimension_numbers<[1], [0], [0], [1], [0, 0, 1, 1], [], []>} : vector<14x48xf32>, vector<48x24xf32>, vector<14x24xf32> -> vector<14x24xf32>
    %c1_474 = arith.constant 1 : index
    %c1_475 = arith.constant 1 : index
    %c0_476 = arith.constant 0 : index
    %c0_477 = arith.constant 0 : index
    %656 = vector.load %arg49[%c1_474, %c1_475, %c0_476, %c0_477] : memref<2x2x1x24xf32, #tpu.memory_space<vmem>>, vector<1x1x1x24xf32>
    %657 = vector.shape_cast %656 : vector<1x1x1x24xf32> to vector<1x24xf32>
    %658 = vector.broadcast %657 : vector<1x24xf32> to vector<14x24xf32>
    %659 = arith.addf %655, %658 : vector<14x24xf32>
    %c1_478 = arith.constant 1 : index
    %c1_479 = arith.constant 1 : index
    %c0_480 = arith.constant 0 : index
    %c0_481 = arith.constant 0 : index
    %660 = vector.load %arg47[%c1_478, %c1_479, %c0_480, %c0_481] : memref<2x2x48x24xf32, #tpu.memory_space<vmem>>, vector<1x1x48x24xf32>
    %661 = vector.shape_cast %660 : vector<1x1x48x24xf32> to vector<48x24xf32>
    %cst_482 = arith.constant dense<0.000000e+00> : vector<14x24xf32>
    %662 = tpu.matmul %613, %661, %cst_482 {dimension_numbers = #tpu.dot_dimension_numbers<[1], [0], [0], [1], [0, 0, 1, 1], [], []>} : vector<14x48xf32>, vector<48x24xf32>, vector<14x24xf32> -> vector<14x24xf32>
    %c1_483 = arith.constant 1 : index
    %c1_484 = arith.constant 1 : index
    %c0_485 = arith.constant 0 : index
    %c0_486 = arith.constant 0 : index
    %663 = vector.load %arg50[%c1_483, %c1_484, %c0_485, %c0_486] : memref<2x2x1x24xf32, #tpu.memory_space<vmem>>, vector<1x1x1x24xf32>
    %664 = vector.shape_cast %663 : vector<1x1x1x24xf32> to vector<1x24xf32>
    %665 = vector.broadcast %664 : vector<1x24xf32> to vector<14x24xf32>
    %666 = arith.addf %662, %665 : vector<14x24xf32>
    %c1_487 = arith.constant 1 : index
    %c1_488 = arith.constant 1 : index
    %c0_489 = arith.constant 0 : index
    %c0_490 = arith.constant 0 : index
    %667 = vector.load %arg48[%c1_487, %c1_488, %c0_489, %c0_490] : memref<2x2x48x24xf32, #tpu.memory_space<vmem>>, vector<1x1x48x24xf32>
    %668 = vector.shape_cast %667 : vector<1x1x48x24xf32> to vector<48x24xf32>
    %cst_491 = arith.constant dense<0.000000e+00> : vector<14x24xf32>
    %669 = tpu.matmul %613, %668, %cst_491 {dimension_numbers = #tpu.dot_dimension_numbers<[1], [0], [0], [1], [0, 0, 1, 1], [], []>} : vector<14x48xf32>, vector<48x24xf32>, vector<14x24xf32> -> vector<14x24xf32>
    %c1_492 = arith.constant 1 : index
    %c1_493 = arith.constant 1 : index
    %c0_494 = arith.constant 0 : index
    %c0_495 = arith.constant 0 : index
    %670 = vector.load %arg51[%c1_492, %c1_493, %c0_494, %c0_495] : memref<2x2x1x24xf32, #tpu.memory_space<vmem>>, vector<1x1x1x24xf32>
    %671 = vector.shape_cast %670 : vector<1x1x1x24xf32> to vector<1x24xf32>
    %672 = vector.broadcast %671 : vector<1x24xf32> to vector<14x24xf32>
    %673 = arith.addf %669, %672 : vector<14x24xf32>
    %cst_496 = arith.constant dense<0.000000e+00> : vector<14x14xf32>
    %674 = tpu.matmul %659, %666, %cst_496 {dimension_numbers = #tpu.dot_dimension_numbers<[1], [1], [0], [0], [0, 0, 1, 0], [], []>} : vector<14x24xf32>, vector<14x24xf32>, vector<14x14xf32> -> vector<14x14xf32>
    %cst_497 = arith.constant 0.204124153 : f32
    %675 = vector.broadcast %cst_497 : f32 to vector<14x14xf32>
    %676 = arith.mulf %674, %675 : vector<14x14xf32>
    %677 = arith.addf %676, %371 : vector<14x14xf32>
    %cst_498 = arith.constant dense<0xFF800000> : vector<14xf32>
    %678 = vector.multi_reduction <maximumf>, %677, %cst_498 [1] : vector<14x14xf32> to vector<14xf32>
    %679 = vector.shape_cast %678 : vector<14xf32> to vector<14x1xf32>
    %680 = vector.broadcast %679 : vector<14x1xf32> to vector<14x14xf32>
    %681 = arith.subf %677, %680 : vector<14x14xf32>
    %682 = math.exp %681 : vector<14x14xf32>
    %cst_499 = arith.constant dense<0.000000e+00> : vector<14xf32>
    %683 = vector.multi_reduction <add>, %682, %cst_499 [1] : vector<14x14xf32> to vector<14xf32>
    %684 = vector.shape_cast %683 : vector<14xf32> to vector<14x1xf32>
    %685 = tpu.reciprocal %684 {approx = true} : vector<14x1xf32> -> vector<14x1xf32>
    %686 = vector.broadcast %685 : vector<14x1xf32> to vector<14x14xf32>
    %687 = arith.mulf %682, %686 : vector<14x14xf32>
    %cst_500 = arith.constant dense<0.000000e+00> : vector<14x24xf32>
    %688 = tpu.matmul %687, %673, %cst_500 {dimension_numbers = #tpu.dot_dimension_numbers<[1], [0], [0], [1], [0, 0, 1, 1], [], []>} : vector<14x14xf32>, vector<14x24xf32>, vector<14x24xf32> -> vector<14x24xf32>
    %c1_501 = arith.constant 1 : index
    %c1_502 = arith.constant 1 : index
    %c0_503 = arith.constant 0 : index
    %c0_504 = arith.constant 0 : index
    %689 = vector.load %arg52[%c1_501, %c1_502, %c0_503, %c0_504] : memref<2x2x24x48xf32, #tpu.memory_space<vmem>>, vector<1x1x24x48xf32>
    %690 = vector.shape_cast %689 : vector<1x1x24x48xf32> to vector<24x48xf32>
    %cst_505 = arith.constant dense<0.000000e+00> : vector<14x48xf32>
    %691 = tpu.matmul %688, %690, %cst_505 {dimension_numbers = #tpu.dot_dimension_numbers<[1], [0], [0], [1], [0, 0, 1, 1], [], []>} : vector<14x24xf32>, vector<24x48xf32>, vector<14x48xf32> -> vector<14x48xf32>
    %692 = arith.addf %652, %691 : vector<14x48xf32>
    %693 = arith.addf %587, %692 : vector<14x48xf32>
    %c1_506 = arith.constant 1 : index
    %c0_507 = arith.constant 0 : index
    %c0_508 = arith.constant 0 : index
    %694 = vector.load %arg53[%c1_506, %c0_507, %c0_508] : memref<2x1x48xf32, #tpu.memory_space<vmem>>, vector<1x1x48xf32>
    %695 = vector.shape_cast %694 : vector<1x1x48xf32> to vector<1x48xf32>
    %696 = vector.broadcast %695 : vector<1x48xf32> to vector<14x48xf32>
    %697 = arith.addf %693, %696 : vector<14x48xf32>
    %c1_509 = arith.constant 1 : index
    %c0_510 = arith.constant 0 : index
    %c0_511 = arith.constant 0 : index
    %698 = vector.load %arg54[%c1_509, %c0_510, %c0_511] : memref<2x1x48xf32, #tpu.memory_space<vmem>>, vector<1x1x48xf32>
    %699 = vector.shape_cast %698 : vector<1x1x48xf32> to vector<1x48xf32>
    %c1_512 = arith.constant 1 : index
    %c0_513 = arith.constant 0 : index
    %c0_514 = arith.constant 0 : index
    %700 = vector.load %arg55[%c1_512, %c0_513, %c0_514] : memref<2x1x48xf32, #tpu.memory_space<vmem>>, vector<1x1x48xf32>
    %701 = vector.shape_cast %700 : vector<1x1x48xf32> to vector<1x48xf32>
    %cst_515 = arith.constant dense<0.000000e+00> : vector<14xf32>
    %702 = vector.multi_reduction <add>, %697, %cst_515 [1] : vector<14x48xf32> to vector<14xf32>
    %703 = vector.shape_cast %702 : vector<14xf32> to vector<14x1xf32>
    %cst_516 = arith.constant 4.800000e+01 : f32
    %704 = vector.broadcast %cst_516 : f32 to vector<14x1xf32>
    %705 = arith.divf %703, %704 : vector<14x1xf32>
    %706 = vector.broadcast %705 : vector<14x1xf32> to vector<14x48xf32>
    %707 = arith.subf %697, %706 : vector<14x48xf32>
    %708 = arith.mulf %707, %707 : vector<14x48xf32>
    %cst_517 = arith.constant dense<0.000000e+00> : vector<14xf32>
    %709 = vector.multi_reduction <add>, %708, %cst_517 [1] : vector<14x48xf32> to vector<14xf32>
    %710 = vector.shape_cast %709 : vector<14xf32> to vector<14x1xf32>
    %cst_518 = arith.constant 4.800000e+01 : f32
    %711 = vector.broadcast %cst_518 : f32 to vector<14x1xf32>
    %712 = arith.divf %710, %711 : vector<14x1xf32>
    %713 = vector.broadcast %705 : vector<14x1xf32> to vector<14x48xf32>
    %714 = arith.subf %697, %713 : vector<14x48xf32>
    %cst_519 = arith.constant 9.99999974E-6 : f32
    %715 = vector.broadcast %cst_519 : f32 to vector<14x1xf32>
    %716 = arith.addf %712, %715 : vector<14x1xf32>
    %717 = math.rsqrt %716 : vector<14x1xf32>
    %718 = vector.broadcast %717 : vector<14x1xf32> to vector<14x48xf32>
    %719 = arith.mulf %714, %718 : vector<14x48xf32>
    %720 = vector.broadcast %699 : vector<1x48xf32> to vector<14x48xf32>
    %721 = arith.mulf %719, %720 : vector<14x48xf32>
    %722 = vector.broadcast %701 : vector<1x48xf32> to vector<14x48xf32>
    %723 = arith.addf %721, %722 : vector<14x48xf32>
    %c1_520 = arith.constant 1 : index
    %c0_521 = arith.constant 0 : index
    %c0_522 = arith.constant 0 : index
    %724 = vector.load %arg56[%c1_520, %c0_521, %c0_522] : memref<2x48x192xf32, #tpu.memory_space<vmem>>, vector<1x48x192xf32>
    %725 = vector.shape_cast %724 : vector<1x48x192xf32> to vector<48x192xf32>
    %cst_523 = arith.constant dense<0.000000e+00> : vector<14x192xf32>
    %726 = tpu.matmul %723, %725, %cst_523 {dimension_numbers = #tpu.dot_dimension_numbers<[1], [0], [0], [1], [0, 0, 1, 1], [], []>} : vector<14x48xf32>, vector<48x192xf32>, vector<14x192xf32> -> vector<14x192xf32>
    %c1_524 = arith.constant 1 : index
    %c0_525 = arith.constant 0 : index
    %c0_526 = arith.constant 0 : index
    %727 = vector.load %arg57[%c1_524, %c0_525, %c0_526] : memref<2x1x192xf32, #tpu.memory_space<vmem>>, vector<1x1x192xf32>
    %728 = vector.shape_cast %727 : vector<1x1x192xf32> to vector<1x192xf32>
    %729 = vector.broadcast %728 : vector<1x192xf32> to vector<14x192xf32>
    %730 = arith.addf %726, %729 : vector<14x192xf32>
    %cst_527 = arith.constant 1.702000e+00 : f32
    %731 = vector.broadcast %cst_527 : f32 to vector<14x192xf32>
    %732 = arith.mulf %731, %730 : vector<14x192xf32>
    %733 = arith.negf %732 : vector<14x192xf32>
    %734 = math.exp %733 : vector<14x192xf32>
    %cst_528 = arith.constant 1.000000e+00 : f32
    %735 = vector.broadcast %cst_528 : f32 to vector<14x192xf32>
    %736 = arith.addf %735, %734 : vector<14x192xf32>
    %737 = arith.divf %735, %736 : vector<14x192xf32>
    %738 = arith.mulf %730, %737 : vector<14x192xf32>
    %c1_529 = arith.constant 1 : index
    %c0_530 = arith.constant 0 : index
    %c0_531 = arith.constant 0 : index
    %739 = vector.load %arg58[%c1_529, %c0_530, %c0_531] : memref<2x192x48xf32, #tpu.memory_space<vmem>>, vector<1x192x48xf32>
    %740 = vector.shape_cast %739 : vector<1x192x48xf32> to vector<192x48xf32>
    %cst_532 = arith.constant dense<0.000000e+00> : vector<14x48xf32>
    %741 = tpu.matmul %738, %740, %cst_532 {dimension_numbers = #tpu.dot_dimension_numbers<[1], [0], [0], [1], [0, 0, 1, 1], [], []>} : vector<14x192xf32>, vector<192x48xf32>, vector<14x48xf32> -> vector<14x48xf32>
    %742 = arith.addf %697, %741 : vector<14x48xf32>
    %c1_533 = arith.constant 1 : index
    %c0_534 = arith.constant 0 : index
    %c0_535 = arith.constant 0 : index
    %743 = vector.load %arg59[%c1_533, %c0_534, %c0_535] : memref<2x1x48xf32, #tpu.memory_space<vmem>>, vector<1x1x48xf32>
    %744 = vector.shape_cast %743 : vector<1x1x48xf32> to vector<1x48xf32>
    %745 = vector.broadcast %744 : vector<1x48xf32> to vector<14x48xf32>
    %746 = arith.addf %742, %745 : vector<14x48xf32>
    %c0_536 = arith.constant 0 : index
    %c0_537 = arith.constant 0 : index
    %747 = vector.load %arg40[%c0_536, %c0_537] : memref<2x14xf32, #tpu.memory_space<vmem>>, vector<2x14xf32>
    %cst_538 = arith.constant dense<0.000000e+00> : vector<2x48xf32>
    %748 = tpu.matmul %747, %746, %cst_538 {dimension_numbers = #tpu.dot_dimension_numbers<[1], [0], [0], [1], [0, 0, 1, 1], [], []>} : vector<2x14xf32>, vector<14x48xf32>, vector<2x48xf32> -> vector<2x48xf32>
    %c0_539 = arith.constant 0 : index
    %c0_540 = arith.constant 0 : index
    %749 = vector.load %arg41[%c0_539, %c0_540] : memref<1x48xf32, #tpu.memory_space<vmem>>, vector<1x48xf32>
    %c0_541 = arith.constant 0 : index
    %c0_542 = arith.constant 0 : index
    %750 = vector.load %arg42[%c0_541, %c0_542] : memref<1x48xf32, #tpu.memory_space<vmem>>, vector<1x48xf32>
    %cst_543 = arith.constant dense<0.000000e+00> : vector<2xf32>
    %751 = vector.multi_reduction <add>, %748, %cst_543 [1] : vector<2x48xf32> to vector<2xf32>
    %752 = vector.shape_cast %751 : vector<2xf32> to vector<2x1xf32>
    %cst_544 = arith.constant 4.800000e+01 : f32
    %753 = vector.broadcast %cst_544 : f32 to vector<2x1xf32>
    %754 = arith.divf %752, %753 : vector<2x1xf32>
    %755 = vector.broadcast %754 : vector<2x1xf32> to vector<2x48xf32>
    %756 = arith.subf %748, %755 : vector<2x48xf32>
    %757 = arith.mulf %756, %756 : vector<2x48xf32>
    %cst_545 = arith.constant dense<0.000000e+00> : vector<2xf32>
    %758 = vector.multi_reduction <add>, %757, %cst_545 [1] : vector<2x48xf32> to vector<2xf32>
    %759 = vector.shape_cast %758 : vector<2xf32> to vector<2x1xf32>
    %cst_546 = arith.constant 4.800000e+01 : f32
    %760 = vector.broadcast %cst_546 : f32 to vector<2x1xf32>
    %761 = arith.divf %759, %760 : vector<2x1xf32>
    %762 = vector.broadcast %754 : vector<2x1xf32> to vector<2x48xf32>
    %763 = arith.subf %748, %762 : vector<2x48xf32>
    %cst_547 = arith.constant 9.99999974E-6 : f32
    %764 = vector.broadcast %cst_547 : f32 to vector<2x1xf32>
    %765 = arith.addf %761, %764 : vector<2x1xf32>
    %766 = math.rsqrt %765 : vector<2x1xf32>
    %767 = vector.broadcast %766 : vector<2x1xf32> to vector<2x48xf32>
    %768 = arith.mulf %763, %767 : vector<2x48xf32>
    %769 = vector.broadcast %749 : vector<1x48xf32> to vector<2x48xf32>
    %770 = arith.mulf %768, %769 : vector<2x48xf32>
    %771 = vector.broadcast %750 : vector<1x48xf32> to vector<2x48xf32>
    %772 = arith.addf %770, %771 : vector<2x48xf32>
    %c0_548 = arith.constant 0 : index
    %c0_549 = arith.constant 0 : index
    %773 = vector.load %arg43[%c0_548, %c0_549] : memref<48x32xf32, #tpu.memory_space<vmem>>, vector<48x32xf32>
    %cst_550 = arith.constant dense<0.000000e+00> : vector<2x32xf32>
    %774 = tpu.matmul %772, %773, %cst_550 {dimension_numbers = #tpu.dot_dimension_numbers<[1], [0], [0], [1], [0, 0, 1, 1], [], []>} : vector<2x48xf32>, vector<48x32xf32>, vector<2x32xf32> -> vector<2x32xf32>
    %775 = arith.mulf %774, %774 : vector<2x32xf32>
    %cst_551 = arith.constant dense<0.000000e+00> : vector<2xf32>
    %776 = vector.multi_reduction <add>, %775, %cst_551 [1] : vector<2x32xf32> to vector<2xf32>
    %777 = vector.shape_cast %776 : vector<2xf32> to vector<2x1xf32>
    %cst_552 = arith.constant 9.99999996E-13 : f32
    %778 = vector.broadcast %cst_552 : f32 to vector<2x1xf32>
    %779 = arith.addf %777, %778 : vector<2x1xf32>
    %780 = math.rsqrt %779 : vector<2x1xf32>
    %781 = vector.broadcast %780 : vector<2x1xf32> to vector<2x32xf32>
    %782 = arith.mulf %774, %781 : vector<2x32xf32>
    %cst_553 = arith.constant dense<0.000000e+00> : vector<2x4xf32>
    %783 = tpu.matmul %782, %368, %cst_553 {dimension_numbers = #tpu.dot_dimension_numbers<[1], [1], [0], [0], [0, 0, 1, 0], [], []>} : vector<2x32xf32>, vector<4x32xf32>, vector<2x4xf32> -> vector<2x4xf32>
    %c0_554 = arith.constant 0 : index
    %c0_555 = arith.constant 0 : index
    %784 = vector.load %arg61[%c0_554, %c0_555] : memref<2x4xf32, #tpu.memory_space<vmem>>, vector<2x4xf32>
    tpu.vector_store %arg61[%c0_554, %c0_555], %783 {strides = array<i32>} : memref<2x4xf32, #tpu.memory_space<vmem>>, vector<2x4xf32>,
    return
  }
}

</mosaic_0001>

<bundles_post_ra>
// kernel: mul.12
= control target key start
LH: loop header
LB: loop body
LE: loop exit
PB: predicated region body
PF: predicated region fallthrough
CT: control target
= control target key end

     0   :  { %vm8_vm0 = vcmask 523264   ;;  %s23_s8 = smov 64   ;;  %vm14_vm1 = vcmask 1048064   ;;  %s40_s0 = inlined_call_operand.vmem [shape: f32[3,64], index: 0, kind: input, shape index: {}]   ;;  %s41_s1 = inlined_call_operand.vmem [shape: f32[192], index: 1, kind: output, shape index: {}]  }
   0x1   :  { %v4_v0 = vld [vmem:[%s40_s0] sm:$0xf]  ;;  %s6_s0 = smov 3 }
   0x2   :  { %5 = vst [vmem:[#allocation1] sm:$0xf] %v4_v0 }
   0x9   :  { %v11_v1 = vld [vmem:[#allocation1 + $0x1] sm:$0x1]   ;;  %v7_v2 = vld [vmem:[#allocation1] ss:$2 sm:%s6_s0]  }
   0xa   :  { %12 = vrot.lane.b32.xlu0 %v11_v1, %s23_s8  ;;  %9 = vst.msk [vmem:[#allocation0] sm:$0x3] %vm8_vm0, %v7_v2  }
  0x7c   :  { %v13_v3 = vpop.permute.xlu0 %12  }
  0x7d   :  { %15 = vst.msk [vmem:[#allocation0] sm:$0x1] %vm14_vm1, %v13_v3  }
  0x84   :  { %v19_v4 = vld [vmem:[#allocation0] sm:$0x3] }
  0x85   :  { %21 = vst [vmem:[%s41_s1] sm:$0x3] %v19_v4 }

// kernel: tile.9
= control target key start
LH: loop header
LB: loop body
LE: loop exit
PB: predicated region body
PF: predicated region fallthrough
CT: control target
= control target key end

     0   :  { %vm3_vm0 = vcmask 392192   ;;  %s34_s0 = inlined_call_operand.vmem [shape: f32[2,7,48], index: 0, kind: input, shape index: {}]   ;;  %s35_s1 = inlined_call_operand.vmem [shape: f32[14,48], index: 1, kind: output, shape index: {}]  }
   0x1   :  { %v2_v0 = vld [vmem:[%s34_s0] sm:$0x7f]   ;;  %v10_v1 = vld [vmem:[%s34_s0 + $0x8] sm:$0x7f]  }
   0x2   :  { %4 = vst.msk [vmem:[%s35_s1] sm:$0x7f] %vm3_vm0, %v2_v0   ;;  %11 = vst.msk [vmem:[%s35_s1 + $0x7] sm:$0x7f] %vm3_vm0, %v10_v1  }

// kernel: custom_clip_forward.1
= control target key start
LH: loop header
LB: loop body
LE: loop exit
PB: predicated region body
PF: predicated region fallthrough
CT: control target
= control target key end

     0   :  { %s10685_s6 = smov 1   ;;  %s10686_s10 = smov 2   ;;  %s12253_s0 = inlined_call_operand.smem [shape: u32[62], index: -1, kind: input, shape index: {}] }
   0x1   :  { %s10760_s5 = sld [smem:[%s12253_s0]]   ;;  %s10687_s14 = smov 3  }
   0x2   :  { %s10765_s9 = sld [smem:[%s12253_s0 + %s10685_s6]]   ;;  %s10688_s18 = smov 4  }
   0x3   :  { %s10770_s13 = sld [smem:[%s12253_s0 + %s10686_s10]]   ;;  %s10689_s22 = smov 5  }
   0x4   :  { %s10775_s17 = sld [smem:[%s12253_s0 + %s10687_s14]]   ;;  %s10690_s26 = smov 6  }
   0x5   :  { %s10780_s21 = sld [smem:[%s12253_s0 + %s10688_s18]]   ;;  %s10691_s30 = smov 7  }
   0x6   :  { %s10785_s25 = sld [smem:[%s12253_s0 + %s10689_s22]]   ;;  %s10692_s4 = smov 8  }
   0x7   :  { %s10790_s29 = sld [smem:[%s12253_s0 + %s10690_s26]]   ;;  %s10693_s10 = smov 9  }
   0x8   :  { %s10795_s3 = sld [smem:[%s12253_s0 + %s10691_s30]]   ;;  %s10694_s15 = smov 10  }
   0x9   :  { %12286 = sst [smem:[#allocation6_spill]] %s10770_s13  ;;  %s10695_s20 = smov 11  }
   0xa   :  { %12287 = sst [smem:[#allocation7_spill]] %s10775_s17  ;;  %s10696_s26 = smov 12  }
   0xb   :  { %12288 = sst [smem:[#allocation8_spill]] %s10780_s21  ;;  %s10697_s1 = smov 13  }
   0xc   :  { %12289 = sst [smem:[#allocation9_spill]] %s10785_s25  ;;  %s10698_s7 = smov 14  }
   0xd   :  { %12290 = sst [smem:[#allocation10_spill]] %s10790_s29  ;;  %s10700_s22 = smov 16  }
   0xe   :  { %12291 = sst [smem:[#allocation11_spill]] %s10795_s3  ;;  %s10701_s28 = smov 17  }
   0xf   :  { %s10800_s8 = sld [smem:[%s12253_s0 + %s10692_s4]]  }
  0x10   :  { %s10805_s14 = sld [smem:[%s12253_s0 + %s10693_s10]]  }
  0x11   :  { %s10810_s19 = sld [smem:[%s12253_s0 + %s10694_s15]]   ;;  %s10699_s15 = smov 15  }
  0x12   :  { %s10815_s24 = sld [smem:[%s12253_s0 + %s10695_s20]]  }
  0x13   :  { %s10820_s30 = sld [smem:[%s12253_s0 + %s10696_s26]]  }
  0x14   :  { %s10825_s6 = sld [smem:[%s12253_s0 + %s10697_s1]]  }
  0x15   :  { %12292 = sst [smem:[#allocation12_spill]] %s10800_s8 }
  0x16   :  { %s10830_s12 = sld [smem:[%s12253_s0 + %s10698_s7]]   ;;  %s10702_s7 = smov 18  }
  0x17   :  { %s10835_s20 = sld [smem:[%s12253_s0 + %s10699_s15]]   ;;  %s10703_s15 = smov 19  }
  0x18   :  { %s10840_s27 = sld [smem:[%s12253_s0 + %s10700_s22]]   ;;  %s10704_s22 = smov 20  }
  0x19   :  { %s10845_s4 = sld [smem:[%s12253_s0 + %s10701_s28]]   ;;  %s10705_s28 = smov 21  }
  0x1a   :  { %s10850_s25 = sld [smem:[%s12253_s0 + %s10702_s7]]   ;;  %s10706_s7 = smov 22  }
  0x1b   :  { %s10855_s8 = sld [smem:[%s12253_s0 + %s10703_s15]]   ;;  %s10707_s15 = smov 23  }
  0x1c   :  { %s10860_s3 = sld [smem:[%s12253_s0 + %s10704_s22]]   ;;  %s10708_s22 = smov 24  }
  0x1d   :  { %s10865_s29 = sld [smem:[%s12253_s0 + %s10705_s28]]   ;;  %s10709_s28 = smov 25  }
  0x1e   :  { %s10870_s21 = sld [smem:[%s12253_s0 + %s10706_s7]]   ;;  %s10710_s7 = smov 26  }
  0x1f   :  { %s10875_s17 = sld [smem:[%s12253_s0 + %s10707_s15]]   ;;  %s10711_s15 = smov 27  }
  0x20   :  { %s10880_s13 = sld [smem:[%s12253_s0 + %s10708_s22]]   ;;  %s10712_s22 = smov 28  }
  0x22   :  { %12293 = sst [smem:[#allocation13_spill]] %s10860_s3 }
  0x23   :  { %s10885_s3 = sld [smem:[%s12253_s0 + %s10709_s28]]   ;;  %s10713_s28 = smov 29  }
  0x24   :  { %12294 = sst [smem:[#allocation14_spill]] %s10870_s21 }
  0x25   :  { %12295 = sst [smem:[#allocation15_spill]] %s10875_s17 }
  0x26   :  { %12296 = sst [smem:[#allocation16_spill]] %s10880_s13 }
  0x27   :  { %s10890_s21 = sld [smem:[%s12253_s0 + %s10710_s7]]   ;;  %s10714_s7 = smov 30  }
  0x28   :  { %s10895_s17 = sld [smem:[%s12253_s0 + %s10711_s15]]   ;;  %s10715_s15 = smov 31  }
  0x29   :  { %12297 = sst [smem:[#allocation17_spill]] %s10885_s3 }
  0x2a   :  { %s10900_s13 = sld [smem:[%s12253_s0 + %s10712_s22]]   ;;  %s10716_s22 = smov 32  }
  0x2b   :  { %s10905_s3 = sld [smem:[%s12253_s0 + %s10713_s28]]   ;;  %s10717_s28 = smov 33  }
  0x2d   :  { %12298 = sst [smem:[#allocation18_spill]] %s10890_s21 }
  0x2e   :  { %12299 = sst [smem:[#allocation19_spill]] %s10895_s17 }
  0x2f   :  { %s10910_s21 = sld [smem:[%s12253_s0 + %s10714_s7]]   ;;  %s10718_s7 = smov 34  }
  0x30   :  { %12300 = sst [smem:[#allocation20_spill]] %s10900_s13 }
  0x31   :  { %12301 = sst [smem:[#allocation21_spill]] %s10905_s3 }
  0x32   :  { %s10915_s17 = sld [smem:[%s12253_s0 + %s10715_s15]]   ;;  %s10719_s15 = smov 35  }
  0x33   :  { %s10920_s13 = sld [smem:[%s12253_s0 + %s10716_s22]]   ;;  %s10720_s22 = smov 36  }
  0x34   :  { %s10925_s3 = sld [smem:[%s12253_s0 + %s10717_s28]]   ;;  %s10721_s28 = smov 37  }
  0x35   :  { %12302 = sst [smem:[#allocation22_spill]] %s10910_s21 }
  0x36   :  { %s10930_s21 = sld [smem:[%s12253_s0 + %s10718_s7]]   ;;  %s10722_s7 = smov 38  }
  0x38   :  { %12303 = sst [smem:[#allocation23_spill]] %s10915_s17 }
  0x39   :  { %12304 = sst [smem:[#allocation24_spill]] %s10920_s13 }
  0x3a   :  { %12305 = sst [smem:[#allocation25_spill]] %s10925_s3 }
  0x3b   :  { %s10935_s17 = sld [smem:[%s12253_s0 + %s10719_s15]]   ;;  %s10723_s15 = smov 39  }
  0x3c   :  { %12306 = sst [smem:[#allocation26_spill]] %s10930_s21 }
  0x3d   :  { %s10940_s13 = sld [smem:[%s12253_s0 + %s10720_s22]]   ;;  %s10724_s22 = smov 40  }
  0x3e   :  { %s10945_s3 = sld [smem:[%s12253_s0 + %s10721_s28]]   ;;  %s10725_s28 = smov 41  }
  0x3f   :  { %s10950_s21 = sld [smem:[%s12253_s0 + %s10722_s7]]   ;;  %s10726_s7 = smov 42  }
  0x41   :  { %12307 = sst [smem:[#allocation27_spill]] %s10935_s17 }
  0x42   :  { %s10955_s17 = sld [smem:[%s12253_s0 + %s10723_s15]]   ;;  %s10727_s15 = smov 43  }
  0x43   :  { %12308 = sst [smem:[#allocation28_spill]] %s10940_s13 }
  0x44   :  { %12309 = sst [smem:[#allocation29_spill]] %s10945_s3 }
  0x45   :  { %12310 = sst [smem:[#allocation30_spill]] %s10950_s21 }
  0x46   :  { %s10960_s13 = sld [smem:[%s12253_s0 + %s10724_s22]]   ;;  %s10728_s22 = smov 44  }
  0x47   :  { %s10965_s3 = sld [smem:[%s12253_s0 + %s10725_s28]]   ;;  %s10729_s28 = smov 45  }
  0x48   :  { %12311 = sst [smem:[#allocation31_spill]] %s10955_s17 }
  0x49   :  { %s10970_s21 = sld [smem:[%s12253_s0 + %s10726_s7]]   ;;  %s10730_s7 = smov 46  }
  0x4a   :  { %s10975_s17 = sld [smem:[%s12253_s0 + %s10727_s15]]   ;;  %s10731_s15 = smov 47  }
  0x4c   :  { %12312 = sst [smem:[#allocation32_spill]] %s10960_s13 }
  0x4d   :  { %12313 = sst [smem:[#allocation33_spill]] %s10965_s3 }
  0x4e   :  { %s10980_s13 = sld [smem:[%s12253_s0 + %s10728_s22]]   ;;  %s10732_s22 = smov 48  }
  0x4f   :  { %12314 = sst [smem:[#allocation34_spill]] %s10970_s21 }
  0x50   :  { %12315 = sst [smem:[#allocation35_spill]] %s10975_s17 }
  0x51   :  { %s10985_s3 = sld [smem:[%s12253_s0 + %s10729_s28]]   ;;  %s10733_s28 = smov 49  }
  0x52   :  { %s10990_s21 = sld [smem:[%s12253_s0 + %s10730_s7]]   ;;  %s10734_s7 = smov 50  }
  0x53   :  { %s10995_s17 = sld [smem:[%s12253_s0 + %s10731_s15]]   ;;  %s10735_s15 = smov 51  }
  0x54   :  { %12316 = sst [smem:[#allocation36_spill]] %s10980_s13 }
  0x55   :  { %s11000_s13 = sld [smem:[%s12253_s0 + %s10732_s22]]   ;;  %s10736_s22 = smov 52  }
  0x57   :  { %12317 = sst [smem:[#allocation37_spill]] %s10985_s3 }
  0x58   :  { %12318 = sst [smem:[#allocation38_spill]] %s10990_s21 }
  0x59   :  { %12319 = sst [smem:[#allocation39_spill]] %s10995_s17 }
  0x5a   :  { %s11005_s3 = sld [smem:[%s12253_s0 + %s10733_s28]]   ;;  %s10737_s28 = smov 53  }
  0x5b   :  { %12320 = sst [smem:[#allocation40_spill]] %s11000_s13 }
  0x5c   :  { %s11010_s21 = sld [smem:[%s12253_s0 + %s10734_s7]]   ;;  %s10738_s7 = smov 54  }
  0x5d   :  { %s11015_s17 = sld [smem:[%s12253_s0 + %s10735_s15]]   ;;  %s10739_s15 = smov 55  }
  0x5e   :  { %s11020_s13 = sld [smem:[%s12253_s0 + %s10736_s22]]   ;;  %s10740_s22 = smov 56  }
  0x60   :  { %12321 = sst [smem:[#allocation41_spill]] %s11005_s3 }
  0x61   :  { %s11025_s3 = sld [smem:[%s12253_s0 + %s10737_s28]]   ;;  %s10741_s28 = smov 57  }
  0x62   :  { %12322 = sst [smem:[#allocation42_spill]] %s11010_s21 }
  0x63   :  { %12323 = sst [smem:[#allocation43_spill]] %s11015_s17 }
  0x64   :  { %12324 = sst [smem:[#allocation44_spill]] %s11020_s13 }
  0x65   :  { %s11030_s21 = sld [smem:[%s12253_s0 + %s10738_s7]]   ;;  %s10742_s7 = smov 58  }
  0x66   :  { %s11035_s17 = sld [smem:[%s12253_s0 + %s10739_s15]]   ;;  %s10743_s15 = smov 59  }
  0x67   :  { %12325 = sst [smem:[#allocation45_spill]] %s11025_s3 }
  0x68   :  { %s11040_s13 = sld [smem:[%s12253_s0 + %s10740_s22]]   ;;  %s10744_s22 = smov 60  }
  0x69   :  { %s11045_s3 = sld [smem:[%s12253_s0 + %s10741_s28]]   ;;  %s10745_s28 = smov 61  }
  0x6b   :  { %12326 = sst [smem:[#allocation46_spill]] %s11030_s21 }
  0x6c   :  { %12327 = sst [smem:[#allocation47_spill]] %s11035_s17 }
  0x6d   :  { %s11050_s21 = sld [smem:[%s12253_s0 + %s10742_s7]]  }
  0x6e   :  { %12328 = sst [smem:[#allocation48_spill]] %s11040_s13 }
  0x6f   :  { %12329 = sst [smem:[#allocation49_spill]] %s11045_s3 }
  0x70   :  { %s11055_s17 = sld [smem:[%s12253_s0 + %s10743_s15]]  }
  0x71   :  { %s11060_s13 = sld [smem:[%s12253_s0 + %s10744_s22]]  }
  0x72   :  { %s11065_s3 = sld [smem:[%s12253_s0 + %s10745_s28]]  }
  0x73   :  { %v11068_v0 = vld [vmem:[%s10760_s5] sm:$0xff]  ;;  %vm270_vm0 = vcmask 261120   ;;  %v11071_v1 = vld [vmem:[%s10760_s5 + $0x10] sm:$0xff]  ;;  %v11074_v2 = vld [vmem:[%s10760_s5 + $0x8] sm:$0xff] }
  0x74   :  { %v271_v3 = vsel %vm270_vm0, %v11068_v0, 0.0  ;;  %v277_v4 = vsel %vm270_vm0, %v11071_v1, 0.0  ;;  %v11081_v5 = vld [vmem:[%s10760_s5 + $0x18] sm:$0xff] }
  0x75   :  { %129 = vsyncpa [#allocation4], 0  ;;  %272 = vadd.xlane.f32.xlu0 %v271_v3  ;;  %278 = vadd.xlane.f32.xlu1 %v277_v4  ;;  %v274_v6 = vsel %vm270_vm0, %v11074_v2, 0.0  ;;  %v280_v7 = vsel %vm270_vm0, %v11081_v5, 0.0  ;;  %v344_v28 = vld [vmem:[%s10815_s24] sm:$0xff]  ;;  %v345_v29 = vld [vmem:[%s10815_s24 + $0x8] sm:$0xff] }
  0x76   :  { %v452_v30 = vld [vmem:[%s10820_s30] sm:$0xff]  ;;  %v9694_v31 = vpack.c.bf16 %v345_v29, %v344_v28  ;;  %v453_v32 = vld [vmem:[%s10820_s30 + $0x8] sm:$0xff]  ;;  %v346_v34 = vld [vmem:[%s10815_s24 + $0x10] sm:$0xff]  ;;  %vm644_vm1 = vcmask 130048   ;;  %s12332_s0 = sld [smem:[#allocation13_spill]]  ;;  %s12333_s5 = sld [smem:[#allocation15_spill]] }
  0x77   :  { %v9702_v33 = vpack.c.bf16 %v453_v32, %v452_v30  ;;  %v347_v35 = vld [vmem:[%s10815_s24 + $0x18] sm:$0xff]  ;;  %v454_v37 = vld [vmem:[%s10820_s30 + $0x10] sm:$0xff]  ;;  %v548_v40 = vld [vmem:[%s10825_s6] sm:$0xff]  ;;  %s12334_s7 = sld [smem:[#allocation6_spill]]  ;;  %s12335_s10 = sld [smem:[#allocation7_spill]]  ;;  %vm2013_vm3 = vcmask 1041408  }
  0x78   :  { %9695 = vmatprep.subr.bf16.mxu0 %v9694_v31  ;;  %v9698_v36 = vpack.c.bf16 %v347_v35, %v346_v34  ;;  %v455_v38 = vld [vmem:[%s10820_s30 + $0x18] sm:$0xff]  ;;  %v549_v41 = vld [vmem:[%s10825_s6 + $0x8] sm:$0xff]  ;;  %v7991_v56 = vld [vmem:[%s10805_s14] ss:$0 sm:$0xff]  ;;  %s12336_s11 = sld [smem:[#allocation8_spill]]  ;;  %vm2000_vm4 = vcmask 15360  }
  0x79   :  { %275 = vadd.xlane.f32.xlu0 %v274_v6  ;;  %281 = vadd.xlane.f32.xlu1 %v280_v7  ;;  %v9706_v39 = vpack.c.bf16 %v455_v38, %v454_v37  ;;  %v9710_v42 = vpack.c.bf16 %v549_v41, %v548_v40  ;;  %v7992_v58 = vld [vmem:[%s10810_s19] ss:$0 sm:$0xff]  ;;  %v550_v6 = vld [vmem:[%s10825_s6 + $0x10] sm:$0xff]  ;;  %v551_v7 = vld [vmem:[%s10825_s6 + $0x18] sm:$0xff]  ;;  %s12337_s15 = sld [smem:[#allocation14_spill]]  ;;  %s12338_s16 = sld [smem:[#allocation16_spill]] }
  0x7a   :  { %9703 = vmatprep.subr.bf16.mxu1 %v9702_v33  ;;  %9697 = vmatpush3.bf16.msra.mxu0 %v9694_v31  ;;  %vm11155_vm2 = vmpackc.low %vm644_vm1, %vm644_vm1  ;;  %v8031_v37 = vld [vmem:[%s10820_s30 + $0x28] sm:$0xff]  ;;  %vm10748_vm5 = vmmov 0   ;;  %vm4238_vm6 = vcmask 523264   ;;  %vm4316_vm7 = vcmask 64512   ;;  %vm4492_vm8 = vcmask 390144   ;;  %s12352_s18 = sld [smem:[#allocation25_spill]] }
  0x7b   :  { %9705 = vmatpush3.bf16.msra.mxu1 %v9702_v33  ;;  %9699 = vmatprep.subr.bf16.mxu0 %v9698_v36  ;;  %v8003_v33 = vld [vmem:[%s10840_s27] ss:$0 sm:$0xff]  ;;  %vm4488_vm9 = vcmask 392192   ;;  %s12353_s22 = sld [smem:[#allocation26_spill]]  ;;  %s12354_s23 = sld [smem:[#allocation38_spill]]  ;;  %vm4847_vm10 = vcmask 195584  }
  0x7c   :  { %9707 = vmatprep.subr.bf16.mxu1 %v9706_v39  ;;  %s12355_s26 = sld [smem:[#allocation39_spill]]  ;;  %s12356_s28 = sld [smem:[#allocation36_spill]]  ;;  %vm11787_vm11 = vmpackc.low %vm4847_vm10, %vm4847_vm10  ;;  %vm4969_vm12 = vcmask 1045504   ;;  %vm10750_vm13 = vmmov 1   ;;  %vm4943_vm15 = vcmask 111616  }
  0x7d   :  { %s12357_s1 = sld [smem:[#allocation37_spill]]  ;;  %s12358_s2 = sld [smem:[#allocation40_spill]]  ;;  %vm11797_vm14 = vmpackc.low %vm4969_vm12, %vm10750_vm13 }
  0x7e   :  { %9701 = vmatpush3.bf16.msra.mxu0 %v9698_v36  ;;  %v8030_v36 = vld [vmem:[%s10820_s30 + $0x20] sm:$0xff] }
  0x7f   :  { %9709 = vmatpush3.bf16.msra.mxu1 %v9706_v39  ;;  %9711 = vmatprep.subr.bf16.mxu0 %v9710_v42  ;;  %v9746_v41 = vpack.c.bf16 %v8031_v37, %v8030_v36 }
 0x102   :  { %v273_v8 = vpop.xlane.xlu0 %272  ;;  %v279_v9 = vpop.xlane.xlu1 %278 }
 0x103   :  { %v284_v10 = vmul.f32 0.03125, %v273_v8  ;;  %v286_v11 = vmul.f32 0.03125, %v279_v9 }
 0x105   :  { %v288_v12 = vsub.f32 %v11068_v0, %v284_v10  ;;  %v11089_v13 = vsub.f32 %v11071_v1, %v286_v11 }
 0x106   :  { %v276_v14 = vpop.xlane.xlu0 %275  ;;  %v282_v15 = vpop.xlane.xlu1 %281 }
 0x107   :  { %v285_v16 = vmul.f32 0.03125, %v276_v14  ;;  %v287_v17 = vmul.f32 0.03125, %v282_v15  ;;  %v292_v18 = vmul.f32 %v288_v12, %v288_v12  ;;  %v294_v19 = vmul.f32 %v11089_v13, %v11089_v13 }
 0x108   :  { %v9714_v14 = vpack.c.bf16 %v551_v7, %v550_v6 }
 0x109   :  { %v289_v20 = vsub.f32 %v11074_v2, %v285_v16  ;;  %v11095_v21 = vsub.f32 %v11081_v5, %v287_v17  ;;  %v296_v22 = vsel %vm270_vm0, %v292_v18, 0.0  ;;  %v302_v23 = vsel %vm270_vm0, %v294_v19, 0.0  ;;  %v7998_v16 = vld [vmem:[%s10835_s20] ss:$0 sm:$0xff] }
 0x10a   :  { %297 = vadd.xlane.f32.xlu0 %v296_v22  ;;  %v7993_v17 = vld [vmem:[%s10830_s12] ss:$0 sm:$0xff] }
 0x10b   :  { %v293_v24 = vmul.f32 %v289_v20, %v289_v20  ;;  %v295_v25 = vmul.f32 %v11095_v21, %v11095_v21 }
 0x10d   :  { %v299_v26 = vsel %vm270_vm0, %v293_v24, 0.0  ;;  %v305_v27 = vsel %vm270_vm0, %v295_v25, 0.0 }
 0x10e   :  { %303 = vadd.xlane.f32.xlu0 %v302_v23  ;;  %300 = vadd.xlane.f32.xlu1 %v299_v26 }
 0x112   :  { %306 = vadd.xlane.f32.xlu1 %v305_v27 }
 0x197   :  { %v298_v43 = vpop.xlane.xlu0 %297 }
 0x198   :  { %v308_v44 = vmul.f32 0.03125, %v298_v43 }
 0x19a   :  { %v312_v45 = vadd.f32 1e-05, %v308_v44 }
 0x19b   :  { %v301_v46 = vpop.xlane.xlu1 %300  ;;  %v304_v47 = vpop.xlane.xlu0 %303 }
 0x19c   :  { %10428 = vrsqrt.f32 %v312_v45  ;;  %v309_v48 = vmul.f32 0.03125, %v301_v46  ;;  %v310_v49 = vmul.f32 0.03125, %v304_v47 }
 0x19e   :  { %v313_v50 = vadd.f32 1e-05, %v309_v48  ;;  %v314_v51 = vadd.f32 1e-05, %v310_v49  ;;  %v8032_v48 = vld [vmem:[%s10820_s30 + $0x30] sm:$0xff]  ;;  %v8033_v49 = vld [vmem:[%s10820_s30 + $0x38] sm:$0xff] }
 0x19f   :  { %v307_v52 = vpop.xlane.xlu1 %306 }
 0x1a0   :  { %10430 = vrsqrt.f32 %v313_v50  ;;  %v311_v53 = vmul.f32 0.03125, %v307_v52 }
 0x1a1   :  { %10432 = vrsqrt.f32 %v314_v51  ;;  %v9750_v51 = vpack.c.bf16 %v8033_v49, %v8032_v48 }
 0x1a2   :  { %v315_v54 = vadd.f32 1e-05, %v311_v53 }
 0x1a4   :  { %10434 = vrsqrt.f32 %v315_v54 }
 0x1a6   :  { %v10429_v55 = vpop.eup %10428 }
 0x1a7   :  { %v320_v57 = vmul.f32 %v10429_v55, %v288_v12  ;;  %v11185_v55 = vld [vmem:[%s10765_s9 + $0x8] sm:$0xff] }
 0x1a9   :  { %v330_v59 = vmul.f32 %v7991_v56, %v320_v57 }
 0x1aa   :  { %v10431_v60 = vpop.eup %10430 }
 0x1ab   :  { %v10433_v61 = vpop.eup %10432  ;;  %v321_v62 = vmul.f32 %v10431_v60, %v289_v20  ;;  %v11115_v63 = vadd.f32 %v7992_v58, %v330_v59 }
 0x1ac   :  { %v322_v3 = vmul.f32 %v10433_v61, %v11089_v13 }
 0x1ad   :  { %v331_v4 = vmul.f32 %v7991_v56, %v321_v62  ;;  %8912 = vmatprep.mubr.msk.f32.mxu0 %vm270_vm0, %v11115_v63  ;;  %8926 = vmatprep.mubr.msk.f32.mxu1 %vm270_vm0, %v11115_v63 }
 0x1ae   :  { %v10435_v8 = vpop.eup %10434  ;;  %v332_v9 = vmul.f32 %v7991_v56, %v322_v3  ;;  %v11193_v3 = vld [vmem:[%s10765_s9 + $0x18] sm:$0xff] }
 0x1af   :  { %v323_v10 = vmul.f32 %v10435_v8, %v11095_v21  ;;  %v11125_v11 = vadd.f32 %v7992_v58, %v331_v4  ;;  %v11197_v8 = vld [vmem:[%s10765_s9 + $0x10] sm:$0xff] }
 0x1b0   :  { %v11127_v12 = vadd.f32 %v7992_v58, %v332_v9 }
 0x1b1   :  { %v333_v13 = vmul.f32 %v7991_v56, %v323_v10  ;;  %8913 = vmatmul.mubr.msk.f32.vlgmr.msra.gmra.mrb[0].mxu0 %vm270_vm0, %v11125_v11  ;;  %8927 = vmatmul.mubr.msk.f32.vlgmr.msra.gmra.mrb[0].mxu1 %vm270_vm0, %v11125_v11 }
 0x1b2   :  { %8915 = vmatprep.mubr.msk.f32.mxu0 %vm270_vm0, %v11127_v12  ;;  %8929 = vmatprep.mubr.msk.f32.mxu1 %vm270_vm0, %v11127_v12 }
 0x1b3   :  { %9713 = vmatpush3.bf16.msra.mxu0 %v9710_v42  ;;  %v11137_v15 = vadd.f32 %v7992_v58, %v333_v13  ;;  %v11188_v58 = vld [vmem:[%s10765_s9] sm:$0xff] }
 0x1b4   :  { %9715 = vmatprep.subr.bf16.mxu0 %v9714_v14 }
 0x1b5   :  { %8916 = vmatmul.mubr.msk.f32.gmra.mrb[2].mxu0 %vm270_vm0, %v11137_v15  ;;  %8930 = vmatmul.mubr.msk.f32.gmra.mrb[2].mxu1 %vm270_vm0, %v11137_v15 }
 0x1b6   :  { %8940 = vmatprep.mubr.msk.f32.mxu0 %vm270_vm0, %v11115_v63 }
 0x1b7   :  { %9717 = vmatpush3.bf16.msra.mxu0 %v9714_v14  ;;  %v8035_v14 = vld [vmem:[%s10835_s20 + $0x1] ss:$0 sm:$0xff] }
 0x1ba   :  { %8941 = vmatmul.mubr.msk.f32.vlgmr.msra.gmra.mrb[4].mxu0 %vm270_vm0, %v11125_v11 }
 0x1bb   :  { %8943 = vmatprep.mubr.msk.f32.mxu0 %vm270_vm0, %v11127_v12 }
 0x1be   :  { %8944 = vmatmul.mubr.msk.f32.gmra.mrb[6].mxu0 %vm270_vm0, %v11137_v15 }
 0x284   :  { %v8914_v18 = vpop.f32.mrb[0].mxu0  ;;  %v8928_v19 = vpop.f32.mrb[0].mxu1 }
 0x285   :  { %v535_v20 = vadd.f32 %v8928_v19, %v7998_v16  ;;  %v433_v21 = vpop.f32.mrb[1].mxu0  ;;  %v529_v22 = vpop.f32.mrb[1].mxu1  ;;  %v439_v50 = vadd.f32 %v8914_v18, %v7993_v17 }
 0x286   :  { %v434_v23 = vadd.f32 %v7993_v17, %v433_v21  ;;  %v530_v24 = vadd.f32 %v7998_v16, %v529_v22 }
 0x288   :  { %v9718_v26 = vpack.c.bf16 %v535_v20, %v530_v24  ;;  %v8917_v27 = vpop.f32.mrb[2].mxu0  ;;  %v8931_v28 = vpop.f32.mrb[2].mxu1  ;;  %8954 = vmatprep.mubr.msk.f32.mxu1 %vm644_vm1, %v434_v23 }
 0x289   :  { %v545_v29 = vadd.f32 %v8931_v28, %v7998_v16  ;;  %v443_v30 = vpop.f32.mrb[3].mxu0  ;;  %v539_v31 = vpop.f32.mrb[3].mxu1  ;;  %v449_v53 = vadd.f32 %v8917_v27, %v7993_v17 }
 0x28a   :  { %v540_v32 = vadd.f32 %v7998_v16, %v539_v31  ;;  %9720 = vmatprep.subr.msk.bf16.mxu1 %vm11155_vm2, %v9718_v26  ;;  %v444_v52 = vadd.f32 %v7993_v17, %v443_v30 }
 0x28b   :  { %9723 = vmatpush3.bf16.xpose.msk.msra.mxu1 %vm11155_vm2, %v9718_v26 }
 0x28c   :  { %v9724_v34 = vpack.c.bf16 %v545_v29, %v540_v32 }
 0x28d   :  { %v8942_v35 = vpop.f32.mrb[4].mxu0 }
 0x28e   :  { %v631_v38 = vadd.f32 %v8942_v35, %v8003_v33  ;;  %v625_v39 = vpop.f32.mrb[5].mxu0  ;;  %9726 = vmatprep.subr.msk.bf16.mxu1 %vm11155_vm2, %v9724_v34 }
 0x28f   :  { %v626_v40 = vadd.f32 %v8003_v33, %v625_v39 }
 0x291   :  { %v9730_v42 = vpack.c.bf16 %v631_v38, %v626_v40  ;;  %v8945_v43 = vpop.f32.mrb[6].mxu0 }
 0x292   :  { %v641_v44 = vadd.f32 %v8945_v43, %v8003_v33  ;;  %v635_v45 = vpop.f32.mrb[7].mxu0 }
 0x293   :  { %v636_v46 = vadd.f32 %v8003_v33, %v635_v45  ;;  %9731 = vmatprep.subr.bf16.mxu0 %v9730_v42  ;;  %9729 = vmatpush3.bf16.xpose.msk.msra.mxu1 %vm11155_vm2, %v9724_v34 }
 0x294   :  { %9733 = vmatpush3.bf16.msra.mxu0 %v9730_v42  ;;  %9747 = vmatprep.subr.bf16.mxu1 %v9746_v41 }
 0x295   :  { %v9734_v47 = vpack.c.bf16 %v641_v44, %v636_v46 }
 0x297   :  { %9735 = vmatprep.subr.bf16.mxu0 %v9734_v47 }
 0x298   :  { %9737 = vmatpush3.bf16.msra.mxu0 %v9734_v47 }
 0x29a   :  { %8955 = vmatmul.mubr.msk.f32.vlgmr.msra.gmra.mrb[4].mxu1 %vm644_vm1, %v439_v50  ;;  %v8020_v50 = vld [vmem:[%s10815_s24 + $0x20] sm:$0xff] }
 0x29b   :  { %8957 = vmatprep.mubr.msk.f32.mxu1 %vm644_vm1, %v444_v52  ;;  %9749 = vmatpush3.bf16.msra.mxu1 %v9746_v41 }
 0x29c   :  { %9751 = vmatprep.subr.bf16.mxu1 %v9750_v51 }
 0x29e   :  { %8958 = vmatmul.mubr.msk.f32.gmra.mrb[6].mxu1 %vm644_vm1, %v449_v53 }
 0x29f   :  { %9753 = vmatpush3.bf16.msra.mxu1 %v9750_v51  ;;  %8996 = vmatprep.mubr.msk.f32.mxu1 %vm270_vm0, %v11115_v63  ;;  %v8021_v51 = vld [vmem:[%s10815_s24 + $0x28] sm:$0xff] }
 0x2a0   :  { %v9738_v52 = vpack.c.bf16 %v8021_v51, %v8020_v50 }
 0x2a2   :  { %8997 = vmatmul.mubr.msk.f32.vlgmr.msra.gmra.mrb[8].mxu1 %vm270_vm0, %v11125_v11  ;;  %9739 = vmatprep.subr.bf16.mxu0 %v9738_v52 }
 0x2a3   :  { %8999 = vmatprep.mubr.msk.f32.mxu1 %vm270_vm0, %v11127_v12 }
 0x2a6   :  { %9000 = vmatmul.mubr.msk.f32.gmra.mrb[10].mxu1 %vm270_vm0, %v11137_v15 }
 0x36d   :  { %v8956_v54 = vpop.f32.mrb[4].mxu1 }
 0x36e   :  { %v755_v56 = vmul.f32 0.25, %v8956_v54  ;;  %v735_v57 = vpop.f32.mrb[5].mxu1 }
 0x36f   :  { %v754_v59 = vmul.f32 0.25, %v735_v57 }
 0x370   :  { %v759_v60 = vadd.f32 %v755_v56, %v11185_v55 }
 0x371   :  { %v8959_v61 = vpop.f32.mrb[6].mxu1  ;;  %v758_v62 = vadd.f32 %v754_v59, %v11188_v58 }
 0x372   :  { %v757_v4 = vmul.f32 0.25, %v8959_v61  ;;  %v745_v6 = vpop.f32.mrb[7].mxu1  ;;  %v765_v7 = vsel %vm270_vm0, %v759_v60, -inf  ;;  %v8023_v61 = vld [vmem:[%s10815_s24 + $0x38] sm:$0xff] }
 0x373   :  { %v756_v9 = vmul.f32 0.25, %v745_v6  ;;  %766 = vmax.xlane.f32.xlu1 %v765_v7  ;;  %v762_v10 = vsel %vm270_vm0, %v758_v62, -inf }
 0x374   :  { %763 = vmax.xlane.f32.xlu0 %v762_v10  ;;  %v761_v13 = vadd.f32 %v757_v4, %v11193_v3  ;;  %v8040_v10 = vld [vmem:[%s10825_s6 + $0x20] sm:$0xff] }
 0x375   :  { %v8998_v16 = vpop.f32.mrb[8].mxu1  ;;  %v760_v17 = vadd.f32 %v756_v9, %v11197_v8 }
 0x376   :  { %v1088_v18 = vadd.f32 %v8998_v16, %v8035_v14  ;;  %v1082_v19 = vpop.f32.mrb[9].mxu1  ;;  %v771_v20 = vsel %vm270_vm0, %v761_v13, -inf }
 0x377   :  { %v1083_v21 = vadd.f32 %v8035_v14, %v1082_v19  ;;  %772 = vmax.xlane.f32.xlu1 %v771_v20  ;;  %v768_v22 = vsel %vm270_vm0, %v760_v17, -inf  ;;  %v8042_v19 = vld [vmem:[%s10825_s6 + $0x30] sm:$0xff]  ;;  %v8043_v20 = vld [vmem:[%s10825_s6 + $0x38] sm:$0xff] }
 0x378   :  { %769 = vmax.xlane.f32.xlu0 %v768_v22 }
 0x379   :  { %v9762_v23 = vpack.c.bf16 %v1088_v18, %v1083_v21  ;;  %v9001_v24 = vpop.f32.mrb[10].mxu1  ;;  %v9758_v21 = vpack.c.bf16 %v8043_v20, %v8042_v19 }
 0x37a   :  { %v1098_v26 = vadd.f32 %v9001_v24, %v8035_v14  ;;  %v1092_v27 = vpop.f32.mrb[11].mxu1 }
 0x37b   :  { %v1093_v28 = vadd.f32 %v8035_v14, %v1092_v27  ;;  %9764 = vmatprep.subr.msk.bf16.mxu1 %vm11155_vm2, %v9762_v23  ;;  %v8041_v14 = vld [vmem:[%s10825_s6 + $0x28] sm:$0xff]  ;;  %v8025_v27 = vld [vmem:[%s10830_s12 + $0x1] ss:$0 sm:$0xff] }
 0x37c   :  { %9767 = vmatpush3.bf16.xpose.msk.msra.mxu1 %vm11155_vm2, %v9762_v23  ;;  %v9754_v18 = vpack.c.bf16 %v8041_v14, %v8040_v10 }
 0x37d   :  { %v9768_v29 = vpack.c.bf16 %v1098_v26, %v1093_v28 }
 0x37f   :  { %9770 = vmatprep.subr.msk.bf16.mxu1 %vm11155_vm2, %v9768_v29 }
 0x384   :  { %9773 = vmatpush3.bf16.xpose.msk.msra.mxu1 %vm11155_vm2, %v9768_v29 }
 0x400   :  { %v767_v30 = vpop.xlane.xlu1 %766 }
 0x401   :  { %v775_v31 = vsub.f32 %v759_v60, %v767_v30  ;;  %v764_v32 = vpop.xlane.xlu0 %763  ;;  %v8022_v60 = vld [vmem:[%s10815_s24 + $0x30] sm:$0xff] }
 0x402   :  { %v774_v33 = vsub.f32 %v758_v62, %v764_v32  ;;  %v9742_v7 = vpack.c.bf16 %v8023_v61, %v8022_v60 }
 0x403   :  { %v780_v34 = vmul.f32 1.442695, %v775_v31  ;;  %v8045_v31 = vld [vmem:[%s10840_s27 + $0x1] ss:$0 sm:$0xff] }
 0x404   :  { %v778_v35 = vmul.f32 1.442695, %v774_v33  ;;  %v773_v36 = vpop.xlane.xlu1 %772 }
 0x405   :  { %10436 = vpow2.f32 %v780_v34  ;;  %v777_v37 = vsub.f32 %v761_v13, %v773_v36  ;;  %v770_v38 = vpop.xlane.xlu0 %769 }
 0x406   :  { %10438 = vpow2.f32 %v778_v35  ;;  %v776_v39 = vsub.f32 %v760_v17, %v770_v38 }
 0x407   :  { %v784_v40 = vmul.f32 1.442695, %v777_v37 }
 0x408   :  { %v782_v41 = vmul.f32 1.442695, %v776_v39 }
 0x409   :  { %10440 = vpow2.f32 %v784_v40 }
 0x40a   :  { %10442 = vpow2.f32 %v782_v41 }
 0x40f   :  { %v10437_v42 = vpop.eup %10436 }
 0x410   :  { %v10439_v43 = vpop.eup %10438  ;;  %v789_v44 = vsel %vm270_vm0, %v10437_v42, 0.0 }
 0x411   :  { %790 = vadd.xlane.f32.xlu1 %v789_v44  ;;  %v786_v45 = vsel %vm270_vm0, %v10439_v43, 0.0 }
 0x412   :  { %787 = vadd.xlane.f32.xlu0 %v786_v45 }
 0x413   :  { %v10441_v46 = vpop.eup %10440 }
 0x414   :  { %v10443_v47 = vpop.eup %10442  ;;  %v795_v48 = vsel %vm270_vm0, %v10441_v46, 0.0 }
 0x415   :  { %796 = vadd.xlane.f32.xlu1 %v795_v48  ;;  %v792_v49 = vsel %vm270_vm0, %v10443_v47, 0.0 }
 0x416   :  { %793 = vadd.xlane.f32.xlu0 %v792_v49 }
 0x49e   :  { %v791_v53 = vpop.xlane.xlu1 %790 }
 0x49f   :  { %10444 = vrcp.f32 %v791_v53  ;;  %v788_v54 = vpop.xlane.xlu0 %787 }
 0x4a0   :  { %10446 = vrcp.f32 %v788_v54 }
 0x4a2   :  { %v797_v56 = vpop.xlane.xlu1 %796 }
 0x4a3   :  { %10448 = vrcp.f32 %v797_v56  ;;  %v794_v57 = vpop.xlane.xlu0 %793 }
 0x4a4   :  { %10450 = vrcp.f32 %v794_v57 }
 0x4a9   :  { %v10445_v59 = vpop.eup %10444 }
 0x4aa   :  { %v10447_v62 = vpop.eup %10446  ;;  %v803_v6 = vmul.f32 %v10445_v59, %v10437_v42 }
 0x4ab   :  { %v802_v4 = vmul.f32 %v10447_v62, %v10439_v43 }
 0x4ad   :  { %v10449_v9 = vpop.eup %10448  ;;  %8968 = vmatprep.mubr.msk.f32.mxu0 %vm270_vm0, %v802_v4 }
 0x4ae   :  { %v10451_v13 = vpop.eup %10450  ;;  %8969 = vmatmul.mubr.msk.f32.vlgmr.msra.gmra.mrb[8].mxu0 %vm270_vm0, %v803_v6  ;;  %v805_v17 = vmul.f32 %v10449_v9, %v10441_v46 }
 0x4af   :  { %9741 = vmatpush3.bf16.msra.mxu0 %v9738_v52  ;;  %v804_v16 = vmul.f32 %v10451_v13, %v10443_v47 }
 0x4b0   :  { %9743 = vmatprep.subr.bf16.mxu0 %v9742_v7 }
 0x4b1   :  { %8971 = vmatprep.mubr.msk.f32.mxu0 %vm270_vm0, %v804_v16 }
 0x4b2   :  { %8972 = vmatmul.mubr.msk.f32.gmra.mrb[10].mxu0 %vm270_vm0, %v805_v17 }
 0x4b3   :  { %9745 = vmatpush3.bf16.msra.mxu0 %v9742_v7  ;;  %8982 = vmatprep.mubr.msk.f32.mxu0 %vm270_vm0, %v11115_v63 }
 0x4b4   :  { %9755 = vmatprep.subr.bf16.mxu0 %v9754_v18 }
 0x4b6   :  { %8983 = vmatmul.mubr.msk.f32.vlgmr.msra.gmra.mrb[12].mxu0 %vm270_vm0, %v11125_v11 }
 0x4b7   :  { %8985 = vmatprep.mubr.msk.f32.mxu0 %vm270_vm0, %v11127_v12  ;;  %9757 = vmatpush3.bf16.msra.mxu0 %v9754_v18 }
 0x4b8   :  { %9759 = vmatprep.subr.bf16.mxu0 %v9758_v21 }
 0x4ba   :  { %8986 = vmatmul.mubr.msk.f32.gmra.mrb[14].mxu0 %vm270_vm0, %v11137_v15 }
 0x4bb   :  { %9761 = vmatpush3.bf16.msra.mxu0 %v9758_v21  ;;  %9010 = vmatprep.mubr.msk.f32.mxu0 %vm270_vm0, %v11115_v63 }
 0x4be   :  { %9011 = vmatmul.mubr.msk.f32.vlgmr.msra.gmra.mrb[16].mxu0 %vm270_vm0, %v11125_v11 }
 0x4bf   :  { %9013 = vmatprep.mubr.msk.f32.mxu0 %vm270_vm0, %v11127_v12 }
 0x4c2   :  { %9014 = vmatmul.mubr.msk.f32.gmra.mrb[18].mxu0 %vm270_vm0, %v11137_v15 }
 0x581   :  { %v11245_v22 = vpop.f32.mrb[8].mxu0 }
 0x582   :  { %v11247_v23 = vpop.f32.mrb[9].mxu0 }
 0x585   :  { %v11249_v24 = vpop.f32.mrb[10].mxu0 }
 0x586   :  { %v11251_v26 = vpop.f32.mrb[11].mxu0 }
 0x589   :  { %v8984_v63 = vpop.f32.mrb[12].mxu0 }
 0x58a   :  { %v984_v28 = vpop.f32.mrb[13].mxu0  ;;  %v990_v11 = vadd.f32 %v8984_v63, %v8025_v27  ;;  %v8062_v63 = vld [vmem:[%s10845_s4 + $0x10] sm:$0xff] }
 0x58b   :  { %v985_v29 = vadd.f32 %v8025_v27, %v984_v28  ;;  %v8063_v28 = vld [vmem:[%s10845_s4 + $0x18] sm:$0xff] }
 0x58d   :  { %v8987_v30 = vpop.f32.mrb[14].mxu0  ;;  %9024 = vmatprep.mubr.msk.f32.mxu1 %vm644_vm1, %v985_v29  ;;  %v9782_v29 = vpack.c.bf16 %v8063_v28, %v8062_v63  ;;  %v1746_v63 = vld [vmem:[%s10865_s29 + $0x18] sm:$0xff] }
 0x58e   :  { %v994_v12 = vpop.f32.mrb[15].mxu0  ;;  %9025 = vmatmul.mubr.msk.f32.vlgmr.msra.gmra.mrb[12].mxu1 %vm644_vm1, %v990_v11  ;;  %v1000_v32 = vadd.f32 %v8987_v30, %v8025_v27 }
 0x58f   :  { %v995_v15 = vadd.f32 %v8025_v27, %v994_v12 }
 0x591   :  { %v9012_v33 = vpop.f32.mrb[16].mxu0  ;;  %9027 = vmatprep.mubr.msk.f32.mxu1 %vm644_vm1, %v995_v15 }
 0x592   :  { %v1186_v34 = vadd.f32 %v9012_v33, %v8045_v31  ;;  %v1180_v35 = vpop.f32.mrb[17].mxu0  ;;  %9028 = vmatmul.mubr.msk.f32.gmra.mrb[14].mxu1 %vm644_vm1, %v1000_v32 }
 0x593   :  { %v1181_v36 = vadd.f32 %v8045_v31, %v1180_v35 }
 0x595   :  { %v9774_v37 = vpack.c.bf16 %v1186_v34, %v1181_v36  ;;  %v9015_v38 = vpop.f32.mrb[18].mxu0 }
 0x596   :  { %v1196_v39 = vadd.f32 %v9015_v38, %v8045_v31  ;;  %v1190_v40 = vpop.f32.mrb[19].mxu0 }
 0x597   :  { %v1191_v41 = vadd.f32 %v8045_v31, %v1190_v40  ;;  %9775 = vmatprep.subr.bf16.mxu0 %v9774_v37  ;;  %v904_v40 = vld [vmem:[%s10845_s4 + $0x8] sm:$0xff] }
 0x598   :  { %9777 = vmatpush3.bf16.msra.mxu0 %v9774_v37 }
 0x599   :  { %v9778_v42 = vpack.c.bf16 %v1196_v39, %v1191_v41  ;;  %v903_v39 = vld [vmem:[%s10845_s4] sm:$0xff] }
 0x59a   :  { %v9786_v41 = vpack.c.bf16 %v904_v40, %v903_v39  ;;  %v8073_v39 = vld [vmem:[%s10855_s8] ss:$0 sm:$0xff] }
 0x59b   :  { %9779 = vmatprep.subr.bf16.mxu0 %v9778_v42 }
 0x59c   :  { %9781 = vmatpush3.bf16.msra.mxu0 %v9778_v42 }
 0x59d   :  { %9783 = vmatprep.subr.bf16.mxu0 %v9782_v29 }
 0x661   :  { %v9026_v43 = vpop.f32.mrb[12].mxu1 }
 0x662   :  { %v1309_v44 = vmul.f32 0.25, %v9026_v43  ;;  %v1289_v45 = vpop.f32.mrb[13].mxu1 }
 0x663   :  { %v1308_v46 = vmul.f32 0.25, %v1289_v45 }
 0x664   :  { %v1313_v47 = vadd.f32 %v1309_v44, %v11185_v55 }
 0x665   :  { %v9029_v48 = vpop.f32.mrb[14].mxu1  ;;  %v1312_v49 = vadd.f32 %v1308_v46, %v11188_v58 }
 0x666   :  { %v1311_v50 = vmul.f32 0.25, %v9029_v48  ;;  %v1299_v51 = vpop.f32.mrb[15].mxu1  ;;  %v1319_v52 = vsel %vm270_vm0, %v1313_v47, -inf }
 0x667   :  { %v1310_v53 = vmul.f32 0.25, %v1299_v51  ;;  %1320 = vmax.xlane.f32.xlu1 %v1319_v52  ;;  %v1316_v54 = vsel %vm270_vm0, %v1312_v49, -inf }
 0x668   :  { %1317 = vmax.xlane.f32.xlu0 %v1316_v54  ;;  %v1315_v56 = vadd.f32 %v1311_v50, %v11193_v3 }
 0x669   :  { %v1314_v57 = vadd.f32 %v1310_v53, %v11197_v8 }
 0x66a   :  { %v1325_v59 = vsel %vm270_vm0, %v1315_v56, -inf }
 0x66b   :  { %1326 = vmax.xlane.f32.xlu1 %v1325_v59  ;;  %v1322_v55 = vsel %vm270_vm0, %v1314_v57, -inf }
 0x66c   :  { %1323 = vmax.xlane.f32.xlu0 %v1322_v55 }
 0x6f4   :  { %v1321_v58 = vpop.xlane.xlu1 %1320 }
 0x6f5   :  { %v1329_v60 = vsub.f32 %v1313_v47, %v1321_v58  ;;  %v1318_v61 = vpop.xlane.xlu0 %1317  ;;  %v8072_v47 = vld [vmem:[%s10850_s25] ss:$0 sm:$0xff] }
 0x6f6   :  { %v1328_v62 = vsub.f32 %v1312_v49, %v1318_v61 }
 0x6f7   :  { %v1334_v4 = vmul.f32 1.442695, %v1329_v60 }
 0x6f8   :  { %v1332_v6 = vmul.f32 1.442695, %v1328_v62  ;;  %v1327_v7 = vpop.xlane.xlu1 %1326 }
 0x6f9   :  { %10452 = vpow2.f32 %v1334_v4  ;;  %v1331_v9 = vsub.f32 %v1315_v56, %v1327_v7  ;;  %v1324_v10 = vpop.xlane.xlu0 %1323 }
 0x6fa   :  { %10454 = vpow2.f32 %v1332_v6  ;;  %v1330_v3 = vsub.f32 %v1314_v57, %v1324_v10 }
 0x6fb   :  { %v1338_v14 = vmul.f32 1.442695, %v1331_v9 }
 0x6fc   :  { %v1336_v8 = vmul.f32 1.442695, %v1330_v3 }
 0x6fd   :  { %10456 = vpow2.f32 %v1338_v14 }
 0x6fe   :  { %10458 = vpow2.f32 %v1336_v8 }
 0x703   :  { %v10453_v13 = vpop.eup %10452 }
 0x704   :  { %v10455_v16 = vpop.eup %10454  ;;  %v1343_v17 = vsel %vm270_vm0, %v10453_v13, 0.0 }
 0x705   :  { %1344 = vadd.xlane.f32.xlu1 %v1343_v17  ;;  %v1340_v18 = vsel %vm270_vm0, %v10455_v16, 0.0 }
 0x706   :  { %1341 = vadd.xlane.f32.xlu0 %v1340_v18 }
 0x707   :  { %v10457_v19 = vpop.eup %10456 }
 0x708   :  { %v10459_v20 = vpop.eup %10458  ;;  %v1349_v21 = vsel %vm270_vm0, %v10457_v19, 0.0 }
 0x709   :  { %1350 = vadd.xlane.f32.xlu1 %v1349_v21  ;;  %v1346_v27 = vsel %vm270_vm0, %v10459_v20, 0.0 }
 0x70a   :  { %1347 = vadd.xlane.f32.xlu0 %v1346_v27  ;;  %v1745_v27 = vld [vmem:[%s10865_s29 + $0x10] sm:$0xff] }
 0x70b   :  { %v9794_v28 = vpack.c.bf16 %v1746_v63, %v1745_v27  ;;  %v261_v27 = vld [vmem:[%s12335_s10 + $0x8] sm:$0xff]  ;;  %v262_v63 = vld [vmem:[%s12335_s10 + $0x10] sm:$0xff] }
 0x792   :  { %v1345_v11 = vpop.xlane.xlu1 %1344 }
 0x793   :  { %10460 = vrcp.f32 %v1345_v11  ;;  %v1342_v30 = vpop.xlane.xlu0 %1341 }
 0x794   :  { %10462 = vrcp.f32 %v1342_v30 }
 0x796   :  { %v1351_v12 = vpop.xlane.xlu1 %1350 }
 0x797   :  { %10464 = vrcp.f32 %v1351_v12  ;;  %v1348_v15 = vpop.xlane.xlu0 %1347 }
 0x798   :  { %10466 = vrcp.f32 %v1348_v15 }
 0x79d   :  { %v10461_v31 = vpop.eup %10460 }
 0x79e   :  { %v10463_v32 = vpop.eup %10462  ;;  %v1357_v34 = vmul.f32 %v10461_v31, %v10453_v13 }
 0x79f   :  { %v1356_v33 = vmul.f32 %v10463_v32, %v10455_v16 }
 0x7a1   :  { %v10465_v35 = vpop.eup %10464  ;;  %9038 = vmatprep.mubr.msk.f32.mxu0 %vm270_vm0, %v1356_v33 }
 0x7a2   :  { %v10467_v36 = vpop.eup %10466  ;;  %9039 = vmatmul.mubr.msk.f32.vlgmr.msra.gmra.mrb[20].mxu0 %vm270_vm0, %v1357_v34  ;;  %v1359_v38 = vmul.f32 %v10465_v35, %v10457_v19  ;;  %v1743_v19 = vld [vmem:[%s10865_s29] sm:$0xff] }
 0x7a3   :  { %v1358_v37 = vmul.f32 %v10467_v36, %v10459_v20  ;;  %9785 = vmatpush3.bf16.msra.mxu0 %v9782_v29  ;;  %v1744_v20 = vld [vmem:[%s10865_s29 + $0x8] sm:$0xff] }
 0x7a4   :  { %9787 = vmatprep.subr.bf16.mxu0 %v9786_v41  ;;  %v9790_v21 = vpack.c.bf16 %v1744_v20, %v1743_v19  ;;  %v1999_v20 = vld [vmem:[%s12334_s7] sm:$0x3] }
 0x7a5   :  { %9041 = vmatprep.mubr.msk.f32.mxu0 %vm270_vm0, %v1358_v37 }
 0x7a6   :  { %9042 = vmatmul.mubr.msk.f32.gmra.mrb[22].mxu0 %vm270_vm0, %v1359_v38  ;;  %9791 = vmatprep.subr.bf16.mxu1 %v9790_v21 }
 0x7a7   :  { %9793 = vmatpush3.bf16.msra.mxu1 %v9790_v21  ;;  %v260_v21 = vld [vmem:[%s12335_s10] sm:$0xff] }
 0x7a8   :  { %9795 = vmatprep.subr.bf16.mxu1 %v9794_v28 }
 0x7ab   :  { %9797 = vmatpush3.bf16.msra.mxu1 %v9794_v28  ;;  %v265_v28 = vld [vmem:[%s12336_s11 + $0x8] sm:$0xff] }
 0x875   :  { %v9040_v42 = vpop.f32.mrb[20].mxu0 }
 0x876   :  { %v1438_v43 = vpop.f32.mrb[21].mxu0 }
 0x877   :  { %9048 = vmatprep.mubr.msk.f32.mxu0 %vm644_vm1, %v1438_v43  ;;  %v8074_v43 = vld [vmem:[%s12332_s0] ss:$0 sm:$0xff] }
 0x878   :  { %9049 = vmatmul.mubr.msk.f32.vlgmr.msra.gmra.mrb[24].mxu0 %vm644_vm1, %v9040_v42 }
 0x879   :  { %v9043_v44 = vpop.f32.mrb[22].mxu0  ;;  %9789 = vmatpush3.bf16.msra.mxu0 %v9786_v41 }
 0x87a   :  { %v1448_v45 = vpop.f32.mrb[23].mxu0  ;;  %9116 = vmatprep.subr.msk.mxu0 %vm2013_vm3, %v1999_v20 }
 0x87b   :  { %9051 = vmatprep.mubr.msk.f32.mxu0 %vm644_vm1, %v1448_v45 }
 0x87c   :  { %9052 = vmatmul.mubr.msk.f32.gmra.mrb[26].mxu0 %vm644_vm1, %v9043_v44 }
 0x87d   :  { %9058 = vmatprep.mubr.msk.f32.mxu0 %vm644_vm1, %v11247_v23 }
 0x880   :  { %9059 = vmatmul.mubr.msk.f32.vlgmr.msra.gmra.mrb[24].mxu0 %vm644_vm1, %v11245_v22 }
 0x881   :  { %9061 = vmatprep.mubr.msk.f32.mxu0 %vm644_vm1, %v11251_v26  ;;  %9117 = vmatpush3.msk.msra.mxu0 %vm2013_vm3, %v1999_v20 }
 0x884   :  { %9062 = vmatmul.mubr.msk.f32.gmra.mrb[26].mxu0 %vm644_vm1, %v11249_v24 }
 0x885   :  { %9118 = vmatprep.mubr.msk.f32.mxu0 %vm2000_vm4, %v260_v21 }
 0x888   :  { %9119 = vmatmul.mubr.msk.f32.vlgmr.msra.gmra.mrb[28].mxu0 %vm2000_vm4, %v261_v27 }
 0x889   :  { %9121 = vmatprep.mubr.msk.f32.mxu0 %vm2000_vm4, %v262_v63 }
 0x953   :  { %v9060_v46 = vpop.f32.mrb[24].mxu0 }
 0x954   :  { %v1655_v48 = vadd.f32 %v9060_v46, %v11074_v2  ;;  %v1635_v49 = vpop.f32.mrb[25].mxu0 }
 0x955   :  { %v1654_v50 = vadd.f32 %v1635_v49, %v11068_v0 }
 0x956   :  { %v11294_v51 = vadd.f32 %v8072_v47, %v1655_v48 }
 0x957   :  { %v11296_v52 = vadd.f32 %v8072_v47, %v1654_v50  ;;  %v9063_v23 = vpop.f32.mrb[26].mxu0 }
 0x958   :  { %v1657_v22 = vadd.f32 %v9063_v23, %v11081_v5  ;;  %v1645_v53 = vpop.f32.mrb[27].mxu0  ;;  %v1674_v26 = vsel %vm270_vm0, %v11294_v51, 0.0 }
 0x959   :  { %v1656_v24 = vadd.f32 %v1645_v53, %v11071_v1  ;;  %1675 = vadd.xlane.f32.xlu1 %v1674_v26  ;;  %v1671_v2 = vsel %vm270_vm0, %v11296_v52, 0.0 }
 0x95a   :  { %v11304_v54 = vadd.f32 %v8072_v47, %v1657_v22  ;;  %1672 = vadd.xlane.f32.xlu0 %v1671_v2  ;;  %v1883_v2 = vld [vmem:[%s12333_s5] sm:$0xff] }
 0x95b   :  { %v11306_v0 = vadd.f32 %v8072_v47, %v1656_v24 }
 0x95c   :  { %v1680_v56 = vsel %vm270_vm0, %v11304_v54, 0.0 }
 0x95d   :  { %1681 = vadd.xlane.f32.xlu1 %v1680_v56  ;;  %v1677_v5 = vsel %vm270_vm0, %v11306_v0, 0.0  ;;  %v1884_v56 = vld [vmem:[%s12333_s5 + $0x8] sm:$0xff] }
 0x95e   :  { %1678 = vadd.xlane.f32.xlu0 %v1677_v5  ;;  %v9798_v5 = vpack.c.bf16 %v1884_v56, %v1883_v2 }
 0x960   :  { %9799 = vmatprep.subr.bf16.mxu1 %v9798_v5 }
 0x9e6   :  { %v1676_v57 = vpop.xlane.xlu1 %1675 }
 0x9e7   :  { %v1684_v59 = vmul.f32 0.03125, %v1676_v57  ;;  %v1673_v1 = vpop.xlane.xlu0 %1672  ;;  %v1885_v57 = vld [vmem:[%s12333_s5 + $0x10] sm:$0xff] }
 0x9e8   :  { %v1683_v55 = vmul.f32 0.03125, %v1673_v1 }
 0x9e9   :  { %v1688_v58 = vsub.f32 %v11294_v51, %v1684_v59  ;;  %v1886_v59 = vld [vmem:[%s12333_s5 + $0x18] sm:$0xff] }
 0x9ea   :  { %v1687_v60 = vsub.f32 %v11296_v52, %v1683_v55  ;;  %v1682_v61 = vpop.xlane.xlu1 %1681  ;;  %v9802_v1 = vpack.c.bf16 %v1886_v59, %v1885_v57  ;;  %v1887_v55 = vld [vmem:[%s12333_s5 + $0x20] sm:$0xff] }
 0x9eb   :  { %v1686_v62 = vmul.f32 0.03125, %v1682_v61  ;;  %v1679_v4 = vpop.xlane.xlu0 %1678  ;;  %v1692_v6 = vmul.f32 %v1688_v58, %v1688_v58  ;;  %v1889_v61 = vld [vmem:[%s12333_s5 + $0x30] sm:$0xff] }
 0x9ec   :  { %v1685_v7 = vmul.f32 0.03125, %v1679_v4  ;;  %v1691_v9 = vmul.f32 %v1687_v60, %v1687_v60 }
 0x9ed   :  { %v1690_v10 = vsub.f32 %v11304_v54, %v1686_v62  ;;  %v1698_v3 = vsel %vm270_vm0, %v1692_v6, 0.0  ;;  %v1890_v62 = vld [vmem:[%s12333_s5 + $0x38] sm:$0xff]  ;;  %v1891_v6 = vld [vmem:[%s12333_s5 + $0x40] sm:$0xff] }
 0x9ee   :  { %v1689_v14 = vsub.f32 %v11306_v0, %v1685_v7  ;;  %1699 = vadd.xlane.f32.xlu1 %v1698_v3  ;;  %v1695_v8 = vsel %vm270_vm0, %v1691_v9, 0.0  ;;  %v9810_v4 = vpack.c.bf16 %v1890_v62, %v1889_v61  ;;  %v1892_v7 = vld [vmem:[%s12333_s5 + $0x48] sm:$0xff]  ;;  %v1894_v3 = vld [vmem:[%s12333_s5 + $0x58] sm:$0xff] }
 0x9ef   :  { %1696 = vadd.xlane.f32.xlu0 %v1695_v8  ;;  %v1694_v13 = vmul.f32 %v1690_v10, %v1690_v10  ;;  %v9814_v9 = vpack.c.bf16 %v1892_v7, %v1891_v6  ;;  %v1895_v8 = vld [vmem:[%s12333_s5 + $0x60] sm:$0xff]  ;;  %v9120_v6 = vpop.f32.mrb[28].mxu0 }
 0x9f0   :  { %v1693_v16 = vmul.f32 %v1689_v14, %v1689_v14  ;;  %v2083_v7 = vpop.f32.mrb[29].mxu0 }
 0x9f1   :  { %v1704_v17 = vsel %vm270_vm0, %v1694_v13, 0.0  ;;  %v1896_v13 = vld [vmem:[%s12333_s5 + $0x68] sm:$0xff] }
 0x9f2   :  { %1705 = vadd.xlane.f32.xlu1 %v1704_v17  ;;  %v1701_v18 = vsel %vm270_vm0, %v1693_v16, 0.0  ;;  %v9822_v16 = vpack.c.bf16 %v1896_v13, %v1895_v8  ;;  %v1897_v17 = vld [vmem:[%s12333_s5 + $0x70] sm:$0xff]  ;;  %v8084_v8 = vld [vmem:[%s12338_s16] ss:$0 sm:$0xff] }
 0x9f3   :  { %1702 = vadd.xlane.f32.xlu0 %v1701_v18  ;;  %v1898_v18 = vld [vmem:[%s12333_s5 + $0x78] sm:$0xff] }
 0x9f4   :  { %v9826_v19 = vpack.c.bf16 %v1898_v18, %v1897_v17 }
 0xa7b   :  { %v1700_v29 = vpop.xlane.xlu1 %1699 }
 0xa7c   :  { %v1708_v11 = vmul.f32 0.03125, %v1700_v29  ;;  %v1697_v30 = vpop.xlane.xlu0 %1696  ;;  %v266_v29 = vld [vmem:[%s12336_s11 + $0x10] sm:$0xff] }
 0xa7d   :  { %v1707_v12 = vmul.f32 0.03125, %v1697_v30  ;;  %v2103_v30 = vsub.f32 1.0, %v265_v28 }
 0xa7e   :  { %v1712_v15 = vadd.f32 1e-05, %v1708_v11  ;;  %v10746_v11 = vmov 0  }
 0xa7f   :  { %v1711_v31 = vadd.f32 1e-05, %v1707_v12  ;;  %v1706_v32 = vpop.xlane.xlu1 %1705  ;;  %10427 = vset.pattern.permute.xlu1 %v10746_v11  ;;  %v264_v12 = vld [vmem:[%s12336_s11] sm:$0xff]  ;;  %10426 = vset.pattern.permute.xlu0 %v10746_v11 }
 0xa80   :  { %10468 = vrsqrt.f32 %v1712_v15  ;;  %v1710_v33 = vmul.f32 0.03125, %v1706_v32  ;;  %v1703_v34 = vpop.xlane.xlu0 %1702  ;;  %v263_v15 = vld [vmem:[%s12335_s10 + $0x18] sm:$0xff]  ;;  %2113 = vperm.xlu1 %10427, %v2103_v30   ;;  %v2104_v32 = vsub.f32 1.0, %v266_v29  ;;  %s12361_s10 = sld [smem:[#allocation43_spill]] }
 0xa81   :  { %10470 = vrsqrt.f32 %v1711_v31  ;;  %v1709_v35 = vmul.f32 0.03125, %v1703_v34  ;;  %v2102_v31 = vsub.f32 1.0, %v264_v12  ;;  %9122 = vmatmul.mubr.msk.f32.gmra.mrb[30].mxu0 %vm2000_vm4, %v263_v15 }
 0xa82   :  { %v1714_v36 = vadd.f32 1e-05, %v1710_v33  ;;  %v267_v33 = vld [vmem:[%s12336_s11 + $0x18] sm:$0xff]  ;;  %s12364_s11 = sld [smem:[#allocation24_spill]] }
 0xa83   :  { %v1713_v37 = vadd.f32 1e-05, %v1709_v35  ;;  %2108 = vperm.xlu0 %10426, %v2102_v31   ;;  %v2105_v34 = vsub.f32 1.0, %v267_v33  ;;  %v8075_v35 = vld [vmem:[%s12337_s15] ss:$0 sm:$0xff] }
 0xa84   :  { %10472 = vrsqrt.f32 %v1714_v36  ;;  %2118 = vperm.xlu1 %10427, %v2104_v32  }
 0xa85   :  { %10474 = vrsqrt.f32 %v1713_v37 }
 0xa88   :  { %2123 = vperm.xlu1 %10427, %v2105_v34  }
 0xa8a   :  { %v10469_v38 = vpop.eup %10468 }
 0xa8b   :  { %v10471_v40 = vpop.eup %10470  ;;  %v1720_v41 = vmul.f32 %v10469_v38, %v1688_v58  ;;  %v1888_v58 = vld [vmem:[%s12333_s5 + $0x28] sm:$0xff] }
 0xa8c   :  { %v1719_v42 = vmul.f32 %v10471_v40, %v1687_v60  ;;  %v9806_v60 = vpack.c.bf16 %v1888_v58, %v1887_v55 }
 0xa8d   :  { %v1730_v44 = vmul.f32 %v8073_v39, %v1720_v41 }
 0xa8e   :  { %v10473_v45 = vpop.eup %10472  ;;  %v1729_v46 = vmul.f32 %v8073_v39, %v1719_v42 }
 0xa8f   :  { %v10475_v47 = vpop.eup %10474  ;;  %v1722_v48 = vmul.f32 %v10473_v45, %v1690_v10  ;;  %v1740_v23 = vadd.f32 %v8074_v43, %v1730_v44  ;;  %v1893_v10 = vld [vmem:[%s12333_s5 + $0x50] sm:$0xff] }
 0xa90   :  { %v1739_v49 = vadd.f32 %v8074_v43, %v1729_v46  ;;  %v1721_v50 = vmul.f32 %v10475_v47, %v1689_v14  ;;  %v9818_v14 = vpack.c.bf16 %v1894_v3, %v1893_v10 }
 0xa91   :  { %v1732_v22 = vmul.f32 %v8073_v39, %v1722_v48 }
 0xa92   :  { %9072 = vmatprep.mubr.msk.f32.mxu1 %vm270_vm0, %v1739_v49  ;;  %v1731_v53 = vmul.f32 %v8073_v39, %v1721_v50 }
 0xa93   :  { %9073 = vmatmul.mubr.msk.f32.vlgmr.msra.gmra.mrb[16].mxu1 %vm270_vm0, %v1740_v23  ;;  %v1742_v24 = vadd.f32 %v8074_v43, %v1732_v22 }
 0xa94   :  { %v1741_v26 = vadd.f32 %v8074_v43, %v1731_v53  ;;  %9801 = vmatpush3.bf16.msra.mxu1 %v9798_v5 }
 0xa95   :  { %9803 = vmatprep.subr.bf16.mxu1 %v9802_v1 }
 0xa96   :  { %9075 = vmatprep.mubr.msk.f32.mxu1 %vm270_vm0, %v1741_v26 }
 0xa97   :  { %9076 = vmatmul.mubr.msk.f32.gmra.mrb[18].mxu1 %vm270_vm0, %v1742_v24 }
 0xa98   :  { %9805 = vmatpush3.bf16.msra.mxu1 %v9802_v1 }
 0xa99   :  { %9807 = vmatprep.subr.bf16.mxu1 %v9806_v60 }
 0xa9c   :  { %9809 = vmatpush3.bf16.msra.mxu1 %v9806_v60 }
 0xa9d   :  { %9811 = vmatprep.subr.bf16.mxu1 %v9810_v4 }
 0xaa0   :  { %9813 = vmatpush3.bf16.msra.mxu1 %v9810_v4 }
 0xaa1   :  { %9815 = vmatprep.subr.bf16.mxu1 %v9814_v9 }
 0xaa4   :  { %9817 = vmatpush3.bf16.msra.mxu1 %v9814_v9 }
 0xaa5   :  { %9819 = vmatprep.subr.bf16.mxu1 %v9818_v14 }
 0xaa8   :  { %9821 = vmatpush3.bf16.msra.mxu1 %v9818_v14 }
 0xaa9   :  { %9823 = vmatprep.subr.bf16.mxu1 %v9822_v16 }
 0xaac   :  { %9825 = vmatpush3.bf16.msra.mxu1 %v9822_v16 }
 0xaad   :  { %9827 = vmatprep.subr.bf16.mxu1 %v9826_v19 }
 0xab0   :  { %9829 = vmatpush3.bf16.msra.mxu1 %v9826_v19 }
 0xaff   :  { %v2114_v3 = vpop.permute.xlu1 %2113 }
 0xb02   :  { %v2109_v20 = vpop.permute.xlu0 %2108 }
 0xb03   :  { %v2119_v17 = vpop.permute.xlu1 %2118 }
 0xb07   :  { %v2124_v31 = vpop.permute.xlu1 %2123 }
 0xb54   :  { %v9123_v9 = vpop.f32.mrb[30].mxu0 }
 0xb55   :  { %v2093_v10 = vpop.f32.mrb[31].mxu0 }
 0xb66   :  { %v9074_v36 = vpop.f32.mrb[16].mxu1 }
 0xb67   :  { %v1838_v37 = vadd.f32 %v9074_v36, %v8075_v35  ;;  %v1832_v38 = vpop.f32.mrb[17].mxu1 }
 0xb68   :  { %v1833_v39 = vadd.f32 %v8075_v35, %v1832_v38 }
 0xb69   :  { %v8081_v40 = vmul.f32 -1.702, %v1838_v37 }
 0xb6a   :  { %v8080_v41 = vmul.f32 -1.702, %v1833_v39  ;;  %v9077_v42 = vpop.f32.mrb[18].mxu1 }
 0xb6b   :  { %v1861_v43 = vmul.f32 1.442695, %v8081_v40  ;;  %v1848_v44 = vadd.f32 %v9077_v42, %v8075_v35  ;;  %v1842_v45 = vpop.f32.mrb[19].mxu1 }
 0xb6c   :  { %v1859_v46 = vmul.f32 1.442695, %v8080_v41  ;;  %v1843_v47 = vadd.f32 %v8075_v35, %v1842_v45 }
 0xb6d   :  { %10476 = vpow2.f32 %v1861_v43  ;;  %v8083_v48 = vmul.f32 -1.702, %v1848_v44 }
 0xb6e   :  { %10478 = vpow2.f32 %v1859_v46  ;;  %v8082_v49 = vmul.f32 -1.702, %v1843_v47 }
 0xb6f   :  { %v1865_v50 = vmul.f32 1.442695, %v8083_v48 }
 0xb70   :  { %v1863_v23 = vmul.f32 1.442695, %v8082_v49 }
 0xb71   :  { %10480 = vpow2.f32 %v1865_v50 }
 0xb72   :  { %10482 = vpow2.f32 %v1863_v23 }
 0xb77   :  { %v10477_v22 = vpop.eup %10476 }
 0xb78   :  { %v10479_v53 = vpop.eup %10478  ;;  %v1868_v26 = vadd.f32 1.0, %v10477_v22 }
 0xb79   :  { %v1867_v24 = vadd.f32 1.0, %v10479_v53 }
 0xb7a   :  { %10484 = vrcp.f32 %v1868_v26 }
 0xb7b   :  { %v10481_v2 = vpop.eup %10480  ;;  %10486 = vrcp.f32 %v1867_v24 }
 0xb7c   :  { %v10483_v56 = vpop.eup %10482  ;;  %v1870_v5 = vadd.f32 1.0, %v10481_v2 }
 0xb7d   :  { %v1869_v57 = vadd.f32 1.0, %v10483_v56 }
 0xb7e   :  { %10488 = vrcp.f32 %v1870_v5  ;;  %v8094_v5 = vld [vmem:[%s10815_s24 + $0x40] sm:$0xff] }
 0xb7f   :  { %10490 = vrcp.f32 %v1869_v57  ;;  %v8095_v57 = vld [vmem:[%s10815_s24 + $0x48] sm:$0xff] }
 0xb84   :  { %v10485_v59 = vpop.eup %10484 }
 0xb85   :  { %v10487_v1 = vpop.eup %10486  ;;  %v1880_v58 = vmul.f32 %v10485_v59, %v1838_v37  ;;  %v9830_v59 = vpack.c.bf16 %v8095_v57, %v8094_v5 }
 0xb86   :  { %v1879_v55 = vmul.f32 %v10487_v1, %v1833_v39  ;;  %v8096_v1 = vld [vmem:[%s10815_s24 + $0x50] sm:$0xff] }
 0xb87   :  { %9831 = vmatprep.subr.bf16.mxu0 %v9830_v59 }
 0xb88   :  { %v10489_v60 = vpop.eup %10488  ;;  %9110 = vmatprep.mubr.f32.mxu1 %v1879_v55  ;;  %9833 = vmatpush3.bf16.msra.mxu0 %v9830_v59  ;;  %v8097_v55 = vld [vmem:[%s10815_s24 + $0x58] sm:$0xff] }
 0xb89   :  { %v10491_v61 = vpop.eup %10490  ;;  %9111 = vmatmul.mubr.f32.vlgmr.msra.gmra.mrb[20].mxu1 %v1880_v58  ;;  %v1882_v4 = vmul.f32 %v10489_v60, %v1848_v44  ;;  %v9834_v58 = vpack.c.bf16 %v8097_v55, %v8096_v1  ;;  %v8104_v60 = vld [vmem:[%s10820_s30 + $0x40] sm:$0xff] }
 0xb8a   :  { %v1881_v62 = vmul.f32 %v10491_v61, %v1843_v47  ;;  %v8105_v61 = vld [vmem:[%s10820_s30 + $0x48] sm:$0xff] }
 0xb8b   :  { %9835 = vmatprep.subr.bf16.mxu0 %v9834_v58 }
 0xb8c   :  { %9113 = vmatprep.mubr.f32.mxu1 %v1881_v62  ;;  %9837 = vmatpush3.bf16.msra.mxu0 %v9834_v58  ;;  %v9838_v62 = vpack.c.bf16 %v8105_v61, %v8104_v60  ;;  %v8119_v58 = vld [vmem:[%s10840_s27 + $0x2] ss:$0 sm:$0xff] }
 0xb8d   :  { %9114 = vmatmul.mubr.f32.gmra.mrb[22].mxu1 %v1882_v4 }
 0xb8e   :  { %9839 = vmatprep.subr.bf16.mxu0 %v9838_v62 }
 0xc5c   :  { %v9112_v14 = vpop.f32.mrb[20].mxu1 }
 0xc5d   :  { %v1985_v13 = vadd.f32 %v9112_v14, %v11294_v51  ;;  %v1965_v16 = vpop.f32.mrb[21].mxu1 }
 0xc5e   :  { %v1984_v18 = vadd.f32 %v1965_v16, %v11296_v52 }
 0xc5f   :  { %v1996_v19 = vadd.f32 %v8084_v8, %v1985_v13 }
 0xc60   :  { %v9115_v21 = vpop.f32.mrb[22].mxu1  ;;  %v1995_v27 = vadd.f32 %v8084_v8, %v1984_v18 }
 0xc61   :  { %v1987_v63 = vadd.f32 %v9115_v21, %v11304_v54  ;;  %v1975_v28 = vpop.f32.mrb[23].mxu1  ;;  %v2127_v29 = vmul.f32 %v2114_v3, %v1996_v19 }
 0xc62   :  { %v1986_v11 = vadd.f32 %v1975_v28, %v11306_v0  ;;  %v2126_v30 = vmul.f32 %v2109_v20, %v1995_v27  ;;  %v8092_v20 = vld [vmem:[%s10805_s14 + $0x1] ss:$0 sm:$0xff]  ;;  %s12343_s14 = sld [smem:[#allocation28_spill]] }
 0xc63   :  { %v1998_v12 = vadd.f32 %v8084_v8, %v1987_v63  ;;  %v11367_v15 = vadd.f32 %v9120_v6, %v2127_v29  ;;  %v8093_v27 = vld [vmem:[%s10810_s19 + $0x1] ss:$0 sm:$0xff]  ;;  %s12344_s19 = sld [smem:[#allocation18_spill]] }
 0xc64   :  { %v1997_v51 = vadd.f32 %v8084_v8, %v1986_v11  ;;  %v11369_v32 = vadd.f32 %v2126_v30, %v2083_v7 }
 0xc65   :  { %v2129_v33 = vmul.f32 %v2124_v31, %v1998_v12  ;;  %v2141_v52 = vsel %vm270_vm0, %v11367_v15, 0.0  ;;  %v8106_v31 = vld [vmem:[%s10820_s30 + $0x50] sm:$0xff] }
 0xc66   :  { %v2128_v34 = vmul.f32 %v2119_v17, %v1997_v51  ;;  %2142 = vadd.xlane.f32.xlu0 %v2141_v52  ;;  %v2138_v54 = vsel %vm270_vm0, %v11369_v32, 0.0  ;;  %v8107_v51 = vld [vmem:[%s10820_s30 + $0x58] sm:$0xff] }
 0xc67   :  { %v11375_v35 = vadd.f32 %v9123_v9, %v2129_v33  ;;  %2139 = vadd.xlane.f32.xlu1 %v2138_v54 }
 0xc68   :  { %v11377_v0 = vadd.f32 %v2128_v34, %v2093_v10 }
 0xc69   :  { %v2147_v37 = vsel %vm270_vm0, %v11375_v35, 0.0 }
 0xc6a   :  { %v2144_v36 = vsel %vm270_vm0, %v11377_v0, 0.0 }
 0xc6b   :  { %2145 = vadd.xlane.f32.xlu1 %v2144_v36 }
 0xc6f   :  { %2148 = vadd.xlane.f32.xlu1 %v2147_v37  ;;  %v9842_v37 = vpack.c.bf16 %v8107_v51, %v8106_v31  ;;  %v11465_v31 = vld [vmem:[%s10765_s9 + $0x8] sm:$0xff] }
 0xcf3   :  { %v2143_v38 = vpop.xlane.xlu0 %2142 }
 0xcf4   :  { %v2151_v39 = vmul.f32 0.03125, %v2143_v38  ;;  %v2140_v40 = vpop.xlane.xlu1 %2139 }
 0xcf5   :  { %v2150_v41 = vmul.f32 0.03125, %v2140_v40  ;;  %v8115_v40 = vld [vmem:[%s10825_s6 + $0x48] sm:$0xff] }
 0xcf6   :  { %v2155_v42 = vsub.f32 %v11367_v15, %v2151_v39  ;;  %v8114_v39 = vld [vmem:[%s10825_s6 + $0x40] sm:$0xff] }
 0xcf7   :  { %v2154_v43 = vsub.f32 %v11369_v32, %v2150_v41 }
 0xcf8   :  { %v2146_v44 = vpop.xlane.xlu1 %2145  ;;  %v2159_v49 = vmul.f32 %v2155_v42, %v2155_v42 }
 0xcf9   :  { %v2152_v45 = vmul.f32 0.03125, %v2146_v44  ;;  %v2158_v46 = vmul.f32 %v2154_v43, %v2154_v43  ;;  %v8116_v44 = vld [vmem:[%s10825_s6 + $0x50] sm:$0xff] }
 0xcfa   :  { %v2165_v24 = vsel %vm270_vm0, %v2159_v49, 0.0 }
 0xcfb   :  { %v2156_v47 = vsub.f32 %v11377_v0, %v2152_v45  ;;  %v2162_v48 = vsel %vm270_vm0, %v2158_v46, 0.0  ;;  %v8117_v45 = vld [vmem:[%s10825_s6 + $0x58] sm:$0xff] }
 0xcfc   :  { %2163 = vadd.xlane.f32.xlu1 %v2162_v48  ;;  %v2149_v50 = vpop.xlane.xlu1 %2148  ;;  %v9850_v46 = vpack.c.bf16 %v8117_v45, %v8116_v44  ;;  %v11476_v44 = vld [vmem:[%s10765_s9 + $0x18] sm:$0xff] }
 0xcfd   :  { %v2153_v23 = vmul.f32 0.03125, %v2149_v50  ;;  %v2160_v22 = vmul.f32 %v2156_v47, %v2156_v47 }
 0xcff   :  { %v2157_v53 = vsub.f32 %v11375_v35, %v2153_v23  ;;  %v2168_v26 = vsel %vm270_vm0, %v2160_v22, 0.0 }
 0xd00   :  { %2169 = vadd.xlane.f32.xlu0 %v2168_v26  ;;  %2166 = vadd.xlane.f32.xlu1 %v2165_v24 }
 0xd01   :  { %v2161_v2 = vmul.f32 %v2157_v53, %v2157_v53 }
 0xd03   :  { %v2171_v56 = vsel %vm270_vm0, %v2161_v2, 0.0 }
 0xd04   :  { %2172 = vadd.xlane.f32.xlu1 %v2171_v56 }
 0xd89   :  { %v2164_v4 = vpop.xlane.xlu1 %2163 }
 0xd8a   :  { %v2174_v6 = vmul.f32 0.03125, %v2164_v4 }
 0xd8c   :  { %v2178_v7 = vadd.f32 1e-05, %v2174_v6  ;;  %v8148_v6 = vld [vmem:[%s10820_s30 + $0x60] sm:$0xff] }
 0xd8d   :  { %v2167_v9 = vpop.xlane.xlu1 %2166  ;;  %v2170_v10 = vpop.xlane.xlu0 %2169 }
 0xd8e   :  { %10492 = vrsqrt.f32 %v2178_v7  ;;  %v2175_v3 = vmul.f32 0.03125, %v2167_v9  ;;  %v2176_v14 = vmul.f32 0.03125, %v2170_v10  ;;  %v8149_v7 = vld [vmem:[%s10820_s30 + $0x68] sm:$0xff] }
 0xd90   :  { %v2179_v8 = vadd.f32 1e-05, %v2175_v3  ;;  %v2180_v13 = vadd.f32 1e-05, %v2176_v14  ;;  %v9882_v14 = vpack.c.bf16 %v8149_v7, %v8148_v6 }
 0xd91   :  { %v2173_v16 = vpop.xlane.xlu1 %2172 }
 0xd92   :  { %10494 = vrsqrt.f32 %v2179_v8  ;;  %v2177_v17 = vmul.f32 0.03125, %v2173_v16 }
 0xd93   :  { %10496 = vrsqrt.f32 %v2180_v13 }
 0xd94   :  { %v2181_v18 = vadd.f32 1e-05, %v2177_v17 }
 0xd96   :  { %10498 = vrsqrt.f32 %v2181_v18  ;;  %v8150_v18 = vld [vmem:[%s10820_s30 + $0x70] sm:$0xff] }
 0xd98   :  { %v10493_v19 = vpop.eup %10492 }
 0xd99   :  { %v2186_v21 = vmul.f32 %v10493_v19, %v2154_v43  ;;  %v9846_v43 = vpack.c.bf16 %v8115_v40, %v8114_v39  ;;  %v8151_v19 = vld [vmem:[%s10820_s30 + $0x78] sm:$0xff]  ;;  %s12346_s30 = sld [smem:[#allocation17_spill]] }
 0xd9b   :  { %v2196_v63 = vmul.f32 %v8092_v20, %v2186_v21  ;;  %v9886_v21 = vpack.c.bf16 %v8151_v19, %v8150_v18  ;;  %v8138_v19 = vld [vmem:[%s10815_s24 + $0x60] sm:$0xff] }
 0xd9c   :  { %v10495_v28 = vpop.eup %10494 }
 0xd9d   :  { %v10497_v29 = vpop.eup %10496  ;;  %v11399_v11 = vadd.f32 %v8093_v27, %v2196_v63  ;;  %v2187_v30 = vmul.f32 %v10495_v28, %v2155_v42 }
 0xd9e   :  { %v2188_v12 = vmul.f32 %v10497_v29, %v2156_v47  ;;  %v8099_v47 = vld [vmem:[%s10830_s12 + $0x2] ss:$0 sm:$0xff] }
 0xd9f   :  { %v2197_v33 = vmul.f32 %v8092_v20, %v2187_v30  ;;  %9132 = vmatprep.mubr.msk.f32.mxu0 %vm270_vm0, %v11399_v11 }
 0xda0   :  { %v10499_v52 = vpop.eup %10498  ;;  %v2198_v34 = vmul.f32 %v8092_v20, %v2188_v12 }
 0xda1   :  { %v11405_v54 = vadd.f32 %v8093_v27, %v2197_v33  ;;  %v2189_v36 = vmul.f32 %v10499_v52, %v2157_v53  ;;  %v8109_v53 = vld [vmem:[%s10835_s20 + $0x2] ss:$0 sm:$0xff] }
 0xda2   :  { %v11407_v38 = vadd.f32 %v8093_v27, %v2198_v34  ;;  %v11469_v52 = vld [vmem:[%s10765_s9] sm:$0xff] }
 0xda3   :  { %v2199_v41 = vmul.f32 %v8092_v20, %v2189_v36  ;;  %9133 = vmatmul.mubr.msk.f32.vlgmr.msra.gmra.mrb[32].mxu0 %vm270_vm0, %v11405_v54 }
 0xda4   :  { %9135 = vmatprep.mubr.msk.f32.mxu0 %vm270_vm0, %v11407_v38  ;;  %9841 = vmatpush3.bf16.msra.mxu0 %v9838_v62 }
 0xda5   :  { %v11415_v42 = vadd.f32 %v8093_v27, %v2199_v41  ;;  %9843 = vmatprep.subr.bf16.mxu0 %v9842_v37 }
 0xda7   :  { %9136 = vmatmul.mubr.msk.f32.gmra.mrb[34].mxu0 %vm270_vm0, %v11415_v42 }
 0xda8   :  { %9845 = vmatpush3.bf16.msra.mxu0 %v9842_v37  ;;  %9146 = vmatprep.mubr.msk.f32.mxu0 %vm270_vm0, %v11399_v11 }
 0xda9   :  { %9847 = vmatprep.subr.bf16.mxu0 %v9846_v43 }
 0xdab   :  { %9147 = vmatmul.mubr.msk.f32.vlgmr.msra.gmra.mrb[36].mxu0 %vm270_vm0, %v11405_v54 }
 0xdac   :  { %9149 = vmatprep.mubr.msk.f32.mxu0 %vm270_vm0, %v11407_v38  ;;  %9849 = vmatpush3.bf16.msra.mxu0 %v9846_v43  ;;  %v8153_v43 = vld [vmem:[%s10835_s20 + $0x3] ss:$0 sm:$0xff]  ;;  %s12349_s20 = sld [smem:[#allocation29_spill]] }
 0xdad   :  { %9851 = vmatprep.subr.bf16.mxu0 %v9850_v46 }
 0xdaf   :  { %9150 = vmatmul.mubr.msk.f32.gmra.mrb[38].mxu0 %vm270_vm0, %v11415_v42 }
 0xdb0   :  { %9853 = vmatpush3.bf16.msra.mxu0 %v9850_v46  ;;  %9160 = vmatprep.mubr.msk.f32.mxu0 %vm270_vm0, %v11399_v11 }
 0xdb3   :  { %9161 = vmatmul.mubr.msk.f32.vlgmr.msra.gmra.mrb[40].mxu0 %vm270_vm0, %v11405_v54 }
 0xdb4   :  { %9163 = vmatprep.mubr.msk.f32.mxu0 %vm270_vm0, %v11407_v38 }
 0xdb7   :  { %9164 = vmatmul.mubr.msk.f32.gmra.mrb[42].mxu0 %vm270_vm0, %v11415_v42 }
 0xe76   :  { %v9134_v48 = vpop.f32.mrb[32].mxu0 }
 0xe77   :  { %v2301_v49 = vpop.f32.mrb[33].mxu0  ;;  %v2307_v20 = vadd.f32 %v9134_v48, %v8099_v47 }
 0xe78   :  { %v2302_v50 = vadd.f32 %v8099_v47, %v2301_v49 }
 0xe7a   :  { %v9137_v23 = vpop.f32.mrb[34].mxu0  ;;  %9174 = vmatprep.mubr.msk.f32.mxu1 %vm644_vm1, %v2302_v50 }
 0xe7b   :  { %v2311_v22 = vpop.f32.mrb[35].mxu0  ;;  %v2317_v63 = vadd.f32 %v9137_v23, %v8099_v47 }
 0xe7c   :  { %v2312_v27 = vadd.f32 %v8099_v47, %v2311_v22  ;;  %v11480_v47 = vld [vmem:[%s10765_s9 + $0x10] sm:$0xff]  ;;  %s12339_s9 = sld [smem:[#allocation10_spill]] }
 0xe7e   :  { %v9148_v26 = vpop.f32.mrb[36].mxu0 }
 0xe7f   :  { %v2405_v24 = vadd.f32 %v9148_v26, %v8109_v53  ;;  %v2399_v2 = vpop.f32.mrb[37].mxu0 }
 0xe80   :  { %v2400_v56 = vadd.f32 %v8109_v53, %v2399_v2 }
 0xe82   :  { %v9854_v5 = vpack.c.bf16 %v2405_v24, %v2400_v56  ;;  %v9151_v57 = vpop.f32.mrb[38].mxu0 }
 0xe83   :  { %v2415_v59 = vadd.f32 %v9151_v57, %v8109_v53  ;;  %v2409_v1 = vpop.f32.mrb[39].mxu0 }
 0xe84   :  { %v2410_v55 = vadd.f32 %v8109_v53, %v2409_v1  ;;  %9856 = vmatprep.subr.msk.bf16.mxu1 %vm11155_vm2, %v9854_v5 }
 0xe85   :  { %9859 = vmatpush3.bf16.xpose.msk.msra.mxu1 %vm11155_vm2, %v9854_v5 }
 0xe86   :  { %v9860_v60 = vpack.c.bf16 %v2415_v59, %v2410_v55  ;;  %v9162_v61 = vpop.f32.mrb[40].mxu0 }
 0xe87   :  { %v2503_v62 = vadd.f32 %v9162_v61, %v8119_v58  ;;  %v2497_v4 = vpop.f32.mrb[41].mxu0 }
 0xe88   :  { %v2498_v9 = vadd.f32 %v8119_v58, %v2497_v4  ;;  %9862 = vmatprep.subr.msk.bf16.mxu1 %vm11155_vm2, %v9860_v60 }
 0xe8a   :  { %v9866_v10 = vpack.c.bf16 %v2503_v62, %v2498_v9  ;;  %v9165_v3 = vpop.f32.mrb[42].mxu0 }
 0xe8b   :  { %v2513_v8 = vadd.f32 %v9165_v3, %v8119_v58  ;;  %v2507_v13 = vpop.f32.mrb[43].mxu0 }
 0xe8c   :  { %v2508_v16 = vadd.f32 %v8119_v58, %v2507_v13  ;;  %9867 = vmatprep.subr.bf16.mxu0 %v9866_v10 }
 0xe8d   :  { %9865 = vmatpush3.bf16.xpose.msk.msra.mxu1 %vm11155_vm2, %v9860_v60  ;;  %9869 = vmatpush3.bf16.msra.mxu0 %v9866_v10 }
 0xe8e   :  { %v9870_v17 = vpack.c.bf16 %v2513_v8, %v2508_v16  ;;  %9883 = vmatprep.subr.bf16.mxu1 %v9882_v14 }
 0xe90   :  { %9871 = vmatprep.subr.bf16.mxu0 %v9870_v17 }
 0xe91   :  { %9873 = vmatpush3.bf16.msra.mxu0 %v9870_v17 }
 0xe94   :  { %9175 = vmatmul.mubr.msk.f32.vlgmr.msra.gmra.mrb[24].mxu1 %vm644_vm1, %v2307_v20  ;;  %v8139_v20 = vld [vmem:[%s10815_s24 + $0x68] sm:$0xff] }
 0xe95   :  { %9177 = vmatprep.mubr.msk.f32.mxu1 %vm644_vm1, %v2312_v27  ;;  %9885 = vmatpush3.bf16.msra.mxu1 %v9882_v14 }
 0xe96   :  { %9887 = vmatprep.subr.bf16.mxu1 %v9886_v21 }
 0xe98   :  { %9178 = vmatmul.mubr.msk.f32.gmra.mrb[26].mxu1 %vm644_vm1, %v2317_v63 }
 0xe99   :  { %9889 = vmatpush3.bf16.msra.mxu1 %v9886_v21  ;;  %9216 = vmatprep.mubr.msk.f32.mxu1 %vm270_vm0, %v11399_v11  ;;  %v9874_v21 = vpack.c.bf16 %v8139_v20, %v8138_v19 }
 0xe9b   :  { %9875 = vmatprep.subr.bf16.mxu0 %v9874_v21 }
 0xe9c   :  { %9217 = vmatmul.mubr.msk.f32.vlgmr.msra.gmra.mrb[28].mxu1 %vm270_vm0, %v11405_v54 }
 0xe9d   :  { %9219 = vmatprep.mubr.msk.f32.mxu1 %vm270_vm0, %v11407_v38 }
 0xea0   :  { %9220 = vmatmul.mubr.msk.f32.gmra.mrb[30].mxu1 %vm270_vm0, %v11415_v42 }
 0xf67   :  { %v9176_v28 = vpop.f32.mrb[24].mxu1 }
 0xf68   :  { %v2626_v29 = vmul.f32 0.25, %v9176_v28  ;;  %v2606_v30 = vpop.f32.mrb[25].mxu1 }
 0xf69   :  { %v2625_v12 = vmul.f32 0.25, %v2606_v30 }
 0xf6a   :  { %v2630_v51 = vadd.f32 %v11465_v31, %v2626_v29 }
 0xf6b   :  { %v9179_v33 = vpop.f32.mrb[26].mxu1  ;;  %v2629_v34 = vadd.f32 %v11469_v52, %v2625_v12  ;;  %v8140_v12 = vld [vmem:[%s10815_s24 + $0x70] sm:$0xff] }
 0xf6c   :  { %v2628_v36 = vmul.f32 0.25, %v9179_v33  ;;  %v2616_v37 = vpop.f32.mrb[27].mxu1  ;;  %v2636_v39 = vsel %vm270_vm0, %v2630_v51, -inf }
 0xf6d   :  { %v2627_v40 = vmul.f32 0.25, %v2616_v37  ;;  %2637 = vmax.xlane.f32.xlu1 %v2636_v39  ;;  %v2633_v41 = vsel %vm270_vm0, %v2629_v34, -inf }
 0xf6e   :  { %2634 = vmax.xlane.f32.xlu0 %v2633_v41  ;;  %v2632_v45 = vadd.f32 %v11476_v44, %v2628_v36  ;;  %v8159_v41 = vld [vmem:[%s10825_s6 + $0x68] sm:$0xff] }
 0xf6f   :  { %v9218_v46 = vpop.f32.mrb[28].mxu1  ;;  %v2631_v48 = vadd.f32 %v11480_v47, %v2627_v40  ;;  %v8158_v40 = vld [vmem:[%s10825_s6 + $0x60] sm:$0xff] }
 0xf70   :  { %v2960_v49 = vadd.f32 %v9218_v46, %v8153_v43  ;;  %v2954_v50 = vpop.f32.mrb[29].mxu1  ;;  %v2642_v23 = vsel %vm270_vm0, %v2632_v45, -inf }
 0xf71   :  { %v2955_v22 = vadd.f32 %v8153_v43, %v2954_v50  ;;  %2643 = vmax.xlane.f32.xlu1 %v2642_v23  ;;  %v2639_v53 = vsel %vm270_vm0, %v2631_v48, -inf  ;;  %v8161_v50 = vld [vmem:[%s10825_s6 + $0x78] sm:$0xff] }
 0xf72   :  { %2640 = vmax.xlane.f32.xlu0 %v2639_v53 }
 0xf73   :  { %v9898_v26 = vpack.c.bf16 %v2960_v49, %v2955_v22  ;;  %v9221_v24 = vpop.f32.mrb[30].mxu1  ;;  %v8160_v49 = vld [vmem:[%s10825_s6 + $0x70] sm:$0xff]  ;;  %s12347_s6 = sld [smem:[#allocation21_spill]] }
 0xf74   :  { %v2970_v2 = vadd.f32 %v9221_v24, %v8153_v43  ;;  %v2964_v56 = vpop.f32.mrb[31].mxu1  ;;  %v9894_v23 = vpack.c.bf16 %v8161_v50, %v8160_v49 }
 0xf75   :  { %v2965_v5 = vadd.f32 %v8153_v43, %v2964_v56  ;;  %9900 = vmatprep.subr.msk.bf16.mxu1 %vm11155_vm2, %v9898_v26 }
 0xf76   :  { %9903 = vmatpush3.bf16.xpose.msk.msra.mxu1 %vm11155_vm2, %v9898_v26 }
 0xf77   :  { %v9904_v57 = vpack.c.bf16 %v2970_v2, %v2965_v5  ;;  %v8143_v2 = vld [vmem:[%s10830_s12 + $0x3] ss:$0 sm:$0xff]  ;;  %s12348_s12 = sld [smem:[#allocation19_spill]] }
 0xf79   :  { %9906 = vmatprep.subr.msk.bf16.mxu1 %vm11155_vm2, %v9904_v57 }
 0xf7e   :  { %9909 = vmatpush3.bf16.xpose.msk.msra.mxu1 %vm11155_vm2, %v9904_v57  ;;  %vm7723_vm2 = vcmask 386048  }
 0xffa   :  { %v2638_v59 = vpop.xlane.xlu1 %2637 }
 0xffb   :  { %v2646_v1 = vsub.f32 %v2630_v51, %v2638_v59  ;;  %v2635_v55 = vpop.xlane.xlu0 %2634  ;;  %v8141_v51 = vld [vmem:[%s10815_s24 + $0x78] sm:$0xff]  ;;  %v8163_v59 = vld [vmem:[%s10840_s27 + $0x3] ss:$0 sm:$0xff]  ;;  %s12345_s24 = sld [smem:[#allocation27_spill]]  ;;  %s12350_s27 = sld [smem:[#allocation22_spill]] }
 0xffc   :  { %v2645_v58 = vsub.f32 %v2629_v34, %v2635_v55  ;;  %v9878_v37 = vpack.c.bf16 %v8141_v51, %v8140_v12 }
 0xffd   :  { %v2651_v60 = vmul.f32 1.442695, %v2646_v1 }
 0xffe   :  { %v2649_v61 = vmul.f32 1.442695, %v2645_v58  ;;  %v2644_v62 = vpop.xlane.xlu1 %2643 }
 0xfff   :  { %10500 = vpow2.f32 %v2651_v60  ;;  %v2648_v4 = vsub.f32 %v2632_v45, %v2644_v62  ;;  %v2641_v6 = vpop.xlane.xlu0 %2640 }
0x1000   :  { %10502 = vpow2.f32 %v2649_v61  ;;  %v2647_v7 = vsub.f32 %v2631_v48, %v2641_v6  ;;  %v9890_v48 = vpack.c.bf16 %v8159_v41, %v8158_v40 }
0x1001   :  { %v2655_v9 = vmul.f32 1.442695, %v2648_v4 }
0x1002   :  { %v2653_v10 = vmul.f32 1.442695, %v2647_v7 }
0x1003   :  { %10504 = vpow2.f32 %v2655_v9 }
0x1004   :  { %10506 = vpow2.f32 %v2653_v10 }
0x1009   :  { %v10501_v25 = vpop.eup %10500 }
0x100a   :  { %v10503_v3 = vpop.eup %10502  ;;  %v2660_v14 = vsel %vm270_vm0, %v10501_v25, 0.0 }
0x100b   :  { %2661 = vadd.xlane.f32.xlu1 %v2660_v14  ;;  %v2657_v8 = vsel %vm270_vm0, %v10503_v3, 0.0 }
0x100c   :  { %2658 = vadd.xlane.f32.xlu0 %v2657_v8 }
0x100d   :  { %v10505_v13 = vpop.eup %10504 }
0x100e   :  { %v10507_v16 = vpop.eup %10506  ;;  %v2666_v17 = vsel %vm270_vm0, %v10505_v13, 0.0 }
0x100f   :  { %2667 = vadd.xlane.f32.xlu1 %v2666_v17  ;;  %v2663_v18 = vsel %vm270_vm0, %v10507_v16, 0.0 }
0x1010   :  { %2664 = vadd.xlane.f32.xlu0 %v2663_v18 }
0x1098   :  { %v2662_v27 = vpop.xlane.xlu1 %2661 }
0x1099   :  { %10508 = vrcp.f32 %v2662_v27  ;;  %v2659_v63 = vpop.xlane.xlu0 %2658 }
0x109a   :  { %10510 = vrcp.f32 %v2659_v63 }
0x109c   :  { %v2668_v28 = vpop.xlane.xlu1 %2667 }
0x109d   :  { %10512 = vrcp.f32 %v2668_v28  ;;  %v2665_v29 = vpop.xlane.xlu0 %2664 }
0x109e   :  { %10514 = vrcp.f32 %v2665_v29 }
0x10a3   :  { %v10509_v30 = vpop.eup %10508 }
0x10a4   :  { %v10511_v33 = vpop.eup %10510  ;;  %v2674_v36 = vmul.f32 %v10509_v30, %v10501_v25 }
0x10a5   :  { %v2673_v34 = vmul.f32 %v10511_v33, %v10503_v3 }
0x10a7   :  { %v10513_v39 = vpop.eup %10512  ;;  %9188 = vmatprep.mubr.msk.f32.mxu0 %vm270_vm0, %v2673_v34 }
0x10a8   :  { %v10515_v43 = vpop.eup %10514  ;;  %9189 = vmatmul.mubr.msk.f32.vlgmr.msra.gmra.mrb[44].mxu0 %vm270_vm0, %v2674_v36  ;;  %v2676_v46 = vmul.f32 %v10513_v39, %v10505_v13 }
0x10a9   :  { %9877 = vmatpush3.bf16.msra.mxu0 %v9874_v21  ;;  %v2675_v45 = vmul.f32 %v10515_v43, %v10507_v16 }
0x10aa   :  { %9879 = vmatprep.subr.bf16.mxu0 %v9878_v37 }
0x10ab   :  { %9191 = vmatprep.mubr.msk.f32.mxu0 %vm270_vm0, %v2675_v45 }
0x10ac   :  { %9192 = vmatmul.mubr.msk.f32.gmra.mrb[46].mxu0 %vm270_vm0, %v2676_v46 }
0x10ad   :  { %9881 = vmatpush3.bf16.msra.mxu0 %v9878_v37  ;;  %9202 = vmatprep.mubr.msk.f32.mxu0 %vm270_vm0, %v11399_v11 }
0x10ae   :  { %9891 = vmatprep.subr.bf16.mxu0 %v9890_v48 }
0x10b0   :  { %9203 = vmatmul.mubr.msk.f32.vlgmr.msra.gmra.mrb[48].mxu0 %vm270_vm0, %v11405_v54 }
0x10b1   :  { %9205 = vmatprep.mubr.msk.f32.mxu0 %vm270_vm0, %v11407_v38  ;;  %9893 = vmatpush3.bf16.msra.mxu0 %v9890_v48 }
0x10b2   :  { %9895 = vmatprep.subr.bf16.mxu0 %v9894_v23 }
0x10b4   :  { %9206 = vmatmul.mubr.msk.f32.gmra.mrb[50].mxu0 %vm270_vm0, %v11415_v42 }
0x10b5   :  { %9897 = vmatpush3.bf16.msra.mxu0 %v9894_v23  ;;  %9230 = vmatprep.mubr.msk.f32.mxu0 %vm270_vm0, %v11399_v11 }
0x10b8   :  { %9231 = vmatmul.mubr.msk.f32.vlgmr.msra.gmra.mrb[52].mxu0 %vm270_vm0, %v11405_v54 }
0x10b9   :  { %9233 = vmatprep.mubr.msk.f32.mxu0 %vm270_vm0, %v11407_v38 }
0x10bc   :  { %9234 = vmatmul.mubr.msk.f32.gmra.mrb[54].mxu0 %vm270_vm0, %v11415_v42 }
0x117b   :  { %v11525_v22 = vpop.f32.mrb[44].mxu0 }
0x117c   :  { %v11527_v53 = vpop.f32.mrb[45].mxu0 }
0x117f   :  { %v11529_v26 = vpop.f32.mrb[46].mxu0 }
0x1180   :  { %v11531_v24 = vpop.f32.mrb[47].mxu0 }
0x1183   :  { %v9204_v11 = vpop.f32.mrb[48].mxu0 }
0x1184   :  { %v2856_v56 = vpop.f32.mrb[49].mxu0  ;;  %v2862_v54 = vadd.f32 %v9204_v11, %v8143_v2  ;;  %v8181_v11 = vld [vmem:[%s10845_s4 + $0x38] sm:$0xff] }
0x1185   :  { %v2857_v5 = vadd.f32 %v8143_v2, %v2856_v56 }
0x1187   :  { %v9207_v57 = vpop.f32.mrb[50].mxu0  ;;  %9244 = vmatprep.mubr.msk.f32.mxu1 %vm644_vm1, %v2857_v5 }
0x1188   :  { %v2866_v38 = vpop.f32.mrb[51].mxu0  ;;  %9245 = vmatmul.mubr.msk.f32.vlgmr.msra.gmra.mrb[32].mxu1 %vm644_vm1, %v2862_v54  ;;  %v2872_v1 = vadd.f32 %v9207_v57, %v8143_v2 }
0x1189   :  { %v2867_v42 = vadd.f32 %v8143_v2, %v2866_v38  ;;  %v8180_v2 = vld [vmem:[%s10845_s4 + $0x30] sm:$0xff] }
0x118a   :  { %v9918_v56 = vpack.c.bf16 %v8181_v11, %v8180_v2 }
0x118b   :  { %v9232_v55 = vpop.f32.mrb[52].mxu0  ;;  %9247 = vmatprep.mubr.msk.f32.mxu1 %vm644_vm1, %v2867_v42 }
0x118c   :  { %v3058_v58 = vadd.f32 %v9232_v55, %v8163_v59  ;;  %v3052_v60 = vpop.f32.mrb[53].mxu0  ;;  %9248 = vmatmul.mubr.msk.f32.gmra.mrb[34].mxu1 %vm644_vm1, %v2872_v1 }
0x118d   :  { %v3053_v61 = vadd.f32 %v8163_v59, %v3052_v60 }
0x118f   :  { %v9910_v62 = vpack.c.bf16 %v3058_v58, %v3053_v61  ;;  %v9235_v4 = vpop.f32.mrb[54].mxu0 }
0x1190   :  { %v3068_v6 = vadd.f32 %v9235_v4, %v8163_v59  ;;  %v3062_v7 = vpop.f32.mrb[55].mxu0  ;;  %v8136_v4 = vld [vmem:[%s10845_s4 + $0x20] sm:$0xff] }
0x1191   :  { %v3063_v9 = vadd.f32 %v8163_v59, %v3062_v7  ;;  %9911 = vmatprep.subr.bf16.mxu0 %v9910_v62 }
0x1192   :  { %9913 = vmatpush3.bf16.msra.mxu0 %v9910_v62 }
0x1193   :  { %v9914_v10 = vpack.c.bf16 %v3068_v6, %v3063_v9  ;;  %v8137_v6 = vld [vmem:[%s10845_s4 + $0x28] sm:$0xff]  ;;  %s12351_s4 = sld [smem:[#allocation20_spill]] }
0x1194   :  { %v9922_v7 = vpack.c.bf16 %v8137_v6, %v8136_v4 }
0x1195   :  { %9915 = vmatprep.subr.bf16.mxu0 %v9914_v10 }
0x1196   :  { %9917 = vmatpush3.bf16.msra.mxu0 %v9914_v10 }
0x1197   :  { %9919 = vmatprep.subr.bf16.mxu0 %v9918_v56 }
0x125b   :  { %v9246_v25 = vpop.f32.mrb[32].mxu1 }
0x125c   :  { %v3181_v3 = vmul.f32 0.25, %v9246_v25  ;;  %v3161_v14 = vpop.f32.mrb[33].mxu1 }
0x125d   :  { %v3180_v8 = vmul.f32 0.25, %v3161_v14 }
0x125e   :  { %v3185_v13 = vadd.f32 %v11465_v31, %v3181_v3 }
0x125f   :  { %v9249_v16 = vpop.f32.mrb[34].mxu1  ;;  %v3184_v17 = vadd.f32 %v11469_v52, %v3180_v8  ;;  %v8191_v8 = vld [vmem:[%s10850_s25 + $0x1] ss:$0 sm:$0xff]  ;;  %s12340_s25 = sld [smem:[#allocation11_spill]] }
0x1260   :  { %v3183_v18 = vmul.f32 0.25, %v9249_v16  ;;  %v3171_v19 = vpop.f32.mrb[35].mxu1  ;;  %v3191_v20 = vsel %vm270_vm0, %v3185_v13, -inf }
0x1261   :  { %v3182_v21 = vmul.f32 0.25, %v3171_v19  ;;  %3192 = vmax.xlane.f32.xlu1 %v3191_v20  ;;  %v3188_v27 = vsel %vm270_vm0, %v3184_v17, -inf }
0x1262   :  { %3189 = vmax.xlane.f32.xlu0 %v3188_v27  ;;  %v3187_v63 = vadd.f32 %v11476_v44, %v3183_v18 }
0x1263   :  { %v3186_v28 = vadd.f32 %v11480_v47, %v3182_v21 }
0x1264   :  { %v3197_v29 = vsel %vm270_vm0, %v3187_v63, -inf }
0x1265   :  { %3198 = vmax.xlane.f32.xlu1 %v3197_v29  ;;  %v3194_v31 = vsel %vm270_vm0, %v3186_v28, -inf }
0x1266   :  { %3195 = vmax.xlane.f32.xlu0 %v3194_v31 }
0x12ee   :  { %v3193_v52 = vpop.xlane.xlu1 %3192 }
0x12ef   :  { %v3201_v30 = vsub.f32 %v3185_v13, %v3193_v52  ;;  %v3190_v12 = vpop.xlane.xlu0 %3189 }
0x12f0   :  { %v3200_v51 = vsub.f32 %v3184_v17, %v3190_v12 }
0x12f1   :  { %v3206_v33 = vmul.f32 1.442695, %v3201_v30 }
0x12f2   :  { %v3204_v34 = vmul.f32 1.442695, %v3200_v51  ;;  %v3199_v36 = vpop.xlane.xlu1 %3198 }
0x12f3   :  { %10516 = vpow2.f32 %v3206_v33  ;;  %v3203_v37 = vsub.f32 %v3187_v63, %v3199_v36  ;;  %v3196_v39 = vpop.xlane.xlu0 %3195 }
0x12f4   :  { %10518 = vpow2.f32 %v3204_v34  ;;  %v3202_v44 = vsub.f32 %v3186_v28, %v3196_v39 }
0x12f5   :  { %v3210_v40 = vmul.f32 1.442695, %v3203_v37 }
0x12f6   :  { %v3208_v47 = vmul.f32 1.442695, %v3202_v44 }
0x12f7   :  { %10520 = vpow2.f32 %v3210_v40 }
0x12f8   :  { %10522 = vpow2.f32 %v3208_v47 }
0x12fd   :  { %v10517_v41 = vpop.eup %10516 }
0x12fe   :  { %v10519_v43 = vpop.eup %10518  ;;  %v3215_v45 = vsel %vm270_vm0, %v10517_v41, 0.0 }
0x12ff   :  { %3216 = vadd.xlane.f32.xlu1 %v3215_v45  ;;  %v3212_v46 = vsel %vm270_vm0, %v10519_v43, 0.0 }
0x1300   :  { %3213 = vadd.xlane.f32.xlu0 %v3212_v46  ;;  %v8196_v46 = vld [vmem:[%s10865_s29 + $0x20] sm:$0xff] }
0x1301   :  { %v10521_v48 = vpop.eup %10520 }
0x1302   :  { %v10523_v49 = vpop.eup %10522  ;;  %v3221_v50 = vsel %vm270_vm0, %v10521_v48, 0.0 }
0x1303   :  { %3222 = vadd.xlane.f32.xlu1 %v3221_v50  ;;  %v3218_v23 = vsel %vm270_vm0, %v10523_v49, 0.0  ;;  %v8198_v50 = vld [vmem:[%s10865_s29 + $0x30] sm:$0xff] }
0x1304   :  { %3219 = vadd.xlane.f32.xlu0 %v3218_v23  ;;  %v8199_v23 = vld [vmem:[%s10865_s29 + $0x38] sm:$0xff] }
0x1305   :  { %v9930_v2 = vpack.c.bf16 %v8199_v23, %v8198_v50 }
0x138c   :  { %v3217_v5 = vpop.xlane.xlu1 %3216 }
0x138d   :  { %10524 = vrcp.f32 %v3217_v5  ;;  %v3214_v54 = vpop.xlane.xlu0 %3213 }
0x138e   :  { %10526 = vrcp.f32 %v3214_v54 }
0x1390   :  { %v3223_v57 = vpop.xlane.xlu1 %3222 }
0x1391   :  { %10528 = vrcp.f32 %v3223_v57  ;;  %v3220_v38 = vpop.xlane.xlu0 %3219 }
0x1392   :  { %10530 = vrcp.f32 %v3220_v38 }
0x1397   :  { %v10525_v42 = vpop.eup %10524 }
0x1398   :  { %v10527_v59 = vpop.eup %10526  ;;  %v3229_v55 = vmul.f32 %v10525_v42, %v10517_v41 }
0x1399   :  { %v3228_v1 = vmul.f32 %v10527_v59, %v10519_v43 }
0x139b   :  { %v10529_v58 = vpop.eup %10528  ;;  %9258 = vmatprep.mubr.msk.f32.mxu0 %vm270_vm0, %v3228_v1 }
0x139c   :  { %v10531_v60 = vpop.eup %10530  ;;  %9259 = vmatmul.mubr.msk.f32.vlgmr.msra.gmra.mrb[56].mxu0 %vm270_vm0, %v3229_v55  ;;  %v3231_v62 = vmul.f32 %v10529_v58, %v10521_v48  ;;  %v8197_v48 = vld [vmem:[%s10865_s29 + $0x28] sm:$0xff]  ;;  %s12341_s29 = sld [smem:[#allocation12_spill]] }
0x139d   :  { %v3230_v61 = vmul.f32 %v10531_v60, %v10523_v49  ;;  %9921 = vmatpush3.bf16.msra.mxu0 %v9918_v56  ;;  %v9926_v49 = vpack.c.bf16 %v8197_v48, %v8196_v46  ;;  %v8201_v46 = vld [vmem:[%s12337_s15 + $0x1] ss:$0 sm:$0xff]  ;;  %s12367_s15 = sld [smem:[#allocation44_spill]] }
0x139e   :  { %9923 = vmatprep.subr.bf16.mxu0 %v9922_v7 }
0x139f   :  { %9261 = vmatprep.mubr.msk.f32.mxu0 %vm270_vm0, %v3230_v61  ;;  %9927 = vmatprep.subr.bf16.mxu1 %v9926_v49 }
0x13a0   :  { %9262 = vmatmul.mubr.msk.f32.gmra.mrb[58].mxu0 %vm270_vm0, %v3231_v62  ;;  %9929 = vmatpush3.bf16.msra.mxu1 %v9926_v49  ;;  %v8194_v62 = vld [vmem:[%s10855_s8 + $0x1] ss:$0 sm:$0xff]  ;;  %s12342_s8 = sld [smem:[#allocation9_spill]] }
0x13a1   :  { %9931 = vmatprep.subr.bf16.mxu1 %v9930_v2 }
0x13a4   :  { %9933 = vmatpush3.bf16.msra.mxu1 %v9930_v2 }
0x146f   :  { %v9260_v9 = vpop.f32.mrb[56].mxu0 }
0x1470   :  { %v3310_v10 = vpop.f32.mrb[57].mxu0 }
0x1471   :  { %9268 = vmatprep.mubr.msk.f32.mxu0 %vm644_vm1, %v3310_v10 }
0x1472   :  { %9269 = vmatmul.mubr.msk.f32.vlgmr.msra.gmra.mrb[60].mxu0 %vm644_vm1, %v9260_v9  ;;  %v8195_v9 = vld [vmem:[%s12332_s0 + $0x1] ss:$0 sm:$0xff]  ;;  %s12359_s0 = sld [smem:[#allocation41_spill]] }
0x1473   :  { %v9263_v25 = vpop.f32.mrb[58].mxu0  ;;  %9925 = vmatpush3.bf16.msra.mxu0 %v9922_v7 }
0x1474   :  { %v3320_v3 = vpop.f32.mrb[59].mxu0 }
0x1475   :  { %9271 = vmatprep.mubr.msk.f32.mxu0 %vm644_vm1, %v3320_v3 }
0x1476   :  { %9272 = vmatmul.mubr.msk.f32.gmra.mrb[62].mxu0 %vm644_vm1, %v9263_v25 }
0x1477   :  { %9278 = vmatprep.mubr.msk.f32.mxu0 %vm644_vm1, %v11527_v53 }
0x147a   :  { %9279 = vmatmul.mubr.msk.f32.vlgmr.msra.gmra.mrb[60].mxu0 %vm644_vm1, %v11525_v22 }
0x147b   :  { %9281 = vmatprep.mubr.msk.f32.mxu0 %vm644_vm1, %v11531_v24 }
0x147e   :  { %9282 = vmatmul.mubr.msk.f32.gmra.mrb[62].mxu0 %vm644_vm1, %v11529_v26  ;;  %vm4939_vm1 = vcmask 113664  }
0x154d   :  { %v9280_v14 = vpop.f32.mrb[60].mxu0 }
0x154e   :  { %v3527_v13 = vadd.f32 %v9280_v14, %v11367_v15  ;;  %v3507_v16 = vpop.f32.mrb[61].mxu0 }
0x154f   :  { %v3526_v17 = vadd.f32 %v3507_v16, %v11369_v32 }
0x1550   :  { %v11574_v18 = vadd.f32 %v8191_v8, %v3527_v13 }
0x1551   :  { %v11576_v19 = vadd.f32 %v8191_v8, %v3526_v17  ;;  %v9283_v53 = vpop.f32.mrb[62].mxu0 }
0x1552   :  { %v3529_v22 = vadd.f32 %v9283_v53, %v11375_v35  ;;  %v3517_v20 = vpop.f32.mrb[63].mxu0  ;;  %v3549_v24 = vsel %vm270_vm0, %v11574_v18, 0.0 }
0x1553   :  { %v3528_v26 = vadd.f32 %v3517_v20, %v11377_v0  ;;  %3550 = vadd.xlane.f32.xlu1 %v3549_v24  ;;  %v3546_v15 = vsel %vm270_vm0, %v11576_v19, 0.0 }
0x1554   :  { %v11584_v21 = vadd.f32 %v8191_v8, %v3529_v22  ;;  %3547 = vadd.xlane.f32.xlu0 %v3546_v15  ;;  %v8211_v15 = vld [vmem:[%s12333_s5 + $0x88] sm:$0xff] }
0x1555   :  { %v11586_v32 = vadd.f32 %v8191_v8, %v3528_v26  ;;  %v8210_v26 = vld [vmem:[%s12333_s5 + $0x80] sm:$0xff] }
0x1556   :  { %v3555_v27 = vsel %vm270_vm0, %v11584_v21, 0.0 }
0x1557   :  { %3556 = vadd.xlane.f32.xlu1 %v3555_v27  ;;  %v3552_v35 = vsel %vm270_vm0, %v11586_v32, 0.0  ;;  %v9934_v27 = vpack.c.bf16 %v8211_v15, %v8210_v26 }
0x1558   :  { %3553 = vadd.xlane.f32.xlu0 %v3552_v35  ;;  %v8212_v35 = vld [vmem:[%s12333_s5 + $0x90] sm:$0xff] }
0x1559   :  { %9935 = vmatprep.subr.bf16.mxu1 %v9934_v27 }
0x15e0   :  { %v3551_v63 = vpop.xlane.xlu1 %3550 }
0x15e1   :  { %v3559_v28 = vmul.f32 0.03125, %v3551_v63  ;;  %v3548_v0 = vpop.xlane.xlu0 %3547  ;;  %v8213_v63 = vld [vmem:[%s12333_s5 + $0x98] sm:$0xff] }
0x15e2   :  { %v3558_v29 = vmul.f32 0.03125, %v3548_v0  ;;  %v8214_v0 = vld [vmem:[%s12333_s5 + $0xa0] sm:$0xff] }
0x15e3   :  { %v3563_v31 = vsub.f32 %v11574_v18, %v3559_v28  ;;  %v9938_v28 = vpack.c.bf16 %v8213_v63, %v8212_v35 }
0x15e4   :  { %v3562_v52 = vsub.f32 %v11576_v19, %v3558_v29  ;;  %v3557_v30 = vpop.xlane.xlu1 %3556  ;;  %v8215_v29 = vld [vmem:[%s12333_s5 + $0xa8] sm:$0xff] }
0x15e5   :  { %v3561_v12 = vmul.f32 0.03125, %v3557_v30  ;;  %v3554_v51 = vpop.xlane.xlu0 %3553  ;;  %v3567_v33 = vmul.f32 %v3563_v31, %v3563_v31  ;;  %v8217_v30 = vld [vmem:[%s12333_s5 + $0xb8] sm:$0xff] }
0x15e6   :  { %v3560_v34 = vmul.f32 0.03125, %v3554_v51  ;;  %v3566_v36 = vmul.f32 %v3562_v52, %v3562_v52  ;;  %v8218_v51 = vld [vmem:[%s12333_s5 + $0xc0] sm:$0xff] }
0x15e7   :  { %v3565_v37 = vsub.f32 %v11584_v21, %v3561_v12  ;;  %v3573_v39 = vsel %vm270_vm0, %v3567_v33, 0.0  ;;  %v8219_v33 = vld [vmem:[%s12333_s5 + $0xc8] sm:$0xff] }
0x15e8   :  { %v3564_v44 = vsub.f32 %v11586_v32, %v3560_v34  ;;  %3574 = vadd.xlane.f32.xlu1 %v3573_v39  ;;  %v3570_v40 = vsel %vm270_vm0, %v3566_v36, 0.0  ;;  %v9950_v34 = vpack.c.bf16 %v8219_v33, %v8218_v51  ;;  %v8220_v36 = vld [vmem:[%s12333_s5 + $0xd0] sm:$0xff] }
0x15e9   :  { %3571 = vadd.xlane.f32.xlu0 %v3570_v40  ;;  %v3569_v47 = vmul.f32 %v3565_v37, %v3565_v37  ;;  %v8223_v40 = vld [vmem:[%s12333_s5 + $0xe8] sm:$0xff] }
0x15ea   :  { %v3568_v41 = vmul.f32 %v3564_v44, %v3564_v44 }
0x15eb   :  { %v3579_v43 = vsel %vm270_vm0, %v3569_v47, 0.0 }
0x15ec   :  { %3580 = vadd.xlane.f32.xlu1 %v3579_v43  ;;  %v3576_v45 = vsel %vm270_vm0, %v3568_v41, 0.0  ;;  %v8224_v41 = vld [vmem:[%s12333_s5 + $0xf0] sm:$0xff]  ;;  %v8225_v43 = vld [vmem:[%s12333_s5 + $0xf8] sm:$0xff] }
0x15ed   :  { %3577 = vadd.xlane.f32.xlu0 %v3576_v45  ;;  %v9962_v45 = vpack.c.bf16 %v8225_v43, %v8224_v41 }
0x1675   :  { %v3575_v11 = vpop.xlane.xlu1 %3574 }
0x1676   :  { %v3583_v56 = vmul.f32 0.03125, %v3575_v11  ;;  %v3572_v5 = vpop.xlane.xlu0 %3571 }
0x1677   :  { %v3582_v54 = vmul.f32 0.03125, %v3572_v5 }
0x1678   :  { %v3587_v57 = vadd.f32 1e-05, %v3583_v56 }
0x1679   :  { %v3586_v38 = vadd.f32 1e-05, %v3582_v54  ;;  %v3581_v42 = vpop.xlane.xlu1 %3580 }
0x167a   :  { %10532 = vrsqrt.f32 %v3587_v57  ;;  %v3585_v59 = vmul.f32 0.03125, %v3581_v42  ;;  %v3578_v1 = vpop.xlane.xlu0 %3577 }
0x167b   :  { %10534 = vrsqrt.f32 %v3586_v38  ;;  %v3584_v55 = vmul.f32 0.03125, %v3578_v1 }
0x167c   :  { %v3589_v58 = vadd.f32 1e-05, %v3585_v59 }
0x167d   :  { %v3588_v60 = vadd.f32 1e-05, %v3584_v55 }
0x167e   :  { %10536 = vrsqrt.f32 %v3589_v58 }
0x167f   :  { %10538 = vrsqrt.f32 %v3588_v60 }
0x1684   :  { %v10533_v61 = vpop.eup %10532 }
0x1685   :  { %v10535_v4 = vpop.eup %10534  ;;  %v3595_v6 = vmul.f32 %v10533_v61, %v3563_v31  ;;  %v9942_v31 = vpack.c.bf16 %v8215_v29, %v8214_v0 }
0x1686   :  { %v3594_v7 = vmul.f32 %v10535_v4, %v3562_v52  ;;  %v8216_v52 = vld [vmem:[%s12333_s5 + $0xb0] sm:$0xff] }
0x1687   :  { %v3605_v10 = vmul.f32 %v8194_v62, %v3595_v6  ;;  %v9946_v12 = vpack.c.bf16 %v8217_v30, %v8216_v52 }
0x1688   :  { %v10537_v25 = vpop.eup %10536  ;;  %v3604_v3 = vmul.f32 %v8194_v62, %v3594_v7 }
0x1689   :  { %v10539_v14 = vpop.eup %10538  ;;  %v3597_v8 = vmul.f32 %v10537_v25, %v3565_v37  ;;  %v3615_v17 = vadd.f32 %v8195_v9, %v3605_v10  ;;  %v8221_v37 = vld [vmem:[%s12333_s5 + $0xd8] sm:$0xff] }
0x168a   :  { %v3614_v13 = vadd.f32 %v8195_v9, %v3604_v3  ;;  %v3596_v16 = vmul.f32 %v10539_v14, %v3564_v44  ;;  %v9954_v39 = vpack.c.bf16 %v8221_v37, %v8220_v36  ;;  %v8222_v44 = vld [vmem:[%s12333_s5 + $0xe0] sm:$0xff]  ;;  %s12360_s5 = sld [smem:[#allocation42_spill]] }
0x168b   :  { %v3607_v53 = vmul.f32 %v8194_v62, %v3597_v8  ;;  %v9958_v47 = vpack.c.bf16 %v8223_v40, %v8222_v44 }
0x168c   :  { %9292 = vmatprep.mubr.msk.f32.mxu1 %vm270_vm0, %v3614_v13  ;;  %v3606_v22 = vmul.f32 %v8194_v62, %v3596_v16 }
0x168d   :  { %9293 = vmatmul.mubr.msk.f32.vlgmr.msra.gmra.mrb[36].mxu1 %vm270_vm0, %v3615_v17  ;;  %v3617_v24 = vadd.f32 %v8195_v9, %v3607_v53 }
0x168e   :  { %v3616_v20 = vadd.f32 %v8195_v9, %v3606_v22  ;;  %9937 = vmatpush3.bf16.msra.mxu1 %v9934_v27 }
0x168f   :  { %9939 = vmatprep.subr.bf16.mxu1 %v9938_v28 }
0x1690   :  { %9295 = vmatprep.mubr.msk.f32.mxu1 %vm270_vm0, %v3616_v20  ;;  %v8227_v20 = vld [vmem:[%s12338_s16 + $0x1] ss:$0 sm:$0xff]  ;;  %s12368_s16 = sld [smem:[#allocation45_spill]] }
0x1691   :  { %9296 = vmatmul.mubr.msk.f32.gmra.mrb[38].mxu1 %vm270_vm0, %v3617_v24 }
0x1692   :  { %9941 = vmatpush3.bf16.msra.mxu1 %v9938_v28 }
0x1693   :  { %9943 = vmatprep.subr.bf16.mxu1 %v9942_v31 }
0x1696   :  { %9945 = vmatpush3.bf16.msra.mxu1 %v9942_v31 }
0x1697   :  { %9947 = vmatprep.subr.bf16.mxu1 %v9946_v12 }
0x169a   :  { %9949 = vmatpush3.bf16.msra.mxu1 %v9946_v12 }
0x169b   :  { %9951 = vmatprep.subr.bf16.mxu1 %v9950_v34 }
0x169e   :  { %9953 = vmatpush3.bf16.msra.mxu1 %v9950_v34 }
0x169f   :  { %9955 = vmatprep.subr.bf16.mxu1 %v9954_v39 }
0x16a2   :  { %9957 = vmatpush3.bf16.msra.mxu1 %v9954_v39 }
0x16a3   :  { %9959 = vmatprep.subr.bf16.mxu1 %v9958_v47 }
0x16a6   :  { %9961 = vmatpush3.bf16.msra.mxu1 %v9958_v47 }
0x16a7   :  { %9963 = vmatprep.subr.bf16.mxu1 %v9962_v45 }
0x16aa   :  { %9965 = vmatpush3.bf16.msra.mxu1 %v9962_v45 }
0x1760   :  { %v9294_v48 = vpop.f32.mrb[36].mxu1 }
0x1761   :  { %v3715_v49 = vadd.f32 %v9294_v48, %v8201_v46  ;;  %v3709_v50 = vpop.f32.mrb[37].mxu1 }
0x1762   :  { %v3710_v23 = vadd.f32 %v8201_v46, %v3709_v50 }
0x1763   :  { %v8207_v2 = vmul.f32 -1.702, %v3715_v49 }
0x1764   :  { %v8206_v11 = vmul.f32 -1.702, %v3710_v23  ;;  %v9297_v56 = vpop.f32.mrb[38].mxu1 }
0x1765   :  { %v3738_v5 = vmul.f32 1.442695, %v8207_v2  ;;  %v3725_v54 = vadd.f32 %v9297_v56, %v8201_v46  ;;  %v3719_v57 = vpop.f32.mrb[39].mxu1  ;;  %v10749_v56 = vmov 0.0  }
0x1766   :  { %v3736_v38 = vmul.f32 1.442695, %v8206_v11  ;;  %v3720_v42 = vadd.f32 %v8201_v46, %v3719_v57  ;;  %v10747_v11 = vmov 0.0|0.0   ;;  %9344 = vmatprep.mubr.msk.f32.mxu0 %vm10748_vm5, %v10749_v56 }
0x1767   :  { %10540 = vpow2.f32 %v3738_v5  ;;  %v8209_v59 = vmul.f32 -1.702, %v3725_v54  ;;  %9966 = vmatprep.subr.bf16.mxu0 %v10747_v11 }
0x1768   :  { %10542 = vpow2.f32 %v3736_v38  ;;  %v8208_v1 = vmul.f32 -1.702, %v3720_v42 }
0x1769   :  { %v3742_v55 = vmul.f32 1.442695, %v8209_v59 }
0x176a   :  { %v3740_v58 = vmul.f32 1.442695, %v8208_v1 }
0x176b   :  { %10544 = vpow2.f32 %v3742_v55 }
0x176c   :  { %10546 = vpow2.f32 %v3740_v58 }
0x1771   :  { %v10541_v60 = vpop.eup %10540 }
0x1772   :  { %v10543_v61 = vpop.eup %10542  ;;  %v3745_v62 = vadd.f32 1.0, %v10541_v60 }
0x1773   :  { %v3744_v4 = vadd.f32 1.0, %v10543_v61 }
0x1774   :  { %10548 = vrcp.f32 %v3745_v62 }
0x1775   :  { %v10545_v6 = vpop.eup %10544  ;;  %10550 = vrcp.f32 %v3744_v4 }
0x1776   :  { %v10547_v7 = vpop.eup %10546  ;;  %v3747_v9 = vadd.f32 1.0, %v10545_v6  ;;  %v8228_v6 = vld [vmem:[%s12339_s9] ss:$0 sm:$0xff]  ;;  %s12369_s9 = sld [smem:[#allocation23_spill]] }
0x1777   :  { %v3746_v10 = vadd.f32 1.0, %v10547_v7 }
0x1778   :  { %10552 = vrcp.f32 %v3747_v9 }
0x1779   :  { %10554 = vrcp.f32 %v3746_v10 }
0x177e   :  { %v10549_v25 = vpop.eup %10548 }
0x177f   :  { %v10551_v3 = vpop.eup %10550  ;;  %v3757_v8 = vmul.f32 %v10549_v25, %v3715_v49  ;;  %v8229_v25 = vld [vmem:[%s12340_s25] ss:$0 sm:$0xff]  ;;  %s12370_s25 = sld [smem:[#allocation48_spill]] }
0x1780   :  { %v3756_v14 = vmul.f32 %v10551_v3, %v3710_v23 }
0x1782   :  { %v10553_v13 = vpop.eup %10552  ;;  %9330 = vmatprep.mubr.f32.mxu1 %v3756_v14 }
0x1783   :  { %v10555_v16 = vpop.eup %10554  ;;  %9331 = vmatmul.mubr.f32.vlgmr.msra.gmra.mrb[40].mxu1 %v3757_v8  ;;  %v3759_v53 = vmul.f32 %v10553_v13, %v3725_v54 }
0x1784   :  { %v3758_v17 = vmul.f32 %v10555_v16, %v3720_v42 }
0x1786   :  { %9333 = vmatprep.mubr.f32.mxu1 %v3758_v17 }
0x1787   :  { %9334 = vmatmul.mubr.f32.gmra.mrb[42].mxu1 %v3759_v53 }
0x1856   :  { %v9332_v22 = vpop.f32.mrb[40].mxu1 }
0x1857   :  { %v3863_v24 = vadd.f32 %v9332_v22, %v11574_v18  ;;  %v3843_v26 = vpop.f32.mrb[41].mxu1 }
0x1858   :  { %v3862_v15 = vadd.f32 %v3843_v26, %v11576_v19 }
0x1859   :  { %v3875_v27 = vadd.f32 %v8227_v20, %v3863_v24 }
0x185a   :  { %v9335_v35 = vpop.f32.mrb[42].mxu1  ;;  %v3874_v63 = vadd.f32 %v8227_v20, %v3862_v15 }
0x185b   :  { %v3865_v28 = vadd.f32 %v9335_v35, %v11584_v21  ;;  %v3853_v0 = vpop.f32.mrb[43].mxu1  ;;  %v3883_v29 = vsel %vm270_vm0, %v3875_v27, 0.0  ;;  %v4026_v35 = vld [vmem:[%s12341_s29] sm:$0xff] }
0x185c   :  { %v3864_v31 = vadd.f32 %v3853_v0, %v11586_v32  ;;  %3884 = vadd.xlane.f32.xlu1 %v3883_v29  ;;  %v3880_v52 = vsel %vm270_vm0, %v3874_v63, 0.0  ;;  %v3952_v0 = vld [vmem:[%s12342_s8] sm:$0xf]  ;;  %s12372_s8 = sld [smem:[#allocation30_spill]] }
0x185d   :  { %3881 = vadd.xlane.f32.xlu0 %v3880_v52  ;;  %v3877_v30 = vadd.f32 %v8227_v20, %v3865_v28  ;;  %v4029_v52 = vld [vmem:[%s12341_s29 + $0x18] sm:$0xff] }
0x185e   :  { %v3876_v12 = vadd.f32 %v8227_v20, %v3864_v31  ;;  %v4028_v31 = vld [vmem:[%s12341_s29 + $0x10] sm:$0xff] }
0x185f   :  { %v3889_v18 = vsel %vm270_vm0, %v3877_v30, 0.0 }
0x1860   :  { %3890 = vadd.xlane.f32.xlu1 %v3889_v18  ;;  %v3886_v19 = vsel %vm270_vm0, %v3876_v12, 0.0  ;;  %v4122_v18 = vld [vmem:[%s12343_s14 + $0x8] sm:$0xff] }
0x1861   :  { %3887 = vadd.xlane.f32.xlu0 %v3886_v19 }
0x18e9   :  { %v3885_v51 = vpop.xlane.xlu1 %3884 }
0x18ea   :  { %v3893_v33 = vmul.f32 0.03125, %v3885_v51  ;;  %v3882_v21 = vpop.xlane.xlu0 %3881  ;;  %v4123_v51 = vld [vmem:[%s12343_s14 + $0x10] sm:$0xff] }
0x18eb   :  { %v3892_v34 = vmul.f32 0.03125, %v3882_v21 }
0x18ec   :  { %v3897_v36 = vsub.f32 %v3875_v27, %v3893_v33  ;;  %v4124_v33 = vld [vmem:[%s12343_s14 + $0x18] sm:$0xff] }
0x18ed   :  { %v3896_v37 = vsub.f32 %v3874_v63, %v3892_v34  ;;  %v3891_v39 = vpop.xlane.xlu1 %3890  ;;  %v4027_v63 = vld [vmem:[%s12341_s29 + $0x8] sm:$0xff]  ;;  %s12371_s29 = sld [smem:[#allocation46_spill]] }
0x18ee   :  { %v3895_v32 = vmul.f32 0.03125, %v3891_v39  ;;  %v3888_v44 = vpop.xlane.xlu0 %3887  ;;  %v3901_v40 = vmul.f32 %v3897_v36, %v3897_v36  ;;  %v9973_v29 = vpack.c.bf16 %v4027_v63, %v4026_v35  ;;  %v4208_v39 = vld [vmem:[%s12344_s19 + $0x8] sm:$0xff] }
0x18ef   :  { %v3894_v47 = vmul.f32 0.03125, %v3888_v44  ;;  %v3900_v41 = vmul.f32 %v3896_v37, %v3896_v37 }
0x18f0   :  { %v3899_v43 = vsub.f32 %v3877_v30, %v3895_v32  ;;  %v3907_v45 = vsel %vm270_vm0, %v3901_v40, 0.0  ;;  %v9976_v30 = vpack.c.bf16 %v4029_v52, %v4028_v31  ;;  %v4120_v32 = vld [vmem:[%s12345_s24] sm:$0x3]  ;;  %v4209_v40 = vld [vmem:[%s12344_s19 + $0x10] sm:$0xff]  ;;  %v11722_v52 = vld [vmem:[%s12350_s27 + $0x8] sm:$0x3f] }
0x18f1   :  { %v3898_v46 = vsub.f32 %v3876_v12, %v3894_v47  ;;  %3908 = vadd.xlane.f32.xlu1 %v3907_v45  ;;  %v3904_v48 = vsel %vm270_vm0, %v3900_v41, 0.0  ;;  %v4121_v12 = vld [vmem:[%s12343_s14] sm:$0xff]  ;;  %v4210_v47 = vld [vmem:[%s12344_s19 + $0x18] sm:$0xff]  ;;  %v4206_v41 = vld [vmem:[%s12346_s30 + $0x8] sm:$0xff]  ;;  %s12373_s14 = sld [smem:[#allocation47_spill]]  ;;  %s12377_s24 = sld [smem:[#allocation35_spill]] }
0x18f2   :  { %3905 = vadd.xlane.f32.xlu0 %v3904_v48  ;;  %v3903_v49 = vmul.f32 %v3899_v43, %v3899_v43  ;;  %v9979_v19 = vpack.c.bf16 %v4122_v18, %v4121_v12  ;;  %v4211_v45 = vld [vmem:[%s12344_s19 + $0x20] sm:$0xff] }
0x18f3   :  { %v3902_v50 = vmul.f32 %v3898_v46, %v3898_v46  ;;  %v11714_v31 = vld [vmem:[%s12350_s27] sm:$0xff] }
0x18f4   :  { %v3913_v23 = vsel %vm270_vm0, %v3903_v49, 0.0  ;;  %v4213_v49 = vld [vmem:[%s12344_s19 + $0x30] sm:$0xff]  ;;  %v4312_v12 = vld [vmem:[%s12351_s4] sm:$0xff] }
0x18f5   :  { %3914 = vadd.xlane.f32.xlu1 %v3913_v23  ;;  %v3910_v2 = vsel %vm270_vm0, %v3902_v50, 0.0  ;;  %v4214_v50 = vld [vmem:[%s12344_s19 + $0x38] sm:$0xff] }
0x18f6   :  { %3911 = vadd.xlane.f32.xlu0 %v3910_v2  ;;  %v9994_v23 = vpack.c.bf16 %v4214_v50, %v4213_v49  ;;  %v4215_v2 = vld [vmem:[%s12344_s19 + $0x40] sm:$0xff] }
0x197e   :  { %v3909_v5 = vpop.xlane.xlu1 %3908 }
0x197f   :  { %v3917_v54 = vmul.f32 0.03125, %v3909_v5  ;;  %v3906_v57 = vpop.xlane.xlu0 %3905  ;;  %v4216_v5 = vld [vmem:[%s12344_s19 + $0x48] sm:$0xff] }
0x1980   :  { %v3916_v38 = vmul.f32 0.03125, %v3906_v57  ;;  %v4217_v57 = vld [vmem:[%s12344_s19 + $0x50] sm:$0xff] }
0x1981   :  { %v3921_v42 = vadd.f32 1e-05, %v3917_v54  ;;  %v9997_v54 = vpack.c.bf16 %v4216_v5, %v4215_v2 }
0x1982   :  { %v3920_v59 = vadd.f32 1e-05, %v3916_v38  ;;  %v3915_v1 = vpop.xlane.xlu1 %3914  ;;  %v4218_v38 = vld [vmem:[%s12344_s19 + $0x58] sm:$0xff] }
0x1983   :  { %10556 = vrsqrt.f32 %v3921_v42  ;;  %v3919_v55 = vmul.f32 0.03125, %v3915_v1  ;;  %v3912_v58 = vpop.xlane.xlu0 %3911  ;;  %v10000_v42 = vpack.c.bf16 %v4218_v38, %v4217_v57  ;;  %v4220_v1 = vld [vmem:[%s12344_s19 + $0x68] sm:$0xff] }
0x1984   :  { %10558 = vrsqrt.f32 %v3920_v59  ;;  %v3918_v60 = vmul.f32 0.03125, %v3912_v58  ;;  %v4219_v59 = vld [vmem:[%s12344_s19 + $0x60] sm:$0xff]  ;;  %v4221_v58 = vld [vmem:[%s12344_s19 + $0x70] sm:$0xff] }
0x1985   :  { %v3923_v61 = vadd.f32 1e-05, %v3919_v55  ;;  %v10003_v55 = vpack.c.bf16 %v4220_v1, %v4219_v59 }
0x1986   :  { %v3922_v62 = vadd.f32 1e-05, %v3918_v60  ;;  %v4222_v60 = vld [vmem:[%s12344_s19 + $0x78] sm:$0xff] }
0x1987   :  { %10560 = vrsqrt.f32 %v3923_v61  ;;  %v10006_v61 = vpack.c.bf16 %v4222_v60, %v4221_v58 }
0x1988   :  { %10562 = vrsqrt.f32 %v3922_v62  ;;  %v4223_v62 = vld [vmem:[%s12344_s19 + $0x80] sm:$0xff] }
0x198d   :  { %v10557_v4 = vpop.eup %10556 }
0x198e   :  { %v10559_v7 = vpop.eup %10558  ;;  %v3929_v9 = vmul.f32 %v10557_v4, %v3897_v36  ;;  %v9982_v36 = vpack.c.bf16 %v4124_v33, %v4123_v51  ;;  %v4224_v4 = vld [vmem:[%s12344_s19 + $0x88] sm:$0xff] }
0x198f   :  { %v3928_v10 = vmul.f32 %v10559_v7, %v3896_v37  ;;  %v4207_v37 = vld [vmem:[%s12344_s19] sm:$0xff]  ;;  %v4225_v7 = vld [vmem:[%s12344_s19 + $0x90] sm:$0xff] }
0x1990   :  { %v3939_v3 = vmul.f32 %v8228_v6, %v3929_v9  ;;  %v9985_v44 = vpack.c.bf16 %v4208_v39, %v4207_v37  ;;  %v4226_v9 = vld [vmem:[%s12344_s19 + $0x98] sm:$0xff] }
0x1991   :  { %v10561_v14 = vpop.eup %10560  ;;  %v3938_v8 = vmul.f32 %v8228_v6, %v3928_v10  ;;  %v10012_v10 = vpack.c.bf16 %v4226_v9, %v4225_v7 }
0x1992   :  { %v10563_v13 = vpop.eup %10562  ;;  %v3931_v16 = vmul.f32 %v10561_v14, %v3899_v43  ;;  %v3949_v17 = vadd.f32 %v8229_v25, %v3939_v3  ;;  %v9988_v43 = vpack.c.bf16 %v4210_v47, %v4209_v40  ;;  %v4228_v3 = vld [vmem:[%s12344_s19 + $0xa8] sm:$0xff] }
0x1993   :  { %v3930_v53 = vmul.f32 %v10563_v13, %v3898_v46  ;;  %v3948_v22 = vadd.f32 %v8229_v25, %v3938_v8  ;;  %v4212_v46 = vld [vmem:[%s12344_s19 + $0x28] sm:$0xff]  ;;  %v4229_v8 = vld [vmem:[%s12344_s19 + $0xb0] sm:$0xff]  ;;  %v4230_v13 = vld [vmem:[%s12344_s19 + $0xb8] sm:$0xff] }
0x1994   :  { %v3941_v20 = vmul.f32 %v8228_v6, %v3931_v16  ;;  %v9991_v48 = vpack.c.bf16 %v4212_v46, %v4211_v45  ;;  %v10018_v16 = vpack.c.bf16 %v4230_v13, %v4229_v8 }
0x1995   :  { %v9967_v24 = vpack.c.bf16 %v3949_v17, %v3948_v22  ;;  %v3940_v26 = vmul.f32 %v8228_v6, %v3930_v53  ;;  %v10009_v6 = vpack.c.bf16 %v4224_v4, %v4223_v62  ;;  %v4205_v17 = vld [vmem:[%s12346_s30] sm:$0xff]  ;;  %s12379_s30 = sld [smem:[#allocation34_spill]] }
0x1996   :  { %v3951_v15 = vadd.f32 %v8229_v25, %v3941_v20  ;;  %v4314_v53 = vld [vmem:[%s12347_s6] sm:$0xff] }
0x1997   :  { %9968 = vmatpush3.bf16.msra.mxu0 %v9967_v24  ;;  %v3950_v27 = vadd.f32 %v8229_v25, %v3940_v26  ;;  %v4227_v25 = vld [vmem:[%s12344_s19 + $0xa0] sm:$0xff]  ;;  %9371 = vmatprep.mubr.msk.f32.mxu1 %vm4316_vm7, %v4314_v53  ;;  %s12375_s19 = sld [smem:[#allocation31_spill]] }
0x1998   :  { %9969 = vmatprep.subr.bf16.mxu0 %v10747_v11  ;;  %v10015_v14 = vpack.c.bf16 %v4228_v3, %v4227_v25 }
0x1999   :  { %v9970_v28 = vpack.c.bf16 %v3951_v15, %v3950_v27  ;;  %v8234_v15 = vld [vmem:[%s12348_s12] ss:$0 sm:$0xff] }
0x199a   :  { %v8232_v27 = vld [vmem:[%s12349_s20] ss:$0 sm:$0xff] }
0x199b   :  { %9971 = vmatpush3.bf16.msra.mxu0 %v9970_v28 }
0x199c   :  { %9972 = vmatprep.subr.bf16.mxu0 %v10747_v11 }
0x199e   :  { %9345 = vmatmul.mubr.msk.f32.vlgmr.msra.gmra.mrb[64].mxu0 %vm270_vm0, %v3952_v0  ;;  %v4315_v0 = vld [vmem:[%s12347_s6 + $0x8] sm:$0x3f] }
0x199f   :  { %9974 = vmatpush3.bf16.msra.mxu0 %v9973_v29  ;;  %9355 = vmatprep.mubr.msk.f32.mxu0 %vm10748_vm5, %v10749_v56 }
0x19a0   :  { %9975 = vmatprep.subr.bf16.mxu0 %v10747_v11 }
0x19a3   :  { %9977 = vmatpush3.bf16.msra.mxu0 %v9976_v30  ;;  %v4313_v30 = vld [vmem:[%s12351_s4 + $0x8] sm:$0x3f] }
0x19a4   :  { %9978 = vmatprep.subr.bf16.mxu0 %v10747_v11 }
0x1a71   :  { %v4022_v21 = vpop.f32.mrb[64].mxu0 }
0x1a72   :  { %v9346_v34 = vpop.f32.mrb[65].mxu0  ;;  %9356 = vmatmul.mubr.msk.f32.vlgmr.msra.gmra.mrb[66].mxu0 %vm270_vm0, %v4022_v21 }
0x1a73   :  { %9980 = vmatpush3.bf16.msra.mxu0 %v9979_v19  ;;  %9366 = vmatprep.mubr.msk.f32.mxu0 %vm10748_vm5, %v10749_v56 }
0x1a74   :  { %9981 = vmatprep.subr.bf16.mxu0 %v10747_v11 }
0x1a77   :  { %9983 = vmatpush3.bf16.msra.mxu0 %v9982_v36 }
0x1a78   :  { %9984 = vmatprep.subr.bf16.mxu0 %v10747_v11 }
0x1a7a   :  { %9367 = vmatmul.mubr.msk.f32.vlgmr.msra.gmra.mrb[68].mxu0 %vm270_vm0, %v4120_v32 }
0x1a7b   :  { %9986 = vmatpush1.bf16.msra.mxu0 %v9985_v44  ;;  %8235 = vmatprep.mubr.msk.f32.mxu0 %vm4238_vm6, %v4206_v41 }
0x1a7c   :  { %9987 = vmatprep.subr.bf16.mxu0 %v10747_v11 }
0x1a7f   :  { %9989 = vmatpush1.bf16.msra.mxu0 %v9988_v43 }
0x1a80   :  { %9990 = vmatprep.subr.bf16.mxu0 %v10747_v11 }
0x1a83   :  { %9992 = vmatpush1.bf16.msra.mxu0 %v9991_v48 }
0x1a84   :  { %9993 = vmatprep.subr.bf16.mxu0 %v10747_v11 }
0x1a87   :  { %9995 = vmatpush1.bf16.msra.mxu0 %v9994_v23 }
0x1a88   :  { %9996 = vmatprep.subr.bf16.mxu0 %v10747_v11 }
0x1a8b   :  { %9998 = vmatpush1.bf16.msra.mxu0 %v9997_v54  ;;  %v8241_v54 = vld [vmem:[%s12352_s18] ss:$0 sm:$0xff] }
0x1a8c   :  { %9999 = vmatprep.subr.bf16.mxu0 %v10747_v11 }
0x1a8f   :  { %10001 = vmatpush1.bf16.msra.mxu0 %v10000_v42  ;;  %v8242_v42 = vld [vmem:[%s12353_s22] ss:$0 sm:$0xff] }
0x1a90   :  { %10002 = vmatprep.subr.bf16.mxu0 %v10747_v11 }
0x1a93   :  { %10004 = vmatpush1.bf16.msra.mxu0 %v10003_v55 }
0x1a94   :  { %10005 = vmatprep.subr.bf16.mxu0 %v10747_v11 }
0x1a97   :  { %10007 = vmatpush1.bf16.msra.mxu0 %v10006_v61 }
0x1a98   :  { %10008 = vmatprep.subr.bf16.mxu0 %v10747_v11 }
0x1a9b   :  { %10010 = vmatpush1.bf16.msra.mxu0 %v10009_v6 }
0x1a9c   :  { %10011 = vmatprep.subr.bf16.mxu0 %v10747_v11 }
0x1a9f   :  { %10013 = vmatpush1.bf16.msra.mxu0 %v10012_v10 }
0x1aa0   :  { %10014 = vmatprep.subr.bf16.mxu0 %v10747_v11 }
0x1aa3   :  { %10016 = vmatpush1.bf16.msra.mxu0 %v10015_v14 }
0x1aa4   :  { %10017 = vmatprep.subr.bf16.mxu0 %v10747_v11 }
0x1aa7   :  { %10019 = vmatpush1.bf16.msra.mxu0 %v10018_v16  ;;  %v4577_v16 = vld [vmem:[%s12354_s23] sm:$0xff] }
0x1aaa   :  { %4307 = vmatmul.mubr.f32.vlgmr.msra.gmra.mrb[70].mxu0 %v4205_v17  ;;  %v4578_v17 = vld [vmem:[%s12354_s23 + $0x8] sm:$0xff] }
0x1aab   :  { %v10020_v53 = vpack.c.bf16 %v4578_v17, %v4577_v16 }
0x1b45   :  { %v11708_v22 = vpop.f32.mrb[66].mxu0 }
0x1b46   :  { %v9357_v20 = vpop.f32.mrb[67].mxu0 }
0x1b47   :  { %v4579_v20 = vld [vmem:[%s12354_s23 + $0x10] sm:$0xff] }
0x1b4d   :  { %v4201_v24 = vpop.f32.mrb[68].mxu0 }
0x1b4e   :  { %v9368_v26 = vpop.f32.mrb[69].mxu0  ;;  %v4202_v29 = vadd.f32 %v8232_v27, %v4201_v24  ;;  %v4580_v24 = vld [vmem:[%s12354_s23 + $0x18] sm:$0xff]  ;;  %v4582_v27 = vld [vmem:[%s12354_s23 + $0x28] sm:$0xff] }
0x1b4f   :  { %v10024_v26 = vpack.c.bf16 %v4580_v24, %v4579_v20 }
0x1b7d   :  { %v4308_v35 = vpop.f32.mrb[70].mxu0 }
0x1b7e   :  { %v4309_v63 = vadd.f32 %v8234_v15, %v4308_v35  ;;  %v4310_v28 = vpop.f32.mrb[71].mxu0  ;;  %v4581_v15 = vld [vmem:[%s12354_s23 + $0x20] sm:$0xff] }
0x1b7f   :  { %v10028_v35 = vpack.c.bf16 %v4582_v27, %v4581_v15  ;;  %v4672_v28 = vld [vmem:[%s12355_s26 + $0x8] sm:$0xff] }
0x1b80   :  { %9369 = vmatprep.subr.mxu1 %v4309_v63  ;;  %v11806_v15 = vld [vmem:[%s12364_s11 + $0x8] sm:$0x3f] }
0x1b81   :  { %9370 = vmatpush3.msra.mxu1 %v4309_v63  ;;  %v4671_v63 = vld [vmem:[%s12355_s26] sm:$0xff] }
0x1b82   :  { %9372 = vmatmul.mubr.msk.f32.vlgmr.msra.gmra.mrb[44].mxu1 %vm4316_vm7, %v4315_v0  ;;  %9374 = vmatprep.subr.msk.mxu1 %vm2013_vm3, %v4202_v29  ;;  %v10032_v0 = vpack.c.bf16 %v4672_v28, %v4671_v63  ;;  %v11809_v63 = vld [vmem:[%s12364_s11] sm:$0xff] }
0x1b83   :  { %9375 = vmatpush3.msk.msra.mxu1 %vm2013_vm3, %v4202_v29  ;;  %9376 = vmatprep.mubr.msk.f32.mxu1 %vm2000_vm4, %v11714_v31 }
0x1b84   :  { %10021 = vmatprep.subr.bf16.mxu1 %v10020_v53 }
0x1b8a   :  { %9377 = vmatmul.mubr.msk.f32.vlgmr.msra.gmra.mrb[44].mxu1 %vm2000_vm4, %v11722_v52 }
0x1b8b   :  { %10023 = vmatpush3.bf16.msra.mxu1 %v10020_v53 }
0x1b8c   :  { %10025 = vmatprep.subr.bf16.mxu1 %v10024_v26 }
0x1b8f   :  { %10027 = vmatpush3.bf16.msra.mxu1 %v10024_v26 }
0x1b90   :  { %10029 = vmatprep.subr.bf16.mxu1 %v10028_v35 }
0x1b93   :  { %10031 = vmatpush3.bf16.msra.mxu1 %v10028_v35 }
0x1b94   :  { %10033 = vmatprep.subr.bf16.mxu1 %v10032_v0 }
0x1c5d   :  { %v9378_v18 = vpop.f32.mrb[44].mxu1 }
0x1c5e   :  { %v10343_v19 = vadd.f32 %v9378_v18, %v4313_v30  ;;  %v4475_v51 = vpop.f32.mrb[45].mxu1 }
0x1c5f   :  { %v10344_v33 = vadd.f32 %v4475_v51, %v4312_v12 }
0x1c60   :  { %v4493_v21 = vsel %vm4492_vm8, %v10343_v19, 0.0 }
0x1c61   :  { %4494 = vadd.xlane.f32.xlu1 %v4493_v21  ;;  %v4489_v34 = vsel %vm4488_vm9, %v10344_v33, 0.0  ;;  %v8243_v21 = vld [vmem:[%s12356_s28] ss:$0 sm:$0xff] }
0x1c62   :  { %4490 = vadd.xlane.f32.xlu0 %v4489_v34 }
0x1cee   :  { %v4495_v36 = vpop.xlane.xlu1 %4494 }
0x1cef   :  { %v4498_v37 = vmul.f32 0.020833334, %v4495_v36  ;;  %v4491_v39 = vpop.xlane.xlu0 %4490 }
0x1cf0   :  { %v4497_v32 = vmul.f32 0.020833334, %v4491_v39  ;;  %v8244_v39 = vld [vmem:[%s12357_s1] ss:$0 sm:$0xff] }
0x1cf1   :  { %v4500_v44 = vsub.f32 %v10343_v19, %v4498_v37 }
0x1cf2   :  { %v4499_v40 = vsub.f32 %v10344_v33, %v4497_v32 }
0x1cf3   :  { %v4502_v47 = vmul.f32 %v4500_v44, %v4500_v44 }
0x1cf4   :  { %v4501_v41 = vmul.f32 %v4499_v40, %v4499_v40 }
0x1cf5   :  { %v4506_v43 = vsel %vm4492_vm8, %v4502_v47, 0.0  ;;  %v4674_v47 = vld [vmem:[%s12355_s26 + $0x18] sm:$0xff] }
0x1cf6   :  { %4507 = vadd.xlane.f32.xlu1 %v4506_v43  ;;  %v4503_v45 = vsel %vm4488_vm9, %v4501_v41, 0.0 }
0x1cf7   :  { %4504 = vadd.xlane.f32.xlu0 %v4503_v45 }
0x1d83   :  { %v4508_v46 = vpop.xlane.xlu1 %4507 }
0x1d84   :  { %v4510_v48 = vmul.f32 0.020833334, %v4508_v46  ;;  %v4505_v49 = vpop.xlane.xlu0 %4504  ;;  %v4675_v46 = vld [vmem:[%s12355_s26 + $0x20] sm:$0xff] }
0x1d85   :  { %v4509_v50 = vmul.f32 0.020833334, %v4505_v49 }
0x1d86   :  { %v4512_v23 = vadd.f32 1e-05, %v4510_v48  ;;  %v4676_v48 = vld [vmem:[%s12355_s26 + $0x28] sm:$0xff] }
0x1d87   :  { %v4511_v2 = vadd.f32 1e-05, %v4509_v50  ;;  %v10040_v49 = vpack.c.bf16 %v4676_v48, %v4675_v46  ;;  %v4759_v50 = vld [vmem:[%s12358_s2] sm:$0xff] }
0x1d88   :  { %10564 = vrsqrt.f32 %v4512_v23  ;;  %v4760_v23 = vld [vmem:[%s12358_s2 + $0x8] sm:$0xff] }
0x1d89   :  { %10566 = vrsqrt.f32 %v4511_v2  ;;  %v10044_v2 = vpack.c.bf16 %v4760_v23, %v4759_v50  ;;  %v8264_v50 = vld [vmem:[%s12354_s23 + $0x48] sm:$0xff] }
0x1d92   :  { %v10565_v5 = vpop.eup %10564 }
0x1d93   :  { %v10567_v57 = vpop.eup %10566  ;;  %v4516_v38 = vmul.f32 %v10565_v5, %v4500_v44  ;;  %v4761_v5 = vld [vmem:[%s12358_s2 + $0x10] sm:$0xff] }
0x1d94   :  { %v4515_v59 = vmul.f32 %v10567_v57, %v4499_v40  ;;  %v4673_v40 = vld [vmem:[%s12355_s26 + $0x10] sm:$0xff] }
0x1d95   :  { %v4524_v1 = vmul.f32 %v8241_v54, %v4516_v38  ;;  %v10036_v45 = vpack.c.bf16 %v4674_v47, %v4673_v40  ;;  %v4763_v38 = vld [vmem:[%s12358_s2 + $0x20] sm:$0xff]  ;;  %v8262_v40 = vld [vmem:[%s12354_s23 + $0x38] sm:$0xff] }
0x1d96   :  { %v4523_v55 = vmul.f32 %v8241_v54, %v4515_v59  ;;  %v4762_v54 = vld [vmem:[%s12358_s2 + $0x18] sm:$0xff] }
0x1d97   :  { %v11734_v58 = vadd.f32 %v8242_v42, %v4524_v1  ;;  %v10048_v57 = vpack.c.bf16 %v4762_v54, %v4761_v5  ;;  %v8245_v1 = vld [vmem:[%s12359_s0] ss:$0 sm:$0xff] }
0x1d98   :  { %v11736_v60 = vadd.f32 %v8242_v42, %v4523_v55  ;;  %v4764_v42 = vld [vmem:[%s12358_s2 + $0x28] sm:$0xff] }
0x1d99   :  { %v4538_v61 = vsel %vm4492_vm8, %v11734_v58, 0.0  ;;  %v10052_v59 = vpack.c.bf16 %v4764_v42, %v4763_v38  ;;  %v8266_v38 = vld [vmem:[%s12354_s23 + $0x58] sm:$0xff] }
0x1d9a   :  { %4539 = vadd.xlane.f32.xlu1 %v4538_v61  ;;  %v4535_v62 = vsel %vm4488_vm9, %v11736_v60, 0.0 }
0x1d9b   :  { %4536 = vadd.xlane.f32.xlu0 %v4535_v62 }
0x1e27   :  { %v4540_v4 = vpop.xlane.xlu1 %4539 }
0x1e28   :  { %v4542_v6 = vmul.f32 0.020833334, %v4540_v4  ;;  %v4537_v7 = vpop.xlane.xlu0 %4536  ;;  %v8248_v4 = vld [vmem:[%s12360_s5] ss:$0 sm:$0xff] }
0x1e29   :  { %v4541_v9 = vmul.f32 0.020833334, %v4537_v7 }
0x1e2a   :  { %v4544_v10 = vsub.f32 %v11734_v58, %v4542_v6 }
0x1e2b   :  { %v4543_v25 = vsub.f32 %v11736_v60, %v4541_v9 }
0x1e2c   :  { %v4546_v3 = vmul.f32 %v4544_v10, %v4544_v10 }
0x1e2d   :  { %v4545_v14 = vmul.f32 %v4543_v25, %v4543_v25 }
0x1e2e   :  { %v4550_v8 = vsel %vm4492_vm8, %v4546_v3, 0.0 }
0x1e2f   :  { %4551 = vadd.xlane.f32.xlu1 %v4550_v8  ;;  %v4547_v13 = vsel %vm4488_vm9, %v4545_v14, 0.0  ;;  %v8251_v14 = vld [vmem:[%s12361_s10] ss:$0 sm:$0xff] }
0x1e30   :  { %4548 = vadd.xlane.f32.xlu0 %v4547_v13 }
0x1ebc   :  { %v4552_v29 = vpop.xlane.xlu1 %4551 }
0x1ebd   :  { %v4554_v30 = vmul.f32 0.020833334, %v4552_v29  ;;  %v4549_v12 = vpop.xlane.xlu0 %4548 }
0x1ebe   :  { %v4553_v18 = vmul.f32 0.020833334, %v4549_v12 }
0x1ebf   :  { %v4556_v19 = vadd.f32 1e-05, %v4554_v30 }
0x1ec0   :  { %v4555_v51 = vadd.f32 1e-05, %v4553_v18 }
0x1ec1   :  { %10568 = vrsqrt.f32 %v4556_v19 }
0x1ec2   :  { %10570 = vrsqrt.f32 %v4555_v51 }
0x1ecb   :  { %v10569_v33 = vpop.eup %10568 }
0x1ecc   :  { %v10571_v34 = vpop.eup %10570  ;;  %v4560_v36 = vmul.f32 %v10569_v33, %v4544_v10 }
0x1ecd   :  { %v4559_v37 = vmul.f32 %v10571_v34, %v4543_v25 }
0x1ece   :  { %v4568_v32 = vmul.f32 %v8243_v21, %v4560_v36 }
0x1ecf   :  { %v4567_v44 = vmul.f32 %v8243_v21, %v4559_v37 }
0x1ed0   :  { %v11760_v43 = vadd.f32 %v8244_v39, %v4568_v32 }
0x1ed1   :  { %v11758_v41 = vadd.f32 %v8244_v39, %v4567_v44  ;;  %v8261_v44 = vld [vmem:[%s12354_s23 + $0x30] sm:$0xff] }
0x1ed2   :  { %v10068_v47 = vpack.c.bf16 %v8262_v40, %v8261_v44 }
0x1ed3   :  { %9391 = vmatprep.mubr.msk.f32.mxu1 %vm4488_vm9, %v11758_v41 }
0x1ed4   :  { %9392 = vmatmul.mubr.msk.f32.vlgmr.msra.gmra.mrb[46].mxu1 %vm4488_vm9, %v11760_v43 }
0x1ed5   :  { %10035 = vmatpush3.bf16.msra.mxu1 %v10032_v0  ;;  %9406 = vmatprep.mubr.msk.f32.mxu1 %vm4488_vm9, %v11758_v41 }
0x1ed6   :  { %10037 = vmatprep.subr.bf16.mxu1 %v10036_v45 }
0x1ed9   :  { %10039 = vmatpush3.bf16.msra.mxu1 %v10036_v45 }
0x1eda   :  { %10041 = vmatprep.subr.bf16.mxu1 %v10040_v49 }
0x1edd   :  { %10043 = vmatpush3.bf16.msra.mxu1 %v10040_v49  ;;  %v8263_v49 = vld [vmem:[%s12354_s23 + $0x40] sm:$0xff] }
0x1ede   :  { %10045 = vmatprep.subr.bf16.mxu1 %v10044_v2  ;;  %v10072_v54 = vpack.c.bf16 %v8264_v50, %v8263_v49 }
0x1ee0   :  { %9407 = vmatmul.mubr.msk.f32.vlgmr.msra.gmra.mrb[48].mxu1 %vm4488_vm9, %v11760_v43 }
0x1ee1   :  { %10047 = vmatpush3.bf16.msra.mxu1 %v10044_v2  ;;  %9421 = vmatprep.mubr.msk.f32.mxu1 %vm4488_vm9, %v11758_v41 }
0x1ee2   :  { %10049 = vmatprep.subr.bf16.mxu1 %v10048_v57 }
0x1ee5   :  { %10051 = vmatpush3.bf16.msra.mxu1 %v10048_v57  ;;  %v8265_v57 = vld [vmem:[%s12354_s23 + $0x50] sm:$0xff] }
0x1ee6   :  { %10053 = vmatprep.subr.bf16.mxu1 %v10052_v59  ;;  %v10076_v42 = vpack.c.bf16 %v8266_v38, %v8265_v57 }
0x1ee9   :  { %10055 = vmatpush3.bf16.msra.mxu1 %v10052_v59  ;;  %v8271_v59 = vld [vmem:[%s12355_s26 + $0x30] sm:$0xff] }
0x1eec   :  { %9422 = vmatmul.mubr.msk.f32.vlgmr.msra.gmra.mrb[50].mxu1 %vm4488_vm9, %v11760_v43 }
0x1fa7   :  { %v9393_v55 = vpop.f32.mrb[46].mxu1 }
0x1fa8   :  { %v4662_v61 = vpop.f32.mrb[47].mxu1  ;;  %v4668_v8 = vadd.f32 %v9393_v55, %v8245_v1 }
0x1fa9   :  { %v4663_v62 = vadd.f32 %v8245_v1, %v4662_v61  ;;  %v8272_v1 = vld [vmem:[%s12355_s26 + $0x38] sm:$0xff]  ;;  %v8273_v61 = vld [vmem:[%s12355_s26 + $0x40] sm:$0xff] }
0x1faa   :  { %v10080_v55 = vpack.c.bf16 %v8272_v1, %v8271_v59  ;;  %v8298_v59 = vld [vmem:[%s12367_s15 + $0x18] sm:$0xff]  ;;  %v8299_v1 = vld [vmem:[%s12367_s15 + $0x20] sm:$0xff] }
0x1fab   :  { %9428 = vmatprep.mubr.msk.f32.mxu0 %vm4847_vm10, %v4663_v62  ;;  %v8274_v62 = vld [vmem:[%s12355_s26 + $0x48] sm:$0xff] }
0x1fb3   :  { %v9408_v6 = vpop.f32.mrb[48].mxu1 }
0x1fb4   :  { %v4756_v7 = vadd.f32 %v9408_v6, %v8248_v4  ;;  %v4750_v9 = vpop.f32.mrb[49].mxu1  ;;  %v8275_v6 = vld [vmem:[%s12355_s26 + $0x50] sm:$0xff] }
0x1fb5   :  { %v4751_v10 = vadd.f32 %v8248_v4, %v4750_v9  ;;  %v10084_v4 = vpack.c.bf16 %v8274_v62, %v8273_v61 }
0x1fb7   :  { %v10056_v3 = vpack.c.bf16 %v4756_v7, %v4751_v10  ;;  %v8276_v7 = vld [vmem:[%s12355_s26 + $0x58] sm:$0xff]  ;;  %v8281_v10 = vld [vmem:[%s12358_s2 + $0x30] sm:$0xff] }
0x1fb8   :  { %v10088_v9 = vpack.c.bf16 %v8276_v7, %v8275_v6 }
0x1fb9   :  { %10058 = vmatprep.subr.msk.bf16.mxu0 %vm11787_vm11, %v10056_v3 }
0x1fba   :  { %10061 = vmatpush3.bf16.xpose.msk.msra.mxu0 %vm11787_vm11, %v10056_v3  ;;  %v8282_v3 = vld [vmem:[%s12358_s2 + $0x38] sm:$0xff] }
0x1fbf   :  { %v9423_v13 = vpop.f32.mrb[50].mxu1 }
0x1fc0   :  { %v4844_v16 = vadd.f32 %v9423_v13, %v8251_v14  ;;  %v4838_v17 = vpop.f32.mrb[51].mxu1  ;;  %v8284_v13 = vld [vmem:[%s12358_s2 + $0x48] sm:$0xff] }
0x1fc1   :  { %v4839_v53 = vadd.f32 %v8251_v14, %v4838_v17  ;;  %9429 = vmatmul.mubr.msk.f32.vlgmr.msra.gmra.mrb[72].mxu0 %vm4847_vm10, %v4668_v8  ;;  %v10092_v14 = vpack.c.bf16 %v8282_v3, %v8281_v10  ;;  %v8283_v8 = vld [vmem:[%s12358_s2 + $0x40] sm:$0xff]  ;;  %v8285_v17 = vld [vmem:[%s12358_s2 + $0x50] sm:$0xff]  ;;  %v8300_v10 = vld [vmem:[%s12367_s15 + $0x28] sm:$0xff] }
0x1fc2   :  { %v5048_v3 = vld [vmem:[%s12367_s15] sm:$0xff] }
0x1fc3   :  { %v10062_v24 = vpack.c.bf16 %v4844_v16, %v4839_v53  ;;  %v10096_v16 = vpack.c.bf16 %v8284_v13, %v8283_v8  ;;  %v8286_v53 = vld [vmem:[%s12358_s2 + $0x58] sm:$0xff] }
0x1fc5   :  { %10064 = vmatprep.subr.msk.bf16.mxu1 %vm11797_vm14, %v10062_v24 }
0x1fc6   :  { %10067 = vmatpush3.bf16.msk.msra.mxu1 %vm11797_vm14, %v10062_v24  ;;  %v10100_v24 = vpack.c.bf16 %v8286_v53, %v8285_v17  ;;  %v5050_v17 = vld [vmem:[%s12367_s15 + $0x10] sm:$0xff] }
0x1fc7   :  { %10069 = vmatprep.subr.bf16.mxu1 %v10068_v47 }
0x2094   :  { %v9430_v26 = vpop.f32.mrb[72].mxu0 }
0x2095   :  { %v4936_v27 = vmul.f32 0.20412415, %v9430_v26  ;;  %v4926_v35 = vpop.f32.mrb[73].mxu0 }
0x2096   :  { %v4935_v28 = vmul.f32 0.20412415, %v4926_v35  ;;  %v8268_v35 = vld [vmem:[%s12359_s0 + $0x1] ss:$0 sm:$0xff] }
0x2097   :  { %v4938_v0 = vadd.f32 %v4936_v27, %v11806_v15 }
0x2098   :  { %v4937_v29 = vadd.f32 %v4935_v28, %v11809_v63 }
0x2099   :  { %v4944_v30 = vsel %vm4943_vm15, %v4938_v0, -inf }
0x209a   :  { %4945 = vmax.xlane.f32.xlu1 %v4944_v30  ;;  %v4940_v12 = vsel %vm4939_vm1, %v4937_v29, -inf }
0x209b   :  { %4941 = vmax.xlane.f32.xlu0 %v4940_v12 }
0x2127   :  { %v4946_v18 = vpop.xlane.xlu1 %4945 }
0x2128   :  { %v4948_v19 = vsub.f32 %v4938_v0, %v4946_v18  ;;  %v4942_v51 = vpop.xlane.xlu0 %4941 }
0x2129   :  { %v4947_v33 = vsub.f32 %v4937_v29, %v4942_v51 }
0x212a   :  { %v4951_v21 = vmul.f32 1.442695, %v4948_v19 }
0x212b   :  { %v4949_v34 = vmul.f32 1.442695, %v4947_v33 }
0x212c   :  { %10572 = vpow2.f32 %v4951_v21 }
0x212d   :  { %10574 = vpow2.f32 %v4949_v34 }
0x2136   :  { %v10573_v36 = vpop.eup %10572 }
0x2137   :  { %v10575_v37 = vpop.eup %10574  ;;  %v4956_v39 = vsel %vm4943_vm15, %v10573_v36, 0.0 }
0x2138   :  { %4957 = vadd.xlane.f32.xlu1 %v4956_v39  ;;  %v4953_v32 = vsel %vm4939_vm1, %v10575_v37, 0.0 }
0x2139   :  { %4954 = vadd.xlane.f32.xlu0 %v4953_v32 }
0x21c5   :  { %v4958_v45 = vpop.xlane.xlu1 %4957 }
0x21c6   :  { %10576 = vrcp.f32 %v4958_v45  ;;  %v4955_v46 = vpop.xlane.xlu0 %4954 }
0x21c7   :  { %10578 = vrcp.f32 %v4955_v46 }
0x21d0   :  { %v10577_v48 = vpop.eup %10576 }
0x21d1   :  { %v10579_v23 = vpop.eup %10578  ;;  %v4962_v5 = vmul.f32 %v10577_v48, %v10573_v36 }
0x21d2   :  { %v4961_v2 = vmul.f32 %v10579_v23, %v10575_v37 }
0x21d4   :  { %9435 = vmatprep.mubr.msk.f32.mxu1 %vm4939_vm1, %v4961_v2 }
0x21d5   :  { %9436 = vmatmul.mubr.msk.f32.vlgmr.msra.gmra.mrb[52].mxu1 %vm4939_vm1, %v4962_v5 }
0x21d6   :  { %10071 = vmatpush3.bf16.msra.mxu1 %v10068_v47  ;;  %9450 = vmatprep.mubr.msk.f32.mxu1 %vm4488_vm9, %v11758_v41 }
0x21d7   :  { %10073 = vmatprep.subr.bf16.mxu1 %v10072_v54 }
0x21da   :  { %10075 = vmatpush3.bf16.msra.mxu1 %v10072_v54 }
0x21db   :  { %10077 = vmatprep.subr.bf16.mxu1 %v10076_v42 }
0x21de   :  { %10079 = vmatpush3.bf16.msra.mxu1 %v10076_v42 }
0x21df   :  { %10081 = vmatprep.subr.bf16.mxu1 %v10080_v55 }
0x21e1   :  { %9451 = vmatmul.mubr.msk.f32.vlgmr.msra.gmra.mrb[54].mxu1 %vm4488_vm9, %v11760_v43 }
0x21e2   :  { %10083 = vmatpush3.bf16.msra.mxu1 %v10080_v55  ;;  %9465 = vmatprep.mubr.msk.f32.mxu1 %vm4488_vm9, %v11758_v41  ;;  %v10116_v55 = vpack.c.bf16 %v8299_v1, %v8298_v59  ;;  %v5878_v59 = vld [vmem:[%s11050_s21] sm:$0xff]  ;;  %v5879_v1 = vld [vmem:[%s11050_s21 + $0x8] sm:$0xff] }
0x21e3   :  { %10085 = vmatprep.subr.bf16.mxu1 %v10084_v4 }
0x21e6   :  { %10087 = vmatpush3.bf16.msra.mxu1 %v10084_v4 }
0x21e7   :  { %10089 = vmatprep.subr.bf16.mxu1 %v10088_v9 }
0x21ea   :  { %10091 = vmatpush3.bf16.msra.mxu1 %v10088_v9 }
0x21eb   :  { %10093 = vmatprep.subr.bf16.mxu1 %v10092_v14 }
0x21ed   :  { %9466 = vmatmul.mubr.msk.f32.vlgmr.msra.gmra.mrb[56].mxu1 %vm4488_vm9, %v11760_v43 }
0x21ee   :  { %10095 = vmatpush3.bf16.msra.mxu1 %v10092_v14  ;;  %9480 = vmatprep.mubr.msk.f32.mxu1 %vm4488_vm9, %v11758_v41  ;;  %v8278_v41 = vld [vmem:[%s12360_s5 + $0x1] ss:$0 sm:$0xff]  ;;  %v5049_v14 = vld [vmem:[%s12367_s15 + $0x8] sm:$0xff] }
0x21ef   :  { %10097 = vmatprep.subr.bf16.mxu1 %v10096_v16  ;;  %v10120_v8 = vpack.c.bf16 %v5049_v14, %v5048_v3 }
0x21f2   :  { %10099 = vmatpush3.bf16.msra.mxu1 %v10096_v16 }
0x21f3   :  { %10101 = vmatprep.subr.bf16.mxu1 %v10100_v24 }
0x21f6   :  { %10103 = vmatpush3.bf16.msra.mxu1 %v10100_v24  ;;  %v8305_v24 = vld [vmem:[%s12368_s16] ss:$0 sm:$0xff] }
0x21f7   :  { %10117 = vmatprep.subr.bf16.mxu1 %v10116_v55 }
0x21f9   :  { %9481 = vmatmul.mubr.msk.f32.vlgmr.msra.gmra.mrb[58].mxu1 %vm4488_vm9, %v11760_v43  ;;  %v8288_v43 = vld [vmem:[%s12361_s10 + $0x1] ss:$0 sm:$0xff] }
0x21fa   :  { %10119 = vmatpush3.bf16.msra.mxu1 %v10116_v55  ;;  %v5880_v55 = vld [vmem:[%s11050_s21 + $0x10] sm:$0xff] }
0x21fb   :  { %9501 = vmatprep.subr.mxu1 %v8300_v10 }
0x21fe   :  { %9502 = vmatpush3.msra.mxu1 %v8300_v10 }
0x21ff   :  { %10121 = vmatprep.subr.bf16.mxu1 %v10120_v8 }
0x22a8   :  { %v11849_v26 = vpop.f32.mrb[52].mxu1 }
0x22a9   :  { %v11851_v27 = vpop.f32.mrb[53].mxu1 }
0x22b4   :  { %v9452_v28 = vpop.f32.mrb[54].mxu1 }
0x22b5   :  { %v5132_v0 = vpop.f32.mrb[55].mxu1  ;;  %v5138_v33 = vadd.f32 %v9452_v28, %v8268_v35 }
0x22b6   :  { %v5133_v29 = vadd.f32 %v8268_v35, %v5132_v0 }
0x22b8   :  { %9487 = vmatprep.mubr.msk.f32.mxu0 %vm4847_vm10, %v5133_v29 }
0x22c0   :  { %v9467_v30 = vpop.f32.mrb[56].mxu1 }
0x22c1   :  { %v5228_v12 = vadd.f32 %v9467_v30, %v8278_v41  ;;  %v5222_v18 = vpop.f32.mrb[57].mxu1 }
0x22c2   :  { %v5223_v19 = vadd.f32 %v8278_v41, %v5222_v18 }
0x22c4   :  { %v10104_v51 = vpack.c.bf16 %v5228_v12, %v5223_v19 }
0x22c6   :  { %10106 = vmatprep.subr.msk.bf16.mxu0 %vm11787_vm11, %v10104_v51 }
0x22c7   :  { %10109 = vmatpush3.bf16.xpose.msk.msra.mxu0 %vm11787_vm11, %v10104_v51 }
0x22cc   :  { %v9482_v21 = vpop.f32.mrb[58].mxu1 }
0x22cd   :  { %v5318_v34 = vadd.f32 %v9482_v21, %v8288_v43  ;;  %v5312_v36 = vpop.f32.mrb[59].mxu1 }
0x22ce   :  { %v5313_v37 = vadd.f32 %v8288_v43, %v5312_v36  ;;  %9488 = vmatmul.mubr.msk.f32.vlgmr.msra.gmra.mrb[74].mxu0 %vm4847_vm10, %v5138_v33 }
0x22d0   :  { %v10110_v39 = vpack.c.bf16 %v5318_v34, %v5313_v37  ;;  %v4117_v34 = vld [vmem:[%s12369_s9 + $0x8] sm:$0x3f]  ;;  %v4116_v37 = vld [vmem:[%s12369_s9] sm:$0xff] }
0x22d1   :  { %v6078_v36 = vsub.f32 1.0, %v4117_v34  ;;  %v5885_v34 = vld [vmem:[%s11050_s21 + $0x38] sm:$0xff] }
0x22d2   :  { %10112 = vmatprep.subr.msk.bf16.mxu0 %vm11797_vm14, %v10110_v39 }
0x22d3   :  { %10115 = vmatpush3.bf16.msk.msra.mxu0 %vm11797_vm14, %v10110_v39  ;;  %v6077_v39 = vsub.f32 1.0, %v4116_v37  ;;  %v5886_v37 = vld [vmem:[%s11050_s21 + $0x40] sm:$0xff] }
0x23a1   :  { %v9489_v32 = vpop.f32.mrb[74].mxu0 }
0x23a2   :  { %v5409_v44 = vmul.f32 0.20412415, %v9489_v32  ;;  %v5399_v40 = vpop.f32.mrb[75].mxu0  ;;  %v5740_v32 = vld [vmem:[%s12370_s25 + $0x8] sm:$0xff] }
0x23a3   :  { %v5408_v47 = vmul.f32 0.20412415, %v5399_v40 }
0x23a4   :  { %v5411_v45 = vadd.f32 %v5409_v44, %v11806_v15  ;;  %v5742_v44 = vld [vmem:[%s12370_s25 + $0x18] sm:$0xff] }
0x23a5   :  { %v5410_v46 = vadd.f32 %v5408_v47, %v11809_v63  ;;  %v10124_v40 = vpack.c.bf16 %v5742_v44, %v5740_v32  ;;  %v5739_v47 = vld [vmem:[%s12370_s25] sm:$0xff]  ;;  %v5888_v44 = vld [vmem:[%s11050_s21 + $0x50] sm:$0xff] }
0x23a6   :  { %v5415_v48 = vsel %vm4943_vm15, %v5411_v45, -inf }
0x23a7   :  { %5416 = vmax.xlane.f32.xlu1 %v5415_v48  ;;  %v5412_v49 = vsel %vm4939_vm1, %v5410_v46, -inf  ;;  %10125 = vmatprep.subr.bf16.mxu0 %v10124_v40  ;;  %v5744_v48 = vld [vmem:[%s12370_s25 + $0x28] sm:$0xff] }
0x23a8   :  { %5413 = vmax.xlane.f32.xlu0 %v5412_v49  ;;  %v5746_v49 = vld [vmem:[%s12370_s25 + $0x38] sm:$0xff] }
0x2434   :  { %v5417_v50 = vpop.xlane.xlu1 %5416 }
0x2435   :  { %v5419_v23 = vsub.f32 %v5411_v45, %v5417_v50  ;;  %v5414_v2 = vpop.xlane.xlu0 %5413  ;;  %v5741_v45 = vld [vmem:[%s12370_s25 + $0x10] sm:$0xff]  ;;  %v10128_v50 = vpack.c.bf16 %v5746_v49, %v5744_v48  ;;  %v5893_v49 = vld [vmem:[%s11050_s21 + $0x78] sm:$0xff] }
0x2436   :  { %v5418_v5 = vsub.f32 %v5410_v46, %v5414_v2  ;;  %v10126_v46 = vpack.c.bf16 %v5741_v45, %v5739_v47  ;;  %v5745_v2 = vld [vmem:[%s12370_s25 + $0x30] sm:$0xff]  ;;  %v5890_v47 = vld [vmem:[%s11050_s21 + $0x60] sm:$0xff]  ;;  %v5891_v45 = vld [vmem:[%s11050_s21 + $0x68] sm:$0xff] }
0x2437   :  { %v5422_v54 = vmul.f32 1.442695, %v5419_v23  ;;  %v5743_v23 = vld [vmem:[%s12370_s25 + $0x20] sm:$0xff]  ;;  %v5892_v48 = vld [vmem:[%s11050_s21 + $0x70] sm:$0xff] }
0x2438   :  { %v5420_v57 = vmul.f32 1.442695, %v5418_v5  ;;  %v10130_v5 = vpack.c.bf16 %v5745_v2, %v5743_v23  ;;  %v5894_v23 = vld [vmem:[%s11050_s21 + $0x80] sm:$0xff]  ;;  %v5895_v2 = vld [vmem:[%s11050_s21 + $0x88] sm:$0xff] }
0x2439   :  { %10580 = vpow2.f32 %v5422_v54  ;;  %v5748_v54 = vld [vmem:[%s12370_s25 + $0x48] sm:$0xff] }
0x243a   :  { %10582 = vpow2.f32 %v5420_v57  ;;  %v5750_v57 = vld [vmem:[%s12370_s25 + $0x58] sm:$0xff] }
0x2443   :  { %v10581_v38 = vpop.eup %10580 }
0x2444   :  { %v10583_v15 = vpop.eup %10582  ;;  %v5427_v63 = vsel %vm4943_vm15, %v10581_v38, 0.0 }
0x2445   :  { %5428 = vadd.xlane.f32.xlu1 %v5427_v63  ;;  %v5424_v42 = vsel %vm4939_vm1, %v10583_v15, 0.0  ;;  %v5749_v63 = vld [vmem:[%s12370_s25 + $0x50] sm:$0xff] }
0x2446   :  { %5425 = vadd.xlane.f32.xlu0 %v5424_v42 }
0x24d2   :  { %v5429_v61 = vpop.xlane.xlu1 %5428 }
0x24d3   :  { %10584 = vrcp.f32 %v5429_v61  ;;  %v5426_v62 = vpop.xlane.xlu0 %5425  ;;  %v10137_v61 = vpack.c.bf16 %v5879_v1, %v5878_v59  ;;  %v5900_v59 = vld [vmem:[%s11050_s21 + $0xb0] sm:$0xff]  ;;  %v5901_v1 = vld [vmem:[%s11050_s21 + $0xb8] sm:$0xff] }
0x24d4   :  { %10586 = vrcp.f32 %v5426_v62  ;;  %v5881_v62 = vld [vmem:[%s11050_s21 + $0x18] sm:$0xff] }
0x24dd   :  { %v10585_v4 = vpop.eup %10584 }
0x24de   :  { %v10587_v6 = vpop.eup %10586  ;;  %v5433_v9 = vmul.f32 %v10585_v4, %v10581_v38  ;;  %v10132_v38 = vpack.c.bf16 %v5750_v57, %v5748_v54  ;;  %v10140_v4 = vpack.c.bf16 %v5881_v62, %v5880_v55  ;;  %v5896_v54 = vld [vmem:[%s11050_s21 + $0x90] sm:$0xff]  ;;  %v5897_v57 = vld [vmem:[%s11050_s21 + $0x98] sm:$0xff]  ;;  %v10170_v55 = vpack.c.bf16 %v5901_v1, %v5900_v59 }
0x24df   :  { %v5432_v7 = vmul.f32 %v10587_v6, %v10583_v15  ;;  %v5747_v15 = vld [vmem:[%s12370_s25 + $0x40] sm:$0xff] }
0x24e0   :  { %v10134_v42 = vpack.c.bf16 %v5749_v63, %v5747_v15  ;;  %v5882_v6 = vld [vmem:[%s11050_s21 + $0x20] sm:$0xff]  ;;  %v5899_v63 = vld [vmem:[%s11050_s21 + $0xa8] sm:$0xff] }
0x24e1   :  { %9494 = vmatprep.mubr.msk.f32.mxu0 %vm4939_vm1, %v5432_v7  ;;  %v5883_v7 = vld [vmem:[%s11050_s21 + $0x28] sm:$0xff]  ;;  %v5898_v15 = vld [vmem:[%s11050_s21 + $0xa0] sm:$0xff] }
0x24e2   :  { %9495 = vmatmul.mubr.msk.f32.vlgmr.msra.gmra.mrb[76].mxu0 %vm4939_vm1, %v5433_v9  ;;  %v10143_v9 = vpack.c.bf16 %v5883_v7, %v5882_v6 }
0x24e3   :  { %5833 = vmatprep.mubr.f32.mxu0 %v10749_v56  ;;  %10127 = vmatpush1.bf16.msra.mxu0 %v10126_v46  ;;  %v10155_v46 = vpack.c.bf16 %v5891_v45, %v5890_v47 }
0x24e4   :  { %10129 = vmatprep.subr.bf16.mxu0 %v10128_v50  ;;  %v10158_v50 = vpack.c.bf16 %v5893_v49, %v5892_v48 }
0x24e7   :  { %10131 = vmatpush1.bf16.msra.mxu0 %v10130_v5  ;;  %v10161_v5 = vpack.c.bf16 %v5895_v2, %v5894_v23  ;;  %v8316_v2 = vld [vmem:[%s11055_s17] ss:$0 sm:$0xff] }
0x24e8   :  { %10133 = vmatprep.subr.bf16.mxu0 %v10132_v38  ;;  %v10164_v38 = vpack.c.bf16 %v5897_v57, %v5896_v54 }
0x24eb   :  { %10135 = vmatpush1.bf16.msra.mxu0 %v10134_v42  ;;  %v10167_v42 = vpack.c.bf16 %v5899_v63, %v5898_v15 }
0x24ec   :  { %10172 = vmatprep.subr.bf16.mxu0 %v10747_v11 }
0x25b5   :  { %v9496_v13 = vpop.f32.mrb[76].mxu0 }
0x25b6   :  { %v5509_v16 = vpop.f32.mrb[77].mxu0 }
0x25b7   :  { %9503 = vmatprep.mubr.msk.f32.mxu1 %vm4847_vm10, %v5509_v16 }
0x25b8   :  { %9504 = vmatmul.mubr.msk.f32.vlgmr.msra.gmra.mrb[60].mxu1 %vm4847_vm10, %v9496_v13 }
0x25b9   :  { %9512 = vmatprep.mubr.msk.f32.mxu1 %vm4847_vm10, %v11851_v27  ;;  %10123 = vmatpush3.bf16.msra.mxu1 %v10120_v8 }
0x25ba   :  { %9510 = vmatprep.subr.mxu1 %v5050_v17 }
0x25bd   :  { %9511 = vmatpush3.msra.mxu1 %v5050_v17 }
0x25be   :  { %10136 = vmatprep.subr.bf16.mxu1 %v10747_v11 }
0x25c0   :  { %9513 = vmatmul.mubr.msk.f32.vlgmr.msra.gmra.mrb[60].mxu1 %vm4847_vm10, %v11849_v26 }
0x25c1   :  { %10138 = vmatpush1.bf16.msra.mxu1 %v10137_v61  ;;  %v5753_v61 = vlaneseq }
0x25c2   :  { %10139 = vmatprep.subr.bf16.mxu1 %v10747_v11 }
0x25c3   :  { %v11979_v62 = vshrl.u32 %v5753_v61, 7 }
0x25c5   :  { %10141 = vmatpush1.bf16.msra.mxu1 %v10140_v4  ;;  %v5755_v4 = vsub.s32 0, %v11979_v62  ;;  %v5759_v7 = vsub.s32 1, %v11979_v62 }
0x25c6   :  { %10142 = vmatprep.subr.bf16.mxu1 %v10747_v11 }
0x25c9   :  { %10144 = vmatpush1.bf16.msra.mxu1 %v10143_v9 }
0x25ca   :  { %10145 = vmatprep.subr.bf16.mxu1 %v10747_v11 }
0x2693   :  { %v9514_v53 = vpop.f32.mrb[60].mxu1 }
0x2694   :  { %v5685_v35 = vadd.f32 %v9514_v53, %v11734_v58  ;;  %v5675_v28 = vpop.f32.mrb[61].mxu1 }
0x2695   :  { %v5684_v0 = vadd.f32 %v5675_v28, %v11736_v60 }
0x2696   :  { %v11891_v29 = vadd.f32 %v8305_v24, %v5685_v35 }
0x2697   :  { %v11893_v41 = vadd.f32 %v8305_v24, %v5684_v0  ;;  %v8306_v24 = vld [vmem:[%s12371_s29] ss:$0 sm:$0xff] }
0x2698   :  { %v5700_v27 = vsel %vm4492_vm8, %v11891_v29, 0.0  ;;  %v5994_v0 = vld [vmem:[%s12372_s8] sm:$0xff] }
0x2699   :  { %5701 = vadd.xlane.f32.xlu1 %v5700_v27  ;;  %v5697_v30 = vsel %vm4488_vm9, %v11893_v41, 0.0  ;;  %v5995_v27 = vld [vmem:[%s12372_s8 + $0x8] sm:$0xff] }
0x269a   :  { %5698 = vadd.xlane.f32.xlu0 %v5697_v30  ;;  %v8307_v30 = vld [vmem:[%s12373_s14] ss:$0 sm:$0xff] }
0x2726   :  { %v5702_v26 = vpop.xlane.xlu1 %5701 }
0x2727   :  { %v5704_v12 = vmul.f32 0.020833334, %v5702_v26  ;;  %v5699_v58 = vpop.xlane.xlu0 %5698 }
0x2728   :  { %v5703_v60 = vmul.f32 0.020833334, %v5699_v58 }
0x2729   :  { %v11900_v18 = vsub.f32 %v11891_v29, %v5704_v12  ;;  %v10173_v12 = vpack.c.bf16 %v5995_v27, %v5994_v0 }
0x272a   :  { %v11903_v19 = vsub.f32 %v11893_v41, %v5703_v60 }
0x272b   :  { %v5708_v51 = vmul.f32 %v11900_v18, %v11900_v18 }
0x272c   :  { %v5707_v43 = vmul.f32 %v11903_v19, %v11903_v19 }
0x272d   :  { %v5712_v33 = vsel %vm4492_vm8, %v5708_v51, 0.0  ;;  %v5996_v51 = vld [vmem:[%s12372_s8 + $0x10] sm:$0xff] }
0x272e   :  { %5713 = vadd.xlane.f32.xlu1 %v5712_v33  ;;  %v5709_v21 = vsel %vm4488_vm9, %v5707_v43, 0.0  ;;  %v5997_v43 = vld [vmem:[%s12372_s8 + $0x18] sm:$0xff]  ;;  %v10658_v33 = vld [vmem:[%s12334_s7] sm:$0x3]  ;;  %s12374_s7 = sld [smem:[#allocation49_spill]] }
0x272f   :  { %5710 = vadd.xlane.f32.xlu0 %v5709_v21  ;;  %v5884_v21 = vld [vmem:[%s11050_s21 + $0x30] sm:$0xff] }
0x2734   :  { %v5751_v6 = vld [vmem:[%s12374_s7] sm:$0x3] }
0x2735   :  { %v5756_v9 = vrot.slane %v5751_v6, %v5755_v4 }
0x273f   :  { %6086 = vperm.xlu1 %10427, %v6078_v36   ;;  %v10146_v36 = vpack.c.bf16 %v5885_v34, %v5884_v21 }
0x2741   :  { %10147 = vmatpush1.bf16.msra.mxu1 %v10146_v36 }
0x2742   :  { %10148 = vmatprep.subr.bf16.mxu1 %v10747_v11 }
0x2745   :  { %6081 = vperm.xlu0 %10426, %v6077_v39   ;;  %v5887_v39 = vld [vmem:[%s11050_s21 + $0x48] sm:$0xff] }
0x2746   :  { %v10149_v32 = vpack.c.bf16 %v5887_v39, %v5886_v37 }
0x2748   :  { %10150 = vmatpush1.bf16.msra.mxu1 %v10149_v32 }
0x2749   :  { %10151 = vmatprep.subr.bf16.mxu1 %v10747_v11 }
0x27bb   :  { %v5714_v10 = vpop.xlane.xlu1 %5713 }
0x27bc   :  { %v5716_v3 = vmul.f32 0.020833334, %v5714_v10  ;;  %v5711_v14 = vpop.xlane.xlu0 %5710  ;;  %v5760_v10 = vrot.slane %v5751_v6, %v5759_v7 }
0x27bd   :  { %v5715_v8 = vmul.f32 0.020833334, %v5711_v14 }
0x27be   :  { %v5718_v13 = vadd.f32 1e-05, %v5716_v3 }
0x27bf   :  { %v5717_v16 = vadd.f32 1e-05, %v5715_v8  ;;  %v6087_v61 = vpop.permute.xlu1 %6086 }
0x27c0   :  { %10588 = vrsqrt.f32 %v5718_v13 }
0x27c1   :  { %10590 = vrsqrt.f32 %v5717_v16 }
0x27ca   :  { %v10589_v17 = vpop.eup %10588 }
0x27cb   :  { %v10591_v53 = vpop.eup %10590  ;;  %v5722_v28 = vmul.f32 %v10589_v17, %v11900_v18  ;;  %v10176_v18 = vpack.c.bf16 %v5997_v43, %v5996_v51 }
0x27cc   :  { %v5721_v35 = vmul.f32 %v10591_v53, %v11903_v19 }
0x27cd   :  { %v5730_v60 = vmul.f32 %v8306_v24, %v5722_v28 }
0x27ce   :  { %v5729_v26 = vmul.f32 %v8306_v24, %v5721_v35 }
0x27cf   :  { %v5738_v19 = vadd.f32 %v8307_v30, %v5730_v60 }
0x27d0   :  { %v5737_v58 = vadd.f32 %v8307_v30, %v5729_v26  ;;  %v8317_v30 = vld [vmem:[%s12375_s19] ss:$0 sm:$0xff] }
0x27d2   :  { %8308 = vmatmul.mubr.msk.f32.vlgmr.msra.gmra.mrb[78].mxu0 %vm4488_vm9, %v5737_v58 }
0x27d3   :  { %5839 = vmatprep.mubr.f32.mxu0 %v10749_v56  ;;  %10174 = vmatpush3.bf16.msra.mxu0 %v10173_v12 }
0x27d4   :  { %10175 = vmatprep.subr.bf16.mxu0 %v10747_v11 }
0x27d6   :  { %8309 = vmatmul.mubr.msk.f32.gmra.mrb[80].mxu0 %vm4488_vm9, %v5738_v19 }
0x27d7   :  { %10177 = vmatpush3.bf16.msra.mxu0 %v10176_v18  ;;  %9523 = vmatprep.mubr.msk.f32.mxu0 %vm10748_vm5, %v10749_v56 }
0x27da   :  { %9524 = vmatmul.mubr.msk.f32.vlgmr.msra.gmra.mrb[82].mxu0 %vm270_vm0, %v10658_v33 }
0x27db   :  { %9528 = vmatprep.mubr.msk.f32.mxu0 %vm2000_vm4, %v11714_v31  ;;  %v5889_v31 = vld [vmem:[%s11050_s21 + $0x58] sm:$0xff] }
0x27dc   :  { %v10152_v40 = vpack.c.bf16 %v5889_v31, %v5888_v44 }
0x27de   :  { %10153 = vmatpush1.bf16.msra.mxu1 %v10152_v40 }
0x27df   :  { %10154 = vmatprep.subr.bf16.mxu1 %v10747_v11 }
0x27e2   :  { %10156 = vmatpush1.bf16.msra.mxu1 %v10155_v46 }
0x27e3   :  { %10157 = vmatprep.subr.bf16.mxu1 %v10747_v11 }
0x27e6   :  { %10159 = vmatpush1.bf16.msra.mxu1 %v10158_v50 }
0x27e7   :  { %10160 = vmatprep.subr.bf16.mxu1 %v10747_v11 }
0x27ea   :  { %10162 = vmatpush1.bf16.msra.mxu1 %v10161_v5 }
0x27eb   :  { %10163 = vmatprep.subr.bf16.mxu1 %v10747_v11 }
0x27ee   :  { %10165 = vmatpush1.bf16.msra.mxu1 %v10164_v38  ;;  %v6082_v38 = vpop.permute.xlu0 %6081 }
0x27ef   :  { %10166 = vmatprep.subr.bf16.mxu1 %v10747_v11 }
0x27f2   :  { %10168 = vmatpush1.bf16.msra.mxu1 %v10167_v42 }
0x27f3   :  { %10169 = vmatprep.subr.bf16.mxu1 %v10747_v11 }
0x27f6   :  { %10171 = vmatpush1.bf16.msra.mxu1 %v10170_v55 }
0x28a5   :  { %v5835_v3 = vpop.f32.mrb[78].mxu0 }
0x28a6   :  { %v5836_v14 = vadd.f32 %v5835_v3, %v5756_v9  ;;  %v5837_v8 = vpop.f32.mrb[79].mxu0 }
0x28a7   :  { %v5838_v13 = vadd.f32 %v5837_v8, %v5760_v10 }
0x28a8   :  { %v8310_v16 = vmul.f32 -1.702, %v5836_v14 }
0x28a9   :  { %v8311_v17 = vmul.f32 -1.702, %v5838_v13  ;;  %v5841_v53 = vpop.f32.mrb[80].mxu0 }
0x28aa   :  { %v5854_v24 = vmul.f32 1.442695, %v8310_v16  ;;  %v5842_v35 = vadd.f32 %v5841_v53, %v5756_v9  ;;  %v5843_v28 = vpop.f32.mrb[81].mxu0 }
0x28ab   :  { %v5856_v0 = vmul.f32 1.442695, %v8311_v17  ;;  %v5844_v27 = vadd.f32 %v5843_v28, %v5760_v10  ;;  %v8326_v28 = vld [vmem:[%s12354_s23 + $0x60] sm:$0xff] }
0x28ac   :  { %10592 = vpow2.f32 %v5854_v24  ;;  %v8312_v26 = vmul.f32 -1.702, %v5842_v35 }
0x28ad   :  { %10594 = vpow2.f32 %v5856_v0  ;;  %v8313_v12 = vmul.f32 -1.702, %v5844_v27  ;;  %v6073_v58 = vpop.f32.mrb[82].mxu0  ;;  %v8327_v0 = vld [vmem:[%s12354_s23 + $0x68] sm:$0xff] }
0x28ae   :  { %v5858_v60 = vmul.f32 1.442695, %v8312_v26  ;;  %v6074_v51 = vadd.f32 %v8317_v30, %v6073_v58  ;;  %v9525_v43 = vpop.f32.mrb[83].mxu0  ;;  %v8328_v30 = vld [vmem:[%s12354_s23 + $0x70] sm:$0xff]  ;;  %v8329_v26 = vld [vmem:[%s12354_s23 + $0x78] sm:$0xff]  ;;  %v8330_v58 = vld [vmem:[%s12354_s23 + $0x80] sm:$0xff] }
0x28af   :  { %v5860_v18 = vmul.f32 1.442695, %v8313_v12  ;;  %v10182_v12 = vpack.c.bf16 %v8329_v26, %v8328_v30  ;;  %v8336_v43 = vld [vmem:[%s12355_s26 + $0x60] sm:$0xff]  ;;  %v8379_v30 = vld [vmem:[%s12355_s26 + $0xa8] sm:$0xff] }
0x28b0   :  { %10596 = vpow2.f32 %v5858_v60  ;;  %9526 = vmatprep.subr.msk.mxu0 %vm2013_vm3, %v6074_v51  ;;  %v8331_v60 = vld [vmem:[%s12354_s23 + $0x88] sm:$0xff]  ;;  %v8353_v26 = vld [vmem:[%s12361_s10 + $0x2] ss:$0 sm:$0xff] }
0x28b1   :  { %10598 = vpow2.f32 %v5860_v18  ;;  %9527 = vmatpush3.msk.msra.mxu0 %vm2013_vm3, %v6074_v51  ;;  %v10186_v51 = vpack.c.bf16 %v8331_v60, %v8330_v58  ;;  %v8337_v18 = vld [vmem:[%s12355_s26 + $0x68] sm:$0xff]  ;;  %vm4104_vm3 = vcmask 257024  }
0x28b2   :  { %9529 = vmatmul.mubr.msk.f32.vlgmr.msra.gmra.mrb[84].mxu0 %vm2000_vm4, %v11722_v52  ;;  %vm7831_vm4 = vcmask 254976  }
0x28b6   :  { %v10593_v19 = vpop.eup %10592 }
0x28b7   :  { %v10595_v33 = vpop.eup %10594  ;;  %v5862_v21 = vadd.f32 1.0, %v10593_v19  ;;  %v10190_v19 = vpack.c.bf16 %v8337_v18, %v8336_v43  ;;  %v8380_v18 = vld [vmem:[%s12355_s26 + $0xb0] sm:$0xff] }
0x28b8   :  { %v5863_v34 = vadd.f32 1.0, %v10595_v33 }
0x28b9   :  { %10600 = vrcp.f32 %v5862_v21 }
0x28ba   :  { %v10597_v36 = vpop.eup %10596  ;;  %10602 = vrcp.f32 %v5863_v34 }
0x28bb   :  { %v10599_v37 = vpop.eup %10598  ;;  %v5864_v39 = vadd.f32 1.0, %v10597_v36 }
0x28bc   :  { %v5865_v32 = vadd.f32 1.0, %v10599_v37 }
0x28bd   :  { %10604 = vrcp.f32 %v5864_v39 }
0x28be   :  { %10606 = vrcp.f32 %v5865_v32 }
0x28c3   :  { %v10601_v44 = vpop.eup %10600 }
0x28c4   :  { %v10603_v31 = vpop.eup %10602  ;;  %v5874_v47 = vmul.f32 %v10601_v44, %v5836_v14  ;;  %v8324_v44 = vld [vmem:[%s12356_s28 + $0x1] ss:$0 sm:$0xff] }
0x28c5   :  { %v5875_v40 = vmul.f32 %v10603_v31, %v5838_v13 }
0x28c7   :  { %v10605_v45 = vpop.eup %10604  ;;  %8314 = vmatprep.mubr.msk.f32.mxu1 %vm4238_vm6, %v5875_v40  ;;  %v8325_v40 = vld [vmem:[%s12357_s1 + $0x1] ss:$0 sm:$0xff] }
0x28c8   :  { %v10607_v52 = vpop.eup %10606  ;;  %5973 = vmatmul.mubr.f32.vlgmr.msra.gmra.mrb[62].mxu1 %v5874_v47  ;;  %v5876_v48 = vmul.f32 %v10605_v45, %v5842_v35 }
0x28c9   :  { %v5877_v46 = vmul.f32 %v10607_v52, %v5844_v27  ;;  %v10178_v27 = vpack.c.bf16 %v8327_v0, %v8326_v28 }
0x28cb   :  { %8315 = vmatprep.mubr.msk.f32.mxu1 %vm4238_vm6, %v5877_v46  ;;  %10179 = vmatprep.subr.bf16.mxu0 %v10178_v27 }
0x28cc   :  { %5978 = vmatmul.mubr.f32.gmra.mrb[64].mxu1 %v5876_v48  ;;  %10181 = vmatpush3.bf16.msra.mxu0 %v10178_v27  ;;  %v8338_v48 = vld [vmem:[%s12355_s26 + $0x70] sm:$0xff]  ;;  %v8378_v27 = vld [vmem:[%s12355_s26 + $0xa0] sm:$0xff] }
0x28cd   :  { %10183 = vmatprep.subr.bf16.mxu0 %v10182_v12  ;;  %v10242_v60 = vpack.c.bf16 %v8379_v30, %v8378_v27  ;;  %v8386_v30 = vld [vmem:[%s12358_s2 + $0x90] sm:$0xff] }
0x28d0   :  { %10185 = vmatpush3.bf16.msra.mxu0 %v10182_v12 }
0x28d1   :  { %10187 = vmatprep.subr.bf16.mxu0 %v10186_v51 }
0x28d4   :  { %10189 = vmatpush3.bf16.msra.mxu0 %v10186_v51 }
0x28d5   :  { %10191 = vmatprep.subr.bf16.mxu0 %v10190_v19 }
0x2985   :  { %v9530_v49 = vpop.f32.mrb[84].mxu0 }
0x2986   :  { %v6160_v50 = vpop.f32.mrb[85].mxu0 }
0x299b   :  { %v5974_v23 = vpop.f32.mrb[62].mxu1 }
0x299c   :  { %v5983_v5 = vadd.f32 %v5974_v23, %v11893_v41  ;;  %v5976_v54 = vpop.f32.mrb[63].mxu1 }
0x299d   :  { %v8341_v54 = vld [vmem:[%s12355_s26 + $0x88] sm:$0xff] }
0x299e   :  { %v5992_v57 = vadd.f32 %v8316_v2, %v5983_v5  ;;  %v8340_v5 = vld [vmem:[%s12355_s26 + $0x80] sm:$0xff] }
0x299f   :  { %v5979_v15 = vpop.f32.mrb[64].mxu1 }
0x29a0   :  { %v5984_v63 = vadd.f32 %v5979_v15, %v11891_v29  ;;  %v5981_v42 = vpop.f32.mrb[65].mxu1  ;;  %v6089_v59 = vmul.f32 %v6082_v38, %v5992_v57  ;;  %v10198_v57 = vpack.c.bf16 %v8341_v54, %v8340_v5  ;;  %v8346_v38 = vld [vmem:[%s12358_s2 + $0x60] sm:$0xff]  ;;  %v8347_v15 = vld [vmem:[%s12358_s2 + $0x68] sm:$0xff] }
0x29a1   :  { %v8348_v42 = vld [vmem:[%s12358_s2 + $0x70] sm:$0xff] }
0x29a2   :  { %v5993_v1 = vadd.f32 %v8316_v2, %v5984_v63  ;;  %v11998_v55 = vadd.f32 %v6160_v50, %v6089_v59  ;;  %v10202_v63 = vpack.c.bf16 %v8347_v15, %v8346_v38  ;;  %v8349_v59 = vld [vmem:[%s12358_s2 + $0x78] sm:$0xff] }
0x29a4   :  { %v6090_v6 = vmul.f32 %v6087_v61, %v5993_v1  ;;  %v6175_v9 = vsel %vm4488_vm9, %v11998_v55, 0.0  ;;  %v10206_v1 = vpack.c.bf16 %v8349_v59, %v8348_v42  ;;  %v8350_v61 = vld [vmem:[%s12358_s2 + $0x80] sm:$0xff] }
0x29a5   :  { %6176 = vadd.xlane.f32.xlu1 %v6175_v9 }
0x29a6   :  { %v12002_v10 = vadd.f32 %v9530_v49, %v6090_v6  ;;  %v8339_v49 = vld [vmem:[%s12355_s26 + $0x78] sm:$0xff]  ;;  %v8351_v6 = vld [vmem:[%s12358_s2 + $0x88] sm:$0xff] }
0x29a7   :  { %v10194_v2 = vpack.c.bf16 %v8339_v49, %v8338_v48  ;;  %v10210_v9 = vpack.c.bf16 %v8351_v6, %v8350_v61  ;;  %v8383_v48 = vld [vmem:[%s12360_s5 + $0x3] ss:$0 sm:$0xff] }
0x29a8   :  { %v6178_v41 = vsel %vm4492_vm8, %v12002_v10, 0.0 }
0x29a9   :  { %6179 = vadd.xlane.f32.xlu0 %v6178_v41  ;;  %v8333_v41 = vld [vmem:[%s12359_s0 + $0x2] ss:$0 sm:$0xff] }
0x2a32   :  { %v6177_v29 = vpop.xlane.xlu1 %6176 }
0x2a33   :  { %v6181_v3 = vmul.f32 0.020833334, %v6177_v29 }
0x2a35   :  { %v6183_v14 = vsub.f32 %v11998_v55, %v6181_v3 }
0x2a36   :  { %v6180_v8 = vpop.xlane.xlu0 %6179 }
0x2a37   :  { %v6182_v13 = vmul.f32 0.020833334, %v6180_v8  ;;  %v6185_v16 = vmul.f32 %v6183_v14, %v6183_v14  ;;  %v8343_v8 = vld [vmem:[%s12360_s5 + $0x2] ss:$0 sm:$0xff] }
0x2a39   :  { %v6184_v17 = vsub.f32 %v12002_v10, %v6182_v13  ;;  %v6187_v53 = vsel %vm4488_vm9, %v6185_v16, 0.0 }
0x2a3a   :  { %6188 = vadd.xlane.f32.xlu0 %v6187_v53  ;;  %v8376_v53 = vld [vmem:[%s12355_s26 + $0x90] sm:$0xff] }
0x2a3b   :  { %v6186_v24 = vmul.f32 %v6184_v17, %v6184_v17 }
0x2a3d   :  { %v6190_v35 = vsel %vm4492_vm8, %v6186_v24, 0.0  ;;  %v8377_v24 = vld [vmem:[%s12355_s26 + $0x98] sm:$0xff] }
0x2a3e   :  { %6191 = vadd.xlane.f32.xlu1 %v6190_v35  ;;  %v10238_v0 = vpack.c.bf16 %v8377_v24, %v8376_v53 }
0x2ac7   :  { %v6189_v33 = vpop.xlane.xlu0 %6188 }
0x2ac8   :  { %v6193_v21 = vmul.f32 0.020833334, %v6189_v33 }
0x2aca   :  { %v6195_v34 = vadd.f32 1e-05, %v6193_v21 }
0x2acb   :  { %v6192_v36 = vpop.xlane.xlu1 %6191 }
0x2acc   :  { %10608 = vrsqrt.f32 %v6195_v34  ;;  %v6194_v37 = vmul.f32 0.020833334, %v6192_v36 }
0x2ace   :  { %v6196_v39 = vadd.f32 1e-05, %v6194_v37 }
0x2ad0   :  { %10610 = vrsqrt.f32 %v6196_v39 }
0x2ad6   :  { %v10609_v32 = vpop.eup %10608 }
0x2ad7   :  { %v6199_v31 = vmul.f32 %v10609_v32, %v6183_v14 }
0x2ad9   :  { %v6207_v47 = vmul.f32 %v8324_v44, %v6199_v31 }
0x2ada   :  { %v10611_v45 = vpop.eup %10610 }
0x2adb   :  { %v12020_v52 = vadd.f32 %v8325_v40, %v6207_v47  ;;  %v6200_v46 = vmul.f32 %v10611_v45, %v6184_v17 }
0x2add   :  { %v6208_v50 = vmul.f32 %v8324_v44, %v6200_v46  ;;  %9543 = vmatprep.mubr.msk.f32.mxu0 %vm4488_vm9, %v12020_v52  ;;  %v12070_v44 = vld [vmem:[%s12364_s11 + $0x8] sm:$0x3f] }
0x2adf   :  { %v12026_v23 = vadd.f32 %v8325_v40, %v6208_v50  ;;  %v12074_v40 = vld [vmem:[%s12364_s11] sm:$0xff] }
0x2ae1   :  { %9544 = vmatmul.mubr.msk.f32.vlgmr.msra.gmra.mrb[86].mxu0 %vm4488_vm9, %v12026_v23 }
0x2ae2   :  { %10193 = vmatpush3.bf16.msra.mxu0 %v10190_v19  ;;  %9558 = vmatprep.mubr.msk.f32.mxu0 %vm4488_vm9, %v12020_v52  ;;  %v8381_v19 = vld [vmem:[%s12355_s26 + $0xb8] sm:$0xff] }
0x2ae3   :  { %10195 = vmatprep.subr.bf16.mxu0 %v10194_v2  ;;  %v10246_v34 = vpack.c.bf16 %v8381_v19, %v8380_v18  ;;  %v8391_v18 = vld [vmem:[%s12358_s2 + $0xb8] sm:$0xff] }
0x2ae6   :  { %10197 = vmatpush3.bf16.msra.mxu0 %v10194_v2 }
0x2ae7   :  { %10199 = vmatprep.subr.bf16.mxu0 %v10198_v57 }
0x2aea   :  { %10201 = vmatpush3.bf16.msra.mxu0 %v10198_v57 }
0x2aeb   :  { %10203 = vmatprep.subr.bf16.mxu0 %v10202_v63 }
0x2aed   :  { %9559 = vmatmul.mubr.msk.f32.vlgmr.msra.gmra.mrb[88].mxu0 %vm4488_vm9, %v12026_v23 }
0x2aee   :  { %10205 = vmatpush3.bf16.msra.mxu0 %v10202_v63  ;;  %9573 = vmatprep.mubr.msk.f32.mxu0 %vm4488_vm9, %v12020_v52 }
0x2aef   :  { %10207 = vmatprep.subr.bf16.mxu0 %v10206_v1 }
0x2af2   :  { %10209 = vmatpush3.bf16.msra.mxu0 %v10206_v1 }
0x2af3   :  { %10211 = vmatprep.subr.bf16.mxu0 %v10210_v9 }
0x2af6   :  { %10213 = vmatpush3.bf16.msra.mxu0 %v10210_v9  ;;  %v8366_v9 = vld [vmem:[%s12354_s23 + $0x90] sm:$0xff] }
0x2af9   :  { %9574 = vmatmul.mubr.msk.f32.vlgmr.msra.gmra.mrb[90].mxu0 %vm4488_vm9, %v12026_v23 }
0x2bb4   :  { %v9545_v29 = vpop.f32.mrb[86].mxu0 }
0x2bb5   :  { %v6304_v3 = vpop.f32.mrb[87].mxu0  ;;  %v6310_v12 = vadd.f32 %v9545_v29, %v8333_v41 }
0x2bb6   :  { %v6305_v14 = vadd.f32 %v8333_v41, %v6304_v3  ;;  %v8367_v41 = vld [vmem:[%s12354_s23 + $0x98] sm:$0xff] }
0x2bb7   :  { %v10226_v29 = vpack.c.bf16 %v8367_v41, %v8366_v9  ;;  %v8403_v9 = vld [vmem:[%s12367_s15 + $0x48] sm:$0xff]  ;;  %v8404_v41 = vld [vmem:[%s12367_s15 + $0x50] sm:$0xff] }
0x2bb8   :  { %9580 = vmatprep.mubr.msk.f32.mxu1 %vm4847_vm10, %v6305_v14 }
0x2bc0   :  { %v9560_v13 = vpop.f32.mrb[88].mxu0 }
0x2bc1   :  { %v6400_v16 = vadd.f32 %v9560_v13, %v8343_v8  ;;  %v6394_v17 = vpop.f32.mrb[89].mxu0  ;;  %v8368_v13 = vld [vmem:[%s12354_s23 + $0xa0] sm:$0xff] }
0x2bc2   :  { %v6395_v35 = vadd.f32 %v8343_v8, %v6394_v17 }
0x2bc4   :  { %v10214_v28 = vpack.c.bf16 %v6400_v16, %v6395_v35  ;;  %v8369_v16 = vld [vmem:[%s12354_s23 + $0xa8] sm:$0xff] }
0x2bc5   :  { %v10230_v35 = vpack.c.bf16 %v8369_v16, %v8368_v13 }
0x2bc6   :  { %10216 = vmatprep.subr.msk.bf16.mxu1 %vm11787_vm11, %v10214_v28 }
0x2bc7   :  { %10219 = vmatpush3.bf16.xpose.msk.msra.mxu1 %vm11787_vm11, %v10214_v28  ;;  %v8370_v28 = vld [vmem:[%s12354_s23 + $0xb0] sm:$0xff] }
0x2bc8   :  { %10239 = vmatprep.subr.bf16.mxu1 %v10238_v0 }
0x2bcc   :  { %v9575_v58 = vpop.f32.mrb[90].mxu0 }
0x2bcd   :  { %v6490_v51 = vadd.f32 %v9575_v58, %v8353_v26  ;;  %v6484_v43 = vpop.f32.mrb[91].mxu0  ;;  %v8388_v58 = vld [vmem:[%s12358_s2 + $0xa0] sm:$0xff] }
0x2bce   :  { %v6485_v33 = vadd.f32 %v8353_v26, %v6484_v43  ;;  %9581 = vmatmul.mubr.msk.f32.vlgmr.msra.gmra.mrb[66].mxu1 %vm4847_vm10, %v6310_v12  ;;  %v8387_v26 = vld [vmem:[%s12358_s2 + $0x98] sm:$0xff]  ;;  %v8390_v43 = vld [vmem:[%s12358_s2 + $0xb0] sm:$0xff] }
0x2bcf   :  { %10241 = vmatpush3.bf16.msra.mxu1 %v10238_v0  ;;  %9617 = vmatprep.mubr.msk.f32.mxu1 %vm4488_vm9, %v12020_v52  ;;  %v8371_v0 = vld [vmem:[%s12354_s23 + $0xb8] sm:$0xff]  ;;  %v10250_v12 = vpack.c.bf16 %v8387_v26, %v8386_v30  ;;  %v10258_v19 = vpack.c.bf16 %v8391_v18, %v8390_v43  ;;  %v8365_v30 = vld [vmem:[%s12367_s15 + $0x40] sm:$0xff] }
0x2bd0   :  { %v10220_v21 = vpack.c.bf16 %v6490_v51, %v6485_v33  ;;  %10243 = vmatprep.subr.bf16.mxu1 %v10242_v60  ;;  %v10234_v27 = vpack.c.bf16 %v8371_v0, %v8370_v28 }
0x2bd2   :  { %10222 = vmatprep.subr.msk.bf16.mxu0 %vm11797_vm14, %v10220_v21 }
0x2bd3   :  { %10225 = vmatpush3.bf16.msk.msra.mxu0 %vm11797_vm14, %v10220_v21  ;;  %10245 = vmatpush3.bf16.msra.mxu1 %v10242_v60  ;;  %v8389_v60 = vld [vmem:[%s12358_s2 + $0xa8] sm:$0xff] }
0x2bd4   :  { %10247 = vmatprep.subr.bf16.mxu1 %v10246_v34  ;;  %10227 = vmatprep.subr.bf16.mxu0 %v10226_v29  ;;  %v10254_v51 = vpack.c.bf16 %v8389_v60, %v8388_v58 }
0x2bd7   :  { %10249 = vmatpush3.bf16.msra.mxu1 %v10246_v34  ;;  %v8373_v34 = vld [vmem:[%s12359_s0 + $0x3] ss:$0 sm:$0xff] }
0x2bda   :  { %9618 = vmatmul.mubr.msk.f32.vlgmr.msra.gmra.mrb[68].mxu1 %vm4488_vm9, %v12026_v23 }
0x2ca1   :  { %v9582_v36 = vpop.f32.mrb[66].mxu1 }
0x2ca2   :  { %v6581_v37 = vmul.f32 0.20412415, %v9582_v36  ;;  %v6571_v39 = vpop.f32.mrb[67].mxu1 }
0x2ca3   :  { %v6580_v32 = vmul.f32 0.20412415, %v6571_v39 }
0x2ca4   :  { %v6583_v31 = vadd.f32 %v12070_v44, %v6581_v37 }
0x2ca5   :  { %v6582_v47 = vadd.f32 %v12074_v40, %v6580_v32 }
0x2ca6   :  { %v6587_v45 = vsel %vm4943_vm15, %v6583_v31, -inf }
0x2ca7   :  { %6588 = vmax.xlane.f32.xlu1 %v6587_v45  ;;  %v6584_v46 = vsel %vm4939_vm1, %v6582_v47, -inf }
0x2ca8   :  { %6585 = vmax.xlane.f32.xlu0 %v6584_v46 }
0x2cad   :  { %v9619_v49 = vpop.f32.mrb[68].mxu1 }
0x2cae   :  { %v6871_v50 = vadd.f32 %v9619_v49, %v8383_v48  ;;  %v6865_v2 = vpop.f32.mrb[69].mxu1 }
0x2caf   :  { %v6866_v5 = vadd.f32 %v8383_v48, %v6865_v2 }
0x2cb1   :  { %v10262_v54 = vpack.c.bf16 %v6871_v50, %v6866_v5 }
0x2cb3   :  { %10264 = vmatprep.subr.msk.bf16.mxu1 %vm11787_vm11, %v10262_v54 }
0x2cb4   :  { %10267 = vmatpush3.bf16.xpose.msk.msra.mxu1 %vm11787_vm11, %v10262_v54 }
0x2d34   :  { %v6589_v57 = vpop.xlane.xlu1 %6588 }
0x2d35   :  { %v6591_v38 = vsub.f32 %v6583_v31, %v6589_v57  ;;  %v6586_v15 = vpop.xlane.xlu0 %6585 }
0x2d36   :  { %v6590_v63 = vsub.f32 %v6582_v47, %v6586_v15 }
0x2d37   :  { %v6594_v42 = vmul.f32 1.442695, %v6591_v38 }
0x2d38   :  { %v6592_v59 = vmul.f32 1.442695, %v6590_v63 }
0x2d39   :  { %10612 = vpow2.f32 %v6594_v42 }
0x2d3a   :  { %10614 = vpow2.f32 %v6592_v59 }
0x2d43   :  { %v10613_v1 = vpop.eup %10612 }
0x2d44   :  { %v10615_v61 = vpop.eup %10614  ;;  %v6599_v6 = vsel %vm4943_vm15, %v10613_v1, 0.0 }
0x2d45   :  { %6600 = vadd.xlane.f32.xlu1 %v6599_v6  ;;  %v6596_v25 = vsel %vm4939_vm1, %v10615_v61, 0.0 }
0x2d46   :  { %6597 = vadd.xlane.f32.xlu0 %v6596_v25 }
0x2dd2   :  { %v6601_v3 = vpop.xlane.xlu1 %6600 }
0x2dd3   :  { %10616 = vrcp.f32 %v6601_v3  ;;  %v6598_v14 = vpop.xlane.xlu0 %6597 }
0x2dd4   :  { %10618 = vrcp.f32 %v6598_v14 }
0x2ddd   :  { %v10617_v8 = vpop.eup %10616 }
0x2dde   :  { %v10619_v17 = vpop.eup %10618  ;;  %v6605_v24 = vmul.f32 %v10617_v8, %v10613_v1 }
0x2ddf   :  { %v6604_v53 = vmul.f32 %v10619_v17, %v10615_v61 }
0x2de1   :  { %9587 = vmatprep.mubr.msk.f32.mxu0 %vm4939_vm1, %v6604_v53  ;;  %v8405_v53 = vld [vmem:[%s12367_s15 + $0x58] sm:$0xff] }
0x2de2   :  { %9588 = vmatmul.mubr.msk.f32.vlgmr.msra.gmra.mrb[92].mxu0 %vm4939_vm1, %v6605_v24  ;;  %v8363_v24 = vld [vmem:[%s12367_s15 + $0x30] sm:$0xff] }
0x2de3   :  { %10229 = vmatpush3.bf16.msra.mxu0 %v10226_v29  ;;  %9602 = vmatprep.mubr.msk.f32.mxu0 %vm4488_vm9, %v12020_v52  ;;  %v10274_v29 = vpack.c.bf16 %v8404_v41, %v8403_v9  ;;  %v8438_v9 = vld [vmem:[%s11050_s21 + $0xd8] sm:$0xff] }
0x2de4   :  { %10231 = vmatprep.subr.bf16.mxu0 %v10230_v35 }
0x2de7   :  { %10233 = vmatpush3.bf16.msra.mxu0 %v10230_v35  ;;  %v8364_v35 = vld [vmem:[%s12367_s15 + $0x38] sm:$0xff] }
0x2de8   :  { %10235 = vmatprep.subr.bf16.mxu0 %v10234_v27  ;;  %v10278_v28 = vpack.c.bf16 %v8364_v35, %v8363_v24 }
0x2deb   :  { %10237 = vmatpush3.bf16.msra.mxu0 %v10234_v27 }
0x2dec   :  { %10251 = vmatprep.subr.bf16.mxu0 %v10250_v12 }
0x2dee   :  { %9603 = vmatmul.mubr.msk.f32.vlgmr.msra.gmra.mrb[94].mxu0 %vm4488_vm9, %v12026_v23 }
0x2def   :  { %10253 = vmatpush3.bf16.msra.mxu0 %v10250_v12  ;;  %9632 = vmatprep.mubr.msk.f32.mxu0 %vm4488_vm9, %v12020_v52  ;;  %v8393_v52 = vld [vmem:[%s12361_s10 + $0x3] ss:$0 sm:$0xff]  ;;  %v8411_v12 = vld [vmem:[%s12368_s16 + $0x1] ss:$0 sm:$0xff] }
0x2df0   :  { %10255 = vmatprep.subr.bf16.mxu0 %v10254_v51 }
0x2df3   :  { %10257 = vmatpush3.bf16.msra.mxu0 %v10254_v51 }
0x2df4   :  { %10259 = vmatprep.subr.bf16.mxu0 %v10258_v19 }
0x2df7   :  { %10261 = vmatpush3.bf16.msra.mxu0 %v10258_v19 }
0x2df8   :  { %10275 = vmatprep.subr.bf16.mxu0 %v10274_v29 }
0x2dfa   :  { %9633 = vmatmul.mubr.msk.f32.vlgmr.msra.gmra.mrb[96].mxu0 %vm4488_vm9, %v12026_v23 }
0x2dfb   :  { %10277 = vmatpush3.bf16.msra.mxu0 %v10274_v29  ;;  %v8439_v29 = vld [vmem:[%s11050_s21 + $0xe0] sm:$0xff] }
0x2dfc   :  { %9653 = vmatprep.subr.mxu0 %v8405_v53 }
0x2dff   :  { %9654 = vmatpush3.msra.mxu0 %v8405_v53 }
0x2e00   :  { %10279 = vmatprep.subr.bf16.mxu0 %v10278_v28 }
0x2eb5   :  { %v12108_v33 = vpop.f32.mrb[92].mxu0 }
0x2eb6   :  { %v12110_v21 = vpop.f32.mrb[93].mxu0 }
0x2ec1   :  { %v9604_v36 = vpop.f32.mrb[94].mxu0 }
0x2ec2   :  { %v6775_v37 = vpop.f32.mrb[95].mxu0  ;;  %v6781_v32 = vadd.f32 %v9604_v36, %v8373_v34 }
0x2ec3   :  { %v6776_v39 = vadd.f32 %v8373_v34, %v6775_v37 }
0x2ec5   :  { %9639 = vmatprep.mubr.msk.f32.mxu1 %vm4847_vm10, %v6776_v39 }
0x2ec6   :  { %9640 = vmatmul.mubr.msk.f32.vlgmr.msra.gmra.mrb[70].mxu1 %vm4847_vm10, %v6781_v32 }
0x2ecd   :  { %v9634_v31 = vpop.f32.mrb[96].mxu0 }
0x2ece   :  { %v6961_v47 = vadd.f32 %v9634_v31, %v8393_v52  ;;  %v6955_v45 = vpop.f32.mrb[97].mxu0 }
0x2ecf   :  { %v6956_v46 = vadd.f32 %v8393_v52, %v6955_v45  ;;  %v8419_v45 = vld [vmem:[%s12370_s25 + $0x78] sm:$0xff] }
0x2ed1   :  { %v10268_v48 = vpack.c.bf16 %v6961_v47, %v6956_v46  ;;  %v8417_v47 = vld [vmem:[%s12370_s25 + $0x68] sm:$0xff] }
0x2ed2   :  { %v10282_v46 = vpack.c.bf16 %v8419_v45, %v8417_v47  ;;  %v8449_v47 = vld [vmem:[%s11050_s21 + $0x130] sm:$0xff]  ;;  %v8450_v45 = vld [vmem:[%s11050_s21 + $0x138] sm:$0xff] }
0x2ed3   :  { %10270 = vmatprep.subr.msk.bf16.mxu1 %vm11797_vm14, %v10268_v48 }
0x2ed4   :  { %10273 = vmatpush3.bf16.msk.msra.mxu1 %vm11797_vm14, %v10268_v48  ;;  %v8416_v48 = vld [vmem:[%s12370_s25 + $0x60] sm:$0xff] }
0x2ed5   :  { %10283 = vmatprep.subr.bf16.mxu1 %v10282_v46  ;;  %v10316_v46 = vpack.c.bf16 %v8450_v45, %v8449_v47 }
0x2f99   :  { %v9641_v23 = vpop.f32.mrb[70].mxu1 }
0x2f9a   :  { %v7052_v49 = vmul.f32 0.20412415, %v9641_v23  ;;  %v7042_v50 = vpop.f32.mrb[71].mxu1  ;;  %v8418_v23 = vld [vmem:[%s12370_s25 + $0x70] sm:$0xff] }
0x2f9b   :  { %v7051_v2 = vmul.f32 0.20412415, %v7042_v50  ;;  %v8421_v50 = vld [vmem:[%s12370_s25 + $0x88] sm:$0xff] }
0x2f9c   :  { %v7054_v5 = vadd.f32 %v12070_v44, %v7052_v49  ;;  %v10284_v49 = vpack.c.bf16 %v8418_v23, %v8416_v48  ;;  %v8451_v48 = vld [vmem:[%s11050_s21 + $0x140] sm:$0xff]  ;;  %v8452_v23 = vld [vmem:[%s11050_s21 + $0x148] sm:$0xff] }
0x2f9d   :  { %v7053_v54 = vadd.f32 %v12074_v40, %v7051_v2  ;;  %v8423_v2 = vld [vmem:[%s12370_s25 + $0x98] sm:$0xff] }
0x2f9e   :  { %v7058_v57 = vsel %vm4943_vm15, %v7054_v5, -inf }
0x2f9f   :  { %7059 = vmax.xlane.f32.xlu1 %v7058_v57  ;;  %v7055_v38 = vsel %vm4939_vm1, %v7053_v54, -inf  ;;  %v8422_v57 = vld [vmem:[%s12370_s25 + $0x90] sm:$0xff] }
0x2fa0   :  { %7056 = vmax.xlane.f32.xlu0 %v7055_v38 }
0x302c   :  { %v7060_v15 = vpop.xlane.xlu1 %7059 }
0x302d   :  { %v7062_v63 = vsub.f32 %v7054_v5, %v7060_v15  ;;  %v7057_v42 = vpop.xlane.xlu0 %7056  ;;  %v10286_v5 = vpack.c.bf16 %v8423_v2, %v8421_v50  ;;  %v8425_v15 = vld [vmem:[%s12370_s25 + $0xa8] sm:$0xff]  ;;  %v8453_v50 = vld [vmem:[%s11050_s21 + $0x150] sm:$0xff]  ;;  %v8454_v2 = vld [vmem:[%s11050_s21 + $0x158] sm:$0xff] }
0x302e   :  { %v7061_v59 = vsub.f32 %v7053_v54, %v7057_v42  ;;  %v8420_v54 = vld [vmem:[%s12370_s25 + $0x80] sm:$0xff] }
0x302f   :  { %v7065_v1 = vmul.f32 1.442695, %v7062_v63  ;;  %v10288_v38 = vpack.c.bf16 %v8422_v57, %v8420_v54  ;;  %v8427_v63 = vld [vmem:[%s12370_s25 + $0xb8] sm:$0xff]  ;;  %v8455_v54 = vld [vmem:[%s11050_s21 + $0x160] sm:$0xff]  ;;  %v8456_v57 = vld [vmem:[%s11050_s21 + $0x168] sm:$0xff] }
0x3030   :  { %v7063_v61 = vmul.f32 1.442695, %v7061_v59  ;;  %v10290_v42 = vpack.c.bf16 %v8427_v63, %v8425_v15  ;;  %v8424_v59 = vld [vmem:[%s12370_s25 + $0xa0] sm:$0xff]  ;;  %v8457_v15 = vld [vmem:[%s11050_s21 + $0x170] sm:$0xff]  ;;  %v8458_v63 = vld [vmem:[%s11050_s21 + $0x178] sm:$0xff] }
0x3031   :  { %10620 = vpow2.f32 %v7065_v1  ;;  %v8426_v1 = vld [vmem:[%s12370_s25 + $0xb0] sm:$0xff] }
0x3032   :  { %10622 = vpow2.f32 %v7063_v61  ;;  %v10292_v61 = vpack.c.bf16 %v8426_v1, %v8424_v59  ;;  %v8428_v59 = vld [vmem:[%s12374_s7 + $0x2] sm:$0x3] }
0x3033   :  { %v7404_v1 = vrot.slane %v8428_v59, %v5755_v4 }
0x303b   :  { %v10621_v6 = vpop.eup %10620 }
0x303c   :  { %v10623_v44 = vpop.eup %10622  ;;  %v7070_v40 = vsel %vm4943_vm15, %v10621_v6, 0.0 }
0x303d   :  { %7071 = vadd.xlane.f32.xlu1 %v7070_v40  ;;  %v7067_v25 = vsel %vm4939_vm1, %v10623_v44, 0.0  ;;  %v8437_v40 = vld [vmem:[%s11050_s21 + $0xd0] sm:$0xff] }
0x303e   :  { %7068 = vadd.xlane.f32.xlu0 %v7067_v25  ;;  %v10298_v41 = vpack.c.bf16 %v8438_v9, %v8437_v40 }
0x30ca   :  { %v7072_v3 = vpop.xlane.xlu1 %7071 }
0x30cb   :  { %10624 = vrcp.f32 %v7072_v3  ;;  %v7069_v14 = vpop.xlane.xlu0 %7068  ;;  %v8440_v3 = vld [vmem:[%s11050_s21 + $0xe8] sm:$0xff] }
0x30cc   :  { %10626 = vrcp.f32 %v7069_v14  ;;  %v10301_v14 = vpack.c.bf16 %v8440_v3, %v8439_v29 }
0x30d5   :  { %v10625_v8 = vpop.eup %10624 }
0x30d6   :  { %v10627_v13 = vpop.eup %10626  ;;  %v7076_v17 = vmul.f32 %v10625_v8, %v10621_v6  ;;  %v8435_v6 = vld [vmem:[%s11050_s21 + $0xc0] sm:$0xff] }
0x30d7   :  { %v7075_v16 = vmul.f32 %v10627_v13, %v10623_v44  ;;  %v8436_v44 = vld [vmem:[%s11050_s21 + $0xc8] sm:$0xff] }
0x30d8   :  { %v10295_v25 = vpack.c.bf16 %v8436_v44, %v8435_v6 }
0x30d9   :  { %9646 = vmatprep.mubr.msk.f32.mxu1 %vm4939_vm1, %v7075_v16 }
0x30da   :  { %9647 = vmatmul.mubr.msk.f32.vlgmr.msra.gmra.mrb[72].mxu1 %vm4939_vm1, %v7076_v17 }
0x30db   :  { %7481 = vmatprep.mubr.f32.mxu1 %v10749_v56  ;;  %10285 = vmatpush1.bf16.msra.mxu1 %v10284_v49  ;;  %v10319_v49 = vpack.c.bf16 %v8452_v23, %v8451_v48 }
0x30dc   :  { %10287 = vmatprep.subr.bf16.mxu1 %v10286_v5  ;;  %v10322_v5 = vpack.c.bf16 %v8454_v2, %v8453_v50 }
0x30df   :  { %10289 = vmatpush1.bf16.msra.mxu1 %v10288_v38  ;;  %v10325_v38 = vpack.c.bf16 %v8456_v57, %v8455_v54  ;;  %v7751_v57 = vld [vmem:[%s12377_s24] sm:$0xff] }
0x30e0   :  { %10291 = vmatprep.subr.bf16.mxu1 %v10290_v42  ;;  %v10328_v42 = vpack.c.bf16 %v8458_v63, %v8457_v15  ;;  %v7753_v63 = vld [vmem:[%s12377_s24 + $0x10] sm:$0xff] }
0x30e3   :  { %10293 = vmatpush1.bf16.msra.mxu1 %v10292_v61  ;;  %v7408_v61 = vrot.slane %v8428_v59, %v5759_v7 }
0x30e4   :  { %10330 = vmatprep.subr.bf16.mxu1 %v10747_v11 }
0x31ad   :  { %v9648_v0 = vpop.f32.mrb[72].mxu1 }
0x31ae   :  { %v7152_v27 = vpop.f32.mrb[73].mxu1 }
0x31af   :  { %9655 = vmatprep.mubr.msk.f32.mxu0 %vm4847_vm10, %v7152_v27 }
0x31b0   :  { %9656 = vmatmul.mubr.msk.f32.vlgmr.msra.gmra.mrb[98].mxu0 %vm4847_vm10, %v9648_v0  ;;  %v8414_v0 = vld [vmem:[%s12371_s29 + $0x1] ss:$0 sm:$0xff] }
0x31b1   :  { %9664 = vmatprep.mubr.msk.f32.mxu0 %vm4847_vm10, %v12110_v21  ;;  %10281 = vmatpush3.bf16.msra.mxu0 %v10278_v28 }
0x31b2   :  { %9662 = vmatprep.subr.mxu0 %v8365_v30 }
0x31b5   :  { %9663 = vmatpush3.msra.mxu0 %v8365_v30 }
0x31b6   :  { %10294 = vmatprep.subr.bf16.mxu0 %v10747_v11 }
0x31b8   :  { %9665 = vmatmul.mubr.msk.f32.vlgmr.msra.gmra.mrb[98].mxu0 %vm4847_vm10, %v12108_v33 }
0x31b9   :  { %10296 = vmatpush1.bf16.msra.mxu0 %v10295_v25 }
0x31ba   :  { %10297 = vmatprep.subr.bf16.mxu0 %v10747_v11 }
0x31bd   :  { %10299 = vmatpush1.bf16.msra.mxu0 %v10298_v41 }
0x31be   :  { %10300 = vmatprep.subr.bf16.mxu0 %v10747_v11 }
0x31c1   :  { %10302 = vmatpush1.bf16.msra.mxu0 %v10301_v14 }
0x31c2   :  { %10303 = vmatprep.subr.bf16.mxu0 %v10747_v11 }
0x328b   :  { %v9666_v26 = vpop.f32.mrb[98].mxu0 }
0x328c   :  { %v7328_v58 = vadd.f32 %v9666_v26, %v12002_v10  ;;  %v7318_v60 = vpop.f32.mrb[99].mxu0  ;;  %v8415_v26 = vld [vmem:[%s12373_s14 + $0x1] ss:$0 sm:$0xff] }
0x328d   :  { %v7327_v51 = vadd.f32 %v7318_v60, %v11998_v55 }
0x328e   :  { %v12145_v43 = vadd.f32 %v8411_v12, %v7328_v58 }
0x328f   :  { %v12147_v18 = vadd.f32 %v8411_v12, %v7327_v51 }
0x3290   :  { %v7346_v19 = vsel %vm4492_vm8, %v12145_v43, 0.0 }
0x3291   :  { %7347 = vadd.xlane.f32.xlu1 %v7346_v19  ;;  %v7343_v33 = vsel %vm4488_vm9, %v12147_v18, 0.0  ;;  %v8441_v19 = vld [vmem:[%s11050_s21 + $0xf0] sm:$0xff] }
0x3292   :  { %7344 = vadd.xlane.f32.xlu0 %v7343_v33  ;;  %v8442_v33 = vld [vmem:[%s11050_s21 + $0xf8] sm:$0xff] }
0x331e   :  { %v7348_v21 = vpop.xlane.xlu1 %7347 }
0x331f   :  { %v7350_v10 = vmul.f32 0.020833334, %v7348_v21  ;;  %v7345_v34 = vpop.xlane.xlu0 %7344  ;;  %v10304_v21 = vpack.c.bf16 %v8442_v33, %v8441_v19 }
0x3320   :  { %v7349_v55 = vmul.f32 0.020833334, %v7345_v34  ;;  %v8444_v34 = vld [vmem:[%s11050_s21 + $0x108] sm:$0xff] }
0x3321   :  { %v7352_v36 = vsub.f32 %v12145_v43, %v7350_v10  ;;  %10305 = vmatpush1.bf16.msra.mxu0 %v10304_v21  ;;  %v8443_v10 = vld [vmem:[%s11050_s21 + $0x100] sm:$0xff] }
0x3322   :  { %v7351_v37 = vsub.f32 %v12147_v18, %v7349_v55  ;;  %10306 = vmatprep.subr.bf16.mxu0 %v10747_v11  ;;  %v10307_v55 = vpack.c.bf16 %v8444_v34, %v8443_v10 }
0x3323   :  { %v7354_v39 = vmul.f32 %v7352_v36, %v7352_v36 }
0x3324   :  { %v7353_v32 = vmul.f32 %v7351_v37, %v7351_v37 }
0x3325   :  { %v7358_v52 = vsel %vm4492_vm8, %v7354_v39, 0.0  ;;  %10308 = vmatpush1.bf16.msra.mxu0 %v10307_v55 }
0x3326   :  { %7359 = vadd.xlane.f32.xlu1 %v7358_v52  ;;  %v7355_v31 = vsel %vm4488_vm9, %v7353_v32, 0.0  ;;  %10309 = vmatprep.subr.bf16.mxu0 %v10747_v11  ;;  %v8447_v32 = vld [vmem:[%s11050_s21 + $0x120] sm:$0xff]  ;;  %v8448_v52 = vld [vmem:[%s11050_s21 + $0x128] sm:$0xff] }
0x3327   :  { %7356 = vadd.xlane.f32.xlu0 %v7355_v31  ;;  %v10313_v31 = vpack.c.bf16 %v8448_v52, %v8447_v32 }
0x33b3   :  { %v7360_v8 = vpop.xlane.xlu1 %7359 }
0x33b4   :  { %v7362_v13 = vmul.f32 0.020833334, %v7360_v8  ;;  %v7357_v16 = vpop.xlane.xlu0 %7356 }
0x33b5   :  { %v7361_v17 = vmul.f32 0.020833334, %v7357_v16 }
0x33b6   :  { %v7364_v53 = vadd.f32 1e-05, %v7362_v13 }
0x33b7   :  { %v7363_v24 = vadd.f32 1e-05, %v7361_v17 }
0x33b8   :  { %10628 = vrsqrt.f32 %v7364_v53 }
0x33b9   :  { %10630 = vrsqrt.f32 %v7363_v24 }
0x33c2   :  { %v10629_v35 = vpop.eup %10628 }
0x33c3   :  { %v10631_v28 = vpop.eup %10630  ;;  %v7368_v30 = vmul.f32 %v10629_v35, %v7352_v36  ;;  %v8445_v36 = vld [vmem:[%s11050_s21 + $0x110] sm:$0xff] }
0x33c4   :  { %v7367_v27 = vmul.f32 %v10631_v28, %v7351_v37  ;;  %v8446_v37 = vld [vmem:[%s11050_s21 + $0x118] sm:$0xff]  ;;  %s12376_s21 = sld [smem:[#allocation32_spill]] }
0x33c5   :  { %v7376_v60 = vmul.f32 %v8414_v0, %v7368_v30  ;;  %v10310_v39 = vpack.c.bf16 %v8446_v37, %v8445_v36  ;;  %v8462_v37 = vld [vmem:[%s11055_s17 + $0x1] ss:$0 sm:$0xff]  ;;  %s12378_s17 = sld [smem:[#allocation33_spill]] }
0x33c6   :  { %v7375_v12 = vmul.f32 %v8414_v0, %v7367_v27 }
0x33c7   :  { %v7384_v51 = vadd.f32 %v8415_v26, %v7376_v60  ;;  %10311 = vmatpush1.bf16.msra.mxu0 %v10310_v39 }
0x33c8   :  { %v7383_v58 = vadd.f32 %v8415_v26, %v7375_v12  ;;  %10312 = vmatprep.subr.bf16.mxu0 %v10747_v11 }
0x33ca   :  { %8429 = vmatmul.mubr.msk.f32.vlgmr.msra.gmra.mrb[74].mxu1 %vm4488_vm9, %v7383_v58 }
0x33cb   :  { %7487 = vmatprep.mubr.f32.mxu1 %v10749_v56  ;;  %10314 = vmatpush1.bf16.msra.mxu0 %v10313_v31 }
0x33cc   :  { %10315 = vmatprep.subr.bf16.mxu0 %v10747_v11 }
0x33ce   :  { %8430 = vmatmul.mubr.msk.f32.gmra.mrb[76].mxu1 %vm4488_vm9, %v7384_v51 }
0x33cf   :  { %9671 = vmatprep.mubr.msk.f32.mxu1 %vm10748_vm5, %v10749_v56  ;;  %10317 = vmatpush1.bf16.msra.mxu0 %v10316_v46  ;;  %v7644_v46 = vld [vmem:[%s12376_s21] sm:$0x3] }
0x33d0   :  { %10318 = vmatprep.subr.bf16.mxu0 %v10747_v11 }
0x33d3   :  { %10320 = vmatpush1.bf16.msra.mxu0 %v10319_v49 }
0x33d4   :  { %10321 = vmatprep.subr.bf16.mxu0 %v10747_v11 }
0x33d7   :  { %10323 = vmatpush1.bf16.msra.mxu0 %v10322_v5 }
0x33d8   :  { %10324 = vmatprep.subr.bf16.mxu0 %v10747_v11 }
0x33db   :  { %10326 = vmatpush1.bf16.msra.mxu0 %v10325_v38  ;;  %v7752_v38 = vld [vmem:[%s12377_s24 + $0x8] sm:$0xff] }
0x33dc   :  { %10327 = vmatprep.subr.bf16.mxu0 %v10747_v11  ;;  %v10335_v15 = vpack.c.bf16 %v7752_v38, %v7751_v57 }
0x33df   :  { %10329 = vmatpush1.bf16.msra.mxu0 %v10328_v42  ;;  %v7754_v42 = vld [vmem:[%s12377_s24 + $0x18] sm:$0xff] }
0x33e0   :  { %v10338_v59 = vpack.c.bf16 %v7754_v42, %v7753_v63 }
0x349d   :  { %v7483_v6 = vpop.f32.mrb[74].mxu1 }
0x349e   :  { %v7484_v44 = vadd.f32 %v7483_v6, %v7404_v1  ;;  %v7485_v40 = vpop.f32.mrb[75].mxu1 }
0x349f   :  { %v7486_v25 = vadd.f32 %v7485_v40, %v7408_v61 }
0x34a0   :  { %v8431_v9 = vmul.f32 -1.702, %v7484_v44 }
0x34a1   :  { %v8432_v41 = vmul.f32 -1.702, %v7486_v25  ;;  %v7489_v29 = vpop.f32.mrb[76].mxu1 }
0x34a2   :  { %v7502_v3 = vmul.f32 1.442695, %v8431_v9  ;;  %v7490_v14 = vadd.f32 %v7489_v29, %v7404_v1  ;;  %v7491_v8 = vpop.f32.mrb[77].mxu1  ;;  %v7755_v1 = vld [vmem:[%s12377_s24 + $0x20] sm:$0xff] }
0x34a3   :  { %v7504_v13 = vmul.f32 1.442695, %v8432_v41  ;;  %v7492_v16 = vadd.f32 %v7491_v8, %v7408_v61  ;;  %v7756_v61 = vld [vmem:[%s12377_s24 + $0x28] sm:$0xff] }
0x34a4   :  { %10632 = vpow2.f32 %v7502_v3  ;;  %v8433_v17 = vmul.f32 -1.702, %v7490_v14  ;;  %v10341_v6 = vpack.c.bf16 %v7756_v61, %v7755_v1 }
0x34a5   :  { %10634 = vpow2.f32 %v7504_v13  ;;  %v8434_v53 = vmul.f32 -1.702, %v7492_v16  ;;  %v8466_v13 = vld [vmem:[%s12379_s30] ss:$0 sm:$0xff] }
0x34a6   :  { %v7506_v4 = vmul.f32 1.442695, %v8433_v17  ;;  %v4112_v17 = vstv %s11060_s13  ;;  %s10751_s13 = smov [#allocation3]  }
0x34a7   :  { %v7508_v24 = vmul.f32 1.442695, %v8434_v53  ;;  %s7922_s6 = sshll.u32 %s10751_s13, 4  ;;  %s7923_s6 = int_to_ptr.vmem [resolvable:$true] %s7922_s6 }
0x34a8   :  { %10636 = vpow2.f32 %v7506_v4  ;;  %s10661_s12 = scalar_lea.vmem %s7923_s6, 32  ;;  %p10666_p1 = scmp.lt.s32.totalorder %s7923_s6, %s7923_s6 }
0x34a9   :  { %10638 = vpow2.f32 %v7508_v24  ;;  %p10662_p0 = scmp.ne.s32.totalorder %s7923_s6, %s10661_s12  ;;  %p10667_p2 = scmp.lt.s32.totalorder %s10661_s12, %s10661_s12 }
0x34ab   :  { %p10668_p3 = por %p10667_p2, %p10666_p1 }
0x34ad   :  { %p10669_p4 = pnand %p10668_p3, %p10662_p0 }
0x34ae   :  { %v10633_v62 = vpop.eup %10632 }
0x34af   :  { %v10635_v7 = vpop.eup %10634  ;;  %v7510_v35 = vadd.f32 1.0, %v10633_v62 }
0x34b0   :  { %v7511_v28 = vadd.f32 1.0, %v10635_v7 }
0x34b1   :  { %10640 = vrcp.f32 %v7510_v35 }
0x34b2   :  { %v10637_v0 = vpop.eup %10636  ;;  %10642 = vrcp.f32 %v7511_v28 }
0x34b3   :  { %v10639_v27 = vpop.eup %10638  ;;  %v7512_v30 = vadd.f32 1.0, %v10637_v0 }
0x34b4   :  { %v7513_v26 = vadd.f32 1.0, %v10639_v27 }
0x34b5   :  { %10644 = vrcp.f32 %v7512_v30 }
0x34b6   :  { %10646 = vrcp.f32 %v7513_v26 }
0x34bb   :  { %v10641_v12 = vpop.eup %10640 }
0x34bc   :  { %v10643_v58 = vpop.eup %10642  ;;  %v7522_v51 = vmul.f32 %v10641_v12, %v7484_v44 }
0x34bd   :  { %v7523_v60 = vmul.f32 %v10643_v58, %v7486_v25 }
0x34bf   :  { %v10645_v19 = vpop.eup %10644  ;;  %8459 = vmatprep.mubr.msk.f32.mxu0 %vm4238_vm6, %v7523_v60 }
0x34c0   :  { %v10647_v33 = vpop.eup %10646  ;;  %7622 = vmatmul.mubr.f32.vlgmr.msra.gmra.mrb[100].mxu0 %v7522_v51  ;;  %v7524_v10 = vmul.f32 %v10645_v19, %v7490_v14  ;;  %v8465_v14 = vld [vmem:[%s12378_s17] ss:$0 sm:$0xff] }
0x34c1   :  { %v7525_v21 = vmul.f32 %v10647_v33, %v7492_v16 }
0x34c3   :  { %8460 = vmatprep.mubr.msk.f32.mxu0 %vm4238_vm6, %v7525_v21  ;;  %vm7914_vm6 = vcmask 25600  }
0x34c4   :  { %7627 = vmatmul.mubr.f32.gmra.mrb[102].mxu0 %v7524_v10 }
0x3593   :  { %v7623_v34 = vpop.f32.mrb[100].mxu0 }
0x3594   :  { %v7625_v55 = vpop.f32.mrb[101].mxu0  ;;  %v7632_v36 = vadd.f32 %v7623_v34, %v12147_v18 }
0x3596   :  { %v7642_v31 = vadd.f32 %v8462_v37, %v7632_v36 }
0x3597   :  { %v7628_v39 = vpop.f32.mrb[102].mxu0 }
0x3598   :  { %v7633_v32 = vadd.f32 %v7628_v39, %v12145_v43  ;;  %v7630_v52 = vpop.f32.mrb[103].mxu0  ;;  %v4103_v43 = vmul.f32 %v11708_v22, %v11708_v22 }
0x359a   :  { %v7643_v47 = vadd.f32 %v8462_v37, %v7633_v32  ;;  %v4105_v20 = vsel %vm4104_vm3, %v4103_v43, 0.0 }
0x359c   :  { %v10331_v45 = vpack.c.bf16 %v7643_v47, %v7642_v31 }
0x359e   :  { %10333 = vmatpush3.bf16.msk.msra.mxu1 %vm11797_vm14, %v10331_v45 }
0x359f   :  { %10334 = vmatprep.subr.bf16.mxu1 %v10747_v11 }
0x35a1   :  { %9672 = vmatmul.mubr.msk.f32.vlgmr.msra.gmra.mrb[78].mxu1 %vm4939_vm1, %v7644_v46 }
0x35a2   :  { %9686 = vmatprep.mubr.msk.f32.mxu1 %vm10748_vm5, %v10749_v56  ;;  %10336 = vmatpush3.bf16.msra.mxu1 %v10335_v15 }
0x35a3   :  { %10337 = vmatprep.subr.bf16.mxu1 %v10747_v11 }
0x35a6   :  { %10339 = vmatpush3.bf16.msra.mxu1 %v10338_v59 }
0x35a7   :  { %10340 = vmatprep.subr.bf16.mxu1 %v10747_v11 }
0x35aa   :  { %10342 = vmatpush3.bf16.msra.mxu1 %v10341_v6 }
0x35ab   :  { %9689 = vmatprep.subr.mxu1 %v10749_v56 }
0x3674   :  { %v7717_v18 = vpop.f32.mrb[78].mxu1 }
0x3675   :  { %v7724_v48 = vsel %vm7723_vm2, %v7717_v18, 0.0  ;;  %v9673_v23 = vpop.f32.mrb[79].mxu1 }
0x3676   :  { %7725 = vadd.xlane.f32.xlu0 %v7724_v48 }
0x367a   :  { %4106 = vadd.xlane.f32.xlu0 %v4105_v20 }
0x3703   :  { %v7726_v49 = vpop.xlane.xlu0 %7725 }
0x3704   :  { %v7727_v50 = vmul.f32 0.020833334, %v7726_v49 }
0x3706   :  { %v7728_v2 = vsub.f32 %v7717_v18, %v7727_v50 }
0x3707   :  { %v4107_v44 = vpop.xlane.xlu0 %4106 }
0x3708   :  { %v7729_v5 = vmul.f32 %v7728_v2, %v7728_v2  ;;  %v4108_v40 = vadd.f32 1e-12, %v4107_v44 }
0x370a   :  { %v7730_v54 = vsel %vm7723_vm2, %v7729_v5, 0.0  ;;  %10648 = vrsqrt.f32 %v4108_v40 }
0x370b   :  { %7731 = vadd.xlane.f32.xlu1 %v7730_v54 }
0x3714   :  { %v10649_v29 = vpop.eup %10648 }
0x3715   :  { %v4110_v11 = vmul.f32 %v10649_v29, %v11708_v22 }
0x3717   :  { %v4113_v4 = vmul.f32 %v4112_v17, %v4110_v11 }
0x3798   :  { %v7732_v25 = vpop.xlane.xlu1 %7731 }
0x3799   :  { %v7733_v9 = vmul.f32 0.020833334, %v7732_v25 }
0x379b   :  { %v7734_v41 = vadd.f32 1e-05, %v7733_v9 }
0x379d   :  { %10650 = vrsqrt.f32 %v7734_v41 }
0x37a7   :  { %v10651_v3 = vpop.eup %10650 }
0x37a8   :  { %v7736_v8 = vmul.f32 %v10651_v3, %v7728_v2 }
0x37aa   :  { %v7743_v16 = vmul.f32 %v8465_v14, %v7736_v8 }
0x37ac   :  { %v7750_v53 = vadd.f32 %v8466_v13, %v7743_v16 }
0x37ae   :  { %9687 = vmatmul.mubr.msk.f32.vlgmr.msra.gmra.mrb[80].mxu1 %vm4488_vm9, %v7750_v53 }
0x37af   :  { %9690 = vmatpush3.xpose.msk.msra.mxu1 %vm270_vm0, %v4113_v4  ;;  %9691 = vmatprep.mubr.msk.f32.mxu1 %vm10748_vm5, %v10749_v56 }
0x3881   :  { %v7826_v24 = vpop.f32.mrb[80].mxu1 }
0x3882   :  { %v7830_v62 = vmul.f32 %v7826_v24, %v7826_v24  ;;  %v9688_v7 = vpop.f32.mrb[81].mxu1 }
0x3884   :  { %v7832_v35 = vsel %vm7831_vm4, %v7830_v62, 0.0 }
0x3885   :  { %7833 = vadd.xlane.f32.xlu1 %v7832_v35 }
0x3912   :  { %v7834_v28 = vpop.xlane.xlu1 %7833 }
0x3913   :  { %v7835_v22 = vadd.f32 1e-12, %v7834_v28 }
0x3915   :  { %10652 = vrsqrt.f32 %v7835_v22 }
0x391f   :  { %v10653_v0 = vpop.eup %10652 }
0x3920   :  { %v7837_v27 = vmul.f32 %v10653_v0, %v7826_v24 }
0x3922   :  { %9692 = vmatmul.mubr.msk.f32.vlgmr.msra.gmra.mrb[82].mxu1 %vm270_vm0, %v7837_v27 }
0x39f5   :  { %v7910_v30 = vpop.f32.mrb[82].mxu1 }
0x39f6   :  { %7915 = vst.msk [vmem:[#allocation3] sm:$0x3] %vm7914_vm6, %v7910_v30  ;;  %v9693_v56 = vpop.f32.mrb[83].mxu1 }
0x39f7   :  { %10672 = shalt.err (!%p10669_p4)
}
0x39f8   :  { %s10673_s20 = scalar_lea.hbm %s11065_s3, 32 }
0x39f9   :  { %p10674_p5 = scmp.ne.s32.totalorder %s11065_s3, %s10673_s20  ;;  %p10677_p6 = scmp.lt.u32.totalorder %s10673_s20, %s11065_s3 }
0x39fb   :  { %p10679_p7 = pnand %p10677_p6, %p10674_p5 }
0x39fd   :  { %10682 = shalt.err (!%p10679_p7)
}
0x39fe   :  { %7925 = dma.vmem_to_hbm [thread:$0]  %s7923_s6, 32, %s11065_s3, [#allocation4]  }
0x39ff   :  { %10683 = dma.done.wait [#allocation4], 32  }
0x3a00   :  { %10684 = vsyncadd [#allocation4], 4294967264 }
0x3a01   :  { %7929 = vsyncpa [#allocation4], 1 }

</bundles_post_ra>
